<compile_context>
chip_gen: v6e
topology: v6e:2x2x1
jax: 0.10.0
libtpu: 0.0.40
codegen_flags: <defaults>
</compile_context>

<pallas_src>
import math

import numpy as np
import jax
import jax.numpy as jnp
from jax.experimental import pallas as pl
from jax.experimental.pallas import tpu as pltpu

BN_EPS = 1e-5
BN_SCALE = 1.0 / math.sqrt(1.0 + BN_EPS)       # eval-mode BatchNorm2d, default stats

SKEW = -0.5
C1 = math.exp(math.lgamma(1.0 - SKEW) - 1.0)
C2 = math.exp(math.lgamma(1.0 - 2.0 * SKEW)) - math.exp(math.lgamma(1.0 - SKEW)) ** 2

PAD = 2        # border width of the in-kernel padded scratch buffers (max conv pad)

# ----------------------------------------------------------------------------
# Static network description.
#   Tap layers  : stride-1 convs run as unrolled shifted-slice MACs (VPU).
#   MM layers   : k=3 stride-3 conv / conv-transpose run as 3 matmul pairs.
# (name, kernel size, output spatial size, has BN+ReLU after)
# ----------------------------------------------------------------------------
TAP_LAYERS = (
    ("e1", 3, 81, True),      # Conv2d 3x3 s1 p1           (encoder net1)
    ("d1b", 5, 27, True),     # ConvTranspose2d 5x5 s1 p2  (decoder net1)
    ("d1c", 3, 27, True),
    ("d2a", 5, 27, True),     # decoder net2
    ("d2b", 3, 27, True),
    ("d2c", 5, 27, True),
    ("d3a", 5, 27, True),     # decoder net3
    ("d3c", 5, 81, False),    # no BN / no ReLU
    ("d3d", 3, 81, False),
)
MM_LAYERS = ("e2", "e3", "e4", "d1a", "d3b")    # all followed by BN + ReLU

W_OFF = {}
_off = 0
for _name, _k, _s, _bn in TAP_LAYERS:
    W_OFF[_name] = _off
    _off += _k * _k + 1                      # k*k weights followed by the bias
B_OFF = {}
for _name in MM_LAYERS:
    B_OFF[_name] = _off
    _off += 1
WVEC_LEN = _off


def _selection(h_out):
    """D[r] in {0,1}^(h_out, 3*h_out) with D[r][i, 3*i + r] = 1."""
    d = np.zeros((3, h_out, 3 * h_out), np.float32)
    idx = np.arange(h_out)
    for r in range(3):
        d[r, idx, 3 * idx + r] = 1.0
    return d


D27_NP = _selection(27)                       # (3, 27, 81): 81 -> 27 subsampling
D9_NP = _selection(9)                         # (3,  9, 27): 27 ->  9
U27_NP = np.transpose(D9_NP, (0, 2, 1))       # (3, 27,  9):  9 -> 27 polyphase up
U81_NP = np.transpose(D27_NP, (0, 2, 1))      # (3, 81, 27): 27 -> 81 polyphase up


# ----------------------------------------------------------------------------
# Fused Pallas kernel: full Autoencoder forward for one sample.
# ----------------------------------------------------------------------------
def _fused_kernel(w_ref, x_ref, eps_ref, circ_ref,
                  d27_ref, d9_ref, u27_ref, u81_ref,
                  wce2_ref, wce3_ref, wce4_ref, fd1a_ref, fd3b_ref,
                  o_ref, pb85, pb31):
    # Zero the padded scratch buffers; their (never-written) borders supply the
    # zero padding of every stride-1 conv.
    pb85[...] = jnp.zeros(pb85.shape, jnp.float32)
    pb31[...] = jnp.zeros(pb31.shape, jnp.float32)

    def same_conv(pbuf, x, name, k, s, relu):
        """Stride-1 'same' kxk conv: unrolled shifted-slice MAC on the VPU."""
        p = (k - 1) // 2
        off = PAD - p
        pbuf[PAD:PAD + s, PAD:PAD + s] = x          # interior; border stays zero
        base = W_OFF[name]
        acc = None
        t = 0
        for di in range(k):
            for dj in range(k):
                tap = pbuf[off + di:off + di + s, off + dj:off + dj + s]
                term = w_ref[base + t] * tap
                acc = term if acc is None else acc + term
                t += 1
        acc = acc + w_ref[base + k * k]             # bias (BN already folded)
        return jnp.maximum(acc, 0.0) if relu else acc

    def resample3(x, l_ref, r_ref, name, relu=True):
        """k=3, stride-3 conv (down) or transposed conv (polyphase up):
           out = sum_r L[r] @ (x @ R[r]) + bias  -- 3 small matmul pairs."""
        acc = None
        for r in range(3):
            t = jnp.dot(x, r_ref[r], preferred_element_type=jnp.float32)
            t = jnp.dot(l_ref[r], t, preferred_element_type=jnp.float32)
            acc = t if acc is None else acc + t
        acc = acc + w_ref[B_OFF[name]]
        return jnp.maximum(acc, 0.0) if relu else acc

    x = x_ref[0]                                    # (81, 81)
    eps = eps_ref[0]                                # (9, 9)

    # ------------------------------ Encoder ------------------------------
    h1 = same_conv(pb85, x, "e1", 3, 81, True)      # BN.Drop.Conv.BN.ReLU (folded)
    hx = h1 + x                                     # residual fed to net2
    h2 = resample3(hx, d27_ref, wce2_ref, "e2")     # 81 -> 27
    mu = resample3(h2, d9_ref, wce3_ref, "e3")      # 27 -> 9
    s4 = resample3(h2, d9_ref, wce4_ref, "e4")      # 27 -> 9
    sigma = jnp.exp(s4)
    z = (mu + (C1 / SKEW) * sigma
         + (C2 / (SKEW * SKEW)) * (sigma * sigma) * eps)

    # ------------------------------ Decoder ------------------------------
    t = resample3(z, u27_ref, fd1a_ref, "d1a")      # 9 -> 27 (polyphase)
    t = same_conv(pb31, t, "d1b", 5, 27, True)
    zy = same_conv(pb31, t, "d1c", 3, 27, True)
    t = same_conv(pb31, zy, "d2a", 5, 27, True)
    t = same_conv(pb31, t, "d2b", 3, 27, True)
    zy1 = same_conv(pb31, t, "d2c", 5, 27, True)
    t = same_conv(pb31, zy + zy1, "d3a", 5, 27, True)
    # AdaptiveAvgPool2d((27, 27)) on a 27x27 map: identity
    t = resample3(t, u81_ref, fd3b_ref, "d3b")      # 27 -> 81 (polyphase)
    t = same_conv(pb85, t, "d3c", 5, 81, False)     # Dropout2d eval: identity
    t = same_conv(pb85, t, "d3d", 3, 81, False)
    o_ref[0] = t * circ_ref[...]                    # circ broadcast along width


# ----------------------------------------------------------------------------
# Wrapper-side operand preparation (tiny; folds BN, flips kernels, builds the
# SMEM weight vector and the stride-3 matmul matrices).
# ----------------------------------------------------------------------------
def _pack_operands(params):
    d27 = jnp.asarray(D27_NP)
    d9 = jnp.asarray(D9_NP)
    u27 = jnp.asarray(U27_NP)
    u81 = jnp.asarray(U81_NP)

    pieces = []
    for name, k, _s, has_bn in TAP_LAYERS:
        w, b = params[name]
        if name != "e1":
            w = w[::-1, ::-1]            # ConvTranspose (s=1) == conv w/ flipped kernel
        w_scale = BN_SCALE if has_bn else 1.0
        if name == "e1":
            w_scale *= BN_SCALE          # the BatchNorm *before* the conv in net1
        b_scale = BN_SCALE if has_bn else 1.0
        pieces.append((w * w_scale).reshape(-1))
        pieces.append(jnp.reshape(b * b_scale, (1,)))
    for name in MM_LAYERS:               # all five have a BN + ReLU after them
        _w, b = params[name]
        pieces.append(jnp.reshape(b * BN_SCALE, (1,)))
    wvec = jnp.concatenate(pieces).astype(jnp.float32)
    assert wvec.shape[0] == WVEC_LEN

    def stride3_matrix(w, basis):        # sum_j w[i, j] * basis[j], BN folded
        return (jnp.einsum("ij,jxy->ixy", w, basis) * BN_SCALE).astype(jnp.float32)

    wce2 = stride3_matrix(params["e2"][0], u81)     # (3, 81, 27)
    wce3 = stride3_matrix(params["e3"][0], u27)     # (3, 27, 9)
    wce4 = stride3_matrix(params["e4"][0], u27)     # (3, 27, 9)
    fd1a = stride3_matrix(params["d1a"][0], d9)     # (3, 9, 27)
    fd3b = stride3_matrix(params["d3b"][0], d27)    # (3, 27, 81)

    circ = params["circ"].reshape(1, 81).astype(jnp.float32)
    return wvec, circ, (d27, d9, u27, u81, wce2, wce3, wce4, fd1a, fd3b)


def _const_spec(shape):
    nd = len(shape)
    return pl.BlockSpec(shape, lambda i, _nd=nd: (0,) * _nd)


# ----------------------------------------------------------------------------
# Full forward pass (Autoencoder.forward)
# ----------------------------------------------------------------------------
def autoencoder_forward(params, x, eps_key):
    n = x.shape[0]
    xs = x[:, 0, :, :].astype(jnp.float32)                       # (N, 81, 81)
    eps = jax.random.normal(eps_key, (n, 9, 9), jnp.float32)     # replaces N.sample
    wvec, circ, mats = _pack_operands(params)
    d27, d9, u27, u81, wce2, wce3, wce4, fd1a, fd3b = mats

    out = pl.pallas_call(
        _fused_kernel,
        out_shape=jax.ShapeDtypeStruct((n, 81, 81), jnp.float32),
        grid=(n,),
        in_specs=[
            pl.BlockSpec(memory_space=pltpu.MemorySpace.SMEM),    # weights + biases
            pl.BlockSpec((1, 81, 81), lambda i: (i, 0, 0)),       # x
            pl.BlockSpec((1, 9, 9), lambda i: (i, 0, 0)),         # eps
            _const_spec((1, 81)),                                 # circ
            _const_spec((3, 27, 81)),                             # D27
            _const_spec((3, 9, 27)),                              # D9
            _const_spec((3, 27, 9)),                              # U27
            _const_spec((3, 81, 27)),                             # U81
            _const_spec((3, 81, 27)),                             # Wc_e2
            _const_spec((3, 27, 9)),                              # Wc_e3
            _const_spec((3, 27, 9)),                              # Wc_e4
            _const_spec((3, 9, 27)),                              # F_d1a
            _const_spec((3, 27, 81)),                             # F_d3b
        ],
        out_specs=pl.BlockSpec((1, 81, 81), lambda i: (i, 0, 0)),
        scratch_shapes=[
            pltpu.VMEM((81 + 2 * PAD, 81 + 2 * PAD), jnp.float32),   # padded 81x81
            pltpu.VMEM((27 + 2 * PAD, 27 + 2 * PAD), jnp.float32),   # padded 27x27
        ],
        compiler_params=pltpu.CompilerParams(
            dimension_semantics=("parallel",)),      # batch across cores on v7x
    )(wvec, xs, eps, circ, d27, d9, u27, u81, wce2, wce3, wce4, fd1a, fd3b)
    return out[:, None, :, :]                                     # NCHW (N,1,81,81)


# ----------------------------------------------------------------------------
# Parameters (deterministic init, PyTorch-default-like U(-1/k, 1/k))
# ----------------------------------------------------------------------------
def init_params(key):
    specs = {"e1": 3, "e2": 3, "e3": 3, "e4": 3,
             "d1a": 3, "d1b": 5, "d1c": 3,
             "d2a": 5, "d2b": 3, "d2c": 5,
             "d3a": 5, "d3b": 3, "d3c": 5, "d3d": 3}
    keys = jax.random.split(key, 2 * len(specs))
    params = {}
    for i, (name, k) in enumerate(specs.items()):
        bound = 1.0 / k                               # 1/sqrt(fan_in), fan_in = k*k
        params[name] = (
            jax.random.uniform(keys[2 * i], (k, k), jnp.float32, -bound, bound),
            jax.random.uniform(keys[2 * i + 1], (), jnp.float32, -bound, bound),
        )
    params["circ"] = jnp.ones((81,), jnp.float32)     # nn.Parameter(torch.ones(81))
    return params


if __name__ == "__main__":
    key = jax.random.PRNGKey(0)
    pkey, xkey, ekey = jax.random.split(key, 3)
    params = init_params(pkey)
    x = jax.random.normal(xkey, (2, 1, 81, 81), jnp.float32)

    fwd = jax.jit(lambda p, xx: autoencoder_forward(p, xx, ekey))
    y = fwd(params, x)
    jax.block_until_ready(y)
    assert y.shape == (2, 1, 81, 81), y.shape
    assert bool(jnp.all(jnp.isfinite(y)))
    print("KERNEL_OK")
</pallas_src>

<mosaic_0001>
module attributes {stable_mosaic.version = 11 : i64} {
  func.func @_fused_kernel(%arg0: i32, %arg1: memref<175xf32, #tpu.memory_space<smem>>, %arg2: memref<1x81x81xf32, #tpu.memory_space<vmem>>, %arg3: memref<1x9x9xf32, #tpu.memory_space<vmem>>, %arg4: memref<1x81xf32, #tpu.memory_space<vmem>>, %arg5: memref<3x27x81xf32, #tpu.memory_space<vmem>>, %arg6: memref<3x9x27xf32, #tpu.memory_space<vmem>>, %arg7: memref<3x27x9xf32, #tpu.memory_space<vmem>>, %arg8: memref<3x81x27xf32, #tpu.memory_space<vmem>>, %arg9: memref<3x81x27xf32, #tpu.memory_space<vmem>>, %arg10: memref<3x27x9xf32, #tpu.memory_space<vmem>>, %arg11: memref<3x27x9xf32, #tpu.memory_space<vmem>>, %arg12: memref<3x9x27xf32, #tpu.memory_space<vmem>>, %arg13: memref<3x27x81xf32, #tpu.memory_space<vmem>>, %arg14: memref<1x81x81xf32, #tpu.memory_space<vmem>>, %arg15: memref<85x85xf32, #tpu.memory_space<vmem>>, %arg16: memref<31x31xf32, #tpu.memory_space<vmem>>) attributes {dimension_semantics = [#tpu.dimension_semantics<parallel>], iteration_bounds = array<i64: 2>, scalar_prefetch = 0 : i64, scratch_operands = 2 : i64, tpu.core_type = #tpu.core_type<tc>, window_params = [{transform_indices = @transform_0, window_bounds = array<i64: 175>}, {transform_indices = @transform_1, window_bounds = array<i64: 1, 81, 81>}, {transform_indices = @transform_2, window_bounds = array<i64: 1, 9, 9>}, {pipeline_mode = #tpu.pipeline_mode<synchronous>, transform_indices = @transform_3, window_bounds = array<i64: 1, 81>}, {pipeline_mode = #tpu.pipeline_mode<synchronous>, transform_indices = @transform_4, window_bounds = array<i64: 3, 27, 81>}, {pipeline_mode = #tpu.pipeline_mode<synchronous>, transform_indices = @transform_5, window_bounds = array<i64: 3, 9, 27>}, {pipeline_mode = #tpu.pipeline_mode<synchronous>, transform_indices = @transform_6, window_bounds = array<i64: 3, 27, 9>}, {pipeline_mode = #tpu.pipeline_mode<synchronous>, transform_indices = @transform_7, window_bounds = array<i64: 3, 81, 27>}, {pipeline_mode = #tpu.pipeline_mode<synchronous>, transform_indices = @transform_8, window_bounds = array<i64: 3, 81, 27>}, {pipeline_mode = #tpu.pipeline_mode<synchronous>, transform_indices = @transform_9, window_bounds = array<i64: 3, 27, 9>}, {pipeline_mode = #tpu.pipeline_mode<synchronous>, transform_indices = @transform_10, window_bounds = array<i64: 3, 27, 9>}, {pipeline_mode = #tpu.pipeline_mode<synchronous>, transform_indices = @transform_11, window_bounds = array<i64: 3, 9, 27>}, {pipeline_mode = #tpu.pipeline_mode<synchronous>, transform_indices = @transform_12, window_bounds = array<i64: 3, 27, 81>}, {transform_indices = @transform_13, window_bounds = array<i64: 1, 81, 81>}]} {
    %cst = arith.constant 0.000000e+00 : f32
    %0 = vector.broadcast %cst : f32 to vector<85x85xf32>
    %c0 = arith.constant 0 : index
    %c0_0 = arith.constant 0 : index
    %1 = vector.load %arg15[%c0, %c0_0] : memref<85x85xf32, #tpu.memory_space<vmem>>, vector<85x85xf32>
    tpu.vector_store %arg15[%c0, %c0_0], %0 {strides = array<i32>} : memref<85x85xf32, #tpu.memory_space<vmem>>, vector<85x85xf32>,
    %cst_1 = arith.constant 0.000000e+00 : f32
    %2 = vector.broadcast %cst_1 : f32 to vector<31x31xf32>
    %c0_2 = arith.constant 0 : index
    %c0_3 = arith.constant 0 : index
    %3 = vector.load %arg16[%c0_2, %c0_3] : memref<31x31xf32, #tpu.memory_space<vmem>>, vector<31x31xf32>
    tpu.vector_store %arg16[%c0_2, %c0_3], %2 {strides = array<i32>} : memref<31x31xf32, #tpu.memory_space<vmem>>, vector<31x31xf32>,
    %c0_4 = arith.constant 0 : index
    %c0_5 = arith.constant 0 : index
    %c0_6 = arith.constant 0 : index
    %4 = vector.load %arg2[%c0_4, %c0_5, %c0_6] : memref<1x81x81xf32, #tpu.memory_space<vmem>>, vector<1x81x81xf32>
    %5 = vector.shape_cast %4 : vector<1x81x81xf32> to vector<81x81xf32>
    %c0_7 = arith.constant 0 : index
    %c0_8 = arith.constant 0 : index
    %c0_9 = arith.constant 0 : index
    %6 = vector.load %arg3[%c0_7, %c0_8, %c0_9] : memref<1x9x9xf32, #tpu.memory_space<vmem>>, vector<1x9x9xf32>
    %7 = vector.shape_cast %6 : vector<1x9x9xf32> to vector<9x9xf32>
    %c2 = arith.constant 2 : index
    %c2_10 = arith.constant 2 : index
    %8 = vector.load %arg15[%c2, %c2_10] : memref<85x85xf32, #tpu.memory_space<vmem>>, vector<81x81xf32>
    tpu.vector_store %arg15[%c2, %c2_10], %5 {strides = array<i32>} : memref<85x85xf32, #tpu.memory_space<vmem>>, vector<81x81xf32>,
    %c1 = arith.constant 1 : index
    %c1_11 = arith.constant 1 : index
    %9 = vector.load %arg15[%c1, %c1_11] : memref<85x85xf32, #tpu.memory_space<vmem>>, vector<81x81xf32>
    %c0_12 = arith.constant 0 : index
    %10 = memref.load %arg1[%c0_12] : memref<175xf32, #tpu.memory_space<smem>>
    %11 = vector.broadcast %10 : f32 to vector<81x81xf32>
    %12 = arith.mulf %11, %9 : vector<81x81xf32>
    %c1_13 = arith.constant 1 : index
    %c2_14 = arith.constant 2 : index
    %13 = vector.load %arg15[%c1_13, %c2_14] : memref<85x85xf32, #tpu.memory_space<vmem>>, vector<81x81xf32>
    %c1_15 = arith.constant 1 : index
    %14 = memref.load %arg1[%c1_15] : memref<175xf32, #tpu.memory_space<smem>>
    %15 = vector.broadcast %14 : f32 to vector<81x81xf32>
    %16 = arith.mulf %15, %13 : vector<81x81xf32>
    %17 = arith.addf %12, %16 : vector<81x81xf32>
    %c1_16 = arith.constant 1 : index
    %c3 = arith.constant 3 : index
    %18 = vector.load %arg15[%c1_16, %c3] : memref<85x85xf32, #tpu.memory_space<vmem>>, vector<81x81xf32>
    %c2_17 = arith.constant 2 : index
    %19 = memref.load %arg1[%c2_17] : memref<175xf32, #tpu.memory_space<smem>>
    %20 = vector.broadcast %19 : f32 to vector<81x81xf32>
    %21 = arith.mulf %20, %18 : vector<81x81xf32>
    %22 = arith.addf %17, %21 : vector<81x81xf32>
    %c2_18 = arith.constant 2 : index
    %c1_19 = arith.constant 1 : index
    %23 = vector.load %arg15[%c2_18, %c1_19] : memref<85x85xf32, #tpu.memory_space<vmem>>, vector<81x81xf32>
    %c3_20 = arith.constant 3 : index
    %24 = memref.load %arg1[%c3_20] : memref<175xf32, #tpu.memory_space<smem>>
    %25 = vector.broadcast %24 : f32 to vector<81x81xf32>
    %26 = arith.mulf %25, %23 : vector<81x81xf32>
    %27 = arith.addf %22, %26 : vector<81x81xf32>
    %c2_21 = arith.constant 2 : index
    %c2_22 = arith.constant 2 : index
    %28 = vector.load %arg15[%c2_21, %c2_22] : memref<85x85xf32, #tpu.memory_space<vmem>>, vector<81x81xf32>
    %c4 = arith.constant 4 : index
    %29 = memref.load %arg1[%c4] : memref<175xf32, #tpu.memory_space<smem>>
    %30 = vector.broadcast %29 : f32 to vector<81x81xf32>
    %31 = arith.mulf %30, %28 : vector<81x81xf32>
    %32 = arith.addf %27, %31 : vector<81x81xf32>
    %c2_23 = arith.constant 2 : index
    %c3_24 = arith.constant 3 : index
    %33 = vector.load %arg15[%c2_23, %c3_24] : memref<85x85xf32, #tpu.memory_space<vmem>>, vector<81x81xf32>
    %c5 = arith.constant 5 : index
    %34 = memref.load %arg1[%c5] : memref<175xf32, #tpu.memory_space<smem>>
    %35 = vector.broadcast %34 : f32 to vector<81x81xf32>
    %36 = arith.mulf %35, %33 : vector<81x81xf32>
    %37 = arith.addf %32, %36 : vector<81x81xf32>
    %c3_25 = arith.constant 3 : index
    %c1_26 = arith.constant 1 : index
    %38 = vector.load %arg15[%c3_25, %c1_26] : memref<85x85xf32, #tpu.memory_space<vmem>>, vector<81x81xf32>
    %c6 = arith.constant 6 : index
    %39 = memref.load %arg1[%c6] : memref<175xf32, #tpu.memory_space<smem>>
    %40 = vector.broadcast %39 : f32 to vector<81x81xf32>
    %41 = arith.mulf %40, %38 : vector<81x81xf32>
    %42 = arith.addf %37, %41 : vector<81x81xf32>
    %c3_27 = arith.constant 3 : index
    %c2_28 = arith.constant 2 : index
    %43 = vector.load %arg15[%c3_27, %c2_28] : memref<85x85xf32, #tpu.memory_space<vmem>>, vector<81x81xf32>
    %c7 = arith.constant 7 : index
    %44 = memref.load %arg1[%c7] : memref<175xf32, #tpu.memory_space<smem>>
    %45 = vector.broadcast %44 : f32 to vector<81x81xf32>
    %46 = arith.mulf %45, %43 : vector<81x81xf32>
    %47 = arith.addf %42, %46 : vector<81x81xf32>
    %c3_29 = arith.constant 3 : index
    %c3_30 = arith.constant 3 : index
    %48 = vector.load %arg15[%c3_29, %c3_30] : memref<85x85xf32, #tpu.memory_space<vmem>>, vector<81x81xf32>
    %c8 = arith.constant 8 : index
    %49 = memref.load %arg1[%c8] : memref<175xf32, #tpu.memory_space<smem>>
    %50 = vector.broadcast %49 : f32 to vector<81x81xf32>
    %51 = arith.mulf %50, %48 : vector<81x81xf32>
    %52 = arith.addf %47, %51 : vector<81x81xf32>
    %c9 = arith.constant 9 : index
    %53 = memref.load %arg1[%c9] : memref<175xf32, #tpu.memory_space<smem>>
    %54 = vector.broadcast %53 : f32 to vector<81x81xf32>
    %55 = arith.addf %52, %54 : vector<81x81xf32>
    %cst_31 = arith.constant 0.000000e+00 : f32
    %56 = vector.broadcast %cst_31 : f32 to vector<81x81xf32>
    %57 = arith.maximumf %55, %56 : vector<81x81xf32>
    %58 = arith.addf %57, %5 : vector<81x81xf32>
    %c0_32 = arith.constant 0 : index
    %c0_33 = arith.constant 0 : index
    %c0_34 = arith.constant 0 : index
    %59 = vector.load %arg9[%c0_32, %c0_33, %c0_34] : memref<3x81x27xf32, #tpu.memory_space<vmem>>, vector<1x81x27xf32>
    %60 = vector.shape_cast %59 : vector<1x81x27xf32> to vector<81x27xf32>
    %cst_35 = arith.constant dense<0.000000e+00> : vector<81x27xf32>
    %61 = tpu.matmul %58, %60, %cst_35 {dimension_numbers = #tpu.dot_dimension_numbers<[1], [0], [0], [1], [0, 0, 1, 1], [], []>} : vector<81x81xf32>, vector<81x27xf32>, vector<81x27xf32> -> vector<81x27xf32>
    %c0_36 = arith.constant 0 : index
    %c0_37 = arith.constant 0 : index
    %c0_38 = arith.constant 0 : index
    %62 = vector.load %arg5[%c0_36, %c0_37, %c0_38] : memref<3x27x81xf32, #tpu.memory_space<vmem>>, vector<1x27x81xf32>
    %63 = vector.shape_cast %62 : vector<1x27x81xf32> to vector<27x81xf32>
    %cst_39 = arith.constant dense<0.000000e+00> : vector<27x27xf32>
    %64 = tpu.matmul %63, %61, %cst_39 {dimension_numbers = #tpu.dot_dimension_numbers<[1], [0], [0], [1], [0, 0, 1, 1], [], []>} : vector<27x81xf32>, vector<81x27xf32>, vector<27x27xf32> -> vector<27x27xf32>
    %c1_40 = arith.constant 1 : index
    %c0_41 = arith.constant 0 : index
    %c0_42 = arith.constant 0 : index
    %65 = vector.load %arg9[%c1_40, %c0_41, %c0_42] : memref<3x81x27xf32, #tpu.memory_space<vmem>>, vector<1x81x27xf32>
    %66 = vector.shape_cast %65 : vector<1x81x27xf32> to vector<81x27xf32>
    %cst_43 = arith.constant dense<0.000000e+00> : vector<81x27xf32>
    %67 = tpu.matmul %58, %66, %cst_43 {dimension_numbers = #tpu.dot_dimension_numbers<[1], [0], [0], [1], [0, 0, 1, 1], [], []>} : vector<81x81xf32>, vector<81x27xf32>, vector<81x27xf32> -> vector<81x27xf32>
    %c1_44 = arith.constant 1 : index
    %c0_45 = arith.constant 0 : index
    %c0_46 = arith.constant 0 : index
    %68 = vector.load %arg5[%c1_44, %c0_45, %c0_46] : memref<3x27x81xf32, #tpu.memory_space<vmem>>, vector<1x27x81xf32>
    %69 = vector.shape_cast %68 : vector<1x27x81xf32> to vector<27x81xf32>
    %cst_47 = arith.constant dense<0.000000e+00> : vector<27x27xf32>
    %70 = tpu.matmul %69, %67, %cst_47 {dimension_numbers = #tpu.dot_dimension_numbers<[1], [0], [0], [1], [0, 0, 1, 1], [], []>} : vector<27x81xf32>, vector<81x27xf32>, vector<27x27xf32> -> vector<27x27xf32>
    %71 = arith.addf %64, %70 : vector<27x27xf32>
    %c2_48 = arith.constant 2 : index
    %c0_49 = arith.constant 0 : index
    %c0_50 = arith.constant 0 : index
    %72 = vector.load %arg9[%c2_48, %c0_49, %c0_50] : memref<3x81x27xf32, #tpu.memory_space<vmem>>, vector<1x81x27xf32>
    %73 = vector.shape_cast %72 : vector<1x81x27xf32> to vector<81x27xf32>
    %cst_51 = arith.constant dense<0.000000e+00> : vector<81x27xf32>
    %74 = tpu.matmul %58, %73, %cst_51 {dimension_numbers = #tpu.dot_dimension_numbers<[1], [0], [0], [1], [0, 0, 1, 1], [], []>} : vector<81x81xf32>, vector<81x27xf32>, vector<81x27xf32> -> vector<81x27xf32>
    %c2_52 = arith.constant 2 : index
    %c0_53 = arith.constant 0 : index
    %c0_54 = arith.constant 0 : index
    %75 = vector.load %arg5[%c2_52, %c0_53, %c0_54] : memref<3x27x81xf32, #tpu.memory_space<vmem>>, vector<1x27x81xf32>
    %76 = vector.shape_cast %75 : vector<1x27x81xf32> to vector<27x81xf32>
    %cst_55 = arith.constant dense<0.000000e+00> : vector<27x27xf32>
    %77 = tpu.matmul %76, %74, %cst_55 {dimension_numbers = #tpu.dot_dimension_numbers<[1], [0], [0], [1], [0, 0, 1, 1], [], []>} : vector<27x81xf32>, vector<81x27xf32>, vector<27x27xf32> -> vector<27x27xf32>
    %78 = arith.addf %71, %77 : vector<27x27xf32>
    %c170 = arith.constant 170 : index
    %79 = memref.load %arg1[%c170] : memref<175xf32, #tpu.memory_space<smem>>
    %80 = vector.broadcast %79 : f32 to vector<27x27xf32>
    %81 = arith.addf %78, %80 : vector<27x27xf32>
    %cst_56 = arith.constant 0.000000e+00 : f32
    %82 = vector.broadcast %cst_56 : f32 to vector<27x27xf32>
    %83 = arith.maximumf %81, %82 : vector<27x27xf32>
    %c0_57 = arith.constant 0 : index
    %c0_58 = arith.constant 0 : index
    %c0_59 = arith.constant 0 : index
    %84 = vector.load %arg10[%c0_57, %c0_58, %c0_59] : memref<3x27x9xf32, #tpu.memory_space<vmem>>, vector<1x27x9xf32>
    %85 = vector.shape_cast %84 : vector<1x27x9xf32> to vector<27x9xf32>
    %cst_60 = arith.constant dense<0.000000e+00> : vector<27x9xf32>
    %86 = tpu.matmul %83, %85, %cst_60 {dimension_numbers = #tpu.dot_dimension_numbers<[1], [0], [0], [1], [0, 0, 1, 1], [], []>} : vector<27x27xf32>, vector<27x9xf32>, vector<27x9xf32> -> vector<27x9xf32>
    %c0_61 = arith.constant 0 : index
    %c0_62 = arith.constant 0 : index
    %c0_63 = arith.constant 0 : index
    %87 = vector.load %arg6[%c0_61, %c0_62, %c0_63] : memref<3x9x27xf32, #tpu.memory_space<vmem>>, vector<1x9x27xf32>
    %88 = vector.shape_cast %87 : vector<1x9x27xf32> to vector<9x27xf32>
    %cst_64 = arith.constant dense<0.000000e+00> : vector<9x9xf32>
    %89 = tpu.matmul %88, %86, %cst_64 {dimension_numbers = #tpu.dot_dimension_numbers<[1], [0], [0], [1], [0, 0, 1, 1], [], []>} : vector<9x27xf32>, vector<27x9xf32>, vector<9x9xf32> -> vector<9x9xf32>
    %c1_65 = arith.constant 1 : index
    %c0_66 = arith.constant 0 : index
    %c0_67 = arith.constant 0 : index
    %90 = vector.load %arg10[%c1_65, %c0_66, %c0_67] : memref<3x27x9xf32, #tpu.memory_space<vmem>>, vector<1x27x9xf32>
    %91 = vector.shape_cast %90 : vector<1x27x9xf32> to vector<27x9xf32>
    %cst_68 = arith.constant dense<0.000000e+00> : vector<27x9xf32>
    %92 = tpu.matmul %83, %91, %cst_68 {dimension_numbers = #tpu.dot_dimension_numbers<[1], [0], [0], [1], [0, 0, 1, 1], [], []>} : vector<27x27xf32>, vector<27x9xf32>, vector<27x9xf32> -> vector<27x9xf32>
    %c1_69 = arith.constant 1 : index
    %c0_70 = arith.constant 0 : index
    %c0_71 = arith.constant 0 : index
    %93 = vector.load %arg6[%c1_69, %c0_70, %c0_71] : memref<3x9x27xf32, #tpu.memory_space<vmem>>, vector<1x9x27xf32>
    %94 = vector.shape_cast %93 : vector<1x9x27xf32> to vector<9x27xf32>
    %cst_72 = arith.constant dense<0.000000e+00> : vector<9x9xf32>
    %95 = tpu.matmul %94, %92, %cst_72 {dimension_numbers = #tpu.dot_dimension_numbers<[1], [0], [0], [1], [0, 0, 1, 1], [], []>} : vector<9x27xf32>, vector<27x9xf32>, vector<9x9xf32> -> vector<9x9xf32>
    %96 = arith.addf %89, %95 : vector<9x9xf32>
    %c2_73 = arith.constant 2 : index
    %c0_74 = arith.constant 0 : index
    %c0_75 = arith.constant 0 : index
    %97 = vector.load %arg10[%c2_73, %c0_74, %c0_75] : memref<3x27x9xf32, #tpu.memory_space<vmem>>, vector<1x27x9xf32>
    %98 = vector.shape_cast %97 : vector<1x27x9xf32> to vector<27x9xf32>
    %cst_76 = arith.constant dense<0.000000e+00> : vector<27x9xf32>
    %99 = tpu.matmul %83, %98, %cst_76 {dimension_numbers = #tpu.dot_dimension_numbers<[1], [0], [0], [1], [0, 0, 1, 1], [], []>} : vector<27x27xf32>, vector<27x9xf32>, vector<27x9xf32> -> vector<27x9xf32>
    %c2_77 = arith.constant 2 : index
    %c0_78 = arith.constant 0 : index
    %c0_79 = arith.constant 0 : index
    %100 = vector.load %arg6[%c2_77, %c0_78, %c0_79] : memref<3x9x27xf32, #tpu.memory_space<vmem>>, vector<1x9x27xf32>
    %101 = vector.shape_cast %100 : vector<1x9x27xf32> to vector<9x27xf32>
    %cst_80 = arith.constant dense<0.000000e+00> : vector<9x9xf32>
    %102 = tpu.matmul %101, %99, %cst_80 {dimension_numbers = #tpu.dot_dimension_numbers<[1], [0], [0], [1], [0, 0, 1, 1], [], []>} : vector<9x27xf32>, vector<27x9xf32>, vector<9x9xf32> -> vector<9x9xf32>
    %103 = arith.addf %96, %102 : vector<9x9xf32>
    %c171 = arith.constant 171 : index
    %104 = memref.load %arg1[%c171] : memref<175xf32, #tpu.memory_space<smem>>
    %105 = vector.broadcast %104 : f32 to vector<9x9xf32>
    %106 = arith.addf %103, %105 : vector<9x9xf32>
    %cst_81 = arith.constant 0.000000e+00 : f32
    %107 = vector.broadcast %cst_81 : f32 to vector<9x9xf32>
    %108 = arith.maximumf %106, %107 : vector<9x9xf32>
    %c0_82 = arith.constant 0 : index
    %c0_83 = arith.constant 0 : index
    %c0_84 = arith.constant 0 : index
    %109 = vector.load %arg11[%c0_82, %c0_83, %c0_84] : memref<3x27x9xf32, #tpu.memory_space<vmem>>, vector<1x27x9xf32>
    %110 = vector.shape_cast %109 : vector<1x27x9xf32> to vector<27x9xf32>
    %cst_85 = arith.constant dense<0.000000e+00> : vector<27x9xf32>
    %111 = tpu.matmul %83, %110, %cst_85 {dimension_numbers = #tpu.dot_dimension_numbers<[1], [0], [0], [1], [0, 0, 1, 1], [], []>} : vector<27x27xf32>, vector<27x9xf32>, vector<27x9xf32> -> vector<27x9xf32>
    %c0_86 = arith.constant 0 : index
    %c0_87 = arith.constant 0 : index
    %c0_88 = arith.constant 0 : index
    %112 = vector.load %arg6[%c0_86, %c0_87, %c0_88] : memref<3x9x27xf32, #tpu.memory_space<vmem>>, vector<1x9x27xf32>
    %113 = vector.shape_cast %112 : vector<1x9x27xf32> to vector<9x27xf32>
    %cst_89 = arith.constant dense<0.000000e+00> : vector<9x9xf32>
    %114 = tpu.matmul %113, %111, %cst_89 {dimension_numbers = #tpu.dot_dimension_numbers<[1], [0], [0], [1], [0, 0, 1, 1], [], []>} : vector<9x27xf32>, vector<27x9xf32>, vector<9x9xf32> -> vector<9x9xf32>
    %c1_90 = arith.constant 1 : index
    %c0_91 = arith.constant 0 : index
    %c0_92 = arith.constant 0 : index
    %115 = vector.load %arg11[%c1_90, %c0_91, %c0_92] : memref<3x27x9xf32, #tpu.memory_space<vmem>>, vector<1x27x9xf32>
    %116 = vector.shape_cast %115 : vector<1x27x9xf32> to vector<27x9xf32>
    %cst_93 = arith.constant dense<0.000000e+00> : vector<27x9xf32>
    %117 = tpu.matmul %83, %116, %cst_93 {dimension_numbers = #tpu.dot_dimension_numbers<[1], [0], [0], [1], [0, 0, 1, 1], [], []>} : vector<27x27xf32>, vector<27x9xf32>, vector<27x9xf32> -> vector<27x9xf32>
    %c1_94 = arith.constant 1 : index
    %c0_95 = arith.constant 0 : index
    %c0_96 = arith.constant 0 : index
    %118 = vector.load %arg6[%c1_94, %c0_95, %c0_96] : memref<3x9x27xf32, #tpu.memory_space<vmem>>, vector<1x9x27xf32>
    %119 = vector.shape_cast %118 : vector<1x9x27xf32> to vector<9x27xf32>
    %cst_97 = arith.constant dense<0.000000e+00> : vector<9x9xf32>
    %120 = tpu.matmul %119, %117, %cst_97 {dimension_numbers = #tpu.dot_dimension_numbers<[1], [0], [0], [1], [0, 0, 1, 1], [], []>} : vector<9x27xf32>, vector<27x9xf32>, vector<9x9xf32> -> vector<9x9xf32>
    %121 = arith.addf %114, %120 : vector<9x9xf32>
    %c2_98 = arith.constant 2 : index
    %c0_99 = arith.constant 0 : index
    %c0_100 = arith.constant 0 : index
    %122 = vector.load %arg11[%c2_98, %c0_99, %c0_100] : memref<3x27x9xf32, #tpu.memory_space<vmem>>, vector<1x27x9xf32>
    %123 = vector.shape_cast %122 : vector<1x27x9xf32> to vector<27x9xf32>
    %cst_101 = arith.constant dense<0.000000e+00> : vector<27x9xf32>
    %124 = tpu.matmul %83, %123, %cst_101 {dimension_numbers = #tpu.dot_dimension_numbers<[1], [0], [0], [1], [0, 0, 1, 1], [], []>} : vector<27x27xf32>, vector<27x9xf32>, vector<27x9xf32> -> vector<27x9xf32>
    %c2_102 = arith.constant 2 : index
    %c0_103 = arith.constant 0 : index
    %c0_104 = arith.constant 0 : index
    %125 = vector.load %arg6[%c2_102, %c0_103, %c0_104] : memref<3x9x27xf32, #tpu.memory_space<vmem>>, vector<1x9x27xf32>
    %126 = vector.shape_cast %125 : vector<1x9x27xf32> to vector<9x27xf32>
    %cst_105 = arith.constant dense<0.000000e+00> : vector<9x9xf32>
    %127 = tpu.matmul %126, %124, %cst_105 {dimension_numbers = #tpu.dot_dimension_numbers<[1], [0], [0], [1], [0, 0, 1, 1], [], []>} : vector<9x27xf32>, vector<27x9xf32>, vector<9x9xf32> -> vector<9x9xf32>
    %128 = arith.addf %121, %127 : vector<9x9xf32>
    %c172 = arith.constant 172 : index
    %129 = memref.load %arg1[%c172] : memref<175xf32, #tpu.memory_space<smem>>
    %130 = vector.broadcast %129 : f32 to vector<9x9xf32>
    %131 = arith.addf %128, %130 : vector<9x9xf32>
    %cst_106 = arith.constant 0.000000e+00 : f32
    %132 = vector.broadcast %cst_106 : f32 to vector<9x9xf32>
    %133 = arith.maximumf %131, %132 : vector<9x9xf32>
    %134 = math.exp %133 : vector<9x9xf32>
    %cst_107 = arith.constant -0.652049303 : f32
    %135 = vector.broadcast %cst_107 : f32 to vector<9x9xf32>
    %136 = arith.mulf %135, %134 : vector<9x9xf32>
    %137 = arith.addf %108, %136 : vector<9x9xf32>
    %138 = arith.mulf %134, %134 : vector<9x9xf32>
    %cst_108 = arith.constant 0.858407318 : f32
    %139 = vector.broadcast %cst_108 : f32 to vector<9x9xf32>
    %140 = arith.mulf %139, %138 : vector<9x9xf32>
    %141 = arith.mulf %140, %7 : vector<9x9xf32>
    %142 = arith.addf %137, %141 : vector<9x9xf32>
    %c0_109 = arith.constant 0 : index
    %c0_110 = arith.constant 0 : index
    %c0_111 = arith.constant 0 : index
    %143 = vector.load %arg12[%c0_109, %c0_110, %c0_111] : memref<3x9x27xf32, #tpu.memory_space<vmem>>, vector<1x9x27xf32>
    %144 = vector.shape_cast %143 : vector<1x9x27xf32> to vector<9x27xf32>
    %cst_112 = arith.constant dense<0.000000e+00> : vector<9x27xf32>
    %145 = tpu.matmul %142, %144, %cst_112 {dimension_numbers = #tpu.dot_dimension_numbers<[1], [0], [0], [1], [0, 0, 1, 1], [], []>} : vector<9x9xf32>, vector<9x27xf32>, vector<9x27xf32> -> vector<9x27xf32>
    %c0_113 = arith.constant 0 : index
    %c0_114 = arith.constant 0 : index
    %c0_115 = arith.constant 0 : index
    %146 = vector.load %arg7[%c0_113, %c0_114, %c0_115] : memref<3x27x9xf32, #tpu.memory_space<vmem>>, vector<1x27x9xf32>
    %147 = vector.shape_cast %146 : vector<1x27x9xf32> to vector<27x9xf32>
    %cst_116 = arith.constant dense<0.000000e+00> : vector<27x27xf32>
    %148 = tpu.matmul %147, %145, %cst_116 {dimension_numbers = #tpu.dot_dimension_numbers<[1], [0], [0], [1], [0, 0, 1, 1], [], []>} : vector<27x9xf32>, vector<9x27xf32>, vector<27x27xf32> -> vector<27x27xf32>
    %c1_117 = arith.constant 1 : index
    %c0_118 = arith.constant 0 : index
    %c0_119 = arith.constant 0 : index
    %149 = vector.load %arg12[%c1_117, %c0_118, %c0_119] : memref<3x9x27xf32, #tpu.memory_space<vmem>>, vector<1x9x27xf32>
    %150 = vector.shape_cast %149 : vector<1x9x27xf32> to vector<9x27xf32>
    %cst_120 = arith.constant dense<0.000000e+00> : vector<9x27xf32>
    %151 = tpu.matmul %142, %150, %cst_120 {dimension_numbers = #tpu.dot_dimension_numbers<[1], [0], [0], [1], [0, 0, 1, 1], [], []>} : vector<9x9xf32>, vector<9x27xf32>, vector<9x27xf32> -> vector<9x27xf32>
    %c1_121 = arith.constant 1 : index
    %c0_122 = arith.constant 0 : index
    %c0_123 = arith.constant 0 : index
    %152 = vector.load %arg7[%c1_121, %c0_122, %c0_123] : memref<3x27x9xf32, #tpu.memory_space<vmem>>, vector<1x27x9xf32>
    %153 = vector.shape_cast %152 : vector<1x27x9xf32> to vector<27x9xf32>
    %cst_124 = arith.constant dense<0.000000e+00> : vector<27x27xf32>
    %154 = tpu.matmul %153, %151, %cst_124 {dimension_numbers = #tpu.dot_dimension_numbers<[1], [0], [0], [1], [0, 0, 1, 1], [], []>} : vector<27x9xf32>, vector<9x27xf32>, vector<27x27xf32> -> vector<27x27xf32>
    %155 = arith.addf %148, %154 : vector<27x27xf32>
    %c2_125 = arith.constant 2 : index
    %c0_126 = arith.constant 0 : index
    %c0_127 = arith.constant 0 : index
    %156 = vector.load %arg12[%c2_125, %c0_126, %c0_127] : memref<3x9x27xf32, #tpu.memory_space<vmem>>, vector<1x9x27xf32>
    %157 = vector.shape_cast %156 : vector<1x9x27xf32> to vector<9x27xf32>
    %cst_128 = arith.constant dense<0.000000e+00> : vector<9x27xf32>
    %158 = tpu.matmul %142, %157, %cst_128 {dimension_numbers = #tpu.dot_dimension_numbers<[1], [0], [0], [1], [0, 0, 1, 1], [], []>} : vector<9x9xf32>, vector<9x27xf32>, vector<9x27xf32> -> vector<9x27xf32>
    %c2_129 = arith.constant 2 : index
    %c0_130 = arith.constant 0 : index
    %c0_131 = arith.constant 0 : index
    %159 = vector.load %arg7[%c2_129, %c0_130, %c0_131] : memref<3x27x9xf32, #tpu.memory_space<vmem>>, vector<1x27x9xf32>
    %160 = vector.shape_cast %159 : vector<1x27x9xf32> to vector<27x9xf32>
    %cst_132 = arith.constant dense<0.000000e+00> : vector<27x27xf32>
    %161 = tpu.matmul %160, %158, %cst_132 {dimension_numbers = #tpu.dot_dimension_numbers<[1], [0], [0], [1], [0, 0, 1, 1], [], []>} : vector<27x9xf32>, vector<9x27xf32>, vector<27x27xf32> -> vector<27x27xf32>
    %162 = arith.addf %155, %161 : vector<27x27xf32>
    %c173 = arith.constant 173 : index
    %163 = memref.load %arg1[%c173] : memref<175xf32, #tpu.memory_space<smem>>
    %164 = vector.broadcast %163 : f32 to vector<27x27xf32>
    %165 = arith.addf %162, %164 : vector<27x27xf32>
    %cst_133 = arith.constant 0.000000e+00 : f32
    %166 = vector.broadcast %cst_133 : f32 to vector<27x27xf32>
    %167 = arith.maximumf %165, %166 : vector<27x27xf32>
    %c2_134 = arith.constant 2 : index
    %c2_135 = arith.constant 2 : index
    %168 = vector.load %arg16[%c2_134, %c2_135] : memref<31x31xf32, #tpu.memory_space<vmem>>, vector<27x27xf32>
    tpu.vector_store %arg16[%c2_134, %c2_135], %167 {strides = array<i32>} : memref<31x31xf32, #tpu.memory_space<vmem>>, vector<27x27xf32>,
    %c0_136 = arith.constant 0 : index
    %c0_137 = arith.constant 0 : index
    %169 = vector.load %arg16[%c0_136, %c0_137] : memref<31x31xf32, #tpu.memory_space<vmem>>, vector<27x27xf32>
    %c10 = arith.constant 10 : index
    %170 = memref.load %arg1[%c10] : memref<175xf32, #tpu.memory_space<smem>>
    %171 = vector.broadcast %170 : f32 to vector<27x27xf32>
    %172 = arith.mulf %171, %169 : vector<27x27xf32>
    %c0_138 = arith.constant 0 : index
    %c1_139 = arith.constant 1 : index
    %173 = vector.load %arg16[%c0_138, %c1_139] : memref<31x31xf32, #tpu.memory_space<vmem>>, vector<27x27xf32>
    %c11 = arith.constant 11 : index
    %174 = memref.load %arg1[%c11] : memref<175xf32, #tpu.memory_space<smem>>
    %175 = vector.broadcast %174 : f32 to vector<27x27xf32>
    %176 = arith.mulf %175, %173 : vector<27x27xf32>
    %177 = arith.addf %172, %176 : vector<27x27xf32>
    %c0_140 = arith.constant 0 : index
    %c2_141 = arith.constant 2 : index
    %178 = vector.load %arg16[%c0_140, %c2_141] : memref<31x31xf32, #tpu.memory_space<vmem>>, vector<27x27xf32>
    %c12 = arith.constant 12 : index
    %179 = memref.load %arg1[%c12] : memref<175xf32, #tpu.memory_space<smem>>
    %180 = vector.broadcast %179 : f32 to vector<27x27xf32>
    %181 = arith.mulf %180, %178 : vector<27x27xf32>
    %182 = arith.addf %177, %181 : vector<27x27xf32>
    %c0_142 = arith.constant 0 : index
    %c3_143 = arith.constant 3 : index
    %183 = vector.load %arg16[%c0_142, %c3_143] : memref<31x31xf32, #tpu.memory_space<vmem>>, vector<27x27xf32>
    %c13 = arith.constant 13 : index
    %184 = memref.load %arg1[%c13] : memref<175xf32, #tpu.memory_space<smem>>
    %185 = vector.broadcast %184 : f32 to vector<27x27xf32>
    %186 = arith.mulf %185, %183 : vector<27x27xf32>
    %187 = arith.addf %182, %186 : vector<27x27xf32>
    %c0_144 = arith.constant 0 : index
    %c4_145 = arith.constant 4 : index
    %188 = vector.load %arg16[%c0_144, %c4_145] : memref<31x31xf32, #tpu.memory_space<vmem>>, vector<27x27xf32>
    %c14 = arith.constant 14 : index
    %189 = memref.load %arg1[%c14] : memref<175xf32, #tpu.memory_space<smem>>
    %190 = vector.broadcast %189 : f32 to vector<27x27xf32>
    %191 = arith.mulf %190, %188 : vector<27x27xf32>
    %192 = arith.addf %187, %191 : vector<27x27xf32>
    %c1_146 = arith.constant 1 : index
    %c0_147 = arith.constant 0 : index
    %193 = vector.load %arg16[%c1_146, %c0_147] : memref<31x31xf32, #tpu.memory_space<vmem>>, vector<27x27xf32>
    %c15 = arith.constant 15 : index
    %194 = memref.load %arg1[%c15] : memref<175xf32, #tpu.memory_space<smem>>
    %195 = vector.broadcast %194 : f32 to vector<27x27xf32>
    %196 = arith.mulf %195, %193 : vector<27x27xf32>
    %197 = arith.addf %192, %196 : vector<27x27xf32>
    %c1_148 = arith.constant 1 : index
    %c1_149 = arith.constant 1 : index
    %198 = vector.load %arg16[%c1_148, %c1_149] : memref<31x31xf32, #tpu.memory_space<vmem>>, vector<27x27xf32>
    %c16 = arith.constant 16 : index
    %199 = memref.load %arg1[%c16] : memref<175xf32, #tpu.memory_space<smem>>
    %200 = vector.broadcast %199 : f32 to vector<27x27xf32>
    %201 = arith.mulf %200, %198 : vector<27x27xf32>
    %202 = arith.addf %197, %201 : vector<27x27xf32>
    %c1_150 = arith.constant 1 : index
    %c2_151 = arith.constant 2 : index
    %203 = vector.load %arg16[%c1_150, %c2_151] : memref<31x31xf32, #tpu.memory_space<vmem>>, vector<27x27xf32>
    %c17 = arith.constant 17 : index
    %204 = memref.load %arg1[%c17] : memref<175xf32, #tpu.memory_space<smem>>
    %205 = vector.broadcast %204 : f32 to vector<27x27xf32>
    %206 = arith.mulf %205, %203 : vector<27x27xf32>
    %207 = arith.addf %202, %206 : vector<27x27xf32>
    %c1_152 = arith.constant 1 : index
    %c3_153 = arith.constant 3 : index
    %208 = vector.load %arg16[%c1_152, %c3_153] : memref<31x31xf32, #tpu.memory_space<vmem>>, vector<27x27xf32>
    %c18 = arith.constant 18 : index
    %209 = memref.load %arg1[%c18] : memref<175xf32, #tpu.memory_space<smem>>
    %210 = vector.broadcast %209 : f32 to vector<27x27xf32>
    %211 = arith.mulf %210, %208 : vector<27x27xf32>
    %212 = arith.addf %207, %211 : vector<27x27xf32>
    %c1_154 = arith.constant 1 : index
    %c4_155 = arith.constant 4 : index
    %213 = vector.load %arg16[%c1_154, %c4_155] : memref<31x31xf32, #tpu.memory_space<vmem>>, vector<27x27xf32>
    %c19 = arith.constant 19 : index
    %214 = memref.load %arg1[%c19] : memref<175xf32, #tpu.memory_space<smem>>
    %215 = vector.broadcast %214 : f32 to vector<27x27xf32>
    %216 = arith.mulf %215, %213 : vector<27x27xf32>
    %217 = arith.addf %212, %216 : vector<27x27xf32>
    %c2_156 = arith.constant 2 : index
    %c0_157 = arith.constant 0 : index
    %218 = vector.load %arg16[%c2_156, %c0_157] : memref<31x31xf32, #tpu.memory_space<vmem>>, vector<27x27xf32>
    %c20 = arith.constant 20 : index
    %219 = memref.load %arg1[%c20] : memref<175xf32, #tpu.memory_space<smem>>
    %220 = vector.broadcast %219 : f32 to vector<27x27xf32>
    %221 = arith.mulf %220, %218 : vector<27x27xf32>
    %222 = arith.addf %217, %221 : vector<27x27xf32>
    %c2_158 = arith.constant 2 : index
    %c1_159 = arith.constant 1 : index
    %223 = vector.load %arg16[%c2_158, %c1_159] : memref<31x31xf32, #tpu.memory_space<vmem>>, vector<27x27xf32>
    %c21 = arith.constant 21 : index
    %224 = memref.load %arg1[%c21] : memref<175xf32, #tpu.memory_space<smem>>
    %225 = vector.broadcast %224 : f32 to vector<27x27xf32>
    %226 = arith.mulf %225, %223 : vector<27x27xf32>
    %227 = arith.addf %222, %226 : vector<27x27xf32>
    %c2_160 = arith.constant 2 : index
    %c2_161 = arith.constant 2 : index
    %228 = vector.load %arg16[%c2_160, %c2_161] : memref<31x31xf32, #tpu.memory_space<vmem>>, vector<27x27xf32>
    %c22 = arith.constant 22 : index
    %229 = memref.load %arg1[%c22] : memref<175xf32, #tpu.memory_space<smem>>
    %230 = vector.broadcast %229 : f32 to vector<27x27xf32>
    %231 = arith.mulf %230, %228 : vector<27x27xf32>
    %232 = arith.addf %227, %231 : vector<27x27xf32>
    %c2_162 = arith.constant 2 : index
    %c3_163 = arith.constant 3 : index
    %233 = vector.load %arg16[%c2_162, %c3_163] : memref<31x31xf32, #tpu.memory_space<vmem>>, vector<27x27xf32>
    %c23 = arith.constant 23 : index
    %234 = memref.load %arg1[%c23] : memref<175xf32, #tpu.memory_space<smem>>
    %235 = vector.broadcast %234 : f32 to vector<27x27xf32>
    %236 = arith.mulf %235, %233 : vector<27x27xf32>
    %237 = arith.addf %232, %236 : vector<27x27xf32>
    %c2_164 = arith.constant 2 : index
    %c4_165 = arith.constant 4 : index
    %238 = vector.load %arg16[%c2_164, %c4_165] : memref<31x31xf32, #tpu.memory_space<vmem>>, vector<27x27xf32>
    %c24 = arith.constant 24 : index
    %239 = memref.load %arg1[%c24] : memref<175xf32, #tpu.memory_space<smem>>
    %240 = vector.broadcast %239 : f32 to vector<27x27xf32>
    %241 = arith.mulf %240, %238 : vector<27x27xf32>
    %242 = arith.addf %237, %241 : vector<27x27xf32>
    %c3_166 = arith.constant 3 : index
    %c0_167 = arith.constant 0 : index
    %243 = vector.load %arg16[%c3_166, %c0_167] : memref<31x31xf32, #tpu.memory_space<vmem>>, vector<27x27xf32>
    %c25 = arith.constant 25 : index
    %244 = memref.load %arg1[%c25] : memref<175xf32, #tpu.memory_space<smem>>
    %245 = vector.broadcast %244 : f32 to vector<27x27xf32>
    %246 = arith.mulf %245, %243 : vector<27x27xf32>
    %247 = arith.addf %242, %246 : vector<27x27xf32>
    %c3_168 = arith.constant 3 : index
    %c1_169 = arith.constant 1 : index
    %248 = vector.load %arg16[%c3_168, %c1_169] : memref<31x31xf32, #tpu.memory_space<vmem>>, vector<27x27xf32>
    %c26 = arith.constant 26 : index
    %249 = memref.load %arg1[%c26] : memref<175xf32, #tpu.memory_space<smem>>
    %250 = vector.broadcast %249 : f32 to vector<27x27xf32>
    %251 = arith.mulf %250, %248 : vector<27x27xf32>
    %252 = arith.addf %247, %251 : vector<27x27xf32>
    %c3_170 = arith.constant 3 : index
    %c2_171 = arith.constant 2 : index
    %253 = vector.load %arg16[%c3_170, %c2_171] : memref<31x31xf32, #tpu.memory_space<vmem>>, vector<27x27xf32>
    %c27 = arith.constant 27 : index
    %254 = memref.load %arg1[%c27] : memref<175xf32, #tpu.memory_space<smem>>
    %255 = vector.broadcast %254 : f32 to vector<27x27xf32>
    %256 = arith.mulf %255, %253 : vector<27x27xf32>
    %257 = arith.addf %252, %256 : vector<27x27xf32>
    %c3_172 = arith.constant 3 : index
    %c3_173 = arith.constant 3 : index
    %258 = vector.load %arg16[%c3_172, %c3_173] : memref<31x31xf32, #tpu.memory_space<vmem>>, vector<27x27xf32>
    %c28 = arith.constant 28 : index
    %259 = memref.load %arg1[%c28] : memref<175xf32, #tpu.memory_space<smem>>
    %260 = vector.broadcast %259 : f32 to vector<27x27xf32>
    %261 = arith.mulf %260, %258 : vector<27x27xf32>
    %262 = arith.addf %257, %261 : vector<27x27xf32>
    %c3_174 = arith.constant 3 : index
    %c4_175 = arith.constant 4 : index
    %263 = vector.load %arg16[%c3_174, %c4_175] : memref<31x31xf32, #tpu.memory_space<vmem>>, vector<27x27xf32>
    %c29 = arith.constant 29 : index
    %264 = memref.load %arg1[%c29] : memref<175xf32, #tpu.memory_space<smem>>
    %265 = vector.broadcast %264 : f32 to vector<27x27xf32>
    %266 = arith.mulf %265, %263 : vector<27x27xf32>
    %267 = arith.addf %262, %266 : vector<27x27xf32>
    %c4_176 = arith.constant 4 : index
    %c0_177 = arith.constant 0 : index
    %268 = vector.load %arg16[%c4_176, %c0_177] : memref<31x31xf32, #tpu.memory_space<vmem>>, vector<27x27xf32>
    %c30 = arith.constant 30 : index
    %269 = memref.load %arg1[%c30] : memref<175xf32, #tpu.memory_space<smem>>
    %270 = vector.broadcast %269 : f32 to vector<27x27xf32>
    %271 = arith.mulf %270, %268 : vector<27x27xf32>
    %272 = arith.addf %267, %271 : vector<27x27xf32>
    %c4_178 = arith.constant 4 : index
    %c1_179 = arith.constant 1 : index
    %273 = vector.load %arg16[%c4_178, %c1_179] : memref<31x31xf32, #tpu.memory_space<vmem>>, vector<27x27xf32>
    %c31 = arith.constant 31 : index
    %274 = memref.load %arg1[%c31] : memref<175xf32, #tpu.memory_space<smem>>
    %275 = vector.broadcast %274 : f32 to vector<27x27xf32>
    %276 = arith.mulf %275, %273 : vector<27x27xf32>
    %277 = arith.addf %272, %276 : vector<27x27xf32>
    %c4_180 = arith.constant 4 : index
    %c2_181 = arith.constant 2 : index
    %278 = vector.load %arg16[%c4_180, %c2_181] : memref<31x31xf32, #tpu.memory_space<vmem>>, vector<27x27xf32>
    %c32 = arith.constant 32 : index
    %279 = memref.load %arg1[%c32] : memref<175xf32, #tpu.memory_space<smem>>
    %280 = vector.broadcast %279 : f32 to vector<27x27xf32>
    %281 = arith.mulf %280, %278 : vector<27x27xf32>
    %282 = arith.addf %277, %281 : vector<27x27xf32>
    %c4_182 = arith.constant 4 : index
    %c3_183 = arith.constant 3 : index
    %283 = vector.load %arg16[%c4_182, %c3_183] : memref<31x31xf32, #tpu.memory_space<vmem>>, vector<27x27xf32>
    %c33 = arith.constant 33 : index
    %284 = memref.load %arg1[%c33] : memref<175xf32, #tpu.memory_space<smem>>
    %285 = vector.broadcast %284 : f32 to vector<27x27xf32>
    %286 = arith.mulf %285, %283 : vector<27x27xf32>
    %287 = arith.addf %282, %286 : vector<27x27xf32>
    %c4_184 = arith.constant 4 : index
    %c4_185 = arith.constant 4 : index
    %288 = vector.load %arg16[%c4_184, %c4_185] : memref<31x31xf32, #tpu.memory_space<vmem>>, vector<27x27xf32>
    %c34 = arith.constant 34 : index
    %289 = memref.load %arg1[%c34] : memref<175xf32, #tpu.memory_space<smem>>
    %290 = vector.broadcast %289 : f32 to vector<27x27xf32>
    %291 = arith.mulf %290, %288 : vector<27x27xf32>
    %292 = arith.addf %287, %291 : vector<27x27xf32>
    %c35 = arith.constant 35 : index
    %293 = memref.load %arg1[%c35] : memref<175xf32, #tpu.memory_space<smem>>
    %294 = vector.broadcast %293 : f32 to vector<27x27xf32>
    %295 = arith.addf %292, %294 : vector<27x27xf32>
    %cst_186 = arith.constant 0.000000e+00 : f32
    %296 = vector.broadcast %cst_186 : f32 to vector<27x27xf32>
    %297 = arith.maximumf %295, %296 : vector<27x27xf32>
    %c2_187 = arith.constant 2 : index
    %c2_188 = arith.constant 2 : index
    %298 = vector.load %arg16[%c2_187, %c2_188] : memref<31x31xf32, #tpu.memory_space<vmem>>, vector<27x27xf32>
    tpu.vector_store %arg16[%c2_187, %c2_188], %297 {strides = array<i32>} : memref<31x31xf32, #tpu.memory_space<vmem>>, vector<27x27xf32>,
    %c1_189 = arith.constant 1 : index
    %c1_190 = arith.constant 1 : index
    %299 = vector.load %arg16[%c1_189, %c1_190] : memref<31x31xf32, #tpu.memory_space<vmem>>, vector<27x27xf32>
    %c36 = arith.constant 36 : index
    %300 = memref.load %arg1[%c36] : memref<175xf32, #tpu.memory_space<smem>>
    %301 = vector.broadcast %300 : f32 to vector<27x27xf32>
    %302 = arith.mulf %301, %299 : vector<27x27xf32>
    %c1_191 = arith.constant 1 : index
    %c2_192 = arith.constant 2 : index
    %303 = vector.load %arg16[%c1_191, %c2_192] : memref<31x31xf32, #tpu.memory_space<vmem>>, vector<27x27xf32>
    %c37 = arith.constant 37 : index
    %304 = memref.load %arg1[%c37] : memref<175xf32, #tpu.memory_space<smem>>
    %305 = vector.broadcast %304 : f32 to vector<27x27xf32>
    %306 = arith.mulf %305, %303 : vector<27x27xf32>
    %307 = arith.addf %302, %306 : vector<27x27xf32>
    %c1_193 = arith.constant 1 : index
    %c3_194 = arith.constant 3 : index
    %308 = vector.load %arg16[%c1_193, %c3_194] : memref<31x31xf32, #tpu.memory_space<vmem>>, vector<27x27xf32>
    %c38 = arith.constant 38 : index
    %309 = memref.load %arg1[%c38] : memref<175xf32, #tpu.memory_space<smem>>
    %310 = vector.broadcast %309 : f32 to vector<27x27xf32>
    %311 = arith.mulf %310, %308 : vector<27x27xf32>
    %312 = arith.addf %307, %311 : vector<27x27xf32>
    %c2_195 = arith.constant 2 : index
    %c1_196 = arith.constant 1 : index
    %313 = vector.load %arg16[%c2_195, %c1_196] : memref<31x31xf32, #tpu.memory_space<vmem>>, vector<27x27xf32>
    %c39 = arith.constant 39 : index
    %314 = memref.load %arg1[%c39] : memref<175xf32, #tpu.memory_space<smem>>
    %315 = vector.broadcast %314 : f32 to vector<27x27xf32>
    %316 = arith.mulf %315, %313 : vector<27x27xf32>
    %317 = arith.addf %312, %316 : vector<27x27xf32>
    %c2_197 = arith.constant 2 : index
    %c2_198 = arith.constant 2 : index
    %318 = vector.load %arg16[%c2_197, %c2_198] : memref<31x31xf32, #tpu.memory_space<vmem>>, vector<27x27xf32>
    %c40 = arith.constant 40 : index
    %319 = memref.load %arg1[%c40] : memref<175xf32, #tpu.memory_space<smem>>
    %320 = vector.broadcast %319 : f32 to vector<27x27xf32>
    %321 = arith.mulf %320, %318 : vector<27x27xf32>
    %322 = arith.addf %317, %321 : vector<27x27xf32>
    %c2_199 = arith.constant 2 : index
    %c3_200 = arith.constant 3 : index
    %323 = vector.load %arg16[%c2_199, %c3_200] : memref<31x31xf32, #tpu.memory_space<vmem>>, vector<27x27xf32>
    %c41 = arith.constant 41 : index
    %324 = memref.load %arg1[%c41] : memref<175xf32, #tpu.memory_space<smem>>
    %325 = vector.broadcast %324 : f32 to vector<27x27xf32>
    %326 = arith.mulf %325, %323 : vector<27x27xf32>
    %327 = arith.addf %322, %326 : vector<27x27xf32>
    %c3_201 = arith.constant 3 : index
    %c1_202 = arith.constant 1 : index
    %328 = vector.load %arg16[%c3_201, %c1_202] : memref<31x31xf32, #tpu.memory_space<vmem>>, vector<27x27xf32>
    %c42 = arith.constant 42 : index
    %329 = memref.load %arg1[%c42] : memref<175xf32, #tpu.memory_space<smem>>
    %330 = vector.broadcast %329 : f32 to vector<27x27xf32>
    %331 = arith.mulf %330, %328 : vector<27x27xf32>
    %332 = arith.addf %327, %331 : vector<27x27xf32>
    %c3_203 = arith.constant 3 : index
    %c2_204 = arith.constant 2 : index
    %333 = vector.load %arg16[%c3_203, %c2_204] : memref<31x31xf32, #tpu.memory_space<vmem>>, vector<27x27xf32>
    %c43 = arith.constant 43 : index
    %334 = memref.load %arg1[%c43] : memref<175xf32, #tpu.memory_space<smem>>
    %335 = vector.broadcast %334 : f32 to vector<27x27xf32>
    %336 = arith.mulf %335, %333 : vector<27x27xf32>
    %337 = arith.addf %332, %336 : vector<27x27xf32>
    %c3_205 = arith.constant 3 : index
    %c3_206 = arith.constant 3 : index
    %338 = vector.load %arg16[%c3_205, %c3_206] : memref<31x31xf32, #tpu.memory_space<vmem>>, vector<27x27xf32>
    %c44 = arith.constant 44 : index
    %339 = memref.load %arg1[%c44] : memref<175xf32, #tpu.memory_space<smem>>
    %340 = vector.broadcast %339 : f32 to vector<27x27xf32>
    %341 = arith.mulf %340, %338 : vector<27x27xf32>
    %342 = arith.addf %337, %341 : vector<27x27xf32>
    %c45 = arith.constant 45 : index
    %343 = memref.load %arg1[%c45] : memref<175xf32, #tpu.memory_space<smem>>
    %344 = vector.broadcast %343 : f32 to vector<27x27xf32>
    %345 = arith.addf %342, %344 : vector<27x27xf32>
    %cst_207 = arith.constant 0.000000e+00 : f32
    %346 = vector.broadcast %cst_207 : f32 to vector<27x27xf32>
    %347 = arith.maximumf %345, %346 : vector<27x27xf32>
    %c2_208 = arith.constant 2 : index
    %c2_209 = arith.constant 2 : index
    %348 = vector.load %arg16[%c2_208, %c2_209] : memref<31x31xf32, #tpu.memory_space<vmem>>, vector<27x27xf32>
    tpu.vector_store %arg16[%c2_208, %c2_209], %347 {strides = array<i32>} : memref<31x31xf32, #tpu.memory_space<vmem>>, vector<27x27xf32>,
    %c0_210 = arith.constant 0 : index
    %c0_211 = arith.constant 0 : index
    %349 = vector.load %arg16[%c0_210, %c0_211] : memref<31x31xf32, #tpu.memory_space<vmem>>, vector<27x27xf32>
    %c46 = arith.constant 46 : index
    %350 = memref.load %arg1[%c46] : memref<175xf32, #tpu.memory_space<smem>>
    %351 = vector.broadcast %350 : f32 to vector<27x27xf32>
    %352 = arith.mulf %351, %349 : vector<27x27xf32>
    %c0_212 = arith.constant 0 : index
    %c1_213 = arith.constant 1 : index
    %353 = vector.load %arg16[%c0_212, %c1_213] : memref<31x31xf32, #tpu.memory_space<vmem>>, vector<27x27xf32>
    %c47 = arith.constant 47 : index
    %354 = memref.load %arg1[%c47] : memref<175xf32, #tpu.memory_space<smem>>
    %355 = vector.broadcast %354 : f32 to vector<27x27xf32>
    %356 = arith.mulf %355, %353 : vector<27x27xf32>
    %357 = arith.addf %352, %356 : vector<27x27xf32>
    %c0_214 = arith.constant 0 : index
    %c2_215 = arith.constant 2 : index
    %358 = vector.load %arg16[%c0_214, %c2_215] : memref<31x31xf32, #tpu.memory_space<vmem>>, vector<27x27xf32>
    %c48 = arith.constant 48 : index
    %359 = memref.load %arg1[%c48] : memref<175xf32, #tpu.memory_space<smem>>
    %360 = vector.broadcast %359 : f32 to vector<27x27xf32>
    %361 = arith.mulf %360, %358 : vector<27x27xf32>
    %362 = arith.addf %357, %361 : vector<27x27xf32>
    %c0_216 = arith.constant 0 : index
    %c3_217 = arith.constant 3 : index
    %363 = vector.load %arg16[%c0_216, %c3_217] : memref<31x31xf32, #tpu.memory_space<vmem>>, vector<27x27xf32>
    %c49 = arith.constant 49 : index
    %364 = memref.load %arg1[%c49] : memref<175xf32, #tpu.memory_space<smem>>
    %365 = vector.broadcast %364 : f32 to vector<27x27xf32>
    %366 = arith.mulf %365, %363 : vector<27x27xf32>
    %367 = arith.addf %362, %366 : vector<27x27xf32>
    %c0_218 = arith.constant 0 : index
    %c4_219 = arith.constant 4 : index
    %368 = vector.load %arg16[%c0_218, %c4_219] : memref<31x31xf32, #tpu.memory_space<vmem>>, vector<27x27xf32>
    %c50 = arith.constant 50 : index
    %369 = memref.load %arg1[%c50] : memref<175xf32, #tpu.memory_space<smem>>
    %370 = vector.broadcast %369 : f32 to vector<27x27xf32>
    %371 = arith.mulf %370, %368 : vector<27x27xf32>
    %372 = arith.addf %367, %371 : vector<27x27xf32>
    %c1_220 = arith.constant 1 : index
    %c0_221 = arith.constant 0 : index
    %373 = vector.load %arg16[%c1_220, %c0_221] : memref<31x31xf32, #tpu.memory_space<vmem>>, vector<27x27xf32>
    %c51 = arith.constant 51 : index
    %374 = memref.load %arg1[%c51] : memref<175xf32, #tpu.memory_space<smem>>
    %375 = vector.broadcast %374 : f32 to vector<27x27xf32>
    %376 = arith.mulf %375, %373 : vector<27x27xf32>
    %377 = arith.addf %372, %376 : vector<27x27xf32>
    %c1_222 = arith.constant 1 : index
    %c1_223 = arith.constant 1 : index
    %378 = vector.load %arg16[%c1_222, %c1_223] : memref<31x31xf32, #tpu.memory_space<vmem>>, vector<27x27xf32>
    %c52 = arith.constant 52 : index
    %379 = memref.load %arg1[%c52] : memref<175xf32, #tpu.memory_space<smem>>
    %380 = vector.broadcast %379 : f32 to vector<27x27xf32>
    %381 = arith.mulf %380, %378 : vector<27x27xf32>
    %382 = arith.addf %377, %381 : vector<27x27xf32>
    %c1_224 = arith.constant 1 : index
    %c2_225 = arith.constant 2 : index
    %383 = vector.load %arg16[%c1_224, %c2_225] : memref<31x31xf32, #tpu.memory_space<vmem>>, vector<27x27xf32>
    %c53 = arith.constant 53 : index
    %384 = memref.load %arg1[%c53] : memref<175xf32, #tpu.memory_space<smem>>
    %385 = vector.broadcast %384 : f32 to vector<27x27xf32>
    %386 = arith.mulf %385, %383 : vector<27x27xf32>
    %387 = arith.addf %382, %386 : vector<27x27xf32>
    %c1_226 = arith.constant 1 : index
    %c3_227 = arith.constant 3 : index
    %388 = vector.load %arg16[%c1_226, %c3_227] : memref<31x31xf32, #tpu.memory_space<vmem>>, vector<27x27xf32>
    %c54 = arith.constant 54 : index
    %389 = memref.load %arg1[%c54] : memref<175xf32, #tpu.memory_space<smem>>
    %390 = vector.broadcast %389 : f32 to vector<27x27xf32>
    %391 = arith.mulf %390, %388 : vector<27x27xf32>
    %392 = arith.addf %387, %391 : vector<27x27xf32>
    %c1_228 = arith.constant 1 : index
    %c4_229 = arith.constant 4 : index
    %393 = vector.load %arg16[%c1_228, %c4_229] : memref<31x31xf32, #tpu.memory_space<vmem>>, vector<27x27xf32>
    %c55 = arith.constant 55 : index
    %394 = memref.load %arg1[%c55] : memref<175xf32, #tpu.memory_space<smem>>
    %395 = vector.broadcast %394 : f32 to vector<27x27xf32>
    %396 = arith.mulf %395, %393 : vector<27x27xf32>
    %397 = arith.addf %392, %396 : vector<27x27xf32>
    %c2_230 = arith.constant 2 : index
    %c0_231 = arith.constant 0 : index
    %398 = vector.load %arg16[%c2_230, %c0_231] : memref<31x31xf32, #tpu.memory_space<vmem>>, vector<27x27xf32>
    %c56 = arith.constant 56 : index
    %399 = memref.load %arg1[%c56] : memref<175xf32, #tpu.memory_space<smem>>
    %400 = vector.broadcast %399 : f32 to vector<27x27xf32>
    %401 = arith.mulf %400, %398 : vector<27x27xf32>
    %402 = arith.addf %397, %401 : vector<27x27xf32>
    %c2_232 = arith.constant 2 : index
    %c1_233 = arith.constant 1 : index
    %403 = vector.load %arg16[%c2_232, %c1_233] : memref<31x31xf32, #tpu.memory_space<vmem>>, vector<27x27xf32>
    %c57 = arith.constant 57 : index
    %404 = memref.load %arg1[%c57] : memref<175xf32, #tpu.memory_space<smem>>
    %405 = vector.broadcast %404 : f32 to vector<27x27xf32>
    %406 = arith.mulf %405, %403 : vector<27x27xf32>
    %407 = arith.addf %402, %406 : vector<27x27xf32>
    %c2_234 = arith.constant 2 : index
    %c2_235 = arith.constant 2 : index
    %408 = vector.load %arg16[%c2_234, %c2_235] : memref<31x31xf32, #tpu.memory_space<vmem>>, vector<27x27xf32>
    %c58 = arith.constant 58 : index
    %409 = memref.load %arg1[%c58] : memref<175xf32, #tpu.memory_space<smem>>
    %410 = vector.broadcast %409 : f32 to vector<27x27xf32>
    %411 = arith.mulf %410, %408 : vector<27x27xf32>
    %412 = arith.addf %407, %411 : vector<27x27xf32>
    %c2_236 = arith.constant 2 : index
    %c3_237 = arith.constant 3 : index
    %413 = vector.load %arg16[%c2_236, %c3_237] : memref<31x31xf32, #tpu.memory_space<vmem>>, vector<27x27xf32>
    %c59 = arith.constant 59 : index
    %414 = memref.load %arg1[%c59] : memref<175xf32, #tpu.memory_space<smem>>
    %415 = vector.broadcast %414 : f32 to vector<27x27xf32>
    %416 = arith.mulf %415, %413 : vector<27x27xf32>
    %417 = arith.addf %412, %416 : vector<27x27xf32>
    %c2_238 = arith.constant 2 : index
    %c4_239 = arith.constant 4 : index
    %418 = vector.load %arg16[%c2_238, %c4_239] : memref<31x31xf32, #tpu.memory_space<vmem>>, vector<27x27xf32>
    %c60 = arith.constant 60 : index
    %419 = memref.load %arg1[%c60] : memref<175xf32, #tpu.memory_space<smem>>
    %420 = vector.broadcast %419 : f32 to vector<27x27xf32>
    %421 = arith.mulf %420, %418 : vector<27x27xf32>
    %422 = arith.addf %417, %421 : vector<27x27xf32>
    %c3_240 = arith.constant 3 : index
    %c0_241 = arith.constant 0 : index
    %423 = vector.load %arg16[%c3_240, %c0_241] : memref<31x31xf32, #tpu.memory_space<vmem>>, vector<27x27xf32>
    %c61 = arith.constant 61 : index
    %424 = memref.load %arg1[%c61] : memref<175xf32, #tpu.memory_space<smem>>
    %425 = vector.broadcast %424 : f32 to vector<27x27xf32>
    %426 = arith.mulf %425, %423 : vector<27x27xf32>
    %427 = arith.addf %422, %426 : vector<27x27xf32>
    %c3_242 = arith.constant 3 : index
    %c1_243 = arith.constant 1 : index
    %428 = vector.load %arg16[%c3_242, %c1_243] : memref<31x31xf32, #tpu.memory_space<vmem>>, vector<27x27xf32>
    %c62 = arith.constant 62 : index
    %429 = memref.load %arg1[%c62] : memref<175xf32, #tpu.memory_space<smem>>
    %430 = vector.broadcast %429 : f32 to vector<27x27xf32>
    %431 = arith.mulf %430, %428 : vector<27x27xf32>
    %432 = arith.addf %427, %431 : vector<27x27xf32>
    %c3_244 = arith.constant 3 : index
    %c2_245 = arith.constant 2 : index
    %433 = vector.load %arg16[%c3_244, %c2_245] : memref<31x31xf32, #tpu.memory_space<vmem>>, vector<27x27xf32>
    %c63 = arith.constant 63 : index
    %434 = memref.load %arg1[%c63] : memref<175xf32, #tpu.memory_space<smem>>
    %435 = vector.broadcast %434 : f32 to vector<27x27xf32>
    %436 = arith.mulf %435, %433 : vector<27x27xf32>
    %437 = arith.addf %432, %436 : vector<27x27xf32>
    %c3_246 = arith.constant 3 : index
    %c3_247 = arith.constant 3 : index
    %438 = vector.load %arg16[%c3_246, %c3_247] : memref<31x31xf32, #tpu.memory_space<vmem>>, vector<27x27xf32>
    %c64 = arith.constant 64 : index
    %439 = memref.load %arg1[%c64] : memref<175xf32, #tpu.memory_space<smem>>
    %440 = vector.broadcast %439 : f32 to vector<27x27xf32>
    %441 = arith.mulf %440, %438 : vector<27x27xf32>
    %442 = arith.addf %437, %441 : vector<27x27xf32>
    %c3_248 = arith.constant 3 : index
    %c4_249 = arith.constant 4 : index
    %443 = vector.load %arg16[%c3_248, %c4_249] : memref<31x31xf32, #tpu.memory_space<vmem>>, vector<27x27xf32>
    %c65 = arith.constant 65 : index
    %444 = memref.load %arg1[%c65] : memref<175xf32, #tpu.memory_space<smem>>
    %445 = vector.broadcast %444 : f32 to vector<27x27xf32>
    %446 = arith.mulf %445, %443 : vector<27x27xf32>
    %447 = arith.addf %442, %446 : vector<27x27xf32>
    %c4_250 = arith.constant 4 : index
    %c0_251 = arith.constant 0 : index
    %448 = vector.load %arg16[%c4_250, %c0_251] : memref<31x31xf32, #tpu.memory_space<vmem>>, vector<27x27xf32>
    %c66 = arith.constant 66 : index
    %449 = memref.load %arg1[%c66] : memref<175xf32, #tpu.memory_space<smem>>
    %450 = vector.broadcast %449 : f32 to vector<27x27xf32>
    %451 = arith.mulf %450, %448 : vector<27x27xf32>
    %452 = arith.addf %447, %451 : vector<27x27xf32>
    %c4_252 = arith.constant 4 : index
    %c1_253 = arith.constant 1 : index
    %453 = vector.load %arg16[%c4_252, %c1_253] : memref<31x31xf32, #tpu.memory_space<vmem>>, vector<27x27xf32>
    %c67 = arith.constant 67 : index
    %454 = memref.load %arg1[%c67] : memref<175xf32, #tpu.memory_space<smem>>
    %455 = vector.broadcast %454 : f32 to vector<27x27xf32>
    %456 = arith.mulf %455, %453 : vector<27x27xf32>
    %457 = arith.addf %452, %456 : vector<27x27xf32>
    %c4_254 = arith.constant 4 : index
    %c2_255 = arith.constant 2 : index
    %458 = vector.load %arg16[%c4_254, %c2_255] : memref<31x31xf32, #tpu.memory_space<vmem>>, vector<27x27xf32>
    %c68 = arith.constant 68 : index
    %459 = memref.load %arg1[%c68] : memref<175xf32, #tpu.memory_space<smem>>
    %460 = vector.broadcast %459 : f32 to vector<27x27xf32>
    %461 = arith.mulf %460, %458 : vector<27x27xf32>
    %462 = arith.addf %457, %461 : vector<27x27xf32>
    %c4_256 = arith.constant 4 : index
    %c3_257 = arith.constant 3 : index
    %463 = vector.load %arg16[%c4_256, %c3_257] : memref<31x31xf32, #tpu.memory_space<vmem>>, vector<27x27xf32>
    %c69 = arith.constant 69 : index
    %464 = memref.load %arg1[%c69] : memref<175xf32, #tpu.memory_space<smem>>
    %465 = vector.broadcast %464 : f32 to vector<27x27xf32>
    %466 = arith.mulf %465, %463 : vector<27x27xf32>
    %467 = arith.addf %462, %466 : vector<27x27xf32>
    %c4_258 = arith.constant 4 : index
    %c4_259 = arith.constant 4 : index
    %468 = vector.load %arg16[%c4_258, %c4_259] : memref<31x31xf32, #tpu.memory_space<vmem>>, vector<27x27xf32>
    %c70 = arith.constant 70 : index
    %469 = memref.load %arg1[%c70] : memref<175xf32, #tpu.memory_space<smem>>
    %470 = vector.broadcast %469 : f32 to vector<27x27xf32>
    %471 = arith.mulf %470, %468 : vector<27x27xf32>
    %472 = arith.addf %467, %471 : vector<27x27xf32>
    %c71 = arith.constant 71 : index
    %473 = memref.load %arg1[%c71] : memref<175xf32, #tpu.memory_space<smem>>
    %474 = vector.broadcast %473 : f32 to vector<27x27xf32>
    %475 = arith.addf %472, %474 : vector<27x27xf32>
    %cst_260 = arith.constant 0.000000e+00 : f32
    %476 = vector.broadcast %cst_260 : f32 to vector<27x27xf32>
    %477 = arith.maximumf %475, %476 : vector<27x27xf32>
    %c2_261 = arith.constant 2 : index
    %c2_262 = arith.constant 2 : index
    %478 = vector.load %arg16[%c2_261, %c2_262] : memref<31x31xf32, #tpu.memory_space<vmem>>, vector<27x27xf32>
    tpu.vector_store %arg16[%c2_261, %c2_262], %477 {strides = array<i32>} : memref<31x31xf32, #tpu.memory_space<vmem>>, vector<27x27xf32>,
    %c1_263 = arith.constant 1 : index
    %c1_264 = arith.constant 1 : index
    %479 = vector.load %arg16[%c1_263, %c1_264] : memref<31x31xf32, #tpu.memory_space<vmem>>, vector<27x27xf32>
    %c72 = arith.constant 72 : index
    %480 = memref.load %arg1[%c72] : memref<175xf32, #tpu.memory_space<smem>>
    %481 = vector.broadcast %480 : f32 to vector<27x27xf32>
    %482 = arith.mulf %481, %479 : vector<27x27xf32>
    %c1_265 = arith.constant 1 : index
    %c2_266 = arith.constant 2 : index
    %483 = vector.load %arg16[%c1_265, %c2_266] : memref<31x31xf32, #tpu.memory_space<vmem>>, vector<27x27xf32>
    %c73 = arith.constant 73 : index
    %484 = memref.load %arg1[%c73] : memref<175xf32, #tpu.memory_space<smem>>
    %485 = vector.broadcast %484 : f32 to vector<27x27xf32>
    %486 = arith.mulf %485, %483 : vector<27x27xf32>
    %487 = arith.addf %482, %486 : vector<27x27xf32>
    %c1_267 = arith.constant 1 : index
    %c3_268 = arith.constant 3 : index
    %488 = vector.load %arg16[%c1_267, %c3_268] : memref<31x31xf32, #tpu.memory_space<vmem>>, vector<27x27xf32>
    %c74 = arith.constant 74 : index
    %489 = memref.load %arg1[%c74] : memref<175xf32, #tpu.memory_space<smem>>
    %490 = vector.broadcast %489 : f32 to vector<27x27xf32>
    %491 = arith.mulf %490, %488 : vector<27x27xf32>
    %492 = arith.addf %487, %491 : vector<27x27xf32>
    %c2_269 = arith.constant 2 : index
    %c1_270 = arith.constant 1 : index
    %493 = vector.load %arg16[%c2_269, %c1_270] : memref<31x31xf32, #tpu.memory_space<vmem>>, vector<27x27xf32>
    %c75 = arith.constant 75 : index
    %494 = memref.load %arg1[%c75] : memref<175xf32, #tpu.memory_space<smem>>
    %495 = vector.broadcast %494 : f32 to vector<27x27xf32>
    %496 = arith.mulf %495, %493 : vector<27x27xf32>
    %497 = arith.addf %492, %496 : vector<27x27xf32>
    %c2_271 = arith.constant 2 : index
    %c2_272 = arith.constant 2 : index
    %498 = vector.load %arg16[%c2_271, %c2_272] : memref<31x31xf32, #tpu.memory_space<vmem>>, vector<27x27xf32>
    %c76 = arith.constant 76 : index
    %499 = memref.load %arg1[%c76] : memref<175xf32, #tpu.memory_space<smem>>
    %500 = vector.broadcast %499 : f32 to vector<27x27xf32>
    %501 = arith.mulf %500, %498 : vector<27x27xf32>
    %502 = arith.addf %497, %501 : vector<27x27xf32>
    %c2_273 = arith.constant 2 : index
    %c3_274 = arith.constant 3 : index
    %503 = vector.load %arg16[%c2_273, %c3_274] : memref<31x31xf32, #tpu.memory_space<vmem>>, vector<27x27xf32>
    %c77 = arith.constant 77 : index
    %504 = memref.load %arg1[%c77] : memref<175xf32, #tpu.memory_space<smem>>
    %505 = vector.broadcast %504 : f32 to vector<27x27xf32>
    %506 = arith.mulf %505, %503 : vector<27x27xf32>
    %507 = arith.addf %502, %506 : vector<27x27xf32>
    %c3_275 = arith.constant 3 : index
    %c1_276 = arith.constant 1 : index
    %508 = vector.load %arg16[%c3_275, %c1_276] : memref<31x31xf32, #tpu.memory_space<vmem>>, vector<27x27xf32>
    %c78 = arith.constant 78 : index
    %509 = memref.load %arg1[%c78] : memref<175xf32, #tpu.memory_space<smem>>
    %510 = vector.broadcast %509 : f32 to vector<27x27xf32>
    %511 = arith.mulf %510, %508 : vector<27x27xf32>
    %512 = arith.addf %507, %511 : vector<27x27xf32>
    %c3_277 = arith.constant 3 : index
    %c2_278 = arith.constant 2 : index
    %513 = vector.load %arg16[%c3_277, %c2_278] : memref<31x31xf32, #tpu.memory_space<vmem>>, vector<27x27xf32>
    %c79 = arith.constant 79 : index
    %514 = memref.load %arg1[%c79] : memref<175xf32, #tpu.memory_space<smem>>
    %515 = vector.broadcast %514 : f32 to vector<27x27xf32>
    %516 = arith.mulf %515, %513 : vector<27x27xf32>
    %517 = arith.addf %512, %516 : vector<27x27xf32>
    %c3_279 = arith.constant 3 : index
    %c3_280 = arith.constant 3 : index
    %518 = vector.load %arg16[%c3_279, %c3_280] : memref<31x31xf32, #tpu.memory_space<vmem>>, vector<27x27xf32>
    %c80 = arith.constant 80 : index
    %519 = memref.load %arg1[%c80] : memref<175xf32, #tpu.memory_space<smem>>
    %520 = vector.broadcast %519 : f32 to vector<27x27xf32>
    %521 = arith.mulf %520, %518 : vector<27x27xf32>
    %522 = arith.addf %517, %521 : vector<27x27xf32>
    %c81 = arith.constant 81 : index
    %523 = memref.load %arg1[%c81] : memref<175xf32, #tpu.memory_space<smem>>
    %524 = vector.broadcast %523 : f32 to vector<27x27xf32>
    %525 = arith.addf %522, %524 : vector<27x27xf32>
    %cst_281 = arith.constant 0.000000e+00 : f32
    %526 = vector.broadcast %cst_281 : f32 to vector<27x27xf32>
    %527 = arith.maximumf %525, %526 : vector<27x27xf32>
    %c2_282 = arith.constant 2 : index
    %c2_283 = arith.constant 2 : index
    %528 = vector.load %arg16[%c2_282, %c2_283] : memref<31x31xf32, #tpu.memory_space<vmem>>, vector<27x27xf32>
    tpu.vector_store %arg16[%c2_282, %c2_283], %527 {strides = array<i32>} : memref<31x31xf32, #tpu.memory_space<vmem>>, vector<27x27xf32>,
    %c0_284 = arith.constant 0 : index
    %c0_285 = arith.constant 0 : index
    %529 = vector.load %arg16[%c0_284, %c0_285] : memref<31x31xf32, #tpu.memory_space<vmem>>, vector<27x27xf32>
    %c82 = arith.constant 82 : index
    %530 = memref.load %arg1[%c82] : memref<175xf32, #tpu.memory_space<smem>>
    %531 = vector.broadcast %530 : f32 to vector<27x27xf32>
    %532 = arith.mulf %531, %529 : vector<27x27xf32>
    %c0_286 = arith.constant 0 : index
    %c1_287 = arith.constant 1 : index
    %533 = vector.load %arg16[%c0_286, %c1_287] : memref<31x31xf32, #tpu.memory_space<vmem>>, vector<27x27xf32>
    %c83 = arith.constant 83 : index
    %534 = memref.load %arg1[%c83] : memref<175xf32, #tpu.memory_space<smem>>
    %535 = vector.broadcast %534 : f32 to vector<27x27xf32>
    %536 = arith.mulf %535, %533 : vector<27x27xf32>
    %537 = arith.addf %532, %536 : vector<27x27xf32>
    %c0_288 = arith.constant 0 : index
    %c2_289 = arith.constant 2 : index
    %538 = vector.load %arg16[%c0_288, %c2_289] : memref<31x31xf32, #tpu.memory_space<vmem>>, vector<27x27xf32>
    %c84 = arith.constant 84 : index
    %539 = memref.load %arg1[%c84] : memref<175xf32, #tpu.memory_space<smem>>
    %540 = vector.broadcast %539 : f32 to vector<27x27xf32>
    %541 = arith.mulf %540, %538 : vector<27x27xf32>
    %542 = arith.addf %537, %541 : vector<27x27xf32>
    %c0_290 = arith.constant 0 : index
    %c3_291 = arith.constant 3 : index
    %543 = vector.load %arg16[%c0_290, %c3_291] : memref<31x31xf32, #tpu.memory_space<vmem>>, vector<27x27xf32>
    %c85 = arith.constant 85 : index
    %544 = memref.load %arg1[%c85] : memref<175xf32, #tpu.memory_space<smem>>
    %545 = vector.broadcast %544 : f32 to vector<27x27xf32>
    %546 = arith.mulf %545, %543 : vector<27x27xf32>
    %547 = arith.addf %542, %546 : vector<27x27xf32>
    %c0_292 = arith.constant 0 : index
    %c4_293 = arith.constant 4 : index
    %548 = vector.load %arg16[%c0_292, %c4_293] : memref<31x31xf32, #tpu.memory_space<vmem>>, vector<27x27xf32>
    %c86 = arith.constant 86 : index
    %549 = memref.load %arg1[%c86] : memref<175xf32, #tpu.memory_space<smem>>
    %550 = vector.broadcast %549 : f32 to vector<27x27xf32>
    %551 = arith.mulf %550, %548 : vector<27x27xf32>
    %552 = arith.addf %547, %551 : vector<27x27xf32>
    %c1_294 = arith.constant 1 : index
    %c0_295 = arith.constant 0 : index
    %553 = vector.load %arg16[%c1_294, %c0_295] : memref<31x31xf32, #tpu.memory_space<vmem>>, vector<27x27xf32>
    %c87 = arith.constant 87 : index
    %554 = memref.load %arg1[%c87] : memref<175xf32, #tpu.memory_space<smem>>
    %555 = vector.broadcast %554 : f32 to vector<27x27xf32>
    %556 = arith.mulf %555, %553 : vector<27x27xf32>
    %557 = arith.addf %552, %556 : vector<27x27xf32>
    %c1_296 = arith.constant 1 : index
    %c1_297 = arith.constant 1 : index
    %558 = vector.load %arg16[%c1_296, %c1_297] : memref<31x31xf32, #tpu.memory_space<vmem>>, vector<27x27xf32>
    %c88 = arith.constant 88 : index
    %559 = memref.load %arg1[%c88] : memref<175xf32, #tpu.memory_space<smem>>
    %560 = vector.broadcast %559 : f32 to vector<27x27xf32>
    %561 = arith.mulf %560, %558 : vector<27x27xf32>
    %562 = arith.addf %557, %561 : vector<27x27xf32>
    %c1_298 = arith.constant 1 : index
    %c2_299 = arith.constant 2 : index
    %563 = vector.load %arg16[%c1_298, %c2_299] : memref<31x31xf32, #tpu.memory_space<vmem>>, vector<27x27xf32>
    %c89 = arith.constant 89 : index
    %564 = memref.load %arg1[%c89] : memref<175xf32, #tpu.memory_space<smem>>
    %565 = vector.broadcast %564 : f32 to vector<27x27xf32>
    %566 = arith.mulf %565, %563 : vector<27x27xf32>
    %567 = arith.addf %562, %566 : vector<27x27xf32>
    %c1_300 = arith.constant 1 : index
    %c3_301 = arith.constant 3 : index
    %568 = vector.load %arg16[%c1_300, %c3_301] : memref<31x31xf32, #tpu.memory_space<vmem>>, vector<27x27xf32>
    %c90 = arith.constant 90 : index
    %569 = memref.load %arg1[%c90] : memref<175xf32, #tpu.memory_space<smem>>
    %570 = vector.broadcast %569 : f32 to vector<27x27xf32>
    %571 = arith.mulf %570, %568 : vector<27x27xf32>
    %572 = arith.addf %567, %571 : vector<27x27xf32>
    %c1_302 = arith.constant 1 : index
    %c4_303 = arith.constant 4 : index
    %573 = vector.load %arg16[%c1_302, %c4_303] : memref<31x31xf32, #tpu.memory_space<vmem>>, vector<27x27xf32>
    %c91 = arith.constant 91 : index
    %574 = memref.load %arg1[%c91] : memref<175xf32, #tpu.memory_space<smem>>
    %575 = vector.broadcast %574 : f32 to vector<27x27xf32>
    %576 = arith.mulf %575, %573 : vector<27x27xf32>
    %577 = arith.addf %572, %576 : vector<27x27xf32>
    %c2_304 = arith.constant 2 : index
    %c0_305 = arith.constant 0 : index
    %578 = vector.load %arg16[%c2_304, %c0_305] : memref<31x31xf32, #tpu.memory_space<vmem>>, vector<27x27xf32>
    %c92 = arith.constant 92 : index
    %579 = memref.load %arg1[%c92] : memref<175xf32, #tpu.memory_space<smem>>
    %580 = vector.broadcast %579 : f32 to vector<27x27xf32>
    %581 = arith.mulf %580, %578 : vector<27x27xf32>
    %582 = arith.addf %577, %581 : vector<27x27xf32>
    %c2_306 = arith.constant 2 : index
    %c1_307 = arith.constant 1 : index
    %583 = vector.load %arg16[%c2_306, %c1_307] : memref<31x31xf32, #tpu.memory_space<vmem>>, vector<27x27xf32>
    %c93 = arith.constant 93 : index
    %584 = memref.load %arg1[%c93] : memref<175xf32, #tpu.memory_space<smem>>
    %585 = vector.broadcast %584 : f32 to vector<27x27xf32>
    %586 = arith.mulf %585, %583 : vector<27x27xf32>
    %587 = arith.addf %582, %586 : vector<27x27xf32>
    %c2_308 = arith.constant 2 : index
    %c2_309 = arith.constant 2 : index
    %588 = vector.load %arg16[%c2_308, %c2_309] : memref<31x31xf32, #tpu.memory_space<vmem>>, vector<27x27xf32>
    %c94 = arith.constant 94 : index
    %589 = memref.load %arg1[%c94] : memref<175xf32, #tpu.memory_space<smem>>
    %590 = vector.broadcast %589 : f32 to vector<27x27xf32>
    %591 = arith.mulf %590, %588 : vector<27x27xf32>
    %592 = arith.addf %587, %591 : vector<27x27xf32>
    %c2_310 = arith.constant 2 : index
    %c3_311 = arith.constant 3 : index
    %593 = vector.load %arg16[%c2_310, %c3_311] : memref<31x31xf32, #tpu.memory_space<vmem>>, vector<27x27xf32>
    %c95 = arith.constant 95 : index
    %594 = memref.load %arg1[%c95] : memref<175xf32, #tpu.memory_space<smem>>
    %595 = vector.broadcast %594 : f32 to vector<27x27xf32>
    %596 = arith.mulf %595, %593 : vector<27x27xf32>
    %597 = arith.addf %592, %596 : vector<27x27xf32>
    %c2_312 = arith.constant 2 : index
    %c4_313 = arith.constant 4 : index
    %598 = vector.load %arg16[%c2_312, %c4_313] : memref<31x31xf32, #tpu.memory_space<vmem>>, vector<27x27xf32>
    %c96 = arith.constant 96 : index
    %599 = memref.load %arg1[%c96] : memref<175xf32, #tpu.memory_space<smem>>
    %600 = vector.broadcast %599 : f32 to vector<27x27xf32>
    %601 = arith.mulf %600, %598 : vector<27x27xf32>
    %602 = arith.addf %597, %601 : vector<27x27xf32>
    %c3_314 = arith.constant 3 : index
    %c0_315 = arith.constant 0 : index
    %603 = vector.load %arg16[%c3_314, %c0_315] : memref<31x31xf32, #tpu.memory_space<vmem>>, vector<27x27xf32>
    %c97 = arith.constant 97 : index
    %604 = memref.load %arg1[%c97] : memref<175xf32, #tpu.memory_space<smem>>
    %605 = vector.broadcast %604 : f32 to vector<27x27xf32>
    %606 = arith.mulf %605, %603 : vector<27x27xf32>
    %607 = arith.addf %602, %606 : vector<27x27xf32>
    %c3_316 = arith.constant 3 : index
    %c1_317 = arith.constant 1 : index
    %608 = vector.load %arg16[%c3_316, %c1_317] : memref<31x31xf32, #tpu.memory_space<vmem>>, vector<27x27xf32>
    %c98 = arith.constant 98 : index
    %609 = memref.load %arg1[%c98] : memref<175xf32, #tpu.memory_space<smem>>
    %610 = vector.broadcast %609 : f32 to vector<27x27xf32>
    %611 = arith.mulf %610, %608 : vector<27x27xf32>
    %612 = arith.addf %607, %611 : vector<27x27xf32>
    %c3_318 = arith.constant 3 : index
    %c2_319 = arith.constant 2 : index
    %613 = vector.load %arg16[%c3_318, %c2_319] : memref<31x31xf32, #tpu.memory_space<vmem>>, vector<27x27xf32>
    %c99 = arith.constant 99 : index
    %614 = memref.load %arg1[%c99] : memref<175xf32, #tpu.memory_space<smem>>
    %615 = vector.broadcast %614 : f32 to vector<27x27xf32>
    %616 = arith.mulf %615, %613 : vector<27x27xf32>
    %617 = arith.addf %612, %616 : vector<27x27xf32>
    %c3_320 = arith.constant 3 : index
    %c3_321 = arith.constant 3 : index
    %618 = vector.load %arg16[%c3_320, %c3_321] : memref<31x31xf32, #tpu.memory_space<vmem>>, vector<27x27xf32>
    %c100 = arith.constant 100 : index
    %619 = memref.load %arg1[%c100] : memref<175xf32, #tpu.memory_space<smem>>
    %620 = vector.broadcast %619 : f32 to vector<27x27xf32>
    %621 = arith.mulf %620, %618 : vector<27x27xf32>
    %622 = arith.addf %617, %621 : vector<27x27xf32>
    %c3_322 = arith.constant 3 : index
    %c4_323 = arith.constant 4 : index
    %623 = vector.load %arg16[%c3_322, %c4_323] : memref<31x31xf32, #tpu.memory_space<vmem>>, vector<27x27xf32>
    %c101 = arith.constant 101 : index
    %624 = memref.load %arg1[%c101] : memref<175xf32, #tpu.memory_space<smem>>
    %625 = vector.broadcast %624 : f32 to vector<27x27xf32>
    %626 = arith.mulf %625, %623 : vector<27x27xf32>
    %627 = arith.addf %622, %626 : vector<27x27xf32>
    %c4_324 = arith.constant 4 : index
    %c0_325 = arith.constant 0 : index
    %628 = vector.load %arg16[%c4_324, %c0_325] : memref<31x31xf32, #tpu.memory_space<vmem>>, vector<27x27xf32>
    %c102 = arith.constant 102 : index
    %629 = memref.load %arg1[%c102] : memref<175xf32, #tpu.memory_space<smem>>
    %630 = vector.broadcast %629 : f32 to vector<27x27xf32>
    %631 = arith.mulf %630, %628 : vector<27x27xf32>
    %632 = arith.addf %627, %631 : vector<27x27xf32>
    %c4_326 = arith.constant 4 : index
    %c1_327 = arith.constant 1 : index
    %633 = vector.load %arg16[%c4_326, %c1_327] : memref<31x31xf32, #tpu.memory_space<vmem>>, vector<27x27xf32>
    %c103 = arith.constant 103 : index
    %634 = memref.load %arg1[%c103] : memref<175xf32, #tpu.memory_space<smem>>
    %635 = vector.broadcast %634 : f32 to vector<27x27xf32>
    %636 = arith.mulf %635, %633 : vector<27x27xf32>
    %637 = arith.addf %632, %636 : vector<27x27xf32>
    %c4_328 = arith.constant 4 : index
    %c2_329 = arith.constant 2 : index
    %638 = vector.load %arg16[%c4_328, %c2_329] : memref<31x31xf32, #tpu.memory_space<vmem>>, vector<27x27xf32>
    %c104 = arith.constant 104 : index
    %639 = memref.load %arg1[%c104] : memref<175xf32, #tpu.memory_space<smem>>
    %640 = vector.broadcast %639 : f32 to vector<27x27xf32>
    %641 = arith.mulf %640, %638 : vector<27x27xf32>
    %642 = arith.addf %637, %641 : vector<27x27xf32>
    %c4_330 = arith.constant 4 : index
    %c3_331 = arith.constant 3 : index
    %643 = vector.load %arg16[%c4_330, %c3_331] : memref<31x31xf32, #tpu.memory_space<vmem>>, vector<27x27xf32>
    %c105 = arith.constant 105 : index
    %644 = memref.load %arg1[%c105] : memref<175xf32, #tpu.memory_space<smem>>
    %645 = vector.broadcast %644 : f32 to vector<27x27xf32>
    %646 = arith.mulf %645, %643 : vector<27x27xf32>
    %647 = arith.addf %642, %646 : vector<27x27xf32>
    %c4_332 = arith.constant 4 : index
    %c4_333 = arith.constant 4 : index
    %648 = vector.load %arg16[%c4_332, %c4_333] : memref<31x31xf32, #tpu.memory_space<vmem>>, vector<27x27xf32>
    %c106 = arith.constant 106 : index
    %649 = memref.load %arg1[%c106] : memref<175xf32, #tpu.memory_space<smem>>
    %650 = vector.broadcast %649 : f32 to vector<27x27xf32>
    %651 = arith.mulf %650, %648 : vector<27x27xf32>
    %652 = arith.addf %647, %651 : vector<27x27xf32>
    %c107 = arith.constant 107 : index
    %653 = memref.load %arg1[%c107] : memref<175xf32, #tpu.memory_space<smem>>
    %654 = vector.broadcast %653 : f32 to vector<27x27xf32>
    %655 = arith.addf %652, %654 : vector<27x27xf32>
    %cst_334 = arith.constant 0.000000e+00 : f32
    %656 = vector.broadcast %cst_334 : f32 to vector<27x27xf32>
    %657 = arith.maximumf %655, %656 : vector<27x27xf32>
    %658 = arith.addf %347, %657 : vector<27x27xf32>
    %c2_335 = arith.constant 2 : index
    %c2_336 = arith.constant 2 : index
    %659 = vector.load %arg16[%c2_335, %c2_336] : memref<31x31xf32, #tpu.memory_space<vmem>>, vector<27x27xf32>
    tpu.vector_store %arg16[%c2_335, %c2_336], %658 {strides = array<i32>} : memref<31x31xf32, #tpu.memory_space<vmem>>, vector<27x27xf32>,
    %c0_337 = arith.constant 0 : index
    %c0_338 = arith.constant 0 : index
    %660 = vector.load %arg16[%c0_337, %c0_338] : memref<31x31xf32, #tpu.memory_space<vmem>>, vector<27x27xf32>
    %c108 = arith.constant 108 : index
    %661 = memref.load %arg1[%c108] : memref<175xf32, #tpu.memory_space<smem>>
    %662 = vector.broadcast %661 : f32 to vector<27x27xf32>
    %663 = arith.mulf %662, %660 : vector<27x27xf32>
    %c0_339 = arith.constant 0 : index
    %c1_340 = arith.constant 1 : index
    %664 = vector.load %arg16[%c0_339, %c1_340] : memref<31x31xf32, #tpu.memory_space<vmem>>, vector<27x27xf32>
    %c109 = arith.constant 109 : index
    %665 = memref.load %arg1[%c109] : memref<175xf32, #tpu.memory_space<smem>>
    %666 = vector.broadcast %665 : f32 to vector<27x27xf32>
    %667 = arith.mulf %666, %664 : vector<27x27xf32>
    %668 = arith.addf %663, %667 : vector<27x27xf32>
    %c0_341 = arith.constant 0 : index
    %c2_342 = arith.constant 2 : index
    %669 = vector.load %arg16[%c0_341, %c2_342] : memref<31x31xf32, #tpu.memory_space<vmem>>, vector<27x27xf32>
    %c110 = arith.constant 110 : index
    %670 = memref.load %arg1[%c110] : memref<175xf32, #tpu.memory_space<smem>>
    %671 = vector.broadcast %670 : f32 to vector<27x27xf32>
    %672 = arith.mulf %671, %669 : vector<27x27xf32>
    %673 = arith.addf %668, %672 : vector<27x27xf32>
    %c0_343 = arith.constant 0 : index
    %c3_344 = arith.constant 3 : index
    %674 = vector.load %arg16[%c0_343, %c3_344] : memref<31x31xf32, #tpu.memory_space<vmem>>, vector<27x27xf32>
    %c111 = arith.constant 111 : index
    %675 = memref.load %arg1[%c111] : memref<175xf32, #tpu.memory_space<smem>>
    %676 = vector.broadcast %675 : f32 to vector<27x27xf32>
    %677 = arith.mulf %676, %674 : vector<27x27xf32>
    %678 = arith.addf %673, %677 : vector<27x27xf32>
    %c0_345 = arith.constant 0 : index
    %c4_346 = arith.constant 4 : index
    %679 = vector.load %arg16[%c0_345, %c4_346] : memref<31x31xf32, #tpu.memory_space<vmem>>, vector<27x27xf32>
    %c112 = arith.constant 112 : index
    %680 = memref.load %arg1[%c112] : memref<175xf32, #tpu.memory_space<smem>>
    %681 = vector.broadcast %680 : f32 to vector<27x27xf32>
    %682 = arith.mulf %681, %679 : vector<27x27xf32>
    %683 = arith.addf %678, %682 : vector<27x27xf32>
    %c1_347 = arith.constant 1 : index
    %c0_348 = arith.constant 0 : index
    %684 = vector.load %arg16[%c1_347, %c0_348] : memref<31x31xf32, #tpu.memory_space<vmem>>, vector<27x27xf32>
    %c113 = arith.constant 113 : index
    %685 = memref.load %arg1[%c113] : memref<175xf32, #tpu.memory_space<smem>>
    %686 = vector.broadcast %685 : f32 to vector<27x27xf32>
    %687 = arith.mulf %686, %684 : vector<27x27xf32>
    %688 = arith.addf %683, %687 : vector<27x27xf32>
    %c1_349 = arith.constant 1 : index
    %c1_350 = arith.constant 1 : index
    %689 = vector.load %arg16[%c1_349, %c1_350] : memref<31x31xf32, #tpu.memory_space<vmem>>, vector<27x27xf32>
    %c114 = arith.constant 114 : index
    %690 = memref.load %arg1[%c114] : memref<175xf32, #tpu.memory_space<smem>>
    %691 = vector.broadcast %690 : f32 to vector<27x27xf32>
    %692 = arith.mulf %691, %689 : vector<27x27xf32>
    %693 = arith.addf %688, %692 : vector<27x27xf32>
    %c1_351 = arith.constant 1 : index
    %c2_352 = arith.constant 2 : index
    %694 = vector.load %arg16[%c1_351, %c2_352] : memref<31x31xf32, #tpu.memory_space<vmem>>, vector<27x27xf32>
    %c115 = arith.constant 115 : index
    %695 = memref.load %arg1[%c115] : memref<175xf32, #tpu.memory_space<smem>>
    %696 = vector.broadcast %695 : f32 to vector<27x27xf32>
    %697 = arith.mulf %696, %694 : vector<27x27xf32>
    %698 = arith.addf %693, %697 : vector<27x27xf32>
    %c1_353 = arith.constant 1 : index
    %c3_354 = arith.constant 3 : index
    %699 = vector.load %arg16[%c1_353, %c3_354] : memref<31x31xf32, #tpu.memory_space<vmem>>, vector<27x27xf32>
    %c116 = arith.constant 116 : index
    %700 = memref.load %arg1[%c116] : memref<175xf32, #tpu.memory_space<smem>>
    %701 = vector.broadcast %700 : f32 to vector<27x27xf32>
    %702 = arith.mulf %701, %699 : vector<27x27xf32>
    %703 = arith.addf %698, %702 : vector<27x27xf32>
    %c1_355 = arith.constant 1 : index
    %c4_356 = arith.constant 4 : index
    %704 = vector.load %arg16[%c1_355, %c4_356] : memref<31x31xf32, #tpu.memory_space<vmem>>, vector<27x27xf32>
    %c117 = arith.constant 117 : index
    %705 = memref.load %arg1[%c117] : memref<175xf32, #tpu.memory_space<smem>>
    %706 = vector.broadcast %705 : f32 to vector<27x27xf32>
    %707 = arith.mulf %706, %704 : vector<27x27xf32>
    %708 = arith.addf %703, %707 : vector<27x27xf32>
    %c2_357 = arith.constant 2 : index
    %c0_358 = arith.constant 0 : index
    %709 = vector.load %arg16[%c2_357, %c0_358] : memref<31x31xf32, #tpu.memory_space<vmem>>, vector<27x27xf32>
    %c118 = arith.constant 118 : index
    %710 = memref.load %arg1[%c118] : memref<175xf32, #tpu.memory_space<smem>>
    %711 = vector.broadcast %710 : f32 to vector<27x27xf32>
    %712 = arith.mulf %711, %709 : vector<27x27xf32>
    %713 = arith.addf %708, %712 : vector<27x27xf32>
    %c2_359 = arith.constant 2 : index
    %c1_360 = arith.constant 1 : index
    %714 = vector.load %arg16[%c2_359, %c1_360] : memref<31x31xf32, #tpu.memory_space<vmem>>, vector<27x27xf32>
    %c119 = arith.constant 119 : index
    %715 = memref.load %arg1[%c119] : memref<175xf32, #tpu.memory_space<smem>>
    %716 = vector.broadcast %715 : f32 to vector<27x27xf32>
    %717 = arith.mulf %716, %714 : vector<27x27xf32>
    %718 = arith.addf %713, %717 : vector<27x27xf32>
    %c2_361 = arith.constant 2 : index
    %c2_362 = arith.constant 2 : index
    %719 = vector.load %arg16[%c2_361, %c2_362] : memref<31x31xf32, #tpu.memory_space<vmem>>, vector<27x27xf32>
    %c120 = arith.constant 120 : index
    %720 = memref.load %arg1[%c120] : memref<175xf32, #tpu.memory_space<smem>>
    %721 = vector.broadcast %720 : f32 to vector<27x27xf32>
    %722 = arith.mulf %721, %719 : vector<27x27xf32>
    %723 = arith.addf %718, %722 : vector<27x27xf32>
    %c2_363 = arith.constant 2 : index
    %c3_364 = arith.constant 3 : index
    %724 = vector.load %arg16[%c2_363, %c3_364] : memref<31x31xf32, #tpu.memory_space<vmem>>, vector<27x27xf32>
    %c121 = arith.constant 121 : index
    %725 = memref.load %arg1[%c121] : memref<175xf32, #tpu.memory_space<smem>>
    %726 = vector.broadcast %725 : f32 to vector<27x27xf32>
    %727 = arith.mulf %726, %724 : vector<27x27xf32>
    %728 = arith.addf %723, %727 : vector<27x27xf32>
    %c2_365 = arith.constant 2 : index
    %c4_366 = arith.constant 4 : index
    %729 = vector.load %arg16[%c2_365, %c4_366] : memref<31x31xf32, #tpu.memory_space<vmem>>, vector<27x27xf32>
    %c122 = arith.constant 122 : index
    %730 = memref.load %arg1[%c122] : memref<175xf32, #tpu.memory_space<smem>>
    %731 = vector.broadcast %730 : f32 to vector<27x27xf32>
    %732 = arith.mulf %731, %729 : vector<27x27xf32>
    %733 = arith.addf %728, %732 : vector<27x27xf32>
    %c3_367 = arith.constant 3 : index
    %c0_368 = arith.constant 0 : index
    %734 = vector.load %arg16[%c3_367, %c0_368] : memref<31x31xf32, #tpu.memory_space<vmem>>, vector<27x27xf32>
    %c123 = arith.constant 123 : index
    %735 = memref.load %arg1[%c123] : memref<175xf32, #tpu.memory_space<smem>>
    %736 = vector.broadcast %735 : f32 to vector<27x27xf32>
    %737 = arith.mulf %736, %734 : vector<27x27xf32>
    %738 = arith.addf %733, %737 : vector<27x27xf32>
    %c3_369 = arith.constant 3 : index
    %c1_370 = arith.constant 1 : index
    %739 = vector.load %arg16[%c3_369, %c1_370] : memref<31x31xf32, #tpu.memory_space<vmem>>, vector<27x27xf32>
    %c124 = arith.constant 124 : index
    %740 = memref.load %arg1[%c124] : memref<175xf32, #tpu.memory_space<smem>>
    %741 = vector.broadcast %740 : f32 to vector<27x27xf32>
    %742 = arith.mulf %741, %739 : vector<27x27xf32>
    %743 = arith.addf %738, %742 : vector<27x27xf32>
    %c3_371 = arith.constant 3 : index
    %c2_372 = arith.constant 2 : index
    %744 = vector.load %arg16[%c3_371, %c2_372] : memref<31x31xf32, #tpu.memory_space<vmem>>, vector<27x27xf32>
    %c125 = arith.constant 125 : index
    %745 = memref.load %arg1[%c125] : memref<175xf32, #tpu.memory_space<smem>>
    %746 = vector.broadcast %745 : f32 to vector<27x27xf32>
    %747 = arith.mulf %746, %744 : vector<27x27xf32>
    %748 = arith.addf %743, %747 : vector<27x27xf32>
    %c3_373 = arith.constant 3 : index
    %c3_374 = arith.constant 3 : index
    %749 = vector.load %arg16[%c3_373, %c3_374] : memref<31x31xf32, #tpu.memory_space<vmem>>, vector<27x27xf32>
    %c126 = arith.constant 126 : index
    %750 = memref.load %arg1[%c126] : memref<175xf32, #tpu.memory_space<smem>>
    %751 = vector.broadcast %750 : f32 to vector<27x27xf32>
    %752 = arith.mulf %751, %749 : vector<27x27xf32>
    %753 = arith.addf %748, %752 : vector<27x27xf32>
    %c3_375 = arith.constant 3 : index
    %c4_376 = arith.constant 4 : index
    %754 = vector.load %arg16[%c3_375, %c4_376] : memref<31x31xf32, #tpu.memory_space<vmem>>, vector<27x27xf32>
    %c127 = arith.constant 127 : index
    %755 = memref.load %arg1[%c127] : memref<175xf32, #tpu.memory_space<smem>>
    %756 = vector.broadcast %755 : f32 to vector<27x27xf32>
    %757 = arith.mulf %756, %754 : vector<27x27xf32>
    %758 = arith.addf %753, %757 : vector<27x27xf32>
    %c4_377 = arith.constant 4 : index
    %c0_378 = arith.constant 0 : index
    %759 = vector.load %arg16[%c4_377, %c0_378] : memref<31x31xf32, #tpu.memory_space<vmem>>, vector<27x27xf32>
    %c128 = arith.constant 128 : index
    %760 = memref.load %arg1[%c128] : memref<175xf32, #tpu.memory_space<smem>>
    %761 = vector.broadcast %760 : f32 to vector<27x27xf32>
    %762 = arith.mulf %761, %759 : vector<27x27xf32>
    %763 = arith.addf %758, %762 : vector<27x27xf32>
    %c4_379 = arith.constant 4 : index
    %c1_380 = arith.constant 1 : index
    %764 = vector.load %arg16[%c4_379, %c1_380] : memref<31x31xf32, #tpu.memory_space<vmem>>, vector<27x27xf32>
    %c129 = arith.constant 129 : index
    %765 = memref.load %arg1[%c129] : memref<175xf32, #tpu.memory_space<smem>>
    %766 = vector.broadcast %765 : f32 to vector<27x27xf32>
    %767 = arith.mulf %766, %764 : vector<27x27xf32>
    %768 = arith.addf %763, %767 : vector<27x27xf32>
    %c4_381 = arith.constant 4 : index
    %c2_382 = arith.constant 2 : index
    %769 = vector.load %arg16[%c4_381, %c2_382] : memref<31x31xf32, #tpu.memory_space<vmem>>, vector<27x27xf32>
    %c130 = arith.constant 130 : index
    %770 = memref.load %arg1[%c130] : memref<175xf32, #tpu.memory_space<smem>>
    %771 = vector.broadcast %770 : f32 to vector<27x27xf32>
    %772 = arith.mulf %771, %769 : vector<27x27xf32>
    %773 = arith.addf %768, %772 : vector<27x27xf32>
    %c4_383 = arith.constant 4 : index
    %c3_384 = arith.constant 3 : index
    %774 = vector.load %arg16[%c4_383, %c3_384] : memref<31x31xf32, #tpu.memory_space<vmem>>, vector<27x27xf32>
    %c131 = arith.constant 131 : index
    %775 = memref.load %arg1[%c131] : memref<175xf32, #tpu.memory_space<smem>>
    %776 = vector.broadcast %775 : f32 to vector<27x27xf32>
    %777 = arith.mulf %776, %774 : vector<27x27xf32>
    %778 = arith.addf %773, %777 : vector<27x27xf32>
    %c4_385 = arith.constant 4 : index
    %c4_386 = arith.constant 4 : index
    %779 = vector.load %arg16[%c4_385, %c4_386] : memref<31x31xf32, #tpu.memory_space<vmem>>, vector<27x27xf32>
    %c132 = arith.constant 132 : index
    %780 = memref.load %arg1[%c132] : memref<175xf32, #tpu.memory_space<smem>>
    %781 = vector.broadcast %780 : f32 to vector<27x27xf32>
    %782 = arith.mulf %781, %779 : vector<27x27xf32>
    %783 = arith.addf %778, %782 : vector<27x27xf32>
    %c133 = arith.constant 133 : index
    %784 = memref.load %arg1[%c133] : memref<175xf32, #tpu.memory_space<smem>>
    %785 = vector.broadcast %784 : f32 to vector<27x27xf32>
    %786 = arith.addf %783, %785 : vector<27x27xf32>
    %cst_387 = arith.constant 0.000000e+00 : f32
    %787 = vector.broadcast %cst_387 : f32 to vector<27x27xf32>
    %788 = arith.maximumf %786, %787 : vector<27x27xf32>
    %c0_388 = arith.constant 0 : index
    %c0_389 = arith.constant 0 : index
    %c0_390 = arith.constant 0 : index
    %789 = vector.load %arg13[%c0_388, %c0_389, %c0_390] : memref<3x27x81xf32, #tpu.memory_space<vmem>>, vector<1x27x81xf32>
    %790 = vector.shape_cast %789 : vector<1x27x81xf32> to vector<27x81xf32>
    %cst_391 = arith.constant dense<0.000000e+00> : vector<27x81xf32>
    %791 = tpu.matmul %788, %790, %cst_391 {dimension_numbers = #tpu.dot_dimension_numbers<[1], [0], [0], [1], [0, 0, 1, 1], [], []>} : vector<27x27xf32>, vector<27x81xf32>, vector<27x81xf32> -> vector<27x81xf32>
    %c0_392 = arith.constant 0 : index
    %c0_393 = arith.constant 0 : index
    %c0_394 = arith.constant 0 : index
    %792 = vector.load %arg8[%c0_392, %c0_393, %c0_394] : memref<3x81x27xf32, #tpu.memory_space<vmem>>, vector<1x81x27xf32>
    %793 = vector.shape_cast %792 : vector<1x81x27xf32> to vector<81x27xf32>
    %cst_395 = arith.constant dense<0.000000e+00> : vector<81x81xf32>
    %794 = tpu.matmul %793, %791, %cst_395 {dimension_numbers = #tpu.dot_dimension_numbers<[1], [0], [0], [1], [0, 0, 1, 1], [], []>} : vector<81x27xf32>, vector<27x81xf32>, vector<81x81xf32> -> vector<81x81xf32>
    %c1_396 = arith.constant 1 : index
    %c0_397 = arith.constant 0 : index
    %c0_398 = arith.constant 0 : index
    %795 = vector.load %arg13[%c1_396, %c0_397, %c0_398] : memref<3x27x81xf32, #tpu.memory_space<vmem>>, vector<1x27x81xf32>
    %796 = vector.shape_cast %795 : vector<1x27x81xf32> to vector<27x81xf32>
    %cst_399 = arith.constant dense<0.000000e+00> : vector<27x81xf32>
    %797 = tpu.matmul %788, %796, %cst_399 {dimension_numbers = #tpu.dot_dimension_numbers<[1], [0], [0], [1], [0, 0, 1, 1], [], []>} : vector<27x27xf32>, vector<27x81xf32>, vector<27x81xf32> -> vector<27x81xf32>
    %c1_400 = arith.constant 1 : index
    %c0_401 = arith.constant 0 : index
    %c0_402 = arith.constant 0 : index
    %798 = vector.load %arg8[%c1_400, %c0_401, %c0_402] : memref<3x81x27xf32, #tpu.memory_space<vmem>>, vector<1x81x27xf32>
    %799 = vector.shape_cast %798 : vector<1x81x27xf32> to vector<81x27xf32>
    %cst_403 = arith.constant dense<0.000000e+00> : vector<81x81xf32>
    %800 = tpu.matmul %799, %797, %cst_403 {dimension_numbers = #tpu.dot_dimension_numbers<[1], [0], [0], [1], [0, 0, 1, 1], [], []>} : vector<81x27xf32>, vector<27x81xf32>, vector<81x81xf32> -> vector<81x81xf32>
    %801 = arith.addf %794, %800 : vector<81x81xf32>
    %c2_404 = arith.constant 2 : index
    %c0_405 = arith.constant 0 : index
    %c0_406 = arith.constant 0 : index
    %802 = vector.load %arg13[%c2_404, %c0_405, %c0_406] : memref<3x27x81xf32, #tpu.memory_space<vmem>>, vector<1x27x81xf32>
    %803 = vector.shape_cast %802 : vector<1x27x81xf32> to vector<27x81xf32>
    %cst_407 = arith.constant dense<0.000000e+00> : vector<27x81xf32>
    %804 = tpu.matmul %788, %803, %cst_407 {dimension_numbers = #tpu.dot_dimension_numbers<[1], [0], [0], [1], [0, 0, 1, 1], [], []>} : vector<27x27xf32>, vector<27x81xf32>, vector<27x81xf32> -> vector<27x81xf32>
    %c2_408 = arith.constant 2 : index
    %c0_409 = arith.constant 0 : index
    %c0_410 = arith.constant 0 : index
    %805 = vector.load %arg8[%c2_408, %c0_409, %c0_410] : memref<3x81x27xf32, #tpu.memory_space<vmem>>, vector<1x81x27xf32>
    %806 = vector.shape_cast %805 : vector<1x81x27xf32> to vector<81x27xf32>
    %cst_411 = arith.constant dense<0.000000e+00> : vector<81x81xf32>
    %807 = tpu.matmul %806, %804, %cst_411 {dimension_numbers = #tpu.dot_dimension_numbers<[1], [0], [0], [1], [0, 0, 1, 1], [], []>} : vector<81x27xf32>, vector<27x81xf32>, vector<81x81xf32> -> vector<81x81xf32>
    %808 = arith.addf %801, %807 : vector<81x81xf32>
    %c174 = arith.constant 174 : index
    %809 = memref.load %arg1[%c174] : memref<175xf32, #tpu.memory_space<smem>>
    %810 = vector.broadcast %809 : f32 to vector<81x81xf32>
    %811 = arith.addf %808, %810 : vector<81x81xf32>
    %cst_412 = arith.constant 0.000000e+00 : f32
    %812 = vector.broadcast %cst_412 : f32 to vector<81x81xf32>
    %813 = arith.maximumf %811, %812 : vector<81x81xf32>
    %c2_413 = arith.constant 2 : index
    %c2_414 = arith.constant 2 : index
    %814 = vector.load %arg15[%c2_413, %c2_414] : memref<85x85xf32, #tpu.memory_space<vmem>>, vector<81x81xf32>
    tpu.vector_store %arg15[%c2_413, %c2_414], %813 {strides = array<i32>} : memref<85x85xf32, #tpu.memory_space<vmem>>, vector<81x81xf32>,
    %c0_415 = arith.constant 0 : index
    %c0_416 = arith.constant 0 : index
    %815 = vector.load %arg15[%c0_415, %c0_416] : memref<85x85xf32, #tpu.memory_space<vmem>>, vector<81x81xf32>
    %c134 = arith.constant 134 : index
    %816 = memref.load %arg1[%c134] : memref<175xf32, #tpu.memory_space<smem>>
    %817 = vector.broadcast %816 : f32 to vector<81x81xf32>
    %818 = arith.mulf %817, %815 : vector<81x81xf32>
    %c0_417 = arith.constant 0 : index
    %c1_418 = arith.constant 1 : index
    %819 = vector.load %arg15[%c0_417, %c1_418] : memref<85x85xf32, #tpu.memory_space<vmem>>, vector<81x81xf32>
    %c135 = arith.constant 135 : index
    %820 = memref.load %arg1[%c135] : memref<175xf32, #tpu.memory_space<smem>>
    %821 = vector.broadcast %820 : f32 to vector<81x81xf32>
    %822 = arith.mulf %821, %819 : vector<81x81xf32>
    %823 = arith.addf %818, %822 : vector<81x81xf32>
    %c0_419 = arith.constant 0 : index
    %c2_420 = arith.constant 2 : index
    %824 = vector.load %arg15[%c0_419, %c2_420] : memref<85x85xf32, #tpu.memory_space<vmem>>, vector<81x81xf32>
    %c136 = arith.constant 136 : index
    %825 = memref.load %arg1[%c136] : memref<175xf32, #tpu.memory_space<smem>>
    %826 = vector.broadcast %825 : f32 to vector<81x81xf32>
    %827 = arith.mulf %826, %824 : vector<81x81xf32>
    %828 = arith.addf %823, %827 : vector<81x81xf32>
    %c0_421 = arith.constant 0 : index
    %c3_422 = arith.constant 3 : index
    %829 = vector.load %arg15[%c0_421, %c3_422] : memref<85x85xf32, #tpu.memory_space<vmem>>, vector<81x81xf32>
    %c137 = arith.constant 137 : index
    %830 = memref.load %arg1[%c137] : memref<175xf32, #tpu.memory_space<smem>>
    %831 = vector.broadcast %830 : f32 to vector<81x81xf32>
    %832 = arith.mulf %831, %829 : vector<81x81xf32>
    %833 = arith.addf %828, %832 : vector<81x81xf32>
    %c0_423 = arith.constant 0 : index
    %c4_424 = arith.constant 4 : index
    %834 = vector.load %arg15[%c0_423, %c4_424] : memref<85x85xf32, #tpu.memory_space<vmem>>, vector<81x81xf32>
    %c138 = arith.constant 138 : index
    %835 = memref.load %arg1[%c138] : memref<175xf32, #tpu.memory_space<smem>>
    %836 = vector.broadcast %835 : f32 to vector<81x81xf32>
    %837 = arith.mulf %836, %834 : vector<81x81xf32>
    %838 = arith.addf %833, %837 : vector<81x81xf32>
    %c1_425 = arith.constant 1 : index
    %c0_426 = arith.constant 0 : index
    %839 = vector.load %arg15[%c1_425, %c0_426] : memref<85x85xf32, #tpu.memory_space<vmem>>, vector<81x81xf32>
    %c139 = arith.constant 139 : index
    %840 = memref.load %arg1[%c139] : memref<175xf32, #tpu.memory_space<smem>>
    %841 = vector.broadcast %840 : f32 to vector<81x81xf32>
    %842 = arith.mulf %841, %839 : vector<81x81xf32>
    %843 = arith.addf %838, %842 : vector<81x81xf32>
    %c1_427 = arith.constant 1 : index
    %c1_428 = arith.constant 1 : index
    %844 = vector.load %arg15[%c1_427, %c1_428] : memref<85x85xf32, #tpu.memory_space<vmem>>, vector<81x81xf32>
    %c140 = arith.constant 140 : index
    %845 = memref.load %arg1[%c140] : memref<175xf32, #tpu.memory_space<smem>>
    %846 = vector.broadcast %845 : f32 to vector<81x81xf32>
    %847 = arith.mulf %846, %844 : vector<81x81xf32>
    %848 = arith.addf %843, %847 : vector<81x81xf32>
    %c1_429 = arith.constant 1 : index
    %c2_430 = arith.constant 2 : index
    %849 = vector.load %arg15[%c1_429, %c2_430] : memref<85x85xf32, #tpu.memory_space<vmem>>, vector<81x81xf32>
    %c141 = arith.constant 141 : index
    %850 = memref.load %arg1[%c141] : memref<175xf32, #tpu.memory_space<smem>>
    %851 = vector.broadcast %850 : f32 to vector<81x81xf32>
    %852 = arith.mulf %851, %849 : vector<81x81xf32>
    %853 = arith.addf %848, %852 : vector<81x81xf32>
    %c1_431 = arith.constant 1 : index
    %c3_432 = arith.constant 3 : index
    %854 = vector.load %arg15[%c1_431, %c3_432] : memref<85x85xf32, #tpu.memory_space<vmem>>, vector<81x81xf32>
    %c142 = arith.constant 142 : index
    %855 = memref.load %arg1[%c142] : memref<175xf32, #tpu.memory_space<smem>>
    %856 = vector.broadcast %855 : f32 to vector<81x81xf32>
    %857 = arith.mulf %856, %854 : vector<81x81xf32>
    %858 = arith.addf %853, %857 : vector<81x81xf32>
    %c1_433 = arith.constant 1 : index
    %c4_434 = arith.constant 4 : index
    %859 = vector.load %arg15[%c1_433, %c4_434] : memref<85x85xf32, #tpu.memory_space<vmem>>, vector<81x81xf32>
    %c143 = arith.constant 143 : index
    %860 = memref.load %arg1[%c143] : memref<175xf32, #tpu.memory_space<smem>>
    %861 = vector.broadcast %860 : f32 to vector<81x81xf32>
    %862 = arith.mulf %861, %859 : vector<81x81xf32>
    %863 = arith.addf %858, %862 : vector<81x81xf32>
    %c2_435 = arith.constant 2 : index
    %c0_436 = arith.constant 0 : index
    %864 = vector.load %arg15[%c2_435, %c0_436] : memref<85x85xf32, #tpu.memory_space<vmem>>, vector<81x81xf32>
    %c144 = arith.constant 144 : index
    %865 = memref.load %arg1[%c144] : memref<175xf32, #tpu.memory_space<smem>>
    %866 = vector.broadcast %865 : f32 to vector<81x81xf32>
    %867 = arith.mulf %866, %864 : vector<81x81xf32>
    %868 = arith.addf %863, %867 : vector<81x81xf32>
    %c2_437 = arith.constant 2 : index
    %c1_438 = arith.constant 1 : index
    %869 = vector.load %arg15[%c2_437, %c1_438] : memref<85x85xf32, #tpu.memory_space<vmem>>, vector<81x81xf32>
    %c145 = arith.constant 145 : index
    %870 = memref.load %arg1[%c145] : memref<175xf32, #tpu.memory_space<smem>>
    %871 = vector.broadcast %870 : f32 to vector<81x81xf32>
    %872 = arith.mulf %871, %869 : vector<81x81xf32>
    %873 = arith.addf %868, %872 : vector<81x81xf32>
    %c2_439 = arith.constant 2 : index
    %c2_440 = arith.constant 2 : index
    %874 = vector.load %arg15[%c2_439, %c2_440] : memref<85x85xf32, #tpu.memory_space<vmem>>, vector<81x81xf32>
    %c146 = arith.constant 146 : index
    %875 = memref.load %arg1[%c146] : memref<175xf32, #tpu.memory_space<smem>>
    %876 = vector.broadcast %875 : f32 to vector<81x81xf32>
    %877 = arith.mulf %876, %874 : vector<81x81xf32>
    %878 = arith.addf %873, %877 : vector<81x81xf32>
    %c2_441 = arith.constant 2 : index
    %c3_442 = arith.constant 3 : index
    %879 = vector.load %arg15[%c2_441, %c3_442] : memref<85x85xf32, #tpu.memory_space<vmem>>, vector<81x81xf32>
    %c147 = arith.constant 147 : index
    %880 = memref.load %arg1[%c147] : memref<175xf32, #tpu.memory_space<smem>>
    %881 = vector.broadcast %880 : f32 to vector<81x81xf32>
    %882 = arith.mulf %881, %879 : vector<81x81xf32>
    %883 = arith.addf %878, %882 : vector<81x81xf32>
    %c2_443 = arith.constant 2 : index
    %c4_444 = arith.constant 4 : index
    %884 = vector.load %arg15[%c2_443, %c4_444] : memref<85x85xf32, #tpu.memory_space<vmem>>, vector<81x81xf32>
    %c148 = arith.constant 148 : index
    %885 = memref.load %arg1[%c148] : memref<175xf32, #tpu.memory_space<smem>>
    %886 = vector.broadcast %885 : f32 to vector<81x81xf32>
    %887 = arith.mulf %886, %884 : vector<81x81xf32>
    %888 = arith.addf %883, %887 : vector<81x81xf32>
    %c3_445 = arith.constant 3 : index
    %c0_446 = arith.constant 0 : index
    %889 = vector.load %arg15[%c3_445, %c0_446] : memref<85x85xf32, #tpu.memory_space<vmem>>, vector<81x81xf32>
    %c149 = arith.constant 149 : index
    %890 = memref.load %arg1[%c149] : memref<175xf32, #tpu.memory_space<smem>>
    %891 = vector.broadcast %890 : f32 to vector<81x81xf32>
    %892 = arith.mulf %891, %889 : vector<81x81xf32>
    %893 = arith.addf %888, %892 : vector<81x81xf32>
    %c3_447 = arith.constant 3 : index
    %c1_448 = arith.constant 1 : index
    %894 = vector.load %arg15[%c3_447, %c1_448] : memref<85x85xf32, #tpu.memory_space<vmem>>, vector<81x81xf32>
    %c150 = arith.constant 150 : index
    %895 = memref.load %arg1[%c150] : memref<175xf32, #tpu.memory_space<smem>>
    %896 = vector.broadcast %895 : f32 to vector<81x81xf32>
    %897 = arith.mulf %896, %894 : vector<81x81xf32>
    %898 = arith.addf %893, %897 : vector<81x81xf32>
    %c3_449 = arith.constant 3 : index
    %c2_450 = arith.constant 2 : index
    %899 = vector.load %arg15[%c3_449, %c2_450] : memref<85x85xf32, #tpu.memory_space<vmem>>, vector<81x81xf32>
    %c151 = arith.constant 151 : index
    %900 = memref.load %arg1[%c151] : memref<175xf32, #tpu.memory_space<smem>>
    %901 = vector.broadcast %900 : f32 to vector<81x81xf32>
    %902 = arith.mulf %901, %899 : vector<81x81xf32>
    %903 = arith.addf %898, %902 : vector<81x81xf32>
    %c3_451 = arith.constant 3 : index
    %c3_452 = arith.constant 3 : index
    %904 = vector.load %arg15[%c3_451, %c3_452] : memref<85x85xf32, #tpu.memory_space<vmem>>, vector<81x81xf32>
    %c152 = arith.constant 152 : index
    %905 = memref.load %arg1[%c152] : memref<175xf32, #tpu.memory_space<smem>>
    %906 = vector.broadcast %905 : f32 to vector<81x81xf32>
    %907 = arith.mulf %906, %904 : vector<81x81xf32>
    %908 = arith.addf %903, %907 : vector<81x81xf32>
    %c3_453 = arith.constant 3 : index
    %c4_454 = arith.constant 4 : index
    %909 = vector.load %arg15[%c3_453, %c4_454] : memref<85x85xf32, #tpu.memory_space<vmem>>, vector<81x81xf32>
    %c153 = arith.constant 153 : index
    %910 = memref.load %arg1[%c153] : memref<175xf32, #tpu.memory_space<smem>>
    %911 = vector.broadcast %910 : f32 to vector<81x81xf32>
    %912 = arith.mulf %911, %909 : vector<81x81xf32>
    %913 = arith.addf %908, %912 : vector<81x81xf32>
    %c4_455 = arith.constant 4 : index
    %c0_456 = arith.constant 0 : index
    %914 = vector.load %arg15[%c4_455, %c0_456] : memref<85x85xf32, #tpu.memory_space<vmem>>, vector<81x81xf32>
    %c154 = arith.constant 154 : index
    %915 = memref.load %arg1[%c154] : memref<175xf32, #tpu.memory_space<smem>>
    %916 = vector.broadcast %915 : f32 to vector<81x81xf32>
    %917 = arith.mulf %916, %914 : vector<81x81xf32>
    %918 = arith.addf %913, %917 : vector<81x81xf32>
    %c4_457 = arith.constant 4 : index
    %c1_458 = arith.constant 1 : index
    %919 = vector.load %arg15[%c4_457, %c1_458] : memref<85x85xf32, #tpu.memory_space<vmem>>, vector<81x81xf32>
    %c155 = arith.constant 155 : index
    %920 = memref.load %arg1[%c155] : memref<175xf32, #tpu.memory_space<smem>>
    %921 = vector.broadcast %920 : f32 to vector<81x81xf32>
    %922 = arith.mulf %921, %919 : vector<81x81xf32>
    %923 = arith.addf %918, %922 : vector<81x81xf32>
    %c4_459 = arith.constant 4 : index
    %c2_460 = arith.constant 2 : index
    %924 = vector.load %arg15[%c4_459, %c2_460] : memref<85x85xf32, #tpu.memory_space<vmem>>, vector<81x81xf32>
    %c156 = arith.constant 156 : index
    %925 = memref.load %arg1[%c156] : memref<175xf32, #tpu.memory_space<smem>>
    %926 = vector.broadcast %925 : f32 to vector<81x81xf32>
    %927 = arith.mulf %926, %924 : vector<81x81xf32>
    %928 = arith.addf %923, %927 : vector<81x81xf32>
    %c4_461 = arith.constant 4 : index
    %c3_462 = arith.constant 3 : index
    %929 = vector.load %arg15[%c4_461, %c3_462] : memref<85x85xf32, #tpu.memory_space<vmem>>, vector<81x81xf32>
    %c157 = arith.constant 157 : index
    %930 = memref.load %arg1[%c157] : memref<175xf32, #tpu.memory_space<smem>>
    %931 = vector.broadcast %930 : f32 to vector<81x81xf32>
    %932 = arith.mulf %931, %929 : vector<81x81xf32>
    %933 = arith.addf %928, %932 : vector<81x81xf32>
    %c4_463 = arith.constant 4 : index
    %c4_464 = arith.constant 4 : index
    %934 = vector.load %arg15[%c4_463, %c4_464] : memref<85x85xf32, #tpu.memory_space<vmem>>, vector<81x81xf32>
    %c158 = arith.constant 158 : index
    %935 = memref.load %arg1[%c158] : memref<175xf32, #tpu.memory_space<smem>>
    %936 = vector.broadcast %935 : f32 to vector<81x81xf32>
    %937 = arith.mulf %936, %934 : vector<81x81xf32>
    %938 = arith.addf %933, %937 : vector<81x81xf32>
    %c159 = arith.constant 159 : index
    %939 = memref.load %arg1[%c159] : memref<175xf32, #tpu.memory_space<smem>>
    %940 = vector.broadcast %939 : f32 to vector<81x81xf32>
    %941 = arith.addf %938, %940 : vector<81x81xf32>
    %c2_465 = arith.constant 2 : index
    %c2_466 = arith.constant 2 : index
    %942 = vector.load %arg15[%c2_465, %c2_466] : memref<85x85xf32, #tpu.memory_space<vmem>>, vector<81x81xf32>
    tpu.vector_store %arg15[%c2_465, %c2_466], %941 {strides = array<i32>} : memref<85x85xf32, #tpu.memory_space<vmem>>, vector<81x81xf32>,
    %c1_467 = arith.constant 1 : index
    %c1_468 = arith.constant 1 : index
    %943 = vector.load %arg15[%c1_467, %c1_468] : memref<85x85xf32, #tpu.memory_space<vmem>>, vector<81x81xf32>
    %c160 = arith.constant 160 : index
    %944 = memref.load %arg1[%c160] : memref<175xf32, #tpu.memory_space<smem>>
    %945 = vector.broadcast %944 : f32 to vector<81x81xf32>
    %946 = arith.mulf %945, %943 : vector<81x81xf32>
    %c1_469 = arith.constant 1 : index
    %c2_470 = arith.constant 2 : index
    %947 = vector.load %arg15[%c1_469, %c2_470] : memref<85x85xf32, #tpu.memory_space<vmem>>, vector<81x81xf32>
    %c161 = arith.constant 161 : index
    %948 = memref.load %arg1[%c161] : memref<175xf32, #tpu.memory_space<smem>>
    %949 = vector.broadcast %948 : f32 to vector<81x81xf32>
    %950 = arith.mulf %949, %947 : vector<81x81xf32>
    %951 = arith.addf %946, %950 : vector<81x81xf32>
    %c1_471 = arith.constant 1 : index
    %c3_472 = arith.constant 3 : index
    %952 = vector.load %arg15[%c1_471, %c3_472] : memref<85x85xf32, #tpu.memory_space<vmem>>, vector<81x81xf32>
    %c162 = arith.constant 162 : index
    %953 = memref.load %arg1[%c162] : memref<175xf32, #tpu.memory_space<smem>>
    %954 = vector.broadcast %953 : f32 to vector<81x81xf32>
    %955 = arith.mulf %954, %952 : vector<81x81xf32>
    %956 = arith.addf %951, %955 : vector<81x81xf32>
    %c2_473 = arith.constant 2 : index
    %c1_474 = arith.constant 1 : index
    %957 = vector.load %arg15[%c2_473, %c1_474] : memref<85x85xf32, #tpu.memory_space<vmem>>, vector<81x81xf32>
    %c163 = arith.constant 163 : index
    %958 = memref.load %arg1[%c163] : memref<175xf32, #tpu.memory_space<smem>>
    %959 = vector.broadcast %958 : f32 to vector<81x81xf32>
    %960 = arith.mulf %959, %957 : vector<81x81xf32>
    %961 = arith.addf %956, %960 : vector<81x81xf32>
    %c2_475 = arith.constant 2 : index
    %c2_476 = arith.constant 2 : index
    %962 = vector.load %arg15[%c2_475, %c2_476] : memref<85x85xf32, #tpu.memory_space<vmem>>, vector<81x81xf32>
    %c164 = arith.constant 164 : index
    %963 = memref.load %arg1[%c164] : memref<175xf32, #tpu.memory_space<smem>>
    %964 = vector.broadcast %963 : f32 to vector<81x81xf32>
    %965 = arith.mulf %964, %962 : vector<81x81xf32>
    %966 = arith.addf %961, %965 : vector<81x81xf32>
    %c2_477 = arith.constant 2 : index
    %c3_478 = arith.constant 3 : index
    %967 = vector.load %arg15[%c2_477, %c3_478] : memref<85x85xf32, #tpu.memory_space<vmem>>, vector<81x81xf32>
    %c165 = arith.constant 165 : index
    %968 = memref.load %arg1[%c165] : memref<175xf32, #tpu.memory_space<smem>>
    %969 = vector.broadcast %968 : f32 to vector<81x81xf32>
    %970 = arith.mulf %969, %967 : vector<81x81xf32>
    %971 = arith.addf %966, %970 : vector<81x81xf32>
    %c3_479 = arith.constant 3 : index
    %c1_480 = arith.constant 1 : index
    %972 = vector.load %arg15[%c3_479, %c1_480] : memref<85x85xf32, #tpu.memory_space<vmem>>, vector<81x81xf32>
    %c166 = arith.constant 166 : index
    %973 = memref.load %arg1[%c166] : memref<175xf32, #tpu.memory_space<smem>>
    %974 = vector.broadcast %973 : f32 to vector<81x81xf32>
    %975 = arith.mulf %974, %972 : vector<81x81xf32>
    %976 = arith.addf %971, %975 : vector<81x81xf32>
    %c3_481 = arith.constant 3 : index
    %c2_482 = arith.constant 2 : index
    %977 = vector.load %arg15[%c3_481, %c2_482] : memref<85x85xf32, #tpu.memory_space<vmem>>, vector<81x81xf32>
    %c167 = arith.constant 167 : index
    %978 = memref.load %arg1[%c167] : memref<175xf32, #tpu.memory_space<smem>>
    %979 = vector.broadcast %978 : f32 to vector<81x81xf32>
    %980 = arith.mulf %979, %977 : vector<81x81xf32>
    %981 = arith.addf %976, %980 : vector<81x81xf32>
    %c3_483 = arith.constant 3 : index
    %c3_484 = arith.constant 3 : index
    %982 = vector.load %arg15[%c3_483, %c3_484] : memref<85x85xf32, #tpu.memory_space<vmem>>, vector<81x81xf32>
    %c168 = arith.constant 168 : index
    %983 = memref.load %arg1[%c168] : memref<175xf32, #tpu.memory_space<smem>>
    %984 = vector.broadcast %983 : f32 to vector<81x81xf32>
    %985 = arith.mulf %984, %982 : vector<81x81xf32>
    %986 = arith.addf %981, %985 : vector<81x81xf32>
    %c169 = arith.constant 169 : index
    %987 = memref.load %arg1[%c169] : memref<175xf32, #tpu.memory_space<smem>>
    %988 = vector.broadcast %987 : f32 to vector<81x81xf32>
    %989 = arith.addf %986, %988 : vector<81x81xf32>
    %c0_485 = arith.constant 0 : index
    %c0_486 = arith.constant 0 : index
    %990 = vector.load %arg4[%c0_485, %c0_486] : memref<1x81xf32, #tpu.memory_space<vmem>>, vector<1x81xf32>
    %991 = vector.broadcast %990 : vector<1x81xf32> to vector<81x81xf32>
    %992 = arith.mulf %989, %991 : vector<81x81xf32>
    %c0_487 = arith.constant 0 : index
    %c0_488 = arith.constant 0 : index
    %c0_489 = arith.constant 0 : index
    %993 = vector.load %arg14[%c0_487, %c0_488, %c0_489] : memref<1x81x81xf32, #tpu.memory_space<vmem>>, vector<1x81x81xf32>
    %994 = vector.shape_cast %993 : vector<1x81x81xf32> to vector<81x81xf32>
    %995 = vector.shape_cast %992 : vector<81x81xf32> to vector<1x81x81xf32>
    tpu.vector_store %arg14[%c0_487, %c0_488, %c0_489], %995 {strides = array<i32>} : memref<1x81x81xf32, #tpu.memory_space<vmem>>, vector<1x81x81xf32>,
    return
  }
  func.func @transform_0(%arg0: i32) -> i32 {
    %c0_i32 = arith.constant 0 : i32
    %c0_i32_0 = arith.constant 0 : i32
    return %c0_i32 : i32
  }
  func.func @transform_1(%arg0: i32) -> (i32, i32, i32) {
    %c0_i32 = arith.constant 0 : i32
    %c0_i32_0 = arith.constant 0 : i32
    %c0_i32_1 = arith.constant 0 : i32
    return %arg0, %c0_i32, %c0_i32_0 : i32, i32, i32
  }
  func.func @transform_2(%arg0: i32) -> (i32, i32, i32) {
    %c0_i32 = arith.constant 0 : i32
    %c0_i32_0 = arith.constant 0 : i32
    %c0_i32_1 = arith.constant 0 : i32
    return %arg0, %c0_i32, %c0_i32_0 : i32, i32, i32
  }
  func.func @transform_3(%arg0: i32) -> (i32, i32) {
    %c0_i32 = arith.constant 0 : i32
    %c0_i32_0 = arith.constant 0 : i32
    %c0_i32_1 = arith.constant 0 : i32
    return %c0_i32, %c0_i32_0 : i32, i32
  }
  func.func @transform_4(%arg0: i32) -> (i32, i32, i32) {
    %c0_i32 = arith.constant 0 : i32
    %c0_i32_0 = arith.constant 0 : i32
    %c0_i32_1 = arith.constant 0 : i32
    %c0_i32_2 = arith.constant 0 : i32
    return %c0_i32, %c0_i32_0, %c0_i32_1 : i32, i32, i32
  }
  func.func @transform_5(%arg0: i32) -> (i32, i32, i32) {
    %c0_i32 = arith.constant 0 : i32
    %c0_i32_0 = arith.constant 0 : i32
    %c0_i32_1 = arith.constant 0 : i32
    %c0_i32_2 = arith.constant 0 : i32
    return %c0_i32, %c0_i32_0, %c0_i32_1 : i32, i32, i32
  }
  func.func @transform_6(%arg0: i32) -> (i32, i32, i32) {
    %c0_i32 = arith.constant 0 : i32
    %c0_i32_0 = arith.constant 0 : i32
    %c0_i32_1 = arith.constant 0 : i32
    %c0_i32_2 = arith.constant 0 : i32
    return %c0_i32, %c0_i32_0, %c0_i32_1 : i32, i32, i32
  }
  func.func @transform_7(%arg0: i32) -> (i32, i32, i32) {
    %c0_i32 = arith.constant 0 : i32
    %c0_i32_0 = arith.constant 0 : i32
    %c0_i32_1 = arith.constant 0 : i32
    %c0_i32_2 = arith.constant 0 : i32
    return %c0_i32, %c0_i32_0, %c0_i32_1 : i32, i32, i32
  }
  func.func @transform_8(%arg0: i32) -> (i32, i32, i32) {
    %c0_i32 = arith.constant 0 : i32
    %c0_i32_0 = arith.constant 0 : i32
    %c0_i32_1 = arith.constant 0 : i32
    %c0_i32_2 = arith.constant 0 : i32
    return %c0_i32, %c0_i32_0, %c0_i32_1 : i32, i32, i32
  }
  func.func @transform_9(%arg0: i32) -> (i32, i32, i32) {
    %c0_i32 = arith.constant 0 : i32
    %c0_i32_0 = arith.constant 0 : i32
    %c0_i32_1 = arith.constant 0 : i32
    %c0_i32_2 = arith.constant 0 : i32
    return %c0_i32, %c0_i32_0, %c0_i32_1 : i32, i32, i32
  }
  func.func @transform_10(%arg0: i32) -> (i32, i32, i32) {
    %c0_i32 = arith.constant 0 : i32
    %c0_i32_0 = arith.constant 0 : i32
    %c0_i32_1 = arith.constant 0 : i32
    %c0_i32_2 = arith.constant 0 : i32
    return %c0_i32, %c0_i32_0, %c0_i32_1 : i32, i32, i32
  }
  func.func @transform_11(%arg0: i32) -> (i32, i32, i32) {
    %c0_i32 = arith.constant 0 : i32
    %c0_i32_0 = arith.constant 0 : i32
    %c0_i32_1 = arith.constant 0 : i32
    %c0_i32_2 = arith.constant 0 : i32
    return %c0_i32, %c0_i32_0, %c0_i32_1 : i32, i32, i32
  }
  func.func @transform_12(%arg0: i32) -> (i32, i32, i32) {
    %c0_i32 = arith.constant 0 : i32
    %c0_i32_0 = arith.constant 0 : i32
    %c0_i32_1 = arith.constant 0 : i32
    %c0_i32_2 = arith.constant 0 : i32
    return %c0_i32, %c0_i32_0, %c0_i32_1 : i32, i32, i32
  }
  func.func @transform_13(%arg0: i32) -> (i32, i32, i32) {
    %c0_i32 = arith.constant 0 : i32
    %c0_i32_0 = arith.constant 0 : i32
    %c0_i32_1 = arith.constant 0 : i32
    return %arg0, %c0_i32, %c0_i32_0 : i32, i32, i32
  }
}

</mosaic_0001>

<bundles_post_ra>
// kernel: _lambda_.1
= control target key start
LH: loop header
LB: loop body
LE: loop exit
PB: predicated region body
PF: predicated region fallthrough
CT: control target
= control target key end

     0   :  { %18 = vsyncpa [#allocation5], 0  ;;  %s11191_s25 = smov 0   ;;  %s16457_s0 = inlined_call_operand.vmem [shape: f32[175], index: 0, kind: input, shape index: {}]   ;;  %s16458_s1 = inlined_call_operand.vmem [shape: f32[2,81,81], index: 1, kind: input, shape index: {}]   ;;  %s16459_s2 = inlined_call_operand.vmem [shape: f32[2,9,9], index: 2, kind: input, shape index: {}]   ;;  %s16460_s3 = inlined_call_operand.vmem [shape: f32[1,81], index: 3, kind: input, shape index: {}]   ;;  %s16461_s4 = inlined_call_operand.vmem [shape: f32[3,27,81], index: 4, kind: input, shape index: {}]   ;;  %s16462_s5 = inlined_call_operand.vmem [shape: f32[3,9,27], index: 5, kind: input, shape index: {}]   ;;  %s16463_s6 = inlined_call_operand.vmem [shape: f32[3,27,9], index: 6, kind: input, shape index: {}]   ;;  %s16464_s7 = inlined_call_operand.vmem [shape: f32[3,81,27], index: 7, kind: input, shape index: {}]   ;;  %s16465_s8 = inlined_call_operand.vmem [shape: f32[3,81,27], index: 8, kind: input, shape index: {}]   ;;  %s16466_s9 = inlined_call_operand.vmem [shape: f32[3,27,9], index: 9, kind: input, shape index: {}]   ;;  %s16467_s10 = inlined_call_operand.vmem [shape: f32[3,27,9], index: 10, kind: input, shape index: {}]   ;;  %s16468_s11 = inlined_call_operand.vmem [shape: f32[3,9,27], index: 11, kind: input, shape index: {}]   ;;  %s16469_s12 = inlined_call_operand.vmem [shape: f32[3,27,81], index: 12, kind: input, shape index: {}]   ;;  %s16470_s13 = inlined_call_operand.vmem [shape: f32[2,81,81], index: 13, kind: output, shape index: {}]  }
   0x1 LB: > { %s11197_s26 = sadd.s32 4294967295, %s11110_s25   ;;  %p9677_p0 = scmp.ge.s32.totalorder %s11110_s25, 1  ;;  %s11110_s25 = sphi %s11191_s25, %s24_s25  }
   0x2   : > { %p338_p1 = scmp.lt.s32.totalorder %s11110_s25, 3  ;;  %s351_s29 = sshll.u32 %s16457_s0, 4  ;;  %s352_s29 = int_to_ptr.vmem [resolvable:$true] %s351_s29 }
   0x3   : > { %p11048_p3 = scmp.eq.s32.totalorder %s11197_s26, 0  ;;  %s11085_s14 = scalar_lea.vmem %s352_s29, 32 }
   0x4   : > { %p11204_p2 = pnand %p9677_p0, %p338_p1  ;;  %p11086_p6 = scmp.ne.s32.totalorder %s352_s29, %s11085_s14 }
   0x5   : > { %p11093_p10 = scmp.lt.s32.totalorder %s352_s29, %s352_s29  ;;  %p11094_p11 = scmp.lt.s32.totalorder %s11085_s14, %s11085_s14 }
   0x6   : > { %p11044_p4 = pneg %p11204_p2 }
   0x7   : > { %p11095_p12 = por %p11094_p11, %p11093_p10 }
   0x8   : > { %p11045_p5 = pnand %p11048_p3, %p11044_p4 }
   0xa   : > { %p11087_p7 = pneg %p11045_p5 }
   0xc   : > { %p11088_p8 = pnand %p11087_p7, %p11086_p6 }
   0xe   : > { %p11089_p9 = pneg %p11088_p8 }
  0x10   : > { %p11096_p13 = pnand %p11095_p12, %p11089_p9 }
  0x12   : > { %11099 = shalt.err (!%p11096_p13)
}
  0x13   : > { %s11112_s15 = smov [#allocation4]   ;;  %410 = sbr.rel (%p11204_p2) target bundleno = 6907 (0x1afb), region = 72 }
  0x14   : > { %11047 = dma.vmem_to_smem (!%p11045_p5), %s352_s29, 32, %s11112_s15, [#allocation5]  }
  0x18   : > { %11105 = dma.done.wait (%p11048_p3), [#allocation5], 32  }
  0x19   : > { %11107 = vsyncadd (%p11048_p3), [#allocation5], 4294967264 }
  0x1a   : > { %416 = sfence }
  0x1b   : > { %p460_p0 = scmp.lt.s32.totalorder %s11197_s26, 1  ;;  %vm475_vm0 = vcmask 695296   ;;  %v16471_v0 = vmov 0.0   ;;  %s11114_s20 = smov 2   ;;  %vm486_vm1 = vcmask 692224   ;;  %vm551_vm2 = vcmask 678928  }
  0x1c   : > { %476 = vst.msk [vmem:[#allocation2] sm:$0xff] %vm475_vm0, %v16471_v0  ;;  %477 = vst.msk [vmem:[#allocation2 + $0x8] sm:$0xff] %vm475_vm0, %v16471_v0  ;;  %10424 = vmatprep.subr.mxu0 %v16471_v0  ;;  %10479 = vmatprep.subr.mxu1 %v16471_v0  ;;  %s11115_s21 = smov 1   ;;  %s9687_s22 = sld [smem:[#allocation4 + $0x2]]  ;;  %vm562_vm3 = vcmask 671760   ;;  %vm1201_vm4 = vcmask 1040384  }
  0x1d   : > { %478 = vst.msk [vmem:[#allocation2 + $0x10] sm:$0xff] %vm475_vm0, %v16471_v0  ;;  %479 = vst.msk [vmem:[#allocation2 + $0x18] sm:$0xff] %vm475_vm0, %v16471_v0  ;;  %s16800_s26 = smov (!%p460_p0, %s11197_s26), 1  ;;  %s9686_s23 = sld [smem:[#allocation4 + $0x1]]  ;;  %vm11118_vm5 = vmmov 0   ;;  %vm1178_vm6 = vcmask 662528  }
  0x1e   : > { %480 = vst.msk [vmem:[#allocation2 + $0x20] sm:$0xff] %vm475_vm0, %v16471_v0  ;;  %481 = vst.msk [vmem:[#allocation2 + $0x28] sm:$0xff] %vm475_vm0, %v16471_v0  ;;  %s11039_s16 = smul.u32 88, %s16800_s26  ;;  %s9689_s24 = sld [smem:[#allocation4 + $0x4]]  ;;  %10446 = vmatprep.mubr.msk.f32.mxu0 %vm11118_vm5, %v16471_v0  ;;  %10501 = vmatprep.mubr.msk.f32.mxu1 %vm11118_vm5, %v16471_v0  ;;  %vm1940_vm7 = vcmask 1042432   ;;  %vm1927_vm8 = vcmask 220160  }
  0x1f   : > { %482 = vst.msk [vmem:[#allocation2 + $0x30] sm:$0xff] %vm475_vm0, %v16471_v0  ;;  %483 = vst.msk [vmem:[#allocation2 + $0x38] sm:$0xff] %vm475_vm0, %v16471_v0  ;;  %s9690_s27 = sld [smem:[#allocation4 + $0x5]]  ;;  %s11116_s28 = smov 126   ;;  %vm3021_vm9 = vcmask 72704   ;;  %vm488_vm10 = vcmask 252928  }
  0x20   : > { %484 = vst.msk [vmem:[#allocation2 + $0x40] sm:$0xff] %vm475_vm0, %v16471_v0  ;;  %485 = vst.msk [vmem:[#allocation2 + $0x48] sm:$0xff] %vm475_vm0, %v16471_v0  ;;  %s464_s19 = scalar_lea.vmem %s16458_s1, %s11039_s16  ;;  %s11117_s29 = smov 127   ;;  %vm492_vm11 = vcmask 251904   ;;  %vm3612_vm12 = vcmask 236560   ;;  %vm3616_vm13 = vcmask 231440  }
  0x21   : > { %v494_v1 = vld [vmem:[%s464_s19] sm:$0xff]  ;;  %v496_v2 = vld [vmem:[%s464_s19 + $0x10] sm:$0xff]  ;;  %v495_v3 = vld [vmem:[%s464_s19 + $0x8] sm:$0xff]  ;;  %487 = vst.msk [vmem:[#allocation2 + $0x50] sm:$0x1f] %vm486_vm1, %v16471_v0  ;;  %s9692_s30 = sld [smem:[#allocation4 + $0x7]] }
  0x22   : > { %518 = vrot.lane.b32.xlu0 %v494_v1, %s11114_s20  ;;  %522 = vrot.lane.b32.xlu1 %v496_v2, %s11114_s20  ;;  %v497_v4 = vld [vmem:[%s464_s19 + $0x18] sm:$0xff]  ;;  %v498_v5 = vld [vmem:[%s464_s19 + $0x20] sm:$0xff]  ;;  %s9693_s14 = sld [smem:[#allocation4 + $0x8]]  ;;  %489 = vst.msk [vmem:[#allocation3] sm:$0xff] %vm488_vm10, %v16471_v0  ;;  %490 = vst.msk [vmem:[#allocation3 + $0x8] sm:$0xff] %vm488_vm10, %v16471_v0  ;;  %vm9594_vm14 = vcmask 655360  }
  0x23   : > { %v11247_v6 = vld [vmem:[%s464_s19 + $0x28] sm:$0xff]  ;;  %v11252_v7 = vld [vmem:[%s464_s19 + $0x30] sm:$0xff]  ;;  %v11254_v8 = vld [vmem:[%s464_s19 + $0x38] sm:$0xff]  ;;  %v11282_v16 = vstv %s9687_s22  ;;  %s575_s15 = sld [smem:[#allocation4]]  ;;  %491 = vst.msk [vmem:[#allocation3 + $0x10] sm:$0xff] %vm488_vm10, %v16471_v0 }
  0x24   : > { %v11260_v9 = vld [vmem:[%s464_s19 + $0x40] sm:$0xff]  ;;  %v11262_v10 = vld [vmem:[%s464_s19 + $0x48] sm:$0xff]  ;;  %v11268_v11 = vld [vmem:[%s464_s19 + $0x50] sm:$0x1]  ;;  %v11284_v17 = vstv %s9686_s23  ;;  %s9688_s23 = sld [smem:[#allocation4 + $0x3]] }
  0x25   : > { %v11308_v30 = vstv %s9689_s24  ;;  %v11318_v35 = vstv %s9690_s27  ;;  %s11661_s18 = sld [smem:[#allocation4 + $0x9]]  ;;  %s10129_s24 = sshll.u32 %s16800_s26, 4  ;;  %493 = vst.msk [vmem:[#allocation3 + $0x18] sm:$0x7f] %vm492_vm11, %v16471_v0 }
  0x26   : > { %520 = vrot.lane.b32.xlu0 %v495_v3, %s11114_s20  ;;  %524 = vrot.lane.b32.xlu1 %v497_v4, %s11114_s20  ;;  %s9776_s27 = sld [smem:[#allocation4 + $0xaa]] }
  0x27   : > { %v11339_v44 = vstv %s9692_s30  ;;  %s9846_s19 = sld [smem:[#allocation4 + $0xac]]  ;;  %s469_s30 = scalar_lea.vmem %s16459_s2, %s10129_s24 }
  0x28   : > { %v11355_v50 = vstv %s9693_s14  ;;  %s11613_s14 = sld [smem:[#allocation4 + $0x6]] }
  0x29   : > { %s9813_s22 = sld [smem:[#allocation4 + $0xab]] }
  0x2a   : > { %526 = vrot.lane.b32.xlu0 %v498_v5, %s11114_s20  ;;  %528 = vrot.lane.b32.xlu1 %v11247_v6, %s11114_s20  ;;  %s9885_s17 = sld [smem:[#allocation4 + $0xb]] }
  0x2b   : > { %s9891_s24 = sld [smem:[#allocation4 + $0x11]] }
  0x2e   : > { %530 = vrot.lane.b32.xlu0 %v11252_v7, %s11114_s20  ;;  %532 = vrot.lane.b32.xlu1 %v11254_v8, %s11114_s20 }
  0x32   : > { %534 = vrot.lane.b32.xlu0 %v11260_v9, %s11114_s20  ;;  %536 = vrot.lane.b32.xlu1 %v11262_v10, %s11114_s20 }
  0x36   : > { %538 = vrot.lane.b32.xlu0 %v11268_v11, %s11114_s20  ;;  %1090 = vrot.lane.b32.xlu1 %v494_v1, %s11115_s21 }
  0x3a   : > { %1094 = vrot.lane.b32.xlu1 %v496_v2, %s11115_s21  ;;  %1092 = vrot.lane.b32.xlu0 %v495_v3, %s11115_s21 }
  0x3e   : > { %1098 = vrot.lane.b32.xlu1 %v498_v5, %s11115_s21  ;;  %1096 = vrot.lane.b32.xlu0 %v497_v4, %s11115_s21 }
  0x94   : > { %v519_v12 = vpop.permute.xlu0 %518  ;;  %v523_v13 = vpop.permute.xlu1 %522 }
  0x95   : > { %552 = vst.msk [vmem:[#allocation2 + $0x2] sm:$0xff] %vm551_vm2, %v519_v12  ;;  %554 = vst.msk [vmem:[#allocation2 + $0x12] sm:$0xff] %vm551_vm2, %v523_v13 }
  0x98   : > { %v521_v14 = vpop.permute.xlu0 %520  ;;  %v525_v15 = vpop.permute.xlu1 %524 }
  0x99   : > { %553 = vst.msk [vmem:[#allocation2 + $0xa] sm:$0xff] %vm551_vm2, %v521_v14  ;;  %555 = vst.msk [vmem:[#allocation2 + $0x1a] sm:$0xff] %vm551_vm2, %v525_v15 }
  0x9c   : > { %v11286_v18 = vld [vmem:[#allocation2 + $0x1] sm:$0xff]  ;;  %v527_v19 = vpop.permute.xlu0 %526  ;;  %v529_v20 = vpop.permute.xlu1 %528  ;;  %v11347_v47 = vld [vmem:[#allocation2 + $0x12] sm:$0xff] }
  0x9d   : > { %v658_v21 = vmul.f32 %v11282_v16, %v11286_v18  ;;  %v590_v22 = vmul.f32 %v11284_v17, %v11286_v18  ;;  %556 = vst.msk [vmem:[#allocation2 + $0x22] sm:$0xff] %vm551_vm2, %v527_v19  ;;  %557 = vst.msk [vmem:[#allocation2 + $0x2a] sm:$0xff] %vm551_vm2, %v529_v20  ;;  %v11306_v29 = vld [vmem:[#allocation2 + $0x2] sm:$0xff]  ;;  %v763_v48 = vmul.f32 %v11308_v30, %v11347_v47 }
  0x9e   : > { %v761_v34 = vmul.f32 %v11308_v30, %v11306_v29  ;;  %v829_v38 = vmul.f32 %v11318_v35, %v11306_v29  ;;  %v831_v55 = vmul.f32 %v11318_v35, %v11347_v47 }
  0x9f   : > { %680 = vrot.lane.b32.xlu0 %v658_v21, %s11116_s28  ;;  %612 = vrot.lane.b32.xlu1 %v590_v22, %s11117_s29 }
  0xa0   : > { %v11296_v23 = vld [vmem:[#allocation2 + $0x9] sm:$0xff]  ;;  %v531_v24 = vpop.permute.xlu0 %530  ;;  %v533_v25 = vpop.permute.xlu1 %532  ;;  %v11304_v28 = vld [vmem:[#allocation2 + $0x11] sm:$0xff]  ;;  %v11327_v39 = vld [vmem:[#allocation2 + $0x19] sm:$0xff] }
  0xa1   : > { %v659_v26 = vmul.f32 %v11282_v16, %v11296_v23  ;;  %v591_v27 = vmul.f32 %v11284_v17, %v11296_v23  ;;  %558 = vst.msk [vmem:[#allocation2 + $0x32] sm:$0xff] %vm551_vm2, %v531_v24  ;;  %559 = vst.msk [vmem:[#allocation2 + $0x3a] sm:$0xff] %vm551_vm2, %v533_v25  ;;  %v592_v33 = vmul.f32 %v11284_v17, %v11304_v28  ;;  %v11329_v40 = vld [vmem:[#allocation2 + $0xa] sm:$0xff]  ;;  %v11373_v57 = vld [vmem:[#allocation2 + $0x1a] sm:$0xff] }
  0xa2   : > { %v660_v37 = vmul.f32 %v11282_v16, %v11304_v28  ;;  %v593_v41 = vmul.f32 %v11284_v17, %v11327_v39  ;;  %v762_v42 = vmul.f32 %v11308_v30, %v11329_v40  ;;  %v11337_v43 = vld [vmem:[#allocation2 + $0x3] sm:$0xff]  ;;  %v830_v46 = vmul.f32 %v11318_v35, %v11329_v40  ;;  %v11365_v54 = vld [vmem:[#allocation2 + $0xb] sm:$0xff]  ;;  %v11389_v63 = vld [vmem:[#allocation2 + $0x13] sm:$0xff] }
  0xa3   : > { %682 = vrot.lane.b32.xlu0 %v659_v26, %s11116_s28  ;;  %614 = vrot.lane.b32.xlu1 %v591_v27, %s11117_s29  ;;  %v932_v45 = vmul.f32 %v11339_v44, %v11337_v43  ;;  %v661_v49 = vmul.f32 %v11282_v16, %v11327_v39  ;;  %v1000_v52 = vmul.f32 %v11355_v50, %v11337_v43 }
  0xa4   : > { %v535_v31 = vpop.permute.xlu0 %534  ;;  %v537_v32 = vpop.permute.xlu1 %536  ;;  %v11357_v51 = vld [vmem:[#allocation2 + $0x21] sm:$0xff]  ;;  %v933_v56 = vmul.f32 %v11339_v44, %v11365_v54  ;;  %v764_v59 = vmul.f32 %v11308_v30, %v11373_v57  ;;  %v11381_v60 = vld [vmem:[#allocation2 + $0x29] sm:$0xff]  ;;  %v1001_v61 = vmul.f32 %v11355_v50, %v11365_v54  ;;  %v832_v1 = vmul.f32 %v11318_v35, %v11373_v57 }
  0xa5   : > { %560 = vst.msk [vmem:[#allocation2 + $0x42] sm:$0xff] %vm551_vm2, %v535_v31  ;;  %561 = vst.msk [vmem:[#allocation2 + $0x4a] sm:$0xff] %vm551_vm2, %v537_v32  ;;  %v594_v53 = vmul.f32 %v11284_v17, %v11357_v51  ;;  %v662_v58 = vmul.f32 %v11282_v16, %v11357_v51  ;;  %v595_v62 = vmul.f32 %v11284_v17, %v11381_v60  ;;  %v11397_v3 = vld [vmem:[#allocation2 + $0x22] sm:$0xff]  ;;  %v11421_v21 = vld [vmem:[#allocation2 + $0x2a] sm:$0xff] }
  0xa6   : > { %v934_v2 = vmul.f32 %v11339_v44, %v11389_v63  ;;  %v765_v4 = vmul.f32 %v11308_v30, %v11397_v3  ;;  %v663_v5 = vmul.f32 %v11282_v16, %v11381_v60  ;;  %v1002_v13 = vmul.f32 %v11355_v50, %v11389_v63  ;;  %v11413_v15 = vld [vmem:[#allocation2 + $0x1b] sm:$0xff]  ;;  %v11437_v31 = vld [vmem:[#allocation2 + $0x23] sm:$0xff] }
  0xa7   : > { %616 = vrot.lane.b32.xlu0 %v592_v33, %s11117_s29  ;;  %783 = vrot.lane.b32.xlu1 %v761_v34, %s11117_s29  ;;  %v833_v19 = vmul.f32 %v11318_v35, %v11397_v3  ;;  %v935_v20 = vmul.f32 %v11339_v44, %v11413_v15  ;;  %v766_v22 = vmul.f32 %v11308_v30, %v11421_v21 }
  0xa8   : > { %v539_v36 = vpop.permute.xlu0 %538  ;;  %v11405_v12 = vld [vmem:[#allocation2 + $0x31] sm:$0xff]  ;;  %v11429_v25 = vld [vmem:[#allocation2 + $0x39] sm:$0xff]  ;;  %v1003_v27 = vmul.f32 %v11355_v50, %v11413_v15  ;;  %v936_v32 = vmul.f32 %v11339_v44, %v11437_v31  ;;  %v834_v33 = vmul.f32 %v11318_v35, %v11421_v21 }
  0xa9   : > { %563 = vst.msk [vmem:[#allocation2 + $0x52] sm:$0x1] %vm562_vm3, %v539_v36  ;;  %v596_v14 = vmul.f32 %v11284_v17, %v11405_v12  ;;  %v664_v24 = vmul.f32 %v11282_v16, %v11405_v12  ;;  %v597_v26 = vmul.f32 %v11284_v17, %v11429_v25  ;;  %v11445_v34 = vld [vmem:[#allocation2 + $0x32] sm:$0xff]  ;;  %v665_v36 = vmul.f32 %v11282_v16, %v11429_v25 }
  0xab   : > { %684 = vrot.lane.b32.xlu0 %v660_v37, %s11116_s28  ;;  %851 = vrot.lane.b32.xlu1 %v829_v38, %s11116_s28  ;;  %v767_v37 = vmul.f32 %v11308_v30, %v11445_v34 }
  0xac   : > { %v11453_v38 = vld [vmem:[#allocation2 + $0x41] sm:$0xff] }
  0xaf   : > { %618 = vrot.lane.b32.xlu0 %v593_v41, %s11117_s29  ;;  %785 = vrot.lane.b32.xlu1 %v762_v42, %s11117_s29  ;;  %v1004_v41 = vmul.f32 %v11355_v50, %v11437_v31  ;;  %v598_v42 = vmul.f32 %v11284_v17, %v11453_v38 }
  0xb3   : > { %954 = vrot.lane.b32.xlu0 %v932_v45, %s11117_s29  ;;  %853 = vrot.lane.b32.xlu1 %v830_v46, %s11116_s28  ;;  %v11461_v45 = vld [vmem:[#allocation2 + $0x2b] sm:$0xff]  ;;  %v835_v46 = vmul.f32 %v11318_v35, %v11445_v34 }
  0xb7   : > { %787 = vrot.lane.b32.xlu0 %v763_v48, %s11117_s29  ;;  %686 = vrot.lane.b32.xlu1 %v661_v49, %s11116_s28  ;;  %v937_v48 = vmul.f32 %v11339_v44, %v11461_v45  ;;  %v11469_v49 = vld [vmem:[#allocation2 + $0x3a] sm:$0xff] }
  0xbb   : > { %1022 = vrot.lane.b32.xlu1 %v1000_v52, %s11116_s28  ;;  %620 = vrot.lane.b32.xlu0 %v594_v53, %s11117_s29  ;;  %v768_v52 = vmul.f32 %v11308_v30, %v11469_v49  ;;  %v666_v53 = vmul.f32 %v11282_v16, %v11453_v38 }
  0xbf   : > { %855 = vrot.lane.b32.xlu1 %v831_v55, %s11116_s28  ;;  %956 = vrot.lane.b32.xlu0 %v933_v56, %s11117_s29  ;;  %v11477_v55 = vld [vmem:[#allocation2 + $0x49] sm:$0xff] }
  0xc0   : > { %v599_v56 = vmul.f32 %v11284_v17, %v11477_v55 }
  0xc3   : > { %688 = vrot.lane.b32.xlu1 %v662_v58, %s11116_s28  ;;  %789 = vrot.lane.b32.xlu0 %v764_v59, %s11117_s29  ;;  %v1005_v58 = vmul.f32 %v11355_v50, %v11461_v45  ;;  %v11485_v59 = vld [vmem:[#allocation2 + $0x33] sm:$0xff] }
  0xc7   : > { %1024 = vrot.lane.b32.xlu1 %v1001_v61, %s11116_s28  ;;  %622 = vrot.lane.b32.xlu0 %v595_v62, %s11117_s29  ;;  %v938_v61 = vmul.f32 %v11339_v44, %v11485_v59  ;;  %v836_v62 = vmul.f32 %v11318_v35, %v11469_v49 }
  0xcb   : > { %857 = vrot.lane.b32.xlu1 %v832_v1, %s11116_s28  ;;  %958 = vrot.lane.b32.xlu0 %v934_v2, %s11117_s29  ;;  %v11493_v1 = vld [vmem:[#allocation2 + $0x42] sm:$0xff]  ;;  %v667_v2 = vmul.f32 %v11282_v16, %v11477_v55 }
  0xcf   : > { %791 = vrot.lane.b32.xlu1 %v765_v4, %s11117_s29  ;;  %690 = vrot.lane.b32.xlu0 %v663_v5, %s11116_s28  ;;  %v769_v4 = vmul.f32 %v11308_v30, %v11493_v1  ;;  %v11501_v5 = vld [vmem:[#allocation2 + $0x51] sm:$0x1] }
  0xd3   : > { %1026 = vrot.lane.b32.xlu0 %v1002_v13, %s11116_s28  ;;  %624 = vrot.lane.b32.xlu1 %v596_v14, %s11117_s29  ;;  %v11505_v13 = vpop.permute.xlu1 %1090  ;;  %v1006_v14 = vmul.f32 %v11355_v50, %v11485_v59 }
  0xd7   : > { %859 = vrot.lane.b32.xlu0 %v833_v19, %s11116_s28  ;;  %960 = vrot.lane.b32.xlu1 %v935_v20, %s11117_s29  ;;  %v600_v19 = vmul.f32 %v11284_v17, %v11501_v5  ;;  %v11511_v20 = vld [vmem:[#allocation2 + $0x3b] sm:$0xff]  ;;  %v668_v17 = vmul.f32 %v11282_v16, %v11501_v5 }
  0xdb   : > { %793 = vrot.lane.b32.xlu0 %v766_v22, %s11117_s29  ;;  %692 = vrot.lane.b32.xlu1 %v664_v24, %s11116_s28  ;;  %v837_v22 = vmul.f32 %v11318_v35, %v11493_v1  ;;  %v939_v24 = vmul.f32 %v11339_v44, %v11511_v20 }
  0xdf   : > { %626 = vrot.lane.b32.xlu0 %v597_v26, %s11117_s29  ;;  %1028 = vrot.lane.b32.xlu1 %v1003_v27, %s11116_s28  ;;  %v11519_v26 = vpop.permute.xlu1 %1094  ;;  %v11521_v27 = vpop.permute.xlu0 %1092 }
  0xe3   : > { %962 = vrot.lane.b32.xlu0 %v936_v32, %s11117_s29  ;;  %861 = vrot.lane.b32.xlu1 %v834_v33, %s11116_s28  ;;  %v11527_v32 = vld [vmem:[#allocation2 + $0x4a] sm:$0xff]  ;;  %v11532_v33 = vpop.permute.xlu1 %1098 }
  0xe7   : > { %694 = vrot.lane.b32.xlu0 %v665_v36, %s11116_s28  ;;  %795 = vrot.lane.b32.xlu1 %v767_v37, %s11117_s29  ;;  %v11534_v36 = vpop.permute.xlu0 %1096  ;;  %v770_v37 = vmul.f32 %v11308_v30, %v11527_v32 }
  0xeb   : > { %1030 = vrot.lane.b32.xlu0 %v1004_v41, %s11116_s28  ;;  %628 = vrot.lane.b32.xlu1 %v598_v42, %s11117_s29  ;;  %v1007_v41 = vmul.f32 %v11355_v50, %v11511_v20  ;;  %v11540_v42 = vld [vmem:[#allocation2 + $0x43] sm:$0xff] }
  0xef   : > { %863 = vrot.lane.b32.xlu0 %v835_v46, %s11116_s28  ;;  %964 = vrot.lane.b32.xlu1 %v937_v48, %s11117_s29  ;;  %v838_v46 = vmul.f32 %v11318_v35, %v11527_v32  ;;  %v940_v48 = vmul.f32 %v11339_v44, %v11540_v42 }
  0xf3   : > { %797 = vrot.lane.b32.xlu0 %v768_v52, %s11117_s29  ;;  %696 = vrot.lane.b32.xlu1 %v666_v53, %s11116_s28  ;;  %v11548_v52 = vld [vmem:[#allocation2 + $0x52] sm:$0x1]  ;;  %v1144_v53 = vld [vmem:[%s16465_s8 + $0x50] sm:$0x1] }
  0xf4   : > { %10425 = vmatpush3.msk.msra.mxu0 %vm1201_vm4, %v1144_v53 }
  0xf5   : > { %10426 = vmatprep.subr.mxu0 %v16471_v0 }
  0xf7   : > { %630 = vrot.lane.b32.xlu0 %v599_v56, %s11117_s29  ;;  %1032 = vrot.lane.b32.xlu1 %v1005_v58, %s11116_s28  ;;  %v9717_v56 = vld [vmem:[%s16465_s8 + $0xa8] sm:$0x1]  ;;  %v11560_v58 = vstv %s575_s15  ;;  %s9883_s15 = sld [smem:[#allocation4 + $0xad]] }
  0xf8   : > { %10480 = vmatpush3.msk.msra.mxu1 %vm1201_vm4, %v9717_v56 }
  0xf9   : > { %10481 = vmatprep.subr.mxu1 %v16471_v0 }
  0xfb   : > { %966 = vrot.lane.b32.xlu0 %v938_v61, %s11117_s29  ;;  %865 = vrot.lane.b32.xlu1 %v836_v62, %s11116_s28 }
  0xff   : > { %698 = vrot.lane.b32.xlu0 %v667_v2, %s11116_s28  ;;  %799 = vrot.lane.b32.xlu1 %v769_v4, %s11117_s29  ;;  %v771_v2 = vmul.f32 %v11308_v30, %v11548_v52  ;;  %v577_v4 = vmul.f32 %v11560_v58, %v11286_v18  ;;  %v9716_v30 = vld [vmem:[%s16465_s8 + $0xa0] sm:$0xff] }
 0x100   : > { %10482 = vmatpush3.msra.mxu1 %v9716_v30  ;;  %v1142_v18 = vld [vmem:[%s16465_s8 + $0x40] sm:$0xff]  ;;  %v9713_v30 = vld [vmem:[%s16465_s8 + $0x88] sm:$0xff] }
 0x101   : > { %10483 = vmatprep.subr.mxu1 %v16471_v0 }
 0x103   : > { %1034 = vrot.lane.b32.xlu0 %v1006_v14, %s11116_s28  ;;  %632 = vrot.lane.b32.xlu1 %v600_v19, %s11117_s29  ;;  %v1143_v14 = vld [vmem:[%s16465_s8 + $0x48] sm:$0xff] }
 0x104   : > { %10427 = vmatpush3.msra.mxu0 %v1143_v14  ;;  %v1140_v14 = vld [vmem:[%s16465_s8 + $0x30] sm:$0xff] }
 0x105   : > { %10428 = vmatprep.subr.mxu0 %v16471_v0 }
 0x106   : > { %10429 = vmatpush3.msra.mxu0 %v1142_v18 }
 0x107   : > { %867 = vrot.lane.b32.xlu0 %v837_v22, %s11116_s28  ;;  %968 = vrot.lane.b32.xlu1 %v939_v24, %s11117_s29  ;;  %v1008_v24 = vmul.f32 %v11355_v50, %v11540_v42 }
 0x108   : > { %10430 = vmatprep.subr.mxu0 %v16471_v0 }
 0x10b   : > { %1100 = vrot.lane.b32.xlu0 %v11247_v6, %s11115_s21  ;;  %700 = vrot.lane.b32.xlu1 %v668_v17, %s11116_s28  ;;  %v9715_v17 = vld [vmem:[%s16465_s8 + $0x98] sm:$0xff] }
 0x10c   : > { %10484 = vmatpush3.msra.mxu1 %v9715_v17 }
 0x10d   : > { %10485 = vmatprep.subr.mxu1 %v16471_v0 }
 0x10f   : > { %801 = vrot.lane.b32.xlu0 %v770_v37, %s11117_s29  ;;  %1036 = vrot.lane.b32.xlu1 %v1007_v41, %s11116_s28  ;;  %v11593_v41 = vld [vmem:[#allocation2 + $0x4b] sm:$0xff] }
 0x110   : > { %v1009_v17 = vmul.f32 %v11355_v50, %v11593_v41 }
 0x111   : > { %v613_v6 = vpop.permute.xlu1 %612  ;;  %v681_v16 = vpop.permute.xlu0 %680 }
 0x112   : > { %v645_v37 = vadd.f32 %v613_v6, %v577_v4  ;;  %v9714_v6 = vld [vmem:[%s16465_s8 + $0x90] sm:$0xff] }
 0x113   : > { %869 = vrot.lane.b32.xlu0 %v838_v46, %s11116_s28  ;;  %970 = vrot.lane.b32.xlu1 %v940_v48, %s11117_s29  ;;  %v1141_v46 = vld [vmem:[%s16465_s8 + $0x38] sm:$0xff]  ;;  %v11607_v48 = vstv %s9688_s23  ;;  %s9896_s23 = sld [smem:[#allocation4 + $0x16]] }
 0x114   : > { %v713_v4 = vadd.f32 %v681_v16, %v645_v37  ;;  %10431 = vmatpush3.msra.mxu0 %v1141_v46  ;;  %10486 = vmatpush3.msra.mxu1 %v9714_v6  ;;  %v737_v16 = vmul.f32 %v11607_v48, %v11306_v29  ;;  %v9712_v29 = vld [vmem:[%s16465_s8 + $0x80] sm:$0xff]  ;;  %v9711_v6 = vld [vmem:[%s16465_s8 + $0x78] sm:$0xff] }
 0x115   : > { %v11562_v61 = vpop.permute.xlu1 %614  ;;  %v11564_v62 = vpop.permute.xlu0 %682  ;;  %10432 = vmatprep.subr.mxu0 %v16471_v0  ;;  %10487 = vmatprep.subr.mxu1 %v16471_v0  ;;  %v1138_v46 = vld [vmem:[%s16465_s8 + $0x20] sm:$0xff] }
 0x116   : > { %10433 = vmatpush3.msra.mxu0 %v1140_v14  ;;  %10488 = vmatpush3.msra.mxu1 %v9713_v30  ;;  %v11659_v30 = vstv %s11613_s14  ;;  %s9901_s14 = sld [smem:[#allocation4 + $0x1b]] }
 0x117   : > { %1102 = vrot.lane.b32.xlu0 %v11252_v7, %s11115_s21  ;;  %803 = vrot.lane.b32.xlu1 %v771_v2, %s11117_s29  ;;  %v839_v7 = vmul.f32 %v11318_v35, %v11548_v52  ;;  %v11599_v35 = vld [vmem:[#allocation2 + $0x53] sm:$0x1]  ;;  %v941_v2 = vmul.f32 %v11339_v44, %v11593_v41 }
 0x118   : > { %10434 = vmatprep.subr.mxu0 %v16471_v0  ;;  %10489 = vmatprep.subr.mxu1 %v16471_v0  ;;  %v1010_v37 = vmul.f32 %v11355_v50, %v11599_v35 }
 0x119   : > { %v784_v19 = vpop.permute.xlu1 %783  ;;  %v11581_v22 = vpop.permute.xlu0 %616  ;;  %10490 = vmatpush3.msra.mxu1 %v9712_v29 }
 0x11a   : > { %10491 = vmatprep.subr.mxu1 %v16471_v0 }
 0x11b   : > { %1038 = vrot.lane.b32.xlu0 %v1008_v24, %s11116_s28  ;;  %871 = vrot.lane.b32.xlu1 %v839_v7, %s11116_s28  ;;  %v942_v24 = vmul.f32 %v11339_v44, %v11599_v35  ;;  %v748_v44 = vadd.f32 %v737_v16, %v713_v4 }
 0x11c   : > { %10492 = vmatpush3.msra.mxu1 %v9711_v6  ;;  %v11703_v6 = vstv %s11661_s18  ;;  %s9895_s18 = sld [smem:[#allocation4 + $0x15]] }
 0x11d   : > { %v852_v53 = vpop.permute.xlu1 %851  ;;  %v11609_v56 = vpop.permute.xlu0 %684  ;;  %v816_v4 = vadd.f32 %v784_v19, %v748_v44  ;;  %v9710_v19 = vld [vmem:[%s16465_s8 + $0x70] sm:$0xff]  ;;  %10493 = vmatprep.subr.mxu1 %v16471_v0  ;;  %v1135_v44 = vld [vmem:[%s16465_s8 + $0x8] sm:$0xff] }
 0x11e   : > { %10494 = vmatpush3.msra.mxu1 %v9710_v19 }
 0x11f   : > { %972 = vrot.lane.b32.xlu0 %v941_v2, %s11117_s29  ;;  %1104 = vrot.lane.b32.xlu1 %v11254_v8, %s11115_s21  ;;  %v1139_v8 = vld [vmem:[%s16465_s8 + $0x28] sm:$0xff]  ;;  %v578_v2 = vmul.f32 %v11560_v58, %v11296_v23  ;;  %v884_v16 = vadd.f32 %v852_v53, %v816_v4  ;;  %v1137_v23 = vld [vmem:[%s16465_s8 + $0x18] sm:$0xff] }
 0x120   : > { %10435 = vmatpush3.msra.mxu0 %v1139_v8  ;;  %v1136_v8 = vld [vmem:[%s16465_s8 + $0x10] sm:$0xff]  ;;  %10495 = vmatprep.subr.mxu1 %v16471_v0 }
 0x121   : > { %v11632_v7 = vpop.permute.xlu1 %785  ;;  %v11634_v18 = vpop.permute.xlu0 %618  ;;  %10436 = vmatprep.subr.mxu0 %v16471_v0  ;;  %v646_v50 = vadd.f32 %v11562_v61, %v578_v2 }
 0x122   : > { %10437 = vmatpush3.msra.mxu0 %v1138_v46 }
 0x123   : > { %1040 = vrot.lane.b32.xlu0 %v1009_v17, %s11116_s28  ;;  %974 = vrot.lane.b32.xlu1 %v942_v24, %s11117_s29  ;;  %v908_v17 = vmul.f32 %v11659_v30, %v11337_v43  ;;  %v714_v43 = vadd.f32 %v11564_v62, %v646_v50  ;;  %v738_v62 = vmul.f32 %v11607_v48, %v11329_v40  ;;  %v9707_v40 = vld [vmem:[%s16465_s8 + $0x58] sm:$0xff] }
 0x124   : > { %10438 = vmatprep.subr.mxu0 %v16471_v0 }
 0x125   : > { %v854_v14 = vpop.permute.xlu1 %853  ;;  %v955_v24 = vpop.permute.xlu0 %954  ;;  %10439 = vmatpush3.msra.mxu0 %v1137_v23  ;;  %v919_v29 = vadd.f32 %v908_v17, %v884_v16  ;;  %v749_v4 = vadd.f32 %v738_v62, %v714_v43  ;;  %v579_v17 = vmul.f32 %v11560_v58, %v11304_v28  ;;  %v909_v43 = vmul.f32 %v11659_v30, %v11365_v54 }
 0x126   : > { %10440 = vmatprep.subr.mxu0 %v16471_v0 }
 0x127   : > { %1106 = vrot.lane.b32.xlu0 %v11260_v9, %s11115_s21  ;;  %1042 = vrot.lane.b32.xlu1 %v1010_v37, %s11116_s28  ;;  %v9709_v9 = vld [vmem:[%s16465_s8 + $0x68] sm:$0xff]  ;;  %v9708_v37 = vld [vmem:[%s16465_s8 + $0x60] sm:$0xff]  ;;  %v987_v46 = vadd.f32 %v955_v24, %v919_v29  ;;  %v817_v24 = vadd.f32 %v11632_v7, %v749_v4  ;;  %v647_v7 = vadd.f32 %v11581_v22, %v579_v17 }
 0x128   : > { %10441 = vmatpush3.msra.mxu0 %v1136_v8  ;;  %10496 = vmatpush3.msra.mxu1 %v9709_v9  ;;  %v582_v17 = vmul.f32 %v11560_v58, %v11381_v60  ;;  %v740_v60 = vmul.f32 %v11607_v48, %v11373_v57 }
 0x129   : > { %v11679_v61 = vpop.permute.xlu1 %686  ;;  %v788_v53 = vpop.permute.xlu0 %787  ;;  %10442 = vmatprep.subr.mxu0 %v16471_v0  ;;  %10497 = vmatprep.subr.mxu1 %v16471_v0  ;;  %v885_v8 = vadd.f32 %v854_v14, %v817_v24  ;;  %v715_v62 = vadd.f32 %v11609_v56, %v647_v7  ;;  %v580_v24 = vmul.f32 %v11560_v58, %v11327_v39 }
 0x12a   : > { %10443 = vmatpush3.msra.mxu0 %v1135_v44  ;;  %10498 = vmatpush3.msra.mxu1 %v9708_v37  ;;  %v742_v39 = vmul.f32 %v11607_v48, %v11421_v21  ;;  %v583_v21 = vmul.f32 %v11560_v58, %v11405_v12  ;;  %v741_v12 = vmul.f32 %v11607_v48, %v11397_v3 }
 0x12b   : > { %1108 = vrot.lane.b32.xlu0 %v11262_v10, %s11115_s21  ;;  %1110 = vrot.lane.b32.xlu1 %v11268_v11, %s11115_s21  ;;  %v1134_v11 = vld [vmem:[%s16465_s8] sm:$0xff]  ;;  %v912_v3 = vmul.f32 %v11659_v30, %v11437_v31 }
 0x12c   : > { %10444 = vmatprep.subr.mxu0 %v16471_v0  ;;  %10499 = vmatprep.subr.mxu1 %v16471_v0 }
 0x12d   : > { %v1023_v10 = vpop.permute.xlu1 %1022  ;;  %v11705_v2 = vpop.permute.xlu0 %620  ;;  %10445 = vmatpush3.msra.mxu0 %v1134_v11  ;;  %10500 = vmatpush3.msra.mxu1 %v9707_v40 }
 0x12e   : > { %v1055_v50 = vadd.f32 %v1023_v10, %v987_v46  ;;  %v920_v46 = vadd.f32 %v909_v43, %v885_v8  ;;  %v739_v10 = vmul.f32 %v11607_v48, %v11347_v47  ;;  %v648_v47 = vadd.f32 %v11634_v18, %v580_v24 }
 0x12f   : > { %v910_v8 = vmul.f32 %v11659_v30, %v11389_v63 }
 0x130   : > { %v1068_v16 = vadd.f32 %v11703_v6, %v1055_v50  ;;  %v750_v4 = vadd.f32 %v739_v10, %v715_v62  ;;  %v716_v43 = vadd.f32 %v11679_v61, %v648_v47 }
 0x131   : > { %v856_v23 = vpop.permute.xlu1 %855  ;;  %v957_v19 = vpop.permute.xlu0 %956 }
 0x132   : > { %v1079_v9 = vmax.f32 %v1068_v16, 0.0  ;;  %v988_v28 = vadd.f32 %v957_v19, %v920_v46  ;;  %v818_v50 = vadd.f32 %v788_v53, %v750_v4  ;;  %v581_v4 = vmul.f32 %v11560_v58, %v11357_v51 }
 0x133   : > { %v743_v51 = vmul.f32 %v11607_v48, %v11445_v34 }
 0x134   : > { %v1123_v29 = vadd.f32 %v11505_v13, %v1079_v9  ;;  %v886_v56 = vadd.f32 %v856_v23, %v818_v50  ;;  %v649_v50 = vadd.f32 %v11705_v2, %v581_v4 }
 0x135   : > { %v689_v44 = vpop.permute.xlu1 %688  ;;  %v790_v37 = vpop.permute.xlu0 %789 }
 0x136   : > { %1156 = vrot.lane.b32.xlu0 %v1123_v29, %s11117_s29  ;;  %v921_v29 = vadd.f32 %v910_v8, %v886_v56 }
 0x139   : > { %v1025_v14 = vpop.permute.xlu1 %1024  ;;  %v623_v11 = vpop.permute.xlu0 %622 }
 0x13a   : > { %v1056_v22 = vadd.f32 %v1025_v14, %v988_v28  ;;  %v650_v19 = vadd.f32 %v623_v11, %v582_v17 }
 0x13c   : > { %v1069_v54 = vadd.f32 %v11703_v6, %v1056_v22 }
 0x13d   : > { %v858_v40 = vpop.permute.xlu1 %857  ;;  %v959_v13 = vpop.permute.xlu0 %958 }
 0x13e   : > { %v1080_v16 = vmax.f32 %v1069_v54, 0.0  ;;  %v989_v18 = vadd.f32 %v959_v13, %v921_v29  ;;  %v911_v13 = vmul.f32 %v11659_v30, %v11413_v15 }
 0x140   : > { %v1124_v53 = vadd.f32 %v11521_v27, %v1080_v16  ;;  %v751_v27 = vadd.f32 %v740_v60, %v716_v43  ;;  %v717_v16 = vadd.f32 %v689_v44, %v649_v50 }
 0x141   : > { %v792_v9 = vpop.permute.xlu1 %791  ;;  %v691_v7 = vpop.permute.xlu0 %690 }
 0x142   : > { %v718_v62 = vadd.f32 %v691_v7, %v650_v19  ;;  %1158 = vrot.lane.b32.xlu1 %v1124_v53, %s11117_s29  ;;  %v819_v28 = vadd.f32 %v790_v37, %v751_v27  ;;  %v752_v15 = vadd.f32 %v741_v12, %v717_v16  ;;  %v913_v12 = vmul.f32 %v11659_v30, %v11461_v45 }
 0x144   : > { %v11748_v23 = vadd.f32 %v742_v39, %v718_v62  ;;  %v887_v22 = vadd.f32 %v858_v40, %v819_v28  ;;  %v584_v39 = vmul.f32 %v11560_v58, %v11429_v25 }
 0x145   : > { %v625_v63 = vpop.permute.xlu1 %624  ;;  %v1027_v46 = vpop.permute.xlu0 %1026 }
 0x146   : > { %v1057_v10 = vadd.f32 %v1027_v46, %v989_v18  ;;  %v651_v54 = vadd.f32 %v625_v63, %v583_v21  ;;  %v922_v17 = vadd.f32 %v911_v13, %v887_v22 }
 0x148   : > { %v1070_v61 = vadd.f32 %v11703_v6, %v1057_v10 }
 0x149   : > { %v961_v14 = vpop.permute.xlu1 %960  ;;  %v860_v11 = vpop.permute.xlu0 %859 }
 0x14a   : > { %v1081_v57 = vmax.f32 %v1070_v61, 0.0  ;;  %v990_v2 = vadd.f32 %v961_v14, %v922_v17 }
 0x14c   : > { %v1125_v37 = vadd.f32 %v11519_v26, %v1081_v57  ;;  %v820_v26 = vadd.f32 %v792_v9, %v752_v15  ;;  %v744_v9 = vmul.f32 %v11607_v48, %v11469_v49  ;;  %v745_v49 = vmul.f32 %v11607_v48, %v11493_v1 }
 0x14d   : > { %v693_v24 = vpop.permute.xlu1 %692  ;;  %v794_v56 = vpop.permute.xlu0 %793 }
 0x14e   : > { %v719_v47 = vadd.f32 %v693_v24, %v651_v54  ;;  %1160 = vrot.lane.b32.xlu0 %v1125_v37, %s11117_s29  ;;  %v888_v29 = vadd.f32 %v860_v11, %v820_v26  ;;  %v821_v17 = vadd.f32 %v794_v56, %v11748_v23  ;;  %v746_v26 = vmul.f32 %v11607_v48, %v11527_v32 }
 0x150   : > { %v754_v40 = vadd.f32 %v743_v51, %v719_v47  ;;  %v923_v46 = vadd.f32 %v912_v3, %v888_v29 }
 0x151   : > { %v1029_v19 = vpop.permute.xlu1 %1028  ;;  %v627_v8 = vpop.permute.xlu0 %626 }
 0x152   : > { %v1058_v53 = vadd.f32 %v1029_v19, %v990_v2  ;;  %v652_v34 = vadd.f32 %v627_v8, %v584_v39 }
 0x154   : > { %v1071_v7 = vadd.f32 %v11703_v6, %v1058_v53 }
 0x155   : > { %v862_v44 = vpop.permute.xlu1 %861  ;;  %v963_v43 = vpop.permute.xlu0 %962 }
 0x156   : > { %v1082_v62 = vmax.f32 %v1071_v7, 0.0  ;;  %v991_v10 = vadd.f32 %v963_v43, %v923_v46  ;;  %v889_v47 = vadd.f32 %v862_v44, %v821_v17 }
 0x158   : > { %v1126_v60 = vadd.f32 %v11534_v36, %v1082_v62  ;;  %v585_v36 = vmul.f32 %v11560_v58, %v11453_v38  ;;  %v924_v2 = vadd.f32 %v913_v12, %v889_v47 }
 0x159   : > { %v796_v18 = vpop.permute.xlu1 %795  ;;  %v695_v63 = vpop.permute.xlu0 %694 }
 0x15a   : > { %v720_v27 = vadd.f32 %v695_v63, %v652_v34  ;;  %1162 = vrot.lane.b32.xlu1 %v1126_v60, %s11117_s29  ;;  %v822_v43 = vadd.f32 %v796_v18, %v754_v40  ;;  %v587_v34 = vmul.f32 %v11560_v58, %v11501_v5  ;;  %v915_v5 = vmul.f32 %v11659_v30, %v11511_v20 }
 0x15c   : > { %v755_v28 = vadd.f32 %v744_v9, %v720_v27  ;;  %v747_v27 = vmul.f32 %v11607_v48, %v11548_v52 }
 0x15d   : > { %v629_v61 = vpop.permute.xlu1 %628  ;;  %v1031_v14 = vpop.permute.xlu0 %1030 }
 0x15e   : > { %v1059_v25 = vadd.f32 %v1031_v14, %v991_v10  ;;  %v653_v21 = vadd.f32 %v629_v61, %v585_v36 }
 0x160   : > { %v1072_v11 = vadd.f32 %v11703_v6, %v1059_v25 }
 0x161   : > { %v965_v4 = vpop.permute.xlu1 %964  ;;  %v864_v31 = vpop.permute.xlu0 %863 }
 0x162   : > { %v1083_v22 = vmax.f32 %v1072_v11, 0.0  ;;  %v992_v53 = vadd.f32 %v965_v4, %v924_v2  ;;  %v890_v29 = vadd.f32 %v864_v31, %v822_v43 }
 0x164   : > { %v1127_v57 = vadd.f32 %v11532_v33, %v1083_v22  ;;  %v586_v33 = vmul.f32 %v11560_v58, %v11477_v55  ;;  %v914_v55 = vmul.f32 %v11659_v30, %v11485_v59 }
 0x165   : > { %v697_v50 = vpop.permute.xlu1 %696  ;;  %v798_v54 = vpop.permute.xlu0 %797 }
 0x166   : > { %v721_v13 = vadd.f32 %v697_v50, %v653_v21  ;;  %1164 = vrot.lane.b32.xlu0 %v1127_v57, %s11117_s29  ;;  %v925_v3 = vadd.f32 %v914_v55, %v890_v29  ;;  %v823_v40 = vadd.f32 %v798_v54, %v755_v28  ;;  %v916_v54 = vmul.f32 %v11659_v30, %v11540_v42 }
 0x168   : > { %v756_v37 = vadd.f32 %v745_v49, %v721_v13 }
 0x169   : > { %v1033_v24 = vpop.permute.xlu1 %1032  ;;  %v631_v16 = vpop.permute.xlu0 %630 }
 0x16a   : > { %v654_v19 = vadd.f32 %v631_v16, %v586_v33  ;;  %v1060_v7 = vadd.f32 %v1033_v24, %v992_v53  ;;  %v917_v33 = vmul.f32 %v11659_v30, %v11593_v41  ;;  %v918_v53 = vmul.f32 %v11659_v30, %v11599_v35 }
 0x16c   : > { %v1073_v45 = vadd.f32 %v11703_v6, %v1060_v7 }
 0x16d   : > { %v866_v51 = vpop.permute.xlu1 %865  ;;  %v967_v38 = vpop.permute.xlu0 %966 }
 0x16e   : > { %v1084_v63 = vmax.f32 %v1073_v45, 0.0  ;;  %v993_v18 = vadd.f32 %v967_v38, %v925_v3  ;;  %v891_v61 = vadd.f32 %v866_v51, %v823_v40 }
 0x170   : > { %v926_v4 = vadd.f32 %v915_v5, %v891_v61 }
 0x171   : > { %v800_v8 = vpop.permute.xlu1 %799  ;;  %v699_v15 = vpop.permute.xlu0 %698 }
 0x172   : > { %v722_v1 = vadd.f32 %v699_v15, %v654_v19  ;;  %v824_v52 = vadd.f32 %v800_v8, %v756_v37 }
 0x174   : > { %v757_v23 = vadd.f32 %v746_v26, %v722_v1 }
 0x175   : > { %v633_v56 = vpop.permute.xlu1 %632  ;;  %v1035_v44 = vpop.permute.xlu0 %1034 }
 0x176   : > { %v655_v60 = vadd.f32 %v633_v56, %v587_v34  ;;  %v1061_v14 = vadd.f32 %v1035_v44, %v993_v18 }
 0x178   : > { %v1074_v58 = vadd.f32 %v11703_v6, %v1061_v14 }
 0x179   : > { %v969_v62 = vpop.permute.xlu1 %968  ;;  %v868_v39 = vpop.permute.xlu0 %867 }
 0x17a   : > { %v994_v48 = vadd.f32 %v969_v62, %v926_v4  ;;  %v892_v28 = vadd.f32 %v868_v39, %v824_v52  ;;  %v1085_v21 = vmax.f32 %v1074_v58, 0.0 }
 0x17c   : > { %v927_v20 = vadd.f32 %v916_v54, %v892_v28 }
 0x17d   : > { %v701_v32 = vpop.permute.xlu1 %700  ;;  %v1101_v46 = vpop.permute.xlu0 %1100 }
 0x17e   : > { %v723_v9 = vadd.f32 %v701_v32, %v655_v60  ;;  %v1128_v10 = vadd.f32 %v1101_v46, %v1084_v63 }
 0x180   : > { %1166 = vrot.lane.b32.xlu1 %v1128_v10, %s11117_s29  ;;  %v758_v59 = vadd.f32 %v747_v27, %v723_v9 }
 0x181   : > { %v1037_v25 = vpop.permute.xlu1 %1036  ;;  %v802_v11 = vpop.permute.xlu0 %801 }
 0x182   : > { %v1062_v22 = vadd.f32 %v1037_v25, %v994_v48  ;;  %v825_v24 = vadd.f32 %v802_v11, %v757_v23 }
 0x184   : > { %v1075_v49 = vadd.f32 %v11703_v6, %v1062_v22 }
 0x185   : > { %v971_v31 = vpop.permute.xlu1 %970  ;;  %v870_v36 = vpop.permute.xlu0 %869 }
 0x186   : > { %v995_v47 = vadd.f32 %v971_v31, %v927_v20  ;;  %v893_v37 = vadd.f32 %v870_v36, %v825_v24  ;;  %v1086_v12 = vmax.f32 %v1075_v49, 0.0  ;;  %v9730_v31 = vld [vmem:[%s16461_s4 + $0x20] sm:$0xff] }
 0x187   : > { %v1325_v36 = vld [vmem:[%s16461_s4] sm:$0xff] }
 0x188   : > { %v928_v15 = vadd.f32 %v917_v33, %v893_v37 }
 0x189   : > { %v804_v57 = vpop.permute.xlu1 %803  ;;  %v1103_v50 = vpop.permute.xlu0 %1102 }
 0x18a   : > { %v1129_v13 = vadd.f32 %v1103_v50, %v1085_v21  ;;  %v826_v51 = vadd.f32 %v804_v57, %v758_v59 }
 0x18c   : > { %1168 = vrot.lane.b32.xlu0 %v1129_v13, %s11117_s29 }
 0x18d   : > { %v872_v16 = vpop.permute.xlu1 %871  ;;  %v1039_v17 = vpop.permute.xlu0 %1038 }
 0x18e   : > { %v1063_v38 = vadd.f32 %v1039_v17, %v995_v47  ;;  %v894_v42 = vadd.f32 %v872_v16, %v826_v51 }
 0x190   : > { %v1076_v1 = vadd.f32 %v11703_v6, %v1063_v38  ;;  %v929_v56 = vadd.f32 %v918_v53, %v894_v42 }
 0x191   : > { %v1105_v2 = vpop.permute.xlu1 %1104  ;;  %v973_v19 = vpop.permute.xlu0 %972 }
 0x192   : > { %v1130_v8 = vadd.f32 %v1105_v2, %v1086_v12  ;;  %v996_v26 = vadd.f32 %v973_v19, %v928_v15  ;;  %v1087_v29 = vmax.f32 %v1076_v1, 0.0 }
 0x194   : > { %1170 = vrot.lane.b32.xlu1 %v1130_v8, %s11117_s29 }
 0x195   : > { %v975_v7 = vpop.permute.xlu1 %974  ;;  %v1041_v23 = vpop.permute.xlu0 %1040 }
 0x196   : > { %v1064_v44 = vadd.f32 %v1041_v23, %v996_v26  ;;  %v997_v43 = vadd.f32 %v975_v7, %v929_v56 }
 0x198   : > { %v1077_v41 = vadd.f32 %v11703_v6, %v1064_v44 }
 0x199   : > { %v1043_v45 = vpop.permute.xlu1 %1042  ;;  %v1107_v62 = vpop.permute.xlu0 %1106 }
 0x19a   : > { %v1065_v39 = vadd.f32 %v1043_v45, %v997_v43  ;;  %v1131_v55 = vadd.f32 %v1107_v62, %v1087_v29  ;;  %v1088_v35 = vmax.f32 %v1077_v41, 0.0 }
 0x19c   : > { %v1078_v34 = vadd.f32 %v11703_v6, %v1065_v39  ;;  %1172 = vrot.lane.b32.xlu0 %v1131_v55, %s11117_s29 }
 0x19d   : > { %v1109_v30 = vpop.permute.xlu0 %1108  ;;  %v1111_v3 = vpop.permute.xlu1 %1110 }
 0x19e   : > { %v1132_v60 = vadd.f32 %v1109_v30, %v1088_v35  ;;  %v1089_v63 = vmax.f32 %v1078_v34, 0.0  ;;  %v9731_v35 = vld [vmem:[%s16461_s4 + $0x28] sm:$0xff] }
 0x19f   : > { %v1326_v30 = vld [vmem:[%s16461_s4 + $0x8] sm:$0xff] }
 0x1a0   : > { %v1133_v32 = vadd.f32 %v1111_v3, %v1089_v63  ;;  %1174 = vrot.lane.b32.xlu1 %v1132_v60, %s11117_s29  ;;  %v9732_v3 = vld [vmem:[%s16461_s4 + $0x30] sm:$0xff]  ;;  %v9754_v60 = vld [vmem:[%s16465_s8 + $0x100] sm:$0x1] }
 0x1a1   : > { %v1327_v63 = vld [vmem:[%s16461_s4 + $0x10] sm:$0xff] }
 0x1a2   : > { %1176 = vrot.lane.b32.xlu0 %v1133_v32, %s11117_s29  ;;  %v9753_v32 = vld [vmem:[%s16465_s8 + $0xf8] sm:$0xff] }
 0x1a8   : > { %v11813_v46 = vpop.permute.xlu0 %1156 }
 0x1a9   : > { %10447 = vmatmul.mubr.msk.f32.vlgmr.msra.gmra.mxu0 %vm1178_vm6, %v11813_v46  ;;  %10502 = vmatmul.mubr.msk.f32.vlgmr.msra.gmra.mxu1 %vm1178_vm6, %v11813_v46 }
 0x1aa   : > { %10449 = vmatprep.mubr.msk.f32.mxu0 %vm11118_vm5, %v16471_v0  ;;  %10504 = vmatprep.mubr.msk.f32.mxu1 %vm11118_vm5, %v16471_v0 }
 0x1b4   : > { %v11823_v6 = vpop.permute.xlu1 %1158 }
 0x1b5   : > { %10450 = vmatmul.mubr.msk.f32.gmra.mxu0 %vm1178_vm6, %v11823_v6  ;;  %10505 = vmatmul.mubr.msk.f32.gmra.mxu1 %vm1178_vm6, %v11823_v6 }
 0x1b6   : > { %10452 = vmatprep.mubr.msk.f32.mxu0 %vm11118_vm5, %v16471_v0  ;;  %10507 = vmatprep.mubr.msk.f32.mxu1 %vm11118_vm5, %v16471_v0 }
 0x1c0   : > { %v11833_v27 = vpop.permute.xlu0 %1160 }
 0x1c1   : > { %10453 = vmatmul.mubr.msk.f32.gmra.mxu0 %vm1178_vm6, %v11833_v27  ;;  %10508 = vmatmul.mubr.msk.f32.gmra.mxu1 %vm1178_vm6, %v11833_v27 }
 0x1c2   : > { %10455 = vmatprep.mubr.msk.f32.mxu0 %vm11118_vm5, %v16471_v0  ;;  %10510 = vmatprep.mubr.msk.f32.mxu1 %vm11118_vm5, %v16471_v0 }
 0x1cc   : > { %v11843_v40 = vpop.permute.xlu1 %1162 }
 0x1cd   : > { %10456 = vmatmul.mubr.msk.f32.gmra.mxu0 %vm1178_vm6, %v11843_v40  ;;  %10511 = vmatmul.mubr.msk.f32.gmra.mxu1 %vm1178_vm6, %v11843_v40 }
 0x1ce   : > { %10458 = vmatprep.mubr.msk.f32.mxu0 %vm11118_vm5, %v16471_v0  ;;  %10513 = vmatprep.mubr.msk.f32.mxu1 %vm11118_vm5, %v16471_v0 }
 0x1d8   : > { %v11853_v18 = vpop.permute.xlu0 %1164 }
 0x1d9   : > { %10459 = vmatmul.mubr.msk.f32.gmra.mxu0 %vm1178_vm6, %v11853_v18  ;;  %10514 = vmatmul.mubr.msk.f32.gmra.mxu1 %vm1178_vm6, %v11853_v18 }
 0x1da   : > { %10461 = vmatprep.mubr.msk.f32.mxu0 %vm11118_vm5, %v16471_v0  ;;  %10516 = vmatprep.mubr.msk.f32.mxu1 %vm11118_vm5, %v16471_v0 }
 0x1f2   : > { %v11863_v9 = vpop.permute.xlu1 %1166 }
 0x1f3   : > { %10462 = vmatmul.mubr.msk.f32.gmra.mxu0 %vm1178_vm6, %v11863_v9  ;;  %10517 = vmatmul.mubr.msk.f32.gmra.mxu1 %vm1178_vm6, %v11863_v9 }
 0x1f4   : > { %10464 = vmatprep.mubr.msk.f32.mxu0 %vm11118_vm5, %v16471_v0  ;;  %10519 = vmatprep.mubr.msk.f32.mxu1 %vm11118_vm5, %v16471_v0 }
 0x1fe   : > { %v11873_v10 = vpop.permute.xlu0 %1168 }
 0x1ff   : > { %10465 = vmatmul.mubr.msk.f32.gmra.mxu0 %vm1178_vm6, %v11873_v10  ;;  %10520 = vmatmul.mubr.msk.f32.gmra.mxu1 %vm1178_vm6, %v11873_v10 }
 0x200   : > { %10467 = vmatprep.mubr.msk.f32.mxu0 %vm11118_vm5, %v16471_v0  ;;  %10522 = vmatprep.mubr.msk.f32.mxu1 %vm11118_vm5, %v16471_v0 }
 0x206   : > { %v11883_v61 = vpop.permute.xlu1 %1170 }
 0x207   : > { %10468 = vmatmul.mubr.msk.f32.gmra.mxu0 %vm1178_vm6, %v11883_v61  ;;  %10523 = vmatmul.mubr.msk.f32.gmra.mxu1 %vm1178_vm6, %v11883_v61 }
 0x208   : > { %10470 = vmatprep.mubr.msk.f32.mxu0 %vm11118_vm5, %v16471_v0  ;;  %10525 = vmatprep.mubr.msk.f32.mxu1 %vm11118_vm5, %v16471_v0 }
 0x20e   : > { %v11893_v14 = vpop.permute.xlu0 %1172 }
 0x20f   : > { %10471 = vmatmul.mubr.msk.f32.gmra.mxu0 %vm1178_vm6, %v11893_v14  ;;  %10526 = vmatmul.mubr.msk.f32.gmra.mxu1 %vm1178_vm6, %v11893_v14 }
 0x210   : > { %10473 = vmatprep.mubr.msk.f32.mxu0 %vm11118_vm5, %v16471_v0  ;;  %10528 = vmatprep.mubr.msk.f32.mxu1 %vm11118_vm5, %v16471_v0 }
 0x212   : > { %v11903_v59 = vpop.permute.xlu1 %1174 }
 0x213   : > { %10474 = vmatmul.mubr.msk.f32.gmra.mxu0 %vm1178_vm6, %v11903_v59  ;;  %10529 = vmatmul.mubr.msk.f32.gmra.mxu1 %vm1178_vm6, %v11903_v59 }
 0x214   : > { %10476 = vmatprep.mubr.msk.f32.mxu0 %vm11118_vm5, %v16471_v0  ;;  %10531 = vmatprep.mubr.msk.f32.mxu1 %vm11118_vm5, %v16471_v0  ;;  %v11913_v25 = vpop.permute.xlu0 %1176 }
 0x217   : > { %10477 = vmatmul.mubr.msk.f32.gmra.mxu0 %vm1178_vm6, %v11913_v25  ;;  %10532 = vmatmul.mubr.msk.f32.gmra.mxu1 %vm1178_vm6, %v11913_v25 }
 0x218   : > { %10556 = vmatprep.mubr.msk.f32.mxu0 %vm1178_vm6, %v9730_v31  ;;  %10584 = vmatprep.mubr.msk.f32.mxu1 %vm1178_vm6, %v1325_v36  ;;  %v9750_v31 = vld [vmem:[%s16465_s8 + $0xe0] sm:$0xff]  ;;  %v9749_v36 = vld [vmem:[%s16465_s8 + $0xd8] sm:$0xff] }
 0x269   : > { %v11919_v11 = vpop.f32.mrf.mxu0  ;;  %v11921_v5 = vpop.f32.mrf.mxu1 }
 0x26b   : > { %v10448_v58 = vpop.f32.mrf.mxu0  ;;  %v10503_v4 = vpop.f32.mrf.mxu1 }
 0x26c   : > { %v9752_v58 = vld [vmem:[%s16465_s8 + $0xf0] sm:$0xff]  ;;  %v9751_v4 = vld [vmem:[%s16465_s8 + $0xe8] sm:$0xff] }
 0x275   : > { %v11931_v52 = vpop.f32.mrf.mxu0  ;;  %v11933_v48 = vpop.f32.mrf.mxu1 }
 0x277   : > { %v10451_v28 = vpop.f32.mrf.mxu0  ;;  %v10506_v22 = vpop.f32.mrf.mxu1 }
 0x278   : > { %v9746_v28 = vld [vmem:[%s16465_s8 + $0xc0] sm:$0xff]  ;;  %v9745_v22 = vld [vmem:[%s16465_s8 + $0xb8] sm:$0xff] }
 0x281   : > { %v11935_v21 = vpop.f32.mrf.mxu0  ;;  %v11937_v57 = vpop.f32.mrf.mxu1 }
 0x283   : > { %v10454_v50 = vpop.f32.mrf.mxu0  ;;  %v10509_v54 = vpop.f32.mrf.mxu1 }
 0x28d   : > { %v1286_v13 = vpop.f32.mrf.mxu0  ;;  %v1425_v49 = vpop.f32.mrf.mxu1 }
 0x28f   : > { %v10457_v24 = vpop.f32.mrf.mxu0  ;;  %v10512_v20 = vpop.f32.mrf.mxu1 }
 0x299   : > { %v1291_v16 = vpop.f32.mrf.mxu0  ;;  %v1430_v17 = vpop.f32.mrf.mxu1 }
 0x29b   : > { %v10460_v47 = vpop.f32.mrf.mxu0  ;;  %v10515_v37 = vpop.f32.mrf.mxu1 }
 0x2b3   : > { %v1296_v51 = vpop.f32.mrf.mxu0  ;;  %v1435_v38 = vpop.f32.mrf.mxu1 }
 0x2b5   : > { %v10463_v12 = vpop.f32.mrf.mxu0  ;;  %v10518_v33 = vpop.f32.mrf.mxu1 }
 0x2bf   : > { %v1301_v2 = vpop.f32.mrf.mxu0  ;;  %v1440_v19 = vpop.f32.mrf.mxu1 }
 0x2c1   : > { %v10466_v42 = vpop.f32.mrf.mxu0  ;;  %v10521_v8 = vpop.f32.mrf.mxu1 }
 0x2c2   : > { %v9769_v42 = vld [vmem:[%s16461_s4 + $0x50] sm:$0xff]  ;;  %v9770_v8 = vld [vmem:[%s16461_s4 + $0x58] sm:$0x7] }
 0x2c7   : > { %v1306_v15 = vpop.f32.mrf.mxu0  ;;  %v1445_v53 = vpop.f32.mrf.mxu1 }
 0x2c9   : > { %v10469_v1 = vpop.f32.mrf.mxu0  ;;  %v10524_v26 = vpop.f32.mrf.mxu1 }
 0x2ca   : > { %v1924_v1 = vld [vmem:[%s16466_s9 + $0x8] sm:$0xff]  ;;  %v1923_v26 = vld [vmem:[%s16466_s9] sm:$0xff] }
 0x2cf   : > { %v1311_v7 = vpop.f32.mrf.mxu0  ;;  %v1450_v23 = vpop.f32.mrf.mxu1 }
 0x2d1   : > { %v10472_v56 = vpop.f32.mrf.mxu0  ;;  %v10527_v44 = vpop.f32.mrf.mxu1 }
 0x2d3   : > { %v1316_v43 = vpop.f32.mrf.mxu0  ;;  %v1455_v41 = vpop.f32.mrf.mxu1 }
 0x2d5   : > { %v10475_v29 = vpop.f32.mrf.mxu0  ;;  %v10530_v45 = vpop.f32.mrf.mxu1 }
 0x2d7   : > { %v1321_v62 = vpop.f32.mrf.mxu0  ;;  %v1460_v39 = vpop.f32.mrf.mxu1 }
 0x2d8   : > { %10534 = vmatprep.subr.msk.mxu0 %vm1201_vm4, %v1460_v39  ;;  %10562 = vmatprep.subr.msk.mxu1 %vm1201_vm4, %v1321_v62 }
 0x2d9   : > { %v10478_v55 = vpop.f32.mrf.mxu0  ;;  %v10533_v34 = vpop.f32.mrf.mxu1  ;;  %10535 = vmatpush3.msk.msra.mxu0 %vm1201_vm4, %v1460_v39  ;;  %10563 = vmatpush3.msk.msra.mxu1 %vm1201_vm4, %v1321_v62  ;;  %v1914_v62 = vstv %s9776_s27  ;;  %s9898_s27 = sld [smem:[#allocation4 + $0x18]] }
 0x2da   : > { %10536 = vmatprep.subr.mxu0 %v1455_v41  ;;  %10564 = vmatprep.subr.mxu1 %v1316_v43 }
 0x2db   : > { %10537 = vmatpush3.msra.mxu0 %v1455_v41  ;;  %10565 = vmatpush3.msra.mxu1 %v1316_v43 }
 0x2dc   : > { %10538 = vmatprep.subr.mxu0 %v1450_v23  ;;  %10566 = vmatprep.subr.mxu1 %v1311_v7 }
 0x2dd   : > { %10539 = vmatpush3.msra.mxu0 %v1450_v23  ;;  %10567 = vmatpush3.msra.mxu1 %v1311_v7  ;;  %v9785_v7 = vld [vmem:[%s16466_s9 + $0x38] sm:$0x7] }
 0x2de   : > { %10540 = vmatprep.subr.mxu0 %v1445_v53  ;;  %10568 = vmatprep.subr.mxu1 %v1306_v15 }
 0x2df   : > { %10541 = vmatpush3.msra.mxu0 %v1445_v53  ;;  %10569 = vmatpush3.msra.mxu1 %v1306_v15  ;;  %v1926_v15 = vld [vmem:[%s16466_s9 + $0x18] sm:$0x7]  ;;  %v1925_v53 = vld [vmem:[%s16466_s9 + $0x10] sm:$0xff] }
 0x2e0   : > { %10542 = vmatprep.subr.mxu0 %v1440_v19  ;;  %10570 = vmatprep.subr.mxu1 %v1301_v2 }
 0x2e1   : > { %10543 = vmatpush3.msra.mxu0 %v1440_v19  ;;  %10571 = vmatpush3.msra.mxu1 %v1301_v2  ;;  %v9768_v19 = vld [vmem:[%s16461_s4 + $0x48] sm:$0xff] }
 0x2e2   : > { %10544 = vmatprep.subr.mxu0 %v1435_v38  ;;  %10572 = vmatprep.subr.mxu1 %v1296_v51 }
 0x2e3   : > { %10545 = vmatpush3.msra.mxu0 %v1435_v38  ;;  %10573 = vmatpush3.msra.mxu1 %v1296_v51 }
 0x2e4   : > { %10546 = vmatprep.subr.mxu0 %v1430_v17  ;;  %10574 = vmatprep.subr.mxu1 %v1291_v16 }
 0x2e5   : > { %10547 = vmatpush3.msra.mxu0 %v1430_v17  ;;  %10575 = vmatpush3.msra.mxu1 %v1291_v16 }
 0x2e6   : > { %10548 = vmatprep.subr.mxu0 %v1425_v49  ;;  %10576 = vmatprep.subr.mxu1 %v1286_v13 }
 0x2e7   : > { %10549 = vmatpush3.msra.mxu0 %v1425_v49  ;;  %10577 = vmatpush3.msra.mxu1 %v1286_v13 }
 0x2e8   : > { %10550 = vmatprep.subr.mxu0 %v11937_v57  ;;  %10578 = vmatprep.subr.mxu1 %v11935_v21 }
 0x2e9   : > { %10551 = vmatpush3.msra.mxu0 %v11937_v57  ;;  %10579 = vmatpush3.msra.mxu1 %v11935_v21  ;;  %v9744_v21 = vld [vmem:[%s16465_s8 + $0xb0] sm:$0xff] }
 0x2ea   : > { %10552 = vmatprep.subr.mxu0 %v11933_v48  ;;  %10580 = vmatprep.subr.mxu1 %v11931_v52 }
 0x2eb   : > { %10553 = vmatpush3.msra.mxu0 %v11933_v48  ;;  %10581 = vmatpush3.msra.mxu1 %v11931_v52  ;;  %v9748_v52 = vld [vmem:[%s16465_s8 + $0xd0] sm:$0xff]  ;;  %v9747_v48 = vld [vmem:[%s16465_s8 + $0xc8] sm:$0xff] }
 0x2ec   : > { %10554 = vmatprep.subr.mxu0 %v11921_v5  ;;  %10582 = vmatprep.subr.mxu1 %v11919_v11 }
 0x2ed   : > { %10555 = vmatpush3.msra.mxu0 %v11921_v5  ;;  %10583 = vmatpush3.msra.mxu1 %v11919_v11  ;;  %v1328_v11 = vld [vmem:[%s16461_s4 + $0x18] sm:$0x7] }
 0x2ee   : > { %10557 = vmatmul.mubr.msk.f32.vlgmr.msra.gmra.mxu0 %vm1178_vm6, %v9731_v35  ;;  %10585 = vmatmul.mubr.msk.f32.vlgmr.msra.gmra.mxu1 %vm1178_vm6, %v1326_v30  ;;  %v9733_v5 = vld [vmem:[%s16461_s4 + $0x38] sm:$0x7] }
 0x2ef   : > { %10590 = vmatprep.subr.mxu0 %v16471_v0  ;;  %10559 = vmatprep.mubr.msk.f32.mxu0 %vm1178_vm6, %v9732_v3 }
 0x2f0   : > { %10591 = vmatpush3.msk.msra.mxu0 %vm1201_vm4, %v9754_v60  ;;  %10587 = vmatprep.mubr.msk.f32.mxu1 %vm1178_vm6, %v1327_v63 }
 0x2f1   : > { %10592 = vmatprep.subr.mxu0 %v16471_v0  ;;  %10673 = vmatprep.subr.msk.mxu1 %vm1940_vm7, %v1926_v15 }
 0x2f2   : > { %10593 = vmatpush3.msra.mxu0 %v9753_v32  ;;  %10588 = vmatmul.mubr.msk.f32.gmra.mxu1 %vm1178_vm6, %v1328_v11 }
 0x2f3   : > { %10594 = vmatprep.subr.mxu0 %v16471_v0  ;;  %10560 = vmatmul.mubr.msk.f32.gmra.mxu0 %vm1178_vm6, %v9733_v5 }
 0x2f4   : > { %10595 = vmatpush3.msra.mxu0 %v9752_v58  ;;  %10612 = vmatprep.mubr.msk.f32.mxu0 %vm11118_vm5, %v16471_v0 }
 0x2f5   : > { %10596 = vmatprep.subr.mxu0 %v16471_v0  ;;  %10674 = vmatpush3.msk.msra.mxu1 %vm1940_vm7, %v1926_v15 }
 0x2f6   : > { %10597 = vmatpush3.msra.mxu0 %v9751_v4  ;;  %10675 = vmatprep.subr.mxu1 %v1925_v53 }
 0x2f7   : > { %10598 = vmatprep.subr.mxu0 %v16471_v0  ;;  %10676 = vmatpush3.msra.mxu1 %v1925_v53 }
 0x2f8   : > { %10599 = vmatpush3.msra.mxu0 %v9750_v31  ;;  %10677 = vmatprep.subr.mxu1 %v1924_v1 }
 0x2f9   : > { %10600 = vmatprep.subr.mxu0 %v16471_v0  ;;  %10678 = vmatpush3.msra.mxu1 %v1924_v1  ;;  %v12237_v1 = vld [vmem:[%s16462_s5 + $0x28] sm:$0x1] }
 0x2fa   : > { %10601 = vmatpush3.msra.mxu0 %v9749_v36  ;;  %10679 = vmatprep.subr.mxu1 %v1923_v26 }
 0x2fb   : > { %10602 = vmatprep.subr.mxu0 %v16471_v0  ;;  %10680 = vmatpush3.msra.mxu1 %v1923_v26  ;;  %v9822_v26 = vld [vmem:[%s16467_s10 + $0x38] sm:$0x7] }
 0x2fc   : > { %10603 = vmatpush3.msra.mxu0 %v9748_v52  ;;  %10687 = vmatprep.subr.msk.mxu1 %vm1940_vm7, %v9785_v7  ;;  %v9784_v52 = vld [vmem:[%s16466_s9 + $0x30] sm:$0xff] }
 0x2fd   : > { %10604 = vmatprep.subr.mxu0 %v16471_v0 }
 0x2fe   : > { %10605 = vmatpush3.msra.mxu0 %v9747_v48 }
 0x2ff   : > { %10606 = vmatprep.subr.mxu0 %v16471_v0 }
 0x300   : > { %10607 = vmatpush3.msra.mxu0 %v9746_v28  ;;  %v9783_v28 = vld [vmem:[%s16466_s9 + $0x28] sm:$0xff] }
 0x301   : > { %10608 = vmatprep.subr.mxu0 %v16471_v0 }
 0x302   : > { %10609 = vmatpush3.msra.mxu0 %v9745_v22 }
 0x303   : > { %10610 = vmatprep.subr.mxu0 %v16471_v0 }
 0x304   : > { %10611 = vmatpush3.msra.mxu0 %v9744_v21  ;;  %v9782_v21 = vld [vmem:[%s16466_s9 + $0x20] sm:$0xff] }
 0x305   : > { %10613 = vmatmul.mubr.msk.f32.vlgmr.msra.gmra.mxu0 %vm1178_vm6, %v11813_v46  ;;  %v9767_v46 = vld [vmem:[%s16461_s4 + $0x40] sm:$0xff] }
 0x306   : > { %10615 = vmatprep.mubr.msk.f32.mxu0 %vm11118_vm5, %v16471_v0 }
 0x309   : > { %10616 = vmatmul.mubr.msk.f32.gmra.mxu0 %vm1178_vm6, %v11823_v6 }
 0x30a   : > { %10618 = vmatprep.mubr.msk.f32.mxu0 %vm11118_vm5, %v16471_v0 }
 0x30d   : > { %10619 = vmatmul.mubr.msk.f32.gmra.mxu0 %vm1178_vm6, %v11833_v27 }
 0x30e   : > { %10621 = vmatprep.mubr.msk.f32.mxu0 %vm11118_vm5, %v16471_v0 }
 0x311   : > { %10622 = vmatmul.mubr.msk.f32.gmra.mxu0 %vm1178_vm6, %v11843_v40 }
 0x312   : > { %10624 = vmatprep.mubr.msk.f32.mxu0 %vm11118_vm5, %v16471_v0 }
 0x315   : > { %10625 = vmatmul.mubr.msk.f32.gmra.mxu0 %vm1178_vm6, %v11853_v18 }
 0x316   : > { %10627 = vmatprep.mubr.msk.f32.mxu0 %vm11118_vm5, %v16471_v0 }
 0x319   : > { %10628 = vmatmul.mubr.msk.f32.gmra.mxu0 %vm1178_vm6, %v11863_v9 }
 0x31a   : > { %10630 = vmatprep.mubr.msk.f32.mxu0 %vm11118_vm5, %v16471_v0 }
 0x31d   : > { %10631 = vmatmul.mubr.msk.f32.gmra.mxu0 %vm1178_vm6, %v11873_v10 }
 0x31e   : > { %10633 = vmatprep.mubr.msk.f32.mxu0 %vm11118_vm5, %v16471_v0 }
 0x321   : > { %10634 = vmatmul.mubr.msk.f32.gmra.mxu0 %vm1178_vm6, %v11883_v61 }
 0x322   : > { %10636 = vmatprep.mubr.msk.f32.mxu0 %vm11118_vm5, %v16471_v0 }
 0x325   : > { %10637 = vmatmul.mubr.msk.f32.gmra.mxu0 %vm1178_vm6, %v11893_v14 }
 0x326   : > { %10639 = vmatprep.mubr.msk.f32.mxu0 %vm11118_vm5, %v16471_v0 }
 0x329   : > { %10640 = vmatmul.mubr.msk.f32.gmra.mxu0 %vm1178_vm6, %v11903_v59 }
 0x32a   : > { %10642 = vmatprep.mubr.msk.f32.mxu0 %vm11118_vm5, %v16471_v0 }
 0x32d   : > { %10643 = vmatmul.mubr.msk.f32.gmra.mxu0 %vm1178_vm6, %v11913_v25 }
 0x32e   : > { %10667 = vmatprep.mubr.msk.f32.mxu0 %vm1178_vm6, %v9767_v46  ;;  %v12153_v46 = vld [vmem:[%s16462_s5 + $0x10] sm:$0xff] }
 0x3ae   : > { %v12072_v6 = vpop.f32.mrf.mxu0  ;;  %v10586_v23 = vpop.f32.mrf.mxu1 }
 0x3af   : > { %v1656_v43 = vadd.f32 %v10586_v23, %v12072_v6 }
 0x3b0   : > { %v12074_v27 = vpop.f32.mrf.mxu0  ;;  %v1650_v56 = vpop.f32.mrf.mxu1 }
 0x3b1   : > { %v1651_v29 = vadd.f32 %v1650_v56, %v12074_v27  ;;  %v9820_v56 = vld [vmem:[%s16467_s10 + $0x28] sm:$0xff] }
 0x3b2   : > { %v10589_v44 = vpop.f32.mrf.mxu1 }
 0x3b3   : > { %v12076_v40 = vpop.f32.mrf.mxu0 }
 0x3b4   : > { %v1660_v39 = vpop.f32.mrf.mxu1  ;;  %v1666_v34 = vadd.f32 %v10589_v44, %v12076_v40  ;;  %v9819_v44 = vld [vmem:[%s16467_s10 + $0x20] sm:$0xff] }
 0x3b5   : > { %v12078_v18 = vpop.f32.mrf.mxu0 }
 0x3b6   : > { %v1661_v60 = vadd.f32 %v1660_v39, %v12078_v18 }
 0x3c5   : > { %v1750_v9 = vpop.f32.mrf.mxu0 }
 0x3c7   : > { %v10614_v10 = vpop.f32.mrf.mxu0 }
 0x3c9   : > { %v1755_v61 = vpop.f32.mrf.mxu0 }
 0x3cb   : > { %v10617_v14 = vpop.f32.mrf.mxu0 }
 0x3cd   : > { %v1760_v59 = vpop.f32.mrf.mxu0 }
 0x3cf   : > { %v10620_v25 = vpop.f32.mrf.mxu0 }
 0x3d0   : > { %v12167_v25 = vld [vmem:[%s16462_s5] sm:$0xff] }
 0x3d1   : > { %v1765_v57 = vpop.f32.mrf.mxu0 }
 0x3d3   : > { %v10623_v50 = vpop.f32.mrf.mxu0 }
 0x3d4   : > { %v9802_v50 = vld [vmem:[%s16466_s9 + $0x58] sm:$0x7] }
 0x3d5   : > { %v1770_v54 = vpop.f32.mrf.mxu0 }
 0x3d7   : > { %v10626_v13 = vpop.f32.mrf.mxu0 }
 0x3d8   : > { %v9800_v13 = vld [vmem:[%s16466_s9 + $0x48] sm:$0xff] }
 0x3d9   : > { %v1775_v49 = vpop.f32.mrf.mxu0 }
 0x3db   : > { %v10629_v24 = vpop.f32.mrf.mxu0 }
 0x3dc   : > { %v2486_v24 = vld [vmem:[%s16467_s10 + $0x18] sm:$0x7] }
 0x3dd   : > { %v1780_v20 = vpop.f32.mrf.mxu0 }
 0x3df   : > { %v10632_v16 = vpop.f32.mrf.mxu0 }
 0x3e0   : > { %v2484_v16 = vld [vmem:[%s16467_s10 + $0x8] sm:$0xff] }
 0x3e1   : > { %v1785_v17 = vpop.f32.mrf.mxu0 }
 0x3e3   : > { %v10635_v47 = vpop.f32.mrf.mxu0 }
 0x3e4   : > { %v9808_v47 = vld [vmem:[%s16462_s5 + $0x20] sm:$0xff] }
 0x3e5   : > { %v1790_v37 = vpop.f32.mrf.mxu0 }
 0x3e7   : > { %v10638_v51 = vpop.f32.mrf.mxu0 }
 0x3e9   : > { %v1795_v38 = vpop.f32.mrf.mxu0 }
 0x3eb   : > { %v10641_v12 = vpop.f32.mrf.mxu0 }
 0x3ed   : > { %v1800_v33 = vpop.f32.mrf.mxu0 }
 0x3ee   : > { %10645 = vmatprep.subr.msk.mxu0 %vm1201_vm4, %v1800_v33 }
 0x3ef   : > { %v10644_v2 = vpop.f32.mrf.mxu0  ;;  %10646 = vmatpush3.msk.msra.mxu0 %vm1201_vm4, %v1800_v33 }
 0x3f0   : > { %10647 = vmatprep.subr.mxu0 %v1795_v38 }
 0x3f1   : > { %10648 = vmatpush3.msra.mxu0 %v1795_v38 }
 0x3f2   : > { %10649 = vmatprep.subr.mxu0 %v1790_v37 }
 0x3f3   : > { %10650 = vmatpush3.msra.mxu0 %v1790_v37 }
 0x3f4   : > { %10651 = vmatprep.subr.mxu0 %v1785_v17 }
 0x3f5   : > { %10652 = vmatpush3.msra.mxu0 %v1785_v17  ;;  %v2483_v17 = vld [vmem:[%s16467_s10] sm:$0xff] }
 0x3f6   : > { %10653 = vmatprep.subr.mxu0 %v1780_v20 }
 0x3f7   : > { %10654 = vmatpush3.msra.mxu0 %v1780_v20  ;;  %v2485_v20 = vld [vmem:[%s16467_s10 + $0x10] sm:$0xff] }
 0x3f8   : > { %10655 = vmatprep.subr.mxu0 %v1775_v49 }
 0x3f9   : > { %10656 = vmatpush3.msra.mxu0 %v1775_v49  ;;  %v9799_v49 = vld [vmem:[%s16466_s9 + $0x40] sm:$0xff] }
 0x3fa   : > { %10657 = vmatprep.subr.mxu0 %v1770_v54 }
 0x3fb   : > { %10658 = vmatpush3.msra.mxu0 %v1770_v54  ;;  %v9801_v54 = vld [vmem:[%s16466_s9 + $0x50] sm:$0xff] }
 0x3fc   : > { %10659 = vmatprep.subr.mxu0 %v1765_v57 }
 0x3fd   : > { %10660 = vmatpush3.msra.mxu0 %v1765_v57  ;;  %v12178_v57 = vld [vmem:[%s16462_s5 + $0x8] sm:$0x1] }
 0x3fe   : > { %10661 = vmatprep.subr.mxu0 %v1760_v59 }
 0x3ff   : > { %10662 = vmatpush3.msra.mxu0 %v1760_v59  ;;  %v12162_v59 = vld [vmem:[%s16462_s5 + $0x18] sm:$0x1] }
 0x400   : > { %10663 = vmatprep.subr.mxu0 %v1755_v61 }
 0x401   : > { %10664 = vmatpush3.msra.mxu0 %v1755_v61 }
 0x402   : > { %10665 = vmatprep.subr.mxu0 %v1750_v9 }
 0x403   : > { %10666 = vmatpush3.msra.mxu0 %v1750_v9 }
 0x404   : > { %10668 = vmatmul.mubr.msk.f32.vlgmr.msra.gmra.mxu0 %vm1178_vm6, %v9768_v19 }
 0x405   : > { %10670 = vmatprep.mubr.msk.f32.mxu0 %vm1178_vm6, %v9769_v42 }
 0x408   : > { %10671 = vmatmul.mubr.msk.f32.gmra.mxu0 %vm1178_vm6, %v9770_v8 }
 0x409   : > { %10745 = vmatprep.mubr.msk.f32.mxu0 %vm1927_vm8, %v9808_v47 }
 0x4c4   : > { %v10669_v41 = vpop.f32.mrf.mxu0 }
 0x4c5   : > { %v1910_v45 = vadd.f32 %v10669_v41, %v1656_v43 }
 0x4c6   : > { %v1890_v55 = vpop.f32.mrf.mxu0 }
 0x4c7   : > { %v1909_v35 = vadd.f32 %v1890_v55, %v1651_v29  ;;  %v1916_v30 = vadd.f32 %v1914_v62, %v1910_v45 }
 0x4c8   : > { %v10672_v3 = vpop.f32.mrf.mxu0 }
 0x4c9   : > { %v1915_v63 = vadd.f32 %v1914_v62, %v1909_v35  ;;  %v1912_v32 = vadd.f32 %v10672_v3, %v1666_v34  ;;  %v12118_v4 = vmax.f32 %v1916_v30, 0.0  ;;  %v9837_v3 = vld [vmem:[%s16467_s10 + $0x58] sm:$0x7] }
 0x4ca   : > { %v1900_v11 = vpop.f32.mrf.mxu0 }
 0x4cb   : > { %v12116_v5 = vmax.f32 %v1915_v63, 0.0  ;;  %v1911_v58 = vadd.f32 %v1900_v11, %v1661_v60  ;;  %v1918_v31 = vadd.f32 %v1914_v62, %v1912_v32  ;;  %v9836_v60 = vld [vmem:[%s16467_s10 + $0x50] sm:$0xff]  ;;  %v9835_v63 = vld [vmem:[%s16467_s10 + $0x48] sm:$0xff]  ;;  %v9834_v32 = vld [vmem:[%s16467_s10 + $0x40] sm:$0xff] }
 0x4cd   : > { %v1917_v36 = vadd.f32 %v1914_v62, %v1911_v58  ;;  %10681 = vmatprep.mubr.msk.f32.mxu1 %vm1927_vm8, %v12116_v5  ;;  %v12133_v22 = vmax.f32 %v1918_v31, 0.0 }
 0x4ce   : > { %10682 = vmatmul.mubr.msk.f32.vlgmr.msra.gmra.mxu1 %vm1927_vm8, %v12118_v4 }
 0x4cf   : > { %v12127_v48 = vmax.f32 %v1917_v36, 0.0  ;;  %10688 = vmatpush3.msk.msra.mxu1 %vm1940_vm7, %v9785_v7  ;;  %v9821_v7 = vld [vmem:[%s16467_s10 + $0x30] sm:$0xff] }
 0x4d0   : > { %10689 = vmatprep.subr.mxu1 %v9784_v52 }
 0x4d1   : > { %10684 = vmatprep.mubr.msk.f32.mxu1 %vm1927_vm8, %v12127_v48  ;;  %10690 = vmatpush3.msra.mxu1 %v9784_v52 }
 0x4d2   : > { %10685 = vmatmul.mubr.msk.f32.gmra.mxu1 %vm1927_vm8, %v12133_v22  ;;  %10691 = vmatprep.subr.mxu1 %v9783_v28 }
 0x4d3   : > { %10692 = vmatpush3.msra.mxu1 %v9783_v28  ;;  %10695 = vmatprep.mubr.msk.f32.mxu1 %vm1927_vm8, %v12116_v5  ;;  %v9851_v28 = vld [vmem:[%s16468_s11 + $0x18] sm:$0x1] }
 0x4d4   : > { %10693 = vmatprep.subr.mxu1 %v9782_v21 }
 0x4d5   : > { %10694 = vmatpush3.msra.mxu1 %v9782_v21 }
 0x4d6   : > { %10696 = vmatmul.mubr.msk.f32.vlgmr.msra.gmra.mxu1 %vm1927_vm8, %v12118_v4 }
 0x4d7   : > { %10698 = vmatprep.mubr.msk.f32.mxu1 %vm1927_vm8, %v12127_v48 }
 0x4da   : > { %10699 = vmatmul.mubr.msk.f32.gmra.mxu1 %vm1927_vm8, %v12133_v22 }
 0x4db   : > { %10709 = vmatprep.mubr.msk.f32.mxu1 %vm1927_vm8, %v12153_v46 }
 0x58e   : > { %v10683_v6 = vpop.f32.mrf.mxu1 }
 0x590   : > { %v2010_v27 = vpop.f32.mrf.mxu1 }
 0x592   : > { %v10686_v40 = vpop.f32.mrf.mxu1 }
 0x594   : > { %v2020_v18 = vpop.f32.mrf.mxu1 }
 0x596   : > { %v10697_v9 = vpop.f32.mrf.mxu1 }
 0x598   : > { %v2105_v10 = vpop.f32.mrf.mxu1 }
 0x59a   : > { %v10700_v61 = vpop.f32.mrf.mxu1 }
 0x59b   : > { %10701 = vmatprep.subr.msk.mxu1 %vm1940_vm7, %v10700_v61 }
 0x59c   : > { %v2115_v14 = vpop.f32.mrf.mxu1  ;;  %10702 = vmatpush3.msk.msra.mxu1 %vm1940_vm7, %v10700_v61 }
 0x59d   : > { %10703 = vmatprep.subr.mxu1 %v2115_v14 }
 0x59e   : > { %10704 = vmatpush3.msra.mxu1 %v2115_v14 }
 0x59f   : > { %10705 = vmatprep.subr.mxu1 %v10697_v9 }
 0x5a0   : > { %10706 = vmatpush3.msra.mxu1 %v10697_v9 }
 0x5a1   : > { %10707 = vmatprep.subr.mxu1 %v2105_v10 }
 0x5a2   : > { %10708 = vmatpush3.msra.mxu1 %v2105_v10 }
 0x5a3   : > { %10710 = vmatmul.mubr.msk.f32.vlgmr.msra.gmra.mxu1 %vm1927_vm8, %v12162_v59  ;;  %10712 = vmatprep.subr.msk.mxu1 %vm1940_vm7, %v10686_v40 }
 0x5a4   : > { %10713 = vmatpush3.msk.msra.mxu1 %vm1940_vm7, %v10686_v40  ;;  %10720 = vmatprep.mubr.msk.f32.mxu1 %vm1927_vm8, %v12167_v25 }
 0x5a5   : > { %10714 = vmatprep.subr.mxu1 %v2020_v18 }
 0x5a6   : > { %10715 = vmatpush3.msra.mxu1 %v2020_v18 }
 0x5a7   : > { %10716 = vmatprep.subr.mxu1 %v10683_v6 }
 0x5a8   : > { %10717 = vmatpush3.msra.mxu1 %v10683_v6 }
 0x5a9   : > { %10718 = vmatprep.subr.mxu1 %v2010_v27 }
 0x5aa   : > { %10719 = vmatpush3.msra.mxu1 %v2010_v27  ;;  %v2998_v27 = vstv %s9846_s19  ;;  %s9886_s19 = sld [smem:[#allocation4 + $0xc]] }
 0x5ab   : > { %10721 = vmatmul.mubr.msk.f32.vlgmr.msra.gmra.mxu1 %vm1927_vm8, %v12178_v57  ;;  %10723 = vmatprep.subr.msk.mxu1 %vm1940_vm7, %v9802_v50 }
 0x5ac   : > { %10724 = vmatpush3.msk.msra.mxu1 %vm1940_vm7, %v9802_v50  ;;  %10731 = vmatprep.mubr.msk.f32.mxu1 %vm1927_vm8, %v12116_v5 }
 0x5ad   : > { %10725 = vmatprep.subr.mxu1 %v9801_v54 }
 0x5ae   : > { %10726 = vmatpush3.msra.mxu1 %v9801_v54  ;;  %v2478_v54 = vstv %s9813_s22  ;;  %s9897_s22 = sld [smem:[#allocation4 + $0x17]] }
 0x5af   : > { %10727 = vmatprep.subr.mxu1 %v9800_v13 }
 0x5b0   : > { %10728 = vmatpush3.msra.mxu1 %v9800_v13 }
 0x5b1   : > { %10729 = vmatprep.subr.mxu1 %v9799_v49 }
 0x5b2   : > { %10730 = vmatpush3.msra.mxu1 %v9799_v49 }
 0x5b3   : > { %10732 = vmatmul.mubr.msk.f32.vlgmr.msra.gmra.mxu1 %vm1927_vm8, %v12118_v4  ;;  %10748 = vmatprep.subr.msk.mxu1 %vm1940_vm7, %v2486_v24 }
 0x5b4   : > { %10734 = vmatprep.mubr.msk.f32.mxu1 %vm1927_vm8, %v12127_v48  ;;  %10749 = vmatpush3.msk.msra.mxu1 %vm1940_vm7, %v2486_v24 }
 0x5b5   : > { %10750 = vmatprep.subr.mxu1 %v2485_v20 }
 0x5b6   : > { %10751 = vmatpush3.msra.mxu1 %v2485_v20 }
 0x5b7   : > { %10735 = vmatmul.mubr.msk.f32.gmra.mxu1 %vm1927_vm8, %v12133_v22  ;;  %10752 = vmatprep.subr.mxu1 %v2484_v16 }
 0x5b8   : > { %10753 = vmatpush3.msra.mxu1 %v2484_v16  ;;  %10756 = vmatprep.mubr.msk.f32.mxu1 %vm1927_vm8, %v12116_v5 }
 0x5b9   : > { %10754 = vmatprep.subr.mxu1 %v2483_v17 }
 0x5ba   : > { %10755 = vmatpush3.msra.mxu1 %v2483_v17 }
 0x5bb   : > { %10757 = vmatmul.mubr.msk.f32.vlgmr.msra.gmra.mxu1 %vm1927_vm8, %v12118_v4 }
 0x5bc   : > { %10759 = vmatprep.mubr.msk.f32.mxu1 %vm1927_vm8, %v12127_v48 }
 0x5bf   : > { %10760 = vmatmul.mubr.msk.f32.gmra.mxu1 %vm1927_vm8, %v12133_v22 }
 0x5c0   : > { %10784 = vmatprep.mubr.msk.f32.mxu1 %vm1927_vm8, %v12153_v46 }
 0x663   : > { %v10711_v37 = vpop.f32.mrf.mxu1 }
 0x665   : > { %v2202_v51 = vpop.f32.mrf.mxu1 }
 0x66b   : > { %v10722_v38 = vpop.f32.mrf.mxu1 }
 0x66c   : > { %v2292_v12 = vadd.f32 %v10722_v38, %v10711_v37 }
 0x66d   : > { %v2286_v33 = vpop.f32.mrf.mxu1 }
 0x66e   : > { %v2287_v2 = vadd.f32 %v2286_v33, %v2202_v51  ;;  %v506_v51 = vld [vmem:[%s469_s30 + $0x8] sm:$0x1] }
 0x673   : > { %v10733_v19 = vpop.f32.mrf.mxu1 }
 0x675   : > { %v2369_v42 = vpop.f32.mrf.mxu1 }
 0x677   : > { %v10736_v8 = vpop.f32.mrf.mxu1 }
 0x678   : > { %10737 = vmatprep.subr.msk.mxu0 %vm1940_vm7, %v10736_v8 }
 0x679   : > { %v2379_v15 = vpop.f32.mrf.mxu1  ;;  %10738 = vmatpush3.msk.msra.mxu0 %vm1940_vm7, %v10736_v8 }
 0x67a   : > { %10739 = vmatprep.subr.mxu0 %v2379_v15 }
 0x67b   : > { %10740 = vmatpush3.msra.mxu0 %v2379_v15  ;;  %v10758_v53 = vpop.f32.mrf.mxu1 }
 0x67c   : > { %10741 = vmatprep.subr.mxu0 %v10733_v19 }
 0x67d   : > { %10742 = vmatpush3.msra.mxu0 %v10733_v19  ;;  %v2556_v23 = vpop.f32.mrf.mxu1  ;;  %v505_v19 = vld [vmem:[%s469_s30] sm:$0xff]  ;;  %s11119_s30 = smov 125  }
 0x67e   : > { %10743 = vmatprep.subr.mxu0 %v2369_v42 }
 0x67f   : > { %10744 = vmatpush3.msra.mxu0 %v2369_v42  ;;  %v10761_v43 = vpop.f32.mrf.mxu1 }
 0x680   : > { %10746 = vmatmul.mubr.msk.f32.vlgmr.msra.gmra.mxu0 %vm1927_vm8, %v12237_v1  ;;  %10762 = vmatprep.subr.msk.mxu0 %vm1940_vm7, %v9822_v26 }
 0x681   : > { %10763 = vmatpush3.msk.msra.mxu0 %vm1940_vm7, %v9822_v26  ;;  %10770 = vmatprep.mubr.msk.f32.mxu0 %vm1927_vm8, %v12116_v5  ;;  %v2566_v41 = vpop.f32.mrf.mxu1 }
 0x682   : > { %10764 = vmatprep.subr.mxu0 %v9821_v7 }
 0x683   : > { %10765 = vmatpush3.msra.mxu0 %v9821_v7  ;;  %v9850_v7 = vld [vmem:[%s16468_s11 + $0x10] sm:$0xff] }
 0x684   : > { %10766 = vmatprep.subr.mxu0 %v9820_v56 }
 0x685   : > { %10767 = vmatpush3.msra.mxu0 %v9820_v56  ;;  %v3106_v56 = vld [vmem:[%s16463_s6] sm:$0xff] }
 0x686   : > { %10768 = vmatprep.subr.mxu0 %v9819_v44 }
 0x687   : > { %10769 = vmatpush3.msra.mxu0 %v9819_v44 }
 0x688   : > { %10771 = vmatmul.mubr.msk.f32.vlgmr.msra.gmra.mxu0 %vm1927_vm8, %v12118_v4  ;;  %10787 = vmatprep.subr.msk.mxu0 %vm1940_vm7, %v10761_v43 }
 0x689   : > { %10773 = vmatprep.mubr.msk.f32.mxu0 %vm1927_vm8, %v12127_v48  ;;  %10788 = vmatpush3.msk.msra.mxu0 %vm1940_vm7, %v10761_v43 }
 0x68a   : > { %10789 = vmatprep.subr.mxu0 %v2566_v41 }
 0x68b   : > { %10790 = vmatpush3.msra.mxu0 %v2566_v41  ;;  %v3107_v41 = vld [vmem:[%s16463_s6 + $0x8] sm:$0xff] }
 0x68c   : > { %10774 = vmatmul.mubr.msk.f32.gmra.mxu0 %vm1927_vm8, %v12133_v22  ;;  %10791 = vmatprep.subr.mxu0 %v10758_v53 }
 0x68d   : > { %10792 = vmatpush3.msra.mxu0 %v10758_v53  ;;  %10795 = vmatprep.mubr.msk.f32.mxu0 %vm1927_vm8, %v12167_v25 }
 0x68e   : > { %10793 = vmatprep.subr.mxu0 %v2556_v23 }
 0x68f   : > { %10794 = vmatpush3.msra.mxu0 %v2556_v23  ;;  %v9855_v23 = vld [vmem:[%s16463_s6 + $0x20] sm:$0xff] }
 0x690   : > { %10796 = vmatmul.mubr.msk.f32.vlgmr.msra.gmra.mxu0 %vm1927_vm8, %v12178_v57 }
 0x691   : > { %10820 = vmatprep.mubr.msk.f32.mxu0 %vm1927_vm8, %v9808_v47 }
 0x740   : > { %v10747_v29 = vpop.f32.mrf.mxu0 }
 0x741   : > { %v12270_v45 = vadd.f32 %v10747_v29, %v2292_v12  ;;  %v3108_v29 = vld [vmem:[%s16463_s6 + $0x10] sm:$0xff] }
 0x742   : > { %v2466_v62 = vpop.f32.mrf.mxu0 }
 0x743   : > { %v12272_v39 = vadd.f32 %v2466_v62, %v2287_v2  ;;  %v2480_v13 = vadd.f32 %v2478_v54, %v12270_v45 }
 0x745   : > { %v2479_v49 = vadd.f32 %v2478_v54, %v12272_v39  ;;  %v2482_v20 = vmax.f32 %v2480_v13, 0.0  ;;  %v9856_v39 = vld [vmem:[%s16463_s6 + $0x28] sm:$0xff] }
 0x747   : > { %v2481_v37 = vmax.f32 %v2479_v49, 0.0 }
 0x748   : > { %v10772_v55 = vpop.f32.mrf.mxu0 }
 0x74a   : > { %v2649_v34 = vpop.f32.mrf.mxu0 }
 0x74c   : > { %v10775_v35 = vpop.f32.mrf.mxu0 }
 0x74d   : > { %10776 = vmatprep.subr.msk.mxu1 %vm1940_vm7, %v10775_v35 }
 0x74e   : > { %v2659_v30 = vpop.f32.mrf.mxu0  ;;  %10777 = vmatpush3.msk.msra.mxu1 %vm1940_vm7, %v10775_v35  ;;  %v9870_v35 = vld [vmem:[%s16468_s11 + $0x28] sm:$0x1] }
 0x74f   : > { %10778 = vmatprep.subr.mxu1 %v2659_v30 }
 0x750   : > { %10779 = vmatpush3.msra.mxu1 %v2659_v30  ;;  %v9869_v30 = vld [vmem:[%s16468_s11 + $0x20] sm:$0xff] }
 0x751   : > { %10780 = vmatprep.subr.mxu1 %v10772_v55 }
 0x752   : > { %10781 = vmatpush3.msra.mxu1 %v10772_v55  ;;  %v3109_v55 = vld [vmem:[%s16463_s6 + $0x18] sm:$0x7] }
 0x753   : > { %10782 = vmatprep.subr.mxu1 %v2649_v34 }
 0x754   : > { %10783 = vmatpush3.msra.mxu1 %v2649_v34  ;;  %v9857_v34 = vld [vmem:[%s16463_s6 + $0x30] sm:$0xff] }
 0x755   : > { %10785 = vmatmul.mubr.msk.f32.vlgmr.msra.gmra.mxu1 %vm1927_vm8, %v12162_v59  ;;  %10798 = vmatprep.subr.msk.mxu1 %vm1940_vm7, %v9837_v3 }
 0x756   : > { %10799 = vmatpush3.msk.msra.mxu1 %vm1940_vm7, %v9837_v3  ;;  %10806 = vmatprep.mubr.msk.f32.mxu1 %vm1927_vm8, %v12116_v5  ;;  %v9858_v3 = vld [vmem:[%s16463_s6 + $0x38] sm:$0x7] }
 0x757   : > { %10800 = vmatprep.subr.mxu1 %v9836_v60 }
 0x758   : > { %10801 = vmatpush3.msra.mxu1 %v9836_v60  ;;  %v9874_v60 = vld [vmem:[%s16463_s6 + $0x40] sm:$0xff] }
 0x759   : > { %10802 = vmatprep.subr.mxu1 %v9835_v63 }
 0x75a   : > { %10803 = vmatpush3.msra.mxu1 %v9835_v63 }
 0x75b   : > { %10804 = vmatprep.subr.mxu1 %v9834_v32 }
 0x75c   : > { %10805 = vmatpush3.msra.mxu1 %v9834_v32 }
 0x75d   : > { %10807 = vmatmul.mubr.msk.f32.vlgmr.msra.gmra.mxu1 %vm1927_vm8, %v12118_v4  ;;  %v3020_v4 = vld [vmem:[%s16468_s11 + $0x8] sm:$0x1] }
 0x75e   : > { %10809 = vmatprep.mubr.msk.f32.mxu1 %vm1927_vm8, %v12127_v48  ;;  %v3019_v48 = vld [vmem:[%s16468_s11] sm:$0xff] }
 0x761   : > { %10810 = vmatmul.mubr.msk.f32.gmra.mxu1 %vm1927_vm8, %v12133_v22  ;;  %v10797_v22 = vpop.f32.mrf.mxu0 }
 0x762   : > { %10851 = vmatprep.mubr.msk.f32.mxu1 %vm3021_vm9, %v3106_v56 }
 0x763   : > { %v2815_v21 = vpop.f32.mrf.mxu0 }
 0x815   : > { %v10786_v11 = vpop.f32.mrf.mxu1 }
 0x816   : > { %v2821_v46 = vadd.f32 %v10797_v22, %v10786_v11 }
 0x817   : > { %v2737_v5 = vpop.f32.mrf.mxu1 }
 0x818   : > { %v2816_v40 = vadd.f32 %v2815_v21, %v2737_v5 }
 0x81d   : > { %v10808_v58 = vpop.f32.mrf.mxu1 }
 0x81f   : > { %v2898_v31 = vpop.f32.mrf.mxu1 }
 0x821   : > { %v10811_v36 = vpop.f32.mrf.mxu1 }
 0x822   : > { %10812 = vmatprep.subr.msk.mxu0 %vm1940_vm7, %v10811_v36 }
 0x823   : > { %v2908_v52 = vpop.f32.mrf.mxu1  ;;  %10813 = vmatpush3.msk.msra.mxu0 %vm1940_vm7, %v10811_v36  ;;  %v9875_v36 = vld [vmem:[%s16463_s6 + $0x48] sm:$0xff] }
 0x824   : > { %10814 = vmatprep.subr.mxu0 %v2908_v52 }
 0x825   : > { %10815 = vmatpush3.msra.mxu0 %v2908_v52  ;;  %v9876_v52 = vld [vmem:[%s16463_s6 + $0x50] sm:$0xff] }
 0x826   : > { %10816 = vmatprep.subr.mxu0 %v10808_v58 }
 0x827   : > { %10817 = vmatpush3.msra.mxu0 %v10808_v58 }
 0x828   : > { %10818 = vmatprep.subr.mxu0 %v2898_v31 }
 0x829   : > { %10819 = vmatpush3.msra.mxu0 %v2898_v31 }
 0x82a   : > { %10821 = vmatmul.mubr.msk.f32.vlgmr.msra.gmra.mxu0 %vm1927_vm8, %v12237_v1  ;;  %10823 = vmatprep.subr.msk.mxu0 %vm1201_vm4, %v3020_v4 }
 0x82b   : > { %10824 = vmatpush3.msk.msra.mxu0 %vm1201_vm4, %v3020_v4  ;;  %v9877_v4 = vld [vmem:[%s16463_s6 + $0x58] sm:$0x7] }
 0x82c   : > { %10825 = vmatprep.subr.mxu0 %v3019_v48 }
 0x82d   : > { %10826 = vmatpush3.msra.mxu0 %v3019_v48 }
 0x82e   : > { %10830 = vmatprep.subr.msk.mxu0 %vm1201_vm4, %v9851_v28 }
 0x8ea   : > { %v10822_v6 = vpop.f32.mrf.mxu0 }
 0x8eb   : > { %v2996_v18 = vadd.f32 %v10822_v6, %v2821_v46 }
 0x8ec   : > { %v2986_v9 = vpop.f32.mrf.mxu0 }
 0x8ed   : > { %v3000_v10 = vadd.f32 %v2998_v27, %v2996_v18  ;;  %v2995_v61 = vadd.f32 %v2986_v9, %v2816_v40 }
 0x8ef   : > { %v3002_v14 = vmax.f32 %v3000_v10, 0.0  ;;  %v2999_v59 = vadd.f32 %v2998_v27, %v2995_v61  ;;  %v3587_v27 = vstv %s9883_s15  ;;  %s9906_s15 = sld [smem:[#allocation4 + $0x20]] }
 0x8f1   : > { %v3005_v25 = vmul.f32 1.442695, %v3002_v14  ;;  %v3001_v57 = vmax.f32 %v2999_v59, 0.0 }
 0x8f3   : > { %11067 = vpow2.f32 %v3005_v25  ;;  %v3003_v50 = vmul.f32 1.442695, %v3001_v57 }
 0x8f5   : > { %11069 = vpow2.f32 %v3003_v50 }
 0x900   : > { %v11068_v24 = vpop.eup %11067 }
 0x901   : > { %v3012_v16 = vmul.f32 %v11068_v24, %v11068_v24  ;;  %v3008_v17 = vmul.f32 -0.6520493, %v11068_v24 }
 0x902   : > { %v11070_v47 = vpop.eup %11069 }
 0x903   : > { %v3007_v38 = vmul.f32 -0.6520493, %v11070_v47  ;;  %v3011_v12 = vmul.f32 %v11070_v47, %v11070_v47  ;;  %v3014_v33 = vmul.f32 0.8584073, %v3012_v16  ;;  %v3010_v2 = vadd.f32 %v3008_v17, %v2482_v20 }
 0x905   : > { %v3009_v42 = vadd.f32 %v3007_v38, %v2481_v37  ;;  %v3013_v8 = vmul.f32 0.8584073, %v3011_v12  ;;  %v3016_v15 = vmul.f32 %v3014_v33, %v506_v51  ;;  %v12405_v33 = vstv %s9895_s18  ;;  %s9887_s18 = sld [smem:[#allocation4 + $0xd]] }
 0x907   : > { %v3015_v53 = vmul.f32 %v3013_v8, %v505_v19  ;;  %v3018_v1 = vadd.f32 %v3016_v15, %v3010_v2  ;;  %v12414_v8 = vstv %s9896_s23  ;;  %s9888_s23 = sld [smem:[#allocation4 + $0xe]] }
 0x909   : > { %v3017_v26 = vadd.f32 %v3015_v53, %v3009_v42  ;;  %v12412_v42 = vstv %s9885_s17  ;;  %s11120_s17 = smov 124  }
 0x90b   : > { %10827 = vmatprep.mubr.msk.f32.mxu0 %vm3021_vm9, %v3017_v26 }
 0x90c   : > { %10828 = vmatmul.mubr.msk.f32.vlgmr.msra.gmra.mxu0 %vm3021_vm9, %v3018_v1 }
 0x90d   : > { %10831 = vmatpush3.msk.msra.mxu0 %vm1201_vm4, %v9851_v28  ;;  %10834 = vmatprep.mubr.msk.f32.mxu0 %vm3021_vm9, %v3017_v26 }
 0x90e   : > { %10832 = vmatprep.subr.mxu0 %v9850_v7 }
 0x90f   : > { %10833 = vmatpush3.msra.mxu0 %v9850_v7  ;;  %v12426_v7 = vstv %s9897_s22  ;;  %s9900_s22 = sld [smem:[#allocation4 + $0x1a]] }
 0x910   : > { %10835 = vmatmul.mubr.msk.f32.vlgmr.msra.gmra.mxu0 %vm3021_vm9, %v3018_v1 }
 0x911   : > { %10841 = vmatprep.mubr.msk.f32.mxu0 %vm3021_vm9, %v9855_v23 }
 0x9cc   : > { %v10829_v44 = vpop.f32.mrf.mxu0 }
 0x9cd   : > { %10847 = vmatprep.subr.msk.mxu1 %vm1201_vm4, %v10829_v44 }
 0x9ce   : > { %v3097_v43 = vpop.f32.mrf.mxu0  ;;  %10848 = vmatpush3.msk.msra.mxu1 %vm1201_vm4, %v10829_v44 }
 0x9cf   : > { %10849 = vmatprep.subr.mxu1 %v3097_v43 }
 0x9d0   : > { %v10836_v45 = vpop.f32.mrf.mxu0  ;;  %10850 = vmatpush3.msra.mxu1 %v3097_v43  ;;  %v12435_v43 = vstv %s9891_s24  ;;  %s9903_s24 = sld [smem:[#allocation4 + $0x1d]] }
 0x9d1   : > { %10837 = vmatprep.subr.msk.mxu0 %vm1201_vm4, %v10836_v45  ;;  %10852 = vmatmul.mubr.msk.f32.vlgmr.msra.gmra.mxu1 %vm3021_vm9, %v3107_v41  ;;  %v12438_v41 = vstv %s9898_s27  ;;  %s9892_s27 = sld [smem:[#allocation4 + $0x12]] }
 0x9d2   : > { %v3182_v62 = vpop.f32.mrf.mxu0  ;;  %10838 = vmatpush3.msk.msra.mxu0 %vm1201_vm4, %v10836_v45  ;;  %10854 = vmatprep.mubr.msk.f32.mxu1 %vm3021_vm9, %v3108_v29 }
 0x9d3   : > { %10839 = vmatprep.subr.mxu0 %v3182_v62 }
 0x9d4   : > { %10840 = vmatpush3.msra.mxu0 %v3182_v62 }
 0x9d5   : > { %10842 = vmatmul.mubr.msk.f32.vlgmr.msra.gmra.mxu0 %vm3021_vm9, %v9856_v39  ;;  %10855 = vmatmul.mubr.msk.f32.gmra.mxu1 %vm3021_vm9, %v3109_v55 }
 0x9d6   : > { %10844 = vmatprep.mubr.msk.f32.mxu0 %vm3021_vm9, %v9857_v34  ;;  %10857 = vmatprep.subr.msk.mxu0 %vm1201_vm4, %v9870_v35 }
 0x9d7   : > { %10858 = vmatpush3.msk.msra.mxu0 %vm1201_vm4, %v9870_v35  ;;  %10868 = vmatprep.mubr.msk.f32.mxu1 %vm3021_vm9, %v9874_v60 }
 0x9d8   : > { %10859 = vmatprep.subr.mxu0 %v9869_v30 }
 0x9d9   : > { %10845 = vmatmul.mubr.msk.f32.gmra.mxu0 %vm3021_vm9, %v9858_v3 }
 0x9da   : > { %10861 = vmatprep.mubr.msk.f32.mxu0 %vm3021_vm9, %v3017_v26  ;;  %10860 = vmatpush3.msra.mxu0 %v9869_v30  ;;  %v12423_v26 = vstv %s9886_s19  ;;  %v12457_v30 = vstv %s9901_s14  ;;  %s9890_s19 = sld [smem:[#allocation4 + $0x10]] }
 0x9db   : > { %s9905_s14 = sld [smem:[#allocation4 + $0x1f]] }
 0x9dd   : > { %10862 = vmatmul.mubr.msk.f32.vlgmr.msra.gmra.mxu0 %vm3021_vm9, %v3018_v1 }
 0xa91   : > { %v10853_v48 = vpop.f32.mrf.mxu1 }
 0xa93   : > { %v3377_v28 = vpop.f32.mrf.mxu1 }
 0xa95   : > { %v10843_v63 = vpop.f32.mrf.mxu0  ;;  %v10856_v22 = vpop.f32.mrf.mxu1 }
 0xa96   : > { %v3383_v46 = vadd.f32 %v10853_v48, %v10843_v63 }
 0xa97   : > { %v3277_v32 = vpop.f32.mrf.mxu0  ;;  %v3387_v21 = vpop.f32.mrf.mxu1 }
 0xa98   : > { %v3378_v40 = vadd.f32 %v3377_v28, %v3277_v32  ;;  %v12467_v32 = vstv %s9906_s15  ;;  %s9893_s15 = sld [smem:[#allocation4 + $0x13]] }
 0xa99   : > { %v10846_v11 = vpop.f32.mrf.mxu0 }
 0xa9a   : > { %v3393_v10 = vadd.f32 %v10856_v22, %v10846_v11  ;;  %v12470_v11 = vstv %s9887_s18  ;;  %s9902_s18 = sld [smem:[#allocation4 + $0x1c]] }
 0xa9b   : > { %v3287_v5 = vpop.f32.mrf.mxu0 }
 0xa9c   : > { %v3388_v25 = vadd.f32 %v3387_v21, %v3287_v5 }
 0xa9d   : > { %v10863_v58 = vpop.f32.mrf.mxu0 }
 0xa9e   : > { %10864 = vmatprep.subr.msk.mxu1 %vm1201_vm4, %v10863_v58 }
 0xa9f   : > { %v3468_v31 = vpop.f32.mrf.mxu0  ;;  %10865 = vmatpush3.msk.msra.mxu1 %vm1201_vm4, %v10863_v58 }
 0xaa0   : > { %10866 = vmatprep.subr.mxu1 %v3468_v31 }
 0xaa1   : > { %10867 = vmatpush3.msra.mxu1 %v3468_v31 }
 0xaa2   : > { %10869 = vmatmul.mubr.msk.f32.vlgmr.msra.gmra.mxu1 %vm3021_vm9, %v9875_v36 }
 0xaa3   : > { %10871 = vmatprep.mubr.msk.f32.mxu1 %vm3021_vm9, %v9876_v52 }
 0xaa6   : > { %10872 = vmatmul.mubr.msk.f32.gmra.mxu1 %vm3021_vm9, %v9877_v4  ;;  %v12486_v4 = vstv %s9888_s23  ;;  %s9907_s23 = sld [smem:[#allocation4 + $0x21]] }
 0xb62   : > { %v10870_v6 = vpop.f32.mrf.mxu1 }
 0xb63   : > { %v3583_v18 = vadd.f32 %v10870_v6, %v3383_v46  ;;  %v12502_v6 = vstv %s9890_s19  ;;  %s9908_s19 = sld [smem:[#allocation4 + $0x22]] }
 0xb64   : > { %v3563_v9 = vpop.f32.mrf.mxu1 }
 0xb65   : > { %v3589_v61 = vadd.f32 %v3587_v27, %v3583_v18  ;;  %v3582_v14 = vadd.f32 %v3563_v9, %v3378_v40 }
 0xb66   : > { %v10873_v59 = vpop.f32.mrf.mxu1 }
 0xb67   : > { %v3593_v57 = vmax.f32 %v3589_v61, 0.0  ;;  %v3588_v50 = vadd.f32 %v3587_v27, %v3582_v14  ;;  %v3585_v54 = vadd.f32 %v10873_v59, %v3393_v10  ;;  %v12521_v14 = vstv %s9903_s24  ;;  %s9889_s24 = sld [smem:[#allocation4 + $0xf]] }
 0xb68   : > { %v3573_v13 = vpop.f32.mrf.mxu1 }
 0xb69   : > { %v3592_v49 = vmax.f32 %v3588_v50, 0.0  ;;  %v3591_v24 = vadd.f32 %v3587_v27, %v3585_v54  ;;  %v3584_v20 = vadd.f32 %v3573_v13, %v3388_v25  ;;  %3602 = vrot.lane.b32.xlu0 %v3593_v57, %s11114_s20  ;;  %v12530_v50 = vstv %s9892_s27  ;;  %s9894_s27 = sld [smem:[#allocation4 + $0x14]] }
 0xb6a   : > { %v12533_v54 = vstv %s9905_s14  ;;  %s9899_s14 = sld [smem:[#allocation4 + $0x19]] }
 0xb6b   : > { %v3595_v16 = vmax.f32 %v3591_v24, 0.0  ;;  %v3590_v17 = vadd.f32 %v3587_v27, %v3584_v20  ;;  %3600 = vrot.lane.b32.xlu1 %v3592_v49, %s11114_s20  ;;  %v12505_v27 = vstv %s9900_s22  ;;  %s9884_s22 = sld [smem:[#allocation4 + $0xa]] }
 0xb6d   : > { %v3594_v47 = vmax.f32 %v3590_v17, 0.0  ;;  %3606 = vrot.lane.b32.xlu0 %v3595_v16, %s11114_s20  ;;  %v12548_v17 = vstv %s9893_s15  ;;  %s9904_s15 = sld [smem:[#allocation4 + $0x1e]] }
 0xb6f   : > { %3604 = vrot.lane.b32.xlu1 %v3594_v47, %s11114_s20 }
 0xbdb   : > { %v3603_v37 = vpop.permute.xlu0 %3602 }
 0xbdc   : > { %3614 = vst.msk [vmem:[#allocation3 + $0xa] sm:$0xff] %vm3612_vm12, %v3603_v37 }
 0xbdd   : > { %v3601_v51 = vpop.permute.xlu1 %3600 }
 0xbde   : > { %3613 = vst.msk [vmem:[#allocation3 + $0x2] sm:$0xff] %vm3612_vm12, %v3601_v51 }
 0xbdf   : > { %v3607_v38 = vpop.permute.xlu0 %3606 }
 0xbe0   : > { %3617 = vst.msk [vmem:[#allocation3 + $0x1a] sm:$0x7] %vm3616_vm13, %v3607_v38 }
 0xbe1   : > { %v3605_v12 = vpop.permute.xlu1 %3604 }
 0xbe2   : > { %3615 = vst.msk [vmem:[#allocation3 + $0x12] sm:$0xff] %vm3612_vm12, %v3605_v12 }
 0xbe3   : > { %v12408_v2 = vld [vmem:[#allocation3 + $0xa] sm:$0xff] }
 0xbe4   : > { %v3867_v19 = vmul.f32 %v12405_v33, %v12408_v2  ;;  %v3893_v1 = vmul.f32 %v12414_v8, %v12408_v2  ;;  %v3919_v56 = vmul.f32 %v12426_v7, %v12408_v2  ;;  %v3945_v45 = vmul.f32 %v12438_v41, %v12408_v2 }
 0xbe5   : > { %v12417_v15 = vld [vmem:[#allocation3] sm:$0xff]  ;;  %v12447_v39 = vld [vmem:[#allocation3 + $0x8] sm:$0xff] }
 0xbe6   : > { %3876 = vrot.lane.b32.xlu0 %v3867_v19, %s11117_s29  ;;  %v3630_v53 = vmul.f32 %v12412_v42, %v12417_v15  ;;  %v3656_v23 = vmul.f32 %v12423_v26, %v12417_v15  ;;  %v12433_v44 = vld [vmem:[#allocation3 + $0x1] sm:$0xff]  ;;  %v3631_v35 = vmul.f32 %v12412_v42, %v12447_v39  ;;  %v3657_v63 = vmul.f32 %v12423_v26, %v12447_v39  ;;  %v12511_v9 = vld [vmem:[#allocation3 + $0x9] sm:$0xff] }
 0xbe7   : > { %v3774_v29 = vmul.f32 %v12435_v43, %v12433_v44  ;;  %v12445_v62 = vld [vmem:[#allocation3 + $0x2] sm:$0xff]  ;;  %v3682_v58 = vmul.f32 %v12470_v11, %v12417_v15  ;;  %v12477_v31 = vld [vmem:[#allocation3 + $0x1a] sm:$0x7]  ;;  %v3683_v52 = vmul.f32 %v12470_v11, %v12447_v39  ;;  %v3708_v28 = vmul.f32 %v12486_v4, %v12417_v15 }
 0xbe8   : > { %3638 = vrot.lane.b32.xlu1 %v3630_v53, %s11117_s29  ;;  %v3892_v55 = vmul.f32 %v12414_v8, %v12445_v62  ;;  %v12453_v34 = vld [vmem:[#allocation3 + $0x3] sm:$0xff]  ;;  %v3869_v36 = vmul.f32 %v12405_v33, %v12477_v31  ;;  %v3895_v48 = vmul.f32 %v12414_v8, %v12477_v31  ;;  %v3947_v22 = vmul.f32 %v12438_v41, %v12477_v31  ;;  %v12499_v46 = vld [vmem:[#allocation3 + $0x1b] sm:$0x7] }
 0xbe9   : > { %v4010_v3 = vmul.f32 %v12457_v30, %v12453_v34  ;;  %v12463_v60 = vld [vmem:[#allocation3 + $0x4] sm:$0xff]  ;;  %v3709_v21 = vmul.f32 %v12486_v4, %v12447_v39  ;;  %v3987_v40 = vmul.f32 %v12505_v27, %v12499_v46  ;;  %v3748_v18 = vmul.f32 %v12502_v6, %v12433_v44  ;;  %v12527_v57 = vld [vmem:[#allocation3 + $0x1c] sm:$0x7]  ;;  %v12543_v20 = vld [vmem:[#allocation3 + $0x10] sm:$0xff] }
 0xbea   : > { %3902 = vrot.lane.b32.xlu0 %v3893_v1, %s11116_s28  ;;  %v4128_v5 = vmul.f32 %v12467_v32, %v12463_v60  ;;  %v4013_v10 = vmul.f32 %v12457_v30, %v12499_v46  ;;  %v3749_v61 = vmul.f32 %v12502_v6, %v12511_v9  ;;  %v4065_v59 = vmul.f32 %v12521_v14, %v12499_v46  ;;  %v12553_v37 = vld [vmem:[#allocation3 + $0x18] sm:$0x7] }
 0xbeb   : > { %v3775_v25 = vmul.f32 %v12435_v43, %v12511_v9  ;;  %v4105_v13 = vmul.f32 %v12533_v54, %v12527_v57  ;;  %v3800_v49 = vmul.f32 %v12530_v50, %v12433_v44  ;;  %v4131_v24 = vmul.f32 %v12467_v32, %v12527_v57 }
 0xbec   : > { %3664 = vrot.lane.b32.xlu1 %v3656_v23, %s11116_s28  ;;  %v3801_v16 = vmul.f32 %v12530_v50, %v12511_v9  ;;  %v3632_v47 = vmul.f32 %v12412_v42, %v12543_v20  ;;  %v3826_v51 = vmul.f32 %v12548_v17, %v12433_v44  ;;  %v3633_v38 = vmul.f32 %v12412_v42, %v12553_v37 }
 0xbed   : > { %v3827_v12 = vmul.f32 %v12548_v17, %v12511_v9  ;;  %v3658_v19 = vmul.f32 %v12423_v26, %v12543_v20  ;;  %v3866_v53 = vmul.f32 %v12405_v33, %v12445_v62  ;;  %v3659_v42 = vmul.f32 %v12423_v26, %v12553_v37 }
 0xbee   : > { %3928 = vrot.lane.b32.xlu0 %v3919_v56, %s11119_s30  ;;  %v3918_v1 = vmul.f32 %v12426_v7, %v12445_v62  ;;  %v3684_v23 = vmul.f32 %v12470_v11, %v12543_v20  ;;  %v3944_v56 = vmul.f32 %v12438_v41, %v12445_v62  ;;  %v3710_v26 = vmul.f32 %v12486_v4, %v12543_v20 }
 0xbf0   : > { %3782 = vrot.lane.b32.xlu1 %v3774_v29, %s11116_s28  ;;  %v3984_v29 = vmul.f32 %v12505_v27, %v12453_v34 }
 0xbf2   : > { %3954 = vrot.lane.b32.xlu0 %v3945_v45, %s11120_s17  ;;  %v12588_v45 = vstv %s9902_s18  ;;  %s9909_s18 = sld [smem:[#allocation4 + $0x23]] }
 0xbf4   : > { %3900 = vrot.lane.b32.xlu1 %v3892_v55, %s11116_s28  ;;  %v3711_v55 = vmul.f32 %v12486_v4, %v12553_v37  ;;  %v12612_v4 = vstv %s9907_s23  ;;  %s9911_s23 = sld [smem:[#allocation4 + $0x25]] }
 0xbf6   : > { %3640 = vrot.lane.b32.xlu0 %v3631_v35, %s11117_s29  ;;  %v12593_v35 = vld [vmem:[#allocation3 + $0x11] sm:$0xff] }
 0xbf8   : > { %4018 = vrot.lane.b32.xlu1 %v4010_v3, %s11116_s28  ;;  %v4036_v3 = vmul.f32 %v12588_v45, %v12453_v34 }
 0xbfa   : > { %3666 = vrot.lane.b32.xlu0 %v3657_v63, %s11116_s28  ;;  %v3750_v63 = vmul.f32 %v12502_v6, %v12593_v35 }
 0xbfc   : > { %4136 = vrot.lane.b32.xlu1 %v4128_v5, %s11116_s28  ;;  %v12601_v5 = vld [vmem:[#allocation3 + $0x19] sm:$0x7] }
 0xbfe   : > { %3690 = vrot.lane.b32.xlu0 %v3682_v58, %s11119_s30  ;;  %v4062_v58 = vmul.f32 %v12521_v14, %v12453_v34 }
 0xc00   : > { %3880 = vrot.lane.b32.xlu1 %v3869_v36, %s11117_s29  ;;  %v3751_v36 = vmul.f32 %v12502_v6, %v12601_v5 }
 0xc02   : > { %3692 = vrot.lane.b32.xlu0 %v3683_v52, %s11119_s30  ;;  %v4102_v52 = vmul.f32 %v12533_v54, %v12463_v60 }
 0xc04   : > { %3906 = vrot.lane.b32.xlu1 %v3895_v48, %s11116_s28  ;;  %v3776_v48 = vmul.f32 %v12435_v43, %v12593_v35 }
 0xc06   : > { %3716 = vrot.lane.b32.xlu0 %v3708_v28, %s11120_s17  ;;  %v4154_v28 = vmul.f32 %v12612_v4, %v12463_v60 }
 0xc08   : > { %3958 = vrot.lane.b32.xlu1 %v3947_v22, %s11120_s17  ;;  %v12620_v22 = vstv %s9908_s19  ;;  %s9912_s19 = sld [smem:[#allocation4 + $0x26]] }
 0xc09   : > { %v4180_v6 = vmul.f32 %v12620_v22, %v12463_v60 }
 0xc0a   : > { %3718 = vrot.lane.b32.xlu0 %v3709_v21, %s11120_s17  ;;  %v3777_v21 = vmul.f32 %v12435_v43, %v12601_v5  ;;  %v3828_v43 = vmul.f32 %v12548_v17, %v12593_v35 }
 0xc0c   : > { %3998 = vrot.lane.b32.xlu1 %v3987_v40, %s11117_s29  ;;  %v3802_v40 = vmul.f32 %v12530_v50, %v12593_v35 }
 0xc0e   : > { %3756 = vrot.lane.b32.xlu0 %v3748_v18, %s11117_s29  ;;  %v3921_v18 = vmul.f32 %v12426_v7, %v12477_v31 }
 0xc10   : > { %4024 = vrot.lane.b32.xlu1 %v4013_v10, %s11116_s28  ;;  %v4039_v10 = vmul.f32 %v12588_v45, %v12499_v46 }
 0xc12   : > { %3758 = vrot.lane.b32.xlu0 %v3749_v61, %s11117_s29  ;;  %v3829_v61 = vmul.f32 %v12548_v17, %v12601_v5 }
 0xc14   : > { %4076 = vrot.lane.b32.xlu1 %v4065_v59, %s11120_s17  ;;  %v3685_v59 = vmul.f32 %v12470_v11, %v12553_v37 }
 0xc16   : > { %3784 = vrot.lane.b32.xlu0 %v3775_v25, %s11116_s28  ;;  %v12645_v25 = vld [vmem:[#allocation3 + $0x12] sm:$0xff] }
 0xc17   : > { %v3894_v11 = vmul.f32 %v12414_v8, %v12645_v25 }
 0xc18   : > { %4116 = vrot.lane.b32.xlu1 %v4105_v13, %s11117_s29  ;;  %v3868_v13 = vmul.f32 %v12405_v33, %v12645_v25  ;;  %v12665_v33 = vld [vmem:[#allocation3 + $0xb] sm:$0xff] }
 0xc19   : > { %v3985_v8 = vmul.f32 %v12505_v27, %v12665_v33 }
 0xc1a   : > { %3808 = vrot.lane.b32.xlu0 %v3800_v49, %s11119_s30 }
 0xc1c   : > { %4142 = vrot.lane.b32.xlu1 %v4131_v24, %s11116_s28  ;;  %v4157_v24 = vmul.f32 %v12612_v4, %v12527_v57 }
 0xc1e   : > { %3810 = vrot.lane.b32.xlu0 %v3801_v16, %s11119_s30 }
 0xc20   : > { %3642 = vrot.lane.b32.xlu1 %v3632_v47, %s11117_s29  ;;  %v3803_v47 = vmul.f32 %v12530_v50, %v12601_v5 }
 0xc22   : > { %3834 = vrot.lane.b32.xlu0 %v3826_v51, %s11120_s17 }
 0xc24   : > { %3644 = vrot.lane.b32.xlu1 %v3633_v38, %s11117_s29  ;;  %v3920_v38 = vmul.f32 %v12426_v7, %v12645_v25  ;;  %v4011_v7 = vmul.f32 %v12457_v30, %v12665_v33 }
 0xc26   : > { %3836 = vrot.lane.b32.xlu0 %v3827_v12, %s11120_s17 }
 0xc28   : > { %3668 = vrot.lane.b32.xlu1 %v3658_v19, %s11116_s28  ;;  %v3946_v19 = vmul.f32 %v12438_v41, %v12645_v25  ;;  %v4037_v41 = vmul.f32 %v12588_v45, %v12665_v33 }
 0xc2a   : > { %3874 = vrot.lane.b32.xlu0 %v3866_v53, %s11117_s29  ;;  %v12683_v53 = vld [vmem:[#allocation3 + $0x13] sm:$0xff] }
 0xc2c   : > { %3670 = vrot.lane.b32.xlu1 %v3659_v42, %s11116_s28 }
 0xc2e   : > { %3926 = vrot.lane.b32.xlu0 %v3918_v1, %s11119_s30 }
 0xc30   : > { %3694 = vrot.lane.b32.xlu1 %v3684_v23, %s11119_s30  ;;  %v3986_v23 = vmul.f32 %v12505_v27, %v12683_v53  ;;  %v12709_v27 = vld [vmem:[#allocation3 + $0xc] sm:$0xff] }
 0xc32   : > { %3952 = vrot.lane.b32.xlu0 %v3944_v56, %s11120_s17 }
 0xc34   : > { %3720 = vrot.lane.b32.xlu1 %v3710_v26, %s11120_s17 }
 0xc36   : > { %3992 = vrot.lane.b32.xlu0 %v3984_v29, %s11117_s29  ;;  %v4012_v29 = vmul.f32 %v12457_v30, %v12683_v53  ;;  %v4103_v30 = vmul.f32 %v12533_v54, %v12709_v27 }
 0xc38   : > { %3722 = vrot.lane.b32.xlu1 %v3711_v55, %s11120_s17 }
 0xc3a   : > { %4044 = vrot.lane.b32.xlu0 %v4036_v3, %s11119_s30  ;;  %v4063_v3 = vmul.f32 %v12521_v14, %v12665_v33 }
 0xc3c   : > { %3760 = vrot.lane.b32.xlu1 %v3750_v63, %s11117_s29 }
 0xc3e   : > { %4070 = vrot.lane.b32.xlu0 %v4062_v58, %s11120_s17  ;;  %v4038_v58 = vmul.f32 %v12588_v45, %v12683_v53  ;;  %v4129_v45 = vmul.f32 %v12467_v32, %v12709_v27 }
 0xc40   : > { %3762 = vrot.lane.b32.xlu1 %v3751_v36, %s11117_s29 }
 0xc42   : > { %4110 = vrot.lane.b32.xlu0 %v4102_v52, %s11117_s29 }
 0xc44   : > { %3786 = vrot.lane.b32.xlu1 %v3776_v48, %s11116_s28  ;;  %v4064_v48 = vmul.f32 %v12521_v14, %v12683_v53  ;;  %v4155_v14 = vmul.f32 %v12612_v4, %v12709_v27 }
 0xc46   : > { %4162 = vrot.lane.b32.xlu0 %v4154_v28, %s11119_s30  ;;  %v12725_v28 = vld [vmem:[#allocation3 + $0x14] sm:$0xff] }
 0xc48   : > { %3788 = vrot.lane.b32.xlu1 %v3777_v21, %s11116_s28 }
 0xc4a   : > { %4188 = vrot.lane.b32.xlu0 %v4180_v6, %s11120_s17 }
 0xc4c   : > { %3812 = vrot.lane.b32.xlu1 %v3802_v40, %s11119_s30  ;;  %v4104_v40 = vmul.f32 %v12533_v54, %v12725_v28  ;;  %v12750_v54 = vstv %s9884_s22  ;;  %s9915_s22 = sld [smem:[#allocation4 + $0x29]] }
 0xc4e   : > { %3932 = vrot.lane.b32.xlu0 %v3921_v18, %s11119_s30 }
 0xc50   : > { %3838 = vrot.lane.b32.xlu1 %v3828_v43, %s11120_s17 }
 0xc52   : > { %4050 = vrot.lane.b32.xlu0 %v4039_v10, %s11119_s30  ;;  %v4130_v10 = vmul.f32 %v12467_v32, %v12725_v28  ;;  %v4183_v32 = vmul.f32 %v12620_v22, %v12527_v57 }
 0xc54   : > { %3840 = vrot.lane.b32.xlu1 %v3829_v61, %s11120_s17 }
 0xc56   : > { %3696 = vrot.lane.b32.xlu0 %v3685_v59, %s11119_s30  ;;  %v4181_v59 = vmul.f32 %v12620_v22, %v12709_v27 }
 0xc58   : > { %v12651_v49 = vpop.permute.xlu0 %3876  ;;  %3878 = vrot.lane.b32.xlu1 %v3868_v13, %s11117_s29 }
 0xc5a   : > { %4168 = vrot.lane.b32.xlu0 %v4157_v24, %s11119_s30  ;;  %v12657_v16 = vpop.permute.xlu1 %3638  ;;  %v4156_v24 = vmul.f32 %v12612_v4, %v12725_v28 }
 0xc5c   : > { %v12661_v17 = vpop.permute.xlu0 %3902  ;;  %3904 = vrot.lane.b32.xlu1 %v3894_v11, %s11116_s28 }
 0xc5e   : > { %3814 = vrot.lane.b32.xlu0 %v3803_v47, %s11119_s30  ;;  %v12669_v51 = vpop.permute.xlu1 %3664  ;;  %v3624_v47 = vmul.f32 %v12750_v54, %v12417_v15  ;;  %v12774_v15 = vstv %s9889_s24  ;;  %s9918_s24 = sld [smem:[#allocation4 + $0x2c]] }
 0xc60   : > { %v12673_v12 = vpop.permute.xlu0 %3928  ;;  %3930 = vrot.lane.b32.xlu1 %v3920_v38, %s11119_s30  ;;  %v3650_v38 = vadd.f32 %v12657_v16, %v3624_v47  ;;  %v3738_v16 = vmul.f32 %v12774_v15, %v12433_v44 }
 0xc62   : > { %3994 = vrot.lane.b32.xlu0 %v3985_v8, %s11117_s29  ;;  %v12679_v50 = vpop.permute.xlu1 %3782 }
 0xc64   : > { %v12685_v42 = vpop.permute.xlu0 %3954  ;;  %3956 = vrot.lane.b32.xlu1 %v3946_v19, %s11120_s17  ;;  %v4182_v19 = vmul.f32 %v12620_v22, %v12725_v28 }
 0xc66   : > { %4020 = vrot.lane.b32.xlu0 %v4011_v7, %s11116_s28  ;;  %v12691_v1 = vpop.permute.xlu1 %3900  ;;  %v3676_v7 = vadd.f32 %v12669_v51, %v3650_v38 }
 0xc68   : > { %v12695_v56 = vpop.permute.xlu0 %3640  ;;  %3996 = vrot.lane.b32.xlu1 %v3986_v23, %s11117_s29 }
 0xc6a   : > { %4046 = vrot.lane.b32.xlu0 %v4037_v41, %s11119_s30  ;;  %v12701_v26 = vpop.permute.xlu1 %4018 }
 0xc6c   : > { %v12705_v55 = vpop.permute.xlu0 %3666  ;;  %4022 = vrot.lane.b32.xlu1 %v4012_v29, %s11116_s28 }
 0xc6e   : > { %4072 = vrot.lane.b32.xlu0 %v4063_v3, %s11120_s17  ;;  %v12713_v63 = vpop.permute.xlu1 %4136 }
 0xc70   : > { %v3691_v36 = vpop.permute.xlu0 %3690  ;;  %4048 = vrot.lane.b32.xlu1 %v4038_v58, %s11119_s30 }
 0xc71   : > { %v3702_v23 = vadd.f32 %v3691_v36, %v3676_v7 }
 0xc72   : > { %4112 = vrot.lane.b32.xlu0 %v4103_v30, %s11117_s29  ;;  %v12721_v52 = vpop.permute.xlu1 %3880 }
 0xc74   : > { %v12727_v21 = vpop.permute.xlu0 %3692  ;;  %4074 = vrot.lane.b32.xlu1 %v4064_v48, %s11120_s17 }
 0xc76   : > { %4138 = vrot.lane.b32.xlu0 %v4129_v45, %s11116_s28  ;;  %v12733_v6 = vpop.permute.xlu1 %3906 }
 0xc78   : > { %v3717_v18 = vpop.permute.xlu0 %3716  ;;  %4114 = vrot.lane.b32.xlu1 %v4104_v40, %s11117_s29 }
 0xc79   : > { %v3728_v3 = vadd.f32 %v3717_v18, %v3702_v23 }
 0xc7a   : > { %4164 = vrot.lane.b32.xlu0 %v4155_v14, %s11119_s30  ;;  %v12741_v43 = vpop.permute.xlu1 %3958 }
 0xc7b   : > { %v3742_v30 = vadd.f32 %v3738_v16, %v3728_v3  ;;  %v12796_v3 = vstv %s9899_s14  ;;  %s9917_s14 = sld [smem:[#allocation4 + $0x2b]] }
 0xc7c   : > { %v12745_v61 = vpop.permute.xlu0 %3718  ;;  %4140 = vrot.lane.b32.xlu1 %v4130_v10, %s11116_s28 }
 0xc7e   : > { %4190 = vrot.lane.b32.xlu0 %v4181_v59, %s11120_s17  ;;  %v12753_v13 = vpop.permute.xlu1 %3998 }
 0xc80   : > { %v3757_v11 = vpop.permute.xlu0 %3756  ;;  %4166 = vrot.lane.b32.xlu1 %v4156_v24, %s11119_s30  ;;  %v12789_v24 = vstv %s9894_s27  ;;  %s9914_s27 = sld [smem:[#allocation4 + $0x28]] }
 0xc81   : > { %v3768_v48 = vadd.f32 %v3757_v11, %v3742_v30 }
 0xc82   : > { %4194 = vrot.lane.b32.xlu0 %v4183_v32, %s11120_s17  ;;  %v12764_v8 = vpop.permute.xlu1 %4024  ;;  %v3856_v32 = vmul.f32 %v12789_v24, %v12445_v62 }
 0xc83   : > { %v3794_v36 = vadd.f32 %v12679_v50, %v3768_v48 }
 0xc84   : > { %v12768_v4 = vpop.permute.xlu0 %3758  ;;  %4192 = vrot.lane.b32.xlu1 %v4182_v19, %s11120_s17 }
 0xc86   : > { %v12772_v41 = vpop.permute.xlu1 %4076 }
 0xc88   : > { %v12776_v29 = vpop.permute.xlu0 %3784 }
 0xc8a   : > { %v12780_v58 = vpop.permute.xlu1 %4116 }
 0xc8c   : > { %v3809_v22 = vpop.permute.xlu0 %3808 }
 0xc8d   : > { %v3820_v10 = vadd.f32 %v3809_v22, %v3794_v36  ;;  %v3974_v36 = vmul.f32 %v12796_v3, %v12453_v34 }
 0xc8e   : > { %v12782_v45 = vpop.permute.xlu1 %4142 }
 0xc8f   : > { %16526 = vst [vmem:[#allocation7_spill] sm:$0xff] %v12782_v45 }
 0xc90   : > { %v12784_v51 = vpop.permute.xlu0 %3810 }
 0xc92   : > { %v3643_v40 = vpop.permute.xlu1 %3642 }
 0xc94   : > { %v3835_v14 = vpop.permute.xlu0 %3834 }
 0xc95   : > { %v3846_v59 = vadd.f32 %v3835_v14, %v3820_v10 }
 0xc96   : > { %v12787_v18 = vpop.permute.xlu1 %3644 }
 0xc97   : > { %v3860_v47 = vadd.f32 %v3856_v32, %v3846_v59 }
 0xc98   : > { %v3837_v44 = vpop.permute.xlu0 %3836 }
 0xc9a   : > { %v3669_v11 = vpop.permute.xlu1 %3668 }
 0xc9c   : > { %v3875_v38 = vpop.permute.xlu0 %3874 }
 0xc9d   : > { %v3886_v19 = vadd.f32 %v3875_v38, %v3860_v47 }
 0xc9e   : > { %v12793_v7 = vpop.permute.xlu1 %3670 }
 0xc9f   : > { %v3912_v50 = vadd.f32 %v12691_v1, %v3886_v19  ;;  %v12801_v1 = vstv %s9904_s15  ;;  %v3625_v19 = vmul.f32 %v12750_v54, %v12447_v39  ;;  %s9910_s15 = sld [smem:[#allocation4 + $0x24]] }
 0xca0   : > { %v3927_v23 = vpop.permute.xlu0 %3926 }
 0xca1   : > { %v3938_v16 = vadd.f32 %v3927_v23, %v3912_v50 }
 0xca2   : > { %v3695_v22 = vpop.permute.xlu1 %3694 }
 0xca4   : > { %v3953_v30 = vpop.permute.xlu0 %3952 }
 0xca5   : > { %v3964_v48 = vadd.f32 %v3953_v30, %v3938_v16  ;;  %v3651_v30 = vadd.f32 %v12695_v56, %v3625_v19  ;;  %v3739_v56 = vmul.f32 %v12774_v15, %v12511_v9 }
 0xca6   : > { %v3721_v62 = vpop.permute.xlu1 %3720 }
 0xca7   : > { %v3978_v14 = vadd.f32 %v3974_v36, %v3964_v48  ;;  %v4092_v48 = vmul.f32 %v12801_v1, %v12463_v60  ;;  %v3677_v36 = vadd.f32 %v12705_v55, %v3651_v30  ;;  %v3626_v55 = vmul.f32 %v12750_v54, %v12543_v20 }
 0xca8   : > { %v3993_v10 = vpop.permute.xlu0 %3992  ;;  %v3627_v20 = vmul.f32 %v12750_v54, %v12553_v37 }
 0xca9   : > { %v4004_v59 = vadd.f32 %v3993_v10, %v3978_v14 }
 0xcaa   : > { %v3723_v32 = vpop.permute.xlu1 %3722 }
 0xcab   : > { %v4030_v47 = vadd.f32 %v12701_v26, %v4004_v59  ;;  %v3703_v59 = vadd.f32 %v12727_v21, %v3677_v36 }
 0xcac   : > { %v4045_v38 = vpop.permute.xlu0 %4044 }
 0xcad   : > { %v4056_v50 = vadd.f32 %v4045_v38, %v4030_v47  ;;  %v3729_v39 = vadd.f32 %v12745_v61, %v3703_v59  ;;  %v3652_v61 = vadd.f32 %v3643_v40, %v3626_v55 }
 0xcae   : > { %v3761_v23 = vpop.permute.xlu1 %3760 }
 0xcaf   : > { %v3743_v19 = vadd.f32 %v3739_v56, %v3729_v39  ;;  %v3678_v36 = vadd.f32 %v3669_v11, %v3652_v61  ;;  %v3857_v11 = vmul.f32 %v12789_v24, %v12408_v2 }
 0xcb0   : > { %v4071_v16 = vpop.permute.xlu0 %4070 }
 0xcb1   : > { %v4082_v34 = vadd.f32 %v4071_v16, %v4056_v50  ;;  %v12816_v16 = vstv %s9909_s18  ;;  %v3769_v21 = vadd.f32 %v12768_v4, %v3743_v19  ;;  %s9913_s18 = sld [smem:[#allocation4 + $0x27]] }
 0xcb2   : > { %v3763_v14 = vpop.permute.xlu1 %3762 }
 0xcb3   : > { %v4096_v10 = vadd.f32 %v4092_v48, %v4082_v34  ;;  %v3795_v48 = vadd.f32 %v12776_v29, %v3769_v21  ;;  %v3653_v29 = vadd.f32 %v12787_v18, %v3627_v20 }
 0xcb4   : > { %v4111_v26 = vpop.permute.xlu0 %4110 }
 0xcb5   : > { %v4122_v0 = vadd.f32 %v4111_v26, %v4096_v10  ;;  %v3704_v26 = vadd.f32 %v3695_v22, %v3678_v36  ;;  %v3679_v22 = vadd.f32 %v12793_v7, %v3653_v29 }
 0xcb6   : > { %v3787_v47 = vpop.permute.xlu1 %3786 }
 0xcb7   : > { %v4148_v38 = vadd.f32 %v12713_v63, %v4122_v0  ;;  %v3730_v4 = vadd.f32 %v3721_v62, %v3704_v26 }
 0xcb8   : > { %v4163_v45 = vpop.permute.xlu0 %4162 }
 0xcb9   : > { %v4174_v60 = vadd.f32 %v4163_v45, %v4148_v38  ;;  %v3821_v45 = vadd.f32 %v12784_v51, %v3795_v48  ;;  %v3740_v51 = vmul.f32 %v12774_v15, %v12593_v35 }
 0xcba   : > { %v3789_v50 = vpop.permute.xlu1 %3788 }
 0xcbb   : > { %v3847_v59 = vadd.f32 %v3837_v44, %v3821_v45  ;;  %v3744_v37 = vadd.f32 %v3740_v51, %v3730_v4 }
 0xcbc   : > { %v4189_v30 = vpop.permute.xlu0 %4188 }
 0xcbd   : > { %v4200_v34 = vadd.f32 %v4189_v30, %v4174_v60  ;;  %v3861_v38 = vadd.f32 %v3857_v11, %v3847_v59  ;;  %v3770_v19 = vadd.f32 %v3761_v23, %v3744_v37  ;;  %v3741_v60 = vmul.f32 %v12774_v15, %v12601_v5 }
 0xcbe   : > { %v3813_v63 = vpop.permute.xlu1 %3812 }
 0xcbf   : > { %v4206_v0 = vadd.f32 %v12816_v16, %v4200_v34  ;;  %v3887_v62 = vadd.f32 %v12651_v49, %v3861_v38  ;;  %v3796_v30 = vadd.f32 %v3787_v47, %v3770_v19  ;;  %v3858_v49 = vmul.f32 %v12789_v24, %v12645_v25 }
 0xcc0   : > { %v3933_v9 = vpop.permute.xlu0 %3932  ;;  %v3859_v47 = vmul.f32 %v12789_v24, %v12477_v31  ;;  %v3975_v25 = vmul.f32 %v12796_v3, %v12665_v33  ;;  %v3977_v38 = vmul.f32 %v12796_v3, %v12499_v46 }
 0xcc1   : > { %v4210_v10 = vmax.f32 %v4206_v0, 0.0  ;;  %v3822_v35 = vadd.f32 %v3813_v63, %v3796_v30  ;;  %v3913_v34 = vadd.f32 %v12661_v17, %v3887_v62 }
 0xcc2   : > { %v3839_v39 = vpop.permute.xlu1 %3838 }
 0xcc3   : > { %4218 = vrot.lane.b32.xlu1 %v4210_v10, %s11114_s20  ;;  %v3848_v48 = vadd.f32 %v3839_v39, %v3822_v35  ;;  %v3939_v5 = vadd.f32 %v12673_v12, %v3913_v34  ;;  %v4095_v35 = vmul.f32 %v12801_v1, %v12527_v57 }
 0xcc4   : > { %v12825_v40 = vpop.permute.xlu0 %4050 }
 0xcc5   : > { %v3862_v15 = vadd.f32 %v3858_v49, %v3848_v48 }
 0xcc6   : > { %v3841_v56 = vpop.permute.xlu1 %3840 }
 0xcc8   : > { %v3697_v54 = vpop.permute.xlu0 %3696 }
 0xcc9   : > { %v3705_v44 = vadd.f32 %v3697_v54, %v3679_v22 }
 0xcca   : > { %v3879_v55 = vpop.permute.xlu1 %3878 }
 0xccb   : > { %v3731_v18 = vadd.f32 %v3723_v32, %v3705_v44  ;;  %v3888_v10 = vadd.f32 %v3879_v55, %v3862_v15 }
 0xccc   : > { %v12836_v2 = vpop.permute.xlu0 %4168 }
 0xccd   : > { %v3745_v21 = vadd.f32 %v3741_v60, %v3731_v18 }
 0xcce   : > { %v3905_v7 = vpop.permute.xlu1 %3904 }
 0xccf   : > { %v3771_v61 = vadd.f32 %v3763_v14, %v3745_v21  ;;  %v3965_v14 = vadd.f32 %v12685_v42, %v3939_v5  ;;  %v3914_v20 = vadd.f32 %v3905_v7, %v3888_v10  ;;  %v3976_v42 = vmul.f32 %v12796_v3, %v12683_v53 }
 0xcd0   : > { %v3815_v0 = vpop.permute.xlu0 %3814  ;;  %v4093_v53 = vmul.f32 %v12801_v1, %v12709_v27  ;;  %v4094_v27 = vmul.f32 %v12801_v1, %v12725_v28 }
 0xcd1   : > { %v3797_v36 = vadd.f32 %v3789_v50, %v3771_v61  ;;  %v3979_v4 = vadd.f32 %v3975_v25, %v3965_v14 }
 0xcd2   : > { %v3931_v45 = vpop.permute.xlu1 %3930 }
 0xcd3   : > { %v3823_v23 = vadd.f32 %v3815_v0, %v3797_v36  ;;  %v3940_v39 = vadd.f32 %v3931_v45, %v3914_v20  ;;  %v16527_v45 = vld [vmem:[#allocation7_spill] sm:$0xff] }
 0xcd4   : > { %v3995_v32 = vpop.permute.xlu0 %3994 }
 0xcd5   : > { %v3849_v63 = vadd.f32 %v3841_v56, %v3823_v23  ;;  %v4005_v51 = vadd.f32 %v3995_v32, %v3979_v4 }
 0xcd6   : > { %v3957_v26 = vpop.permute.xlu1 %3956 }
 0xcd7   : > { %v3863_v17 = vadd.f32 %v3859_v47, %v3849_v63  ;;  %v3966_v11 = vadd.f32 %v3957_v26, %v3940_v39  ;;  %v4245_v39 = vstv %s9911_s23  ;;  %s9916_s23 = sld [smem:[#allocation4 + $0x2a]] }
 0xcd8   : > { %v4021_v50 = vpop.permute.xlu0 %4020 }
 0xcd9   : > { %v3889_v59 = vadd.f32 %v12721_v52, %v3863_v17  ;;  %v4031_v22 = vadd.f32 %v4021_v50, %v4005_v51  ;;  %v3980_v33 = vadd.f32 %v3976_v42, %v3966_v11 }
 0xcda   : > { %v3997_v29 = vpop.permute.xlu1 %3996 }
 0xcdb   : > { %v3915_v12 = vadd.f32 %v12733_v6, %v3889_v59 }
 0xcdc   : > { %v4047_v31 = vpop.permute.xlu0 %4046 }
 0xcdd   : > { %v3941_v24 = vadd.f32 %v3933_v9, %v3915_v12  ;;  %v4057_v6 = vadd.f32 %v4047_v31, %v4031_v22  ;;  %v4006_v9 = vadd.f32 %v3997_v29, %v3980_v33  ;;  %v4271_v29 = vstv %s9912_s19  ;;  %s9919_s19 = sld [smem:[#allocation4 + $0x2d]] }
 0xcde   : > { %v4023_v56 = vpop.permute.xlu1 %4022  ;;  %v4337_v31 = vstv %s9915_s22  ;;  %s9921_s22 = sld [smem:[#allocation4 + $0x2f]] }
 0xcdf   : > { %v3967_v52 = vadd.f32 %v12741_v43, %v3941_v24  ;;  %v4032_v46 = vadd.f32 %v4023_v56, %v4006_v9 }
 0xce0   : > { %v4073_v37 = vpop.permute.xlu0 %4072 }
 0xce1   : > { %v3981_v54 = vadd.f32 %v3977_v38, %v3967_v52  ;;  %v4083_v44 = vadd.f32 %v4073_v37, %v4057_v6  ;;  %v4403_v38 = vstv %s9918_s24  ;;  %v4311_v6 = vstv %s9914_s27  ;;  %s9922_s24 = sld [smem:[#allocation4 + $0x30]] }
 0xce2   : > { %v4049_v19 = vpop.permute.xlu1 %4048  ;;  %s9927_s27 = sld [smem:[#allocation4 + $0x35]] }
 0xce3   : > { %v4007_v62 = vadd.f32 %v12753_v13, %v3981_v54  ;;  %v4097_v3 = vadd.f32 %v4093_v53, %v4083_v44  ;;  %v4058_v30 = vadd.f32 %v4049_v19, %v4032_v46 }
 0xce4   : > { %v4113_v60 = vpop.permute.xlu0 %4112 }
 0xce5   : > { %v4033_v18 = vadd.f32 %v12764_v8, %v4007_v62  ;;  %v4123_v7 = vadd.f32 %v4113_v60, %v4097_v3 }
 0xce6   : > { %v4075_v43 = vpop.permute.xlu1 %4074 }
 0xce7   : > { %v4059_v55 = vadd.f32 %v12825_v40, %v4033_v18  ;;  %v4084_v13 = vadd.f32 %v4075_v43, %v4058_v30 }
 0xce8   : > { %v4139_v21 = vpop.permute.xlu0 %4138 }
 0xce9   : > { %v4085_v34 = vadd.f32 %v12772_v41, %v4059_v55  ;;  %v4149_v0 = vadd.f32 %v4139_v21, %v4123_v7  ;;  %v4098_v49 = vadd.f32 %v4094_v27, %v4084_v13  ;;  %v4377_v55 = vstv %s9917_s14  ;;  %s9932_s14 = sld [smem:[#allocation4 + $0x3a]] }
 0xcea   : > { %v4115_v61 = vpop.permute.xlu1 %4114 }
 0xceb   : > { %v4099_v48 = vadd.f32 %v4095_v35, %v4085_v34  ;;  %v4124_v32 = vadd.f32 %v4115_v61, %v4098_v49 }
 0xcec   : > { %v4165_v8 = vpop.permute.xlu0 %4164 }
 0xced   : > { %v4125_v36 = vadd.f32 %v12780_v58, %v4099_v48  ;;  %v4175_v40 = vadd.f32 %v4165_v8, %v4149_v0 }
 0xcee   : > { %v4141_v23 = vpop.permute.xlu1 %4140 }
 0xcef   : > { %v4151_v5 = vadd.f32 %v16527_v45, %v4125_v36  ;;  %v4150_v10 = vadd.f32 %v4141_v23, %v4124_v32 }
 0xcf0   : > { %v4191_v15 = vpop.permute.xlu0 %4190 }
 0xcf1   : > { %v4201_v57 = vadd.f32 %v4191_v15, %v4175_v40  ;;  %v4177_v63 = vadd.f32 %v12836_v2, %v4151_v5 }
 0xcf2   : > { %v4167_v47 = vpop.permute.xlu1 %4166 }
 0xcf3   : > { %v4207_v41 = vadd.f32 %v12816_v16, %v4201_v57  ;;  %v4176_v14 = vadd.f32 %v4167_v47, %v4150_v10  ;;  %v4239_v57 = vstv %s9910_s15  ;;  %s9937_s15 = sld [smem:[#allocation4 + $0x3f]] }
 0xcf4   : > { %v4195_v17 = vpop.permute.xlu0 %4194 }
 0xcf5   : > { %v4211_v28 = vmax.f32 %v4207_v41, 0.0  ;;  %v4203_v1 = vadd.f32 %v4195_v17, %v4177_v63 }
 0xcf6   : > { %v4193_v26 = vpop.permute.xlu1 %4192 }
 0xcf7   : > { %v4209_v58 = vadd.f32 %v12816_v16, %v4203_v1  ;;  %4220 = vrot.lane.b32.xlu0 %v4211_v28, %s11114_s20  ;;  %v4202_v20 = vadd.f32 %v4193_v26, %v4176_v14  ;;  %v4301_v28 = vstv %s9913_s18  ;;  %s9942_s18 = sld [smem:[#allocation4 + $0x44]] }
 0xcf9   : > { %v4213_v50 = vmax.f32 %v4209_v58, 0.0  ;;  %v4208_v59 = vadd.f32 %v12816_v16, %v4202_v20 }
 0xcfb   : > { %4224 = vrot.lane.b32.xlu0 %v4213_v50, %s11114_s20  ;;  %v4212_v25 = vmax.f32 %v4208_v59, 0.0 }
 0xcfd   : > { %4222 = vrot.lane.b32.xlu1 %v4212_v25, %s11114_s20 }
 0xd35   : > { %v4219_v2 = vpop.permute.xlu1 %4218 }
 0xd36   : > { %4230 = vst.msk [vmem:[#allocation3 + $0x2] sm:$0xff] %vm3612_vm12, %v4219_v2  ;;  %v4367_v2 = vstv %s9916_s23  ;;  %s9923_s23 = sld [smem:[#allocation4 + $0x31]] }
 0xd3d   : > { %v12874_v12 = vld [vmem:[#allocation3 + $0x1] sm:$0xff] }
 0xd3e   : > { %v4246_v4 = vmul.f32 %v4245_v39, %v12874_v12  ;;  %v4272_v16 = vmul.f32 %v4271_v29, %v12874_v12  ;;  %v12879_v11 = vld [vmem:[#allocation3 + $0x2] sm:$0xff]  ;;  %v4240_v47 = vmul.f32 %v4239_v57, %v12874_v12 }
 0xd3f   : > { %v4338_v24 = vmul.f32 %v4337_v31, %v12879_v11  ;;  %v4312_v62 = vmul.f32 %v4311_v6, %v12879_v11  ;;  %v4302_v58 = vmul.f32 %v4301_v28, %v12879_v11 }
 0xd40   : > { %4254 = vrot.lane.b32.xlu1 %v4246_v4, %s11117_s29 }
 0xd44   : > { %4280 = vrot.lane.b32.xlu1 %v4272_v16, %s11116_s28 }
 0xd48   : > { %4346 = vrot.lane.b32.xlu1 %v4338_v24, %s11116_s28 }
 0xd69   : > { %v4221_v51 = vpop.permute.xlu0 %4220 }
 0xd6a   : > { %4231 = vst.msk [vmem:[#allocation3 + $0xa] sm:$0xff] %vm3612_vm12, %v4221_v51 }
 0xd6d   : > { %v4225_v42 = vpop.permute.xlu0 %4224 }
 0xd6e   : > { %4233 = vst.msk [vmem:[#allocation3 + $0x1a] sm:$0x7] %vm3616_vm13, %v4225_v42 }
 0xd6f   : > { %v4223_v52 = vpop.permute.xlu1 %4222 }
 0xd70   : > { %4232 = vst.msk [vmem:[#allocation3 + $0x12] sm:$0xff] %vm3612_vm12, %v4223_v52 }
 0xd71   : > { %v12887_v22 = vld [vmem:[#allocation3 + $0x9] sm:$0xff] }
 0xd72   : > { %v12889_v56 = vld [vmem:[#allocation3 + $0x3] sm:$0xff]  ;;  %v4247_v33 = vmul.f32 %v4245_v39, %v12887_v22  ;;  %v4273_v54 = vmul.f32 %v4271_v29, %v12887_v22  ;;  %v4241_v16 = vmul.f32 %v4239_v57, %v12887_v22 }
 0xd73   : > { %v4404_v37 = vmul.f32 %v4403_v38, %v12889_v56  ;;  %v12902_v9 = vld [vmem:[#allocation3 + $0xa] sm:$0xff]  ;;  %v4378_v21 = vmul.f32 %v4377_v55, %v12889_v56 }
 0xd74   : > { %4256 = vrot.lane.b32.xlu0 %v4247_v33, %s11117_s29  ;;  %v4313_v53 = vmul.f32 %v4311_v6, %v12902_v9  ;;  %v4339_v3 = vmul.f32 %v4337_v31, %v12902_v9 }
 0xd75   : > { %4412 = vrot.lane.b32.xlu1 %v4404_v37, %s11116_s28  ;;  %v12923_v13 = vld [vmem:[#allocation3 + $0x1a] sm:$0x7] }
 0xd76   : > { %v4341_v7 = vmul.f32 %v4337_v31, %v12923_v13  ;;  %v4315_v61 = vmul.f32 %v4311_v6, %v12923_v13  ;;  %v12942_v40 = vld [vmem:[#allocation3 + $0x1b] sm:$0x7] }
 0xd77   : > { %v12897_v44 = vld [vmem:[#allocation3 + $0x11] sm:$0xff]  ;;  %v12907_v18 = vld [vmem:[#allocation3 + $0x19] sm:$0x7]  ;;  %v4381_v23 = vmul.f32 %v4377_v55, %v12942_v40  ;;  %v4407_v45 = vmul.f32 %v4403_v38, %v12942_v40 }
 0xd78   : > { %4282 = vrot.lane.b32.xlu0 %v4273_v54, %s11116_s28  ;;  %v4248_v19 = vmul.f32 %v4245_v39, %v12897_v44  ;;  %v4274_v60 = vmul.f32 %v4271_v29, %v12897_v44  ;;  %v4275_v46 = vmul.f32 %v4271_v29, %v12907_v18  ;;  %v12913_v43 = vld [vmem:[#allocation3 + $0x12] sm:$0xff]  ;;  %v4249_v34 = vmul.f32 %v4245_v39, %v12907_v18 }
 0xd79   : > { %v4314_v30 = vmul.f32 %v4311_v6, %v12913_v43  ;;  %v4340_v35 = vmul.f32 %v4337_v31, %v12913_v43  ;;  %v12929_v48 = vld [vmem:[#allocation3 + $0x13] sm:$0xff]  ;;  %v12932_v27 = vld [vmem:[#allocation3 + $0xb] sm:$0xff]  ;;  %v4242_v12 = vmul.f32 %v4239_v57, %v12897_v44  ;;  %v4368_v31 = vmul.f32 %v4367_v2, %v12889_v56 }
 0xd7a   : > { %4258 = vrot.lane.b32.xlu1 %v4248_v19, %s11117_s29  ;;  %v4380_v8 = vmul.f32 %v4377_v55, %v12929_v48  ;;  %v4379_v0 = vmul.f32 %v4377_v55, %v12932_v27  ;;  %v4406_v36 = vmul.f32 %v4403_v38, %v12929_v48  ;;  %v4405_v49 = vmul.f32 %v4403_v38, %v12932_v27 }
 0xd7b   : > { %v4304_v54 = vmul.f32 %v4301_v28, %v12913_v43  ;;  %v4429_v6 = vstv %s9919_s19  ;;  %v4303_v19 = vmul.f32 %v4301_v28, %v12902_v9  ;;  %v4305_v43 = vmul.f32 %v4301_v28, %v12923_v13  ;;  %s9924_s19 = sld [smem:[#allocation4 + $0x32]] }
 0xd7c   : > { %4320 = vrot.lane.b32.xlu0 %v4312_v62, %s11117_s29 }
 0xd7e   : > { %4284 = vrot.lane.b32.xlu1 %v4274_v60, %s11116_s28  ;;  %v4243_v60 = vmul.f32 %v4239_v57, %v12907_v18  ;;  %v4370_v18 = vmul.f32 %v4367_v2, %v12929_v48  ;;  %v4371_v48 = vmul.f32 %v4367_v2, %v12942_v40 }
 0xd80   : > { %4322 = vrot.lane.b32.xlu0 %v4313_v53, %s11117_s29 }
 0xd82   : > { %4286 = vrot.lane.b32.xlu1 %v4275_v46, %s11116_s28 }
 0xd84   : > { %4348 = vrot.lane.b32.xlu0 %v4339_v3, %s11116_s28 }
 0xd86   : > { %4324 = vrot.lane.b32.xlu1 %v4314_v30, %s11117_s29 }
 0xd88   : > { %4386 = vrot.lane.b32.xlu0 %v4378_v21, %s11117_s29 }
 0xd8a   : > { %4350 = vrot.lane.b32.xlu1 %v4340_v35, %s11116_s28 }
 0xd8c   : > { %4260 = vrot.lane.b32.xlu0 %v4249_v34, %s11117_s29 }
 0xd8e   : > { %4352 = vrot.lane.b32.xlu1 %v4341_v7, %s11116_s28 }
 0xd90   : > { %4326 = vrot.lane.b32.xlu0 %v4315_v61, %s11117_s29 }
 0xd92   : > { %4390 = vrot.lane.b32.xlu1 %v4380_v8, %s11117_s29 }
 0xd94   : > { %4388 = vrot.lane.b32.xlu0 %v4379_v0, %s11117_s29 }
 0xd96   : > { %4416 = vrot.lane.b32.xlu1 %v4406_v36, %s11116_s28  ;;  %v4369_v36 = vmul.f32 %v4367_v2, %v12932_v27 }
 0xd98   : > { %4414 = vrot.lane.b32.xlu0 %v4405_v49, %s11116_s28 }
 0xd9c   : > { %4392 = vrot.lane.b32.xlu0 %v4381_v23, %s11117_s29 }
 0xda0   : > { %4418 = vrot.lane.b32.xlu0 %v4407_v45, %s11116_s28 }
 0xdb2   : > { %v4255_v5 = vpop.permute.xlu1 %4254 }
 0xdb3   : > { %v4266_v63 = vadd.f32 %v4255_v5, %v4240_v47 }
 0xdb6   : > { %v4281_v15 = vpop.permute.xlu1 %4280 }
 0xdb7   : > { %v4292_v1 = vadd.f32 %v4281_v15, %v4266_v63 }
 0xdb9   : > { %v4306_v20 = vadd.f32 %v4302_v58, %v4292_v1 }
 0xdba   : > { %v4347_v32 = vpop.permute.xlu1 %4346 }
 0xde6   : > { %v4257_v41 = vpop.permute.xlu0 %4256 }
 0xde7   : > { %v4413_v10 = vpop.permute.xlu1 %4412  ;;  %v4267_v51 = vadd.f32 %v4257_v41, %v4241_v16 }
 0xdea   : > { %v4283_v17 = vpop.permute.xlu0 %4282 }
 0xdeb   : > { %v4293_v33 = vadd.f32 %v4283_v17, %v4267_v51 }
 0xdec   : > { %v4259_v14 = vpop.permute.xlu1 %4258 }
 0xded   : > { %v4268_v24 = vadd.f32 %v4259_v14, %v4242_v12  ;;  %v4307_v56 = vadd.f32 %v4303_v19, %v4293_v33 }
 0xdee   : > { %v4321_v26 = vpop.permute.xlu0 %4320 }
 0xdef   : > { %v4332_v50 = vadd.f32 %v4321_v26, %v4306_v20 }
 0xdf0   : > { %v4285_v59 = vpop.permute.xlu1 %4284 }
 0xdf1   : > { %v4358_v39 = vadd.f32 %v4347_v32, %v4332_v50  ;;  %v4294_v38 = vadd.f32 %v4285_v59, %v4268_v24  ;;  %v12994_v24 = vstv %s9927_s27  ;;  %s9929_s27 = sld [smem:[#allocation4 + $0x37]] }
 0xdf2   : > { %v4323_v25 = vpop.permute.xlu0 %4322 }
 0xdf3   : > { %v4372_v11 = vadd.f32 %v4368_v31, %v4358_v39  ;;  %v4308_v22 = vadd.f32 %v4304_v54, %v4294_v38  ;;  %v4333_v30 = vadd.f32 %v4323_v25, %v4307_v56  ;;  %v4469_v25 = vstv %s9921_s22  ;;  %s9926_s22 = sld [smem:[#allocation4 + $0x34]] }
 0xdf4   : > { %v4287_v4 = vpop.permute.xlu1 %4286  ;;  %v13011_v54 = vstv %s9937_s15  ;;  %s9933_s15 = sld [smem:[#allocation4 + $0x3b]] }
 0xdf6   : > { %v4349_v29 = vpop.permute.xlu0 %4348 }
 0xdf7   : > { %v4359_v61 = vadd.f32 %v4349_v29, %v4333_v30 }
 0xdf8   : > { %v4325_v42 = vpop.permute.xlu1 %4324 }
 0xdf9   : > { %v4334_v55 = vadd.f32 %v4325_v42, %v4308_v22  ;;  %v4373_v5 = vadd.f32 %v4369_v36, %v4359_v61  ;;  %v13025_v22 = vstv %s9923_s23  ;;  %s9936_s23 = sld [smem:[#allocation4 + $0x3e]] }
 0xdfa   : > { %v4387_v52 = vpop.permute.xlu0 %4386 }
 0xdfb   : > { %v4398_v37 = vadd.f32 %v4387_v52, %v4372_v11  ;;  %v13002_v11 = vstv %s9932_s14  ;;  %s9931_s14 = sld [smem:[#allocation4 + $0x39]] }
 0xdfc   : > { %v4351_v44 = vpop.permute.xlu1 %4350 }
 0xdfd   : > { %v4424_v62 = vadd.f32 %v4413_v10, %v4398_v37  ;;  %v4360_v7 = vadd.f32 %v4351_v44, %v4334_v55  ;;  %v13021_v44 = vstv %s9942_s18  ;;  %s9934_s18 = sld [smem:[#allocation4 + $0x3c]] }
 0xdfe   : > { %v4261_v53 = vpop.permute.xlu0 %4260 }
 0xdff   : > { %v12957_v46 = vadd.f32 %v4429_v6, %v4424_v62  ;;  %v4269_v3 = vadd.f32 %v4261_v53, %v4243_v60  ;;  %v4374_v49 = vadd.f32 %v4370_v18, %v4360_v7 }
 0xe00   : > { %v4353_v34 = vpop.permute.xlu1 %4352 }
 0xe01   : > { %16528 = vst [vmem:[#allocation7_spill] sm:$0xff] %v12957_v46  ;;  %v16476_v21 = vmax.f32 %v12957_v46, 0.0  ;;  %v4295_v35 = vadd.f32 %v4287_v4, %v4269_v3  ;;  %v4495_v4 = vstv %s9922_s24  ;;  %s9928_s24 = sld [smem:[#allocation4 + $0x36]] }
 0xe02   : > { %v4327_v9 = vpop.permute.xlu0 %4326 }
 0xe03   : > { %v4309_v8 = vadd.f32 %v4305_v43, %v4295_v35  ;;  %4442 = vrot.lane.b32.xlu1 %v16476_v21, %s11115_s21 }
 0xe04   : > { %v4391_v0 = vpop.permute.xlu1 %4390 }
 0xe05   : > { %v4335_v45 = vadd.f32 %v4327_v9, %v4309_v8  ;;  %v4400_v15 = vadd.f32 %v4391_v0, %v4374_v49  ;;  %v4587_v8 = vstv %s9926_s22  ;;  %s9939_s22 = sld [smem:[#allocation4 + $0x41]] }
 0xe06   : > { %v4389_v23 = vpop.permute.xlu0 %4388 }
 0xe07   : > { %v4399_v57 = vadd.f32 %v4389_v23, %v4373_v5  ;;  %v4361_v47 = vadd.f32 %v4353_v34, %v4335_v45  ;;  %v4547_v34 = vstv %s9924_s19  ;;  %s9938_s19 = sld [smem:[#allocation4 + $0x40]] }
 0xe08   : > { %v4417_v13 = vpop.permute.xlu1 %4416 }
 0xe09   : > { %v4426_v32 = vadd.f32 %v4417_v13, %v4400_v15  ;;  %v4375_v14 = vadd.f32 %v4371_v48, %v4361_v47  ;;  %v13066_v15 = vstv %s9928_s24  ;;  %v4665_v48 = vstv %s9929_s27  ;;  %s9941_s24 = sld [smem:[#allocation4 + $0x43]] }
 0xe0a   : > { %v4415_v41 = vpop.permute.xlu0 %4414  ;;  %s9943_s27 = sld [smem:[#allocation4 + $0x45]] }
 0xe0b   : > { %v4425_v63 = vadd.f32 %v4415_v41, %v4399_v57  ;;  %v12966_v10 = vadd.f32 %v4429_v6, %v4426_v32 }
 0xe0d   : > { %16529 = vst [vmem:[#allocation8_spill] sm:$0xff] %v12966_v10  ;;  %v12968_v17 = vadd.f32 %v4429_v6, %v4425_v63  ;;  %v16475_v28 = vmax.f32 %v12966_v10, 0.0 }
 0xe0e   : > { %v4393_v27 = vpop.permute.xlu0 %4392 }
 0xe0f   : > { %16530 = vst [vmem:[#allocation9_spill] sm:$0xff] %v12968_v17  ;;  %v16474_v1 = vmax.f32 %v12968_v17, 0.0  ;;  %4446 = vrot.lane.b32.xlu1 %v16475_v28, %s11115_s21  ;;  %v4401_v58 = vadd.f32 %v4393_v27, %v4375_v14 }
 0xe11   : > { %4444 = vrot.lane.b32.xlu0 %v16474_v1, %s11115_s21 }
 0xe12   : > { %v4419_v26 = vpop.permute.xlu0 %4418 }
 0xe13   : > { %v4427_v20 = vadd.f32 %v4419_v26, %v4401_v58 }
 0xe15   : > { %v12979_v50 = vadd.f32 %v4429_v6, %v4427_v20  ;;  %v4705_v20 = vstv %s9931_s14  ;;  %s9944_s14 = sld [smem:[#allocation4 + $0x46]] }
 0xe17   : > { %16531 = vst [vmem:[#allocation10_spill] sm:$0xff] %v12979_v50  ;;  %v16473_v40 = vmax.f32 %v12979_v50, 0.0 }
 0xe19   : > { %4448 = vrot.lane.b32.xlu0 %v16473_v40, %s11115_s21 }
 0xe75   : > { %v4443_v59 = vpop.permute.xlu1 %4442 }
 0xe76   : > { %4454 = vst.msk [vmem:[#allocation3 + $0x2] sm:$0xff] %vm3612_vm12, %v4443_v59 }
 0xe7d   : > { %v12986_v2 = vld [vmem:[#allocation3] sm:$0xff] }
 0xe7e   : > { %v4470_v39 = vmul.f32 %v4469_v25, %v12986_v2  ;;  %v4496_v29 = vmul.f32 %v4495_v4, %v12986_v2  ;;  %v12992_v31 = vld [vmem:[#allocation3 + $0x1] sm:$0xff]  ;;  %v4522_v3 = vmul.f32 %v13025_v22, %v12986_v2  ;;  %v4548_v7 = vmul.f32 %v4547_v34, %v12986_v2 }
 0xe7f   : > { %v4614_v51 = vmul.f32 %v12994_v24, %v12992_v31  ;;  %v13000_v42 = vld [vmem:[#allocation3 + $0x2] sm:$0xff]  ;;  %v4588_v0 = vmul.f32 %v4587_v8, %v12992_v31  ;;  %v4640_v32 = vmul.f32 %v13066_v15, %v12992_v31  ;;  %v4666_v14 = vmul.f32 %v4665_v48, %v12992_v31 }
 0xe80   : > { %4478 = vrot.lane.b32.xlu1 %v4470_v39, %s11117_s29  ;;  %v4732_v38 = vmul.f32 %v13002_v11, %v13000_v42 }
 0xe81   : > { %v4447_v12 = vpop.permute.xlu1 %4446 }
 0xe82   : > { %4456 = vst.msk [vmem:[#allocation3 + $0x12] sm:$0xff] %vm3612_vm12, %v4447_v12 }
 0xe83   : > { %v4445_v16 = vpop.permute.xlu0 %4444 }
 0xe84   : > { %4455 = vst.msk [vmem:[#allocation3 + $0xa] sm:$0xff] %vm3612_vm12, %v4445_v16  ;;  %4504 = vrot.lane.b32.xlu1 %v4496_v29, %s11116_s28 }
 0xe88   : > { %4622 = vrot.lane.b32.xlu1 %v4614_v51, %s11116_s28 }
 0xe8b   : > { %v4449_v52 = vpop.permute.xlu0 %4448  ;;  %v13007_v33 = vld [vmem:[#allocation3 + $0x8] sm:$0xff]  ;;  %v13030_v56 = vld [vmem:[#allocation3 + $0x10] sm:$0xff] }
 0xe8c   : > { %v13009_v37 = vld [vmem:[#allocation3 + $0x3] sm:$0xff]  ;;  %4457 = vst.msk [vmem:[#allocation3 + $0x1a] sm:$0x7] %vm3616_vm13, %v4449_v52  ;;  %4740 = vrot.lane.b32.xlu1 %v4732_v38, %s11116_s28  ;;  %v4471_v6 = vmul.f32 %v4469_v25, %v13007_v33  ;;  %v4497_v60 = vmul.f32 %v4495_v4, %v13007_v33  ;;  %v4472_v55 = vmul.f32 %v4469_v25, %v13030_v56  ;;  %v13070_v13 = vld [vmem:[#allocation3 + $0x11] sm:$0xff] }
 0xe8d   : > { %v4850_v19 = vmul.f32 %v13011_v54, %v13009_v37  ;;  %v13019_v62 = vld [vmem:[#allocation3 + $0x4] sm:$0xff]  ;;  %v4523_v35 = vmul.f32 %v13025_v22, %v13007_v33  ;;  %v4498_v9 = vmul.f32 %v4495_v4, %v13030_v56  ;;  %v4549_v61 = vmul.f32 %v4547_v34, %v13007_v33  ;;  %v13112_v38 = vld [vmem:[#allocation3 + $0x12] sm:$0xff] }
 0xe8e   : > { %4480 = vrot.lane.b32.xlu0 %v4471_v6, %s11117_s29  ;;  %v4968_v53 = vmul.f32 %v13021_v44, %v13019_v62  ;;  %v13054_v36 = vld [vmem:[#allocation3 + $0x9] sm:$0xff]  ;;  %v4524_v49 = vmul.f32 %v13025_v22, %v13030_v56  ;;  %v4550_v45 = vmul.f32 %v4547_v34, %v13030_v56  ;;  %v4590_v41 = vmul.f32 %v4587_v8, %v13070_v13 }
 0xe8f   : > { %v4589_v23 = vmul.f32 %v4587_v8, %v13054_v36  ;;  %v4615_v5 = vmul.f32 %v12994_v24, %v13054_v36  ;;  %v4641_v63 = vmul.f32 %v13066_v15, %v13054_v36  ;;  %v4616_v58 = vmul.f32 %v12994_v24, %v13070_v13  ;;  %v13096_v39 = vld [vmem:[#allocation3 + $0xa] sm:$0xff] }
 0xe90   : > { %4858 = vrot.lane.b32.xlu1 %v4850_v19, %s11116_s28  ;;  %v4667_v26 = vmul.f32 %v4665_v48, %v13054_v36  ;;  %v4707_v12 = vmul.f32 %v4705_v20, %v13096_v39  ;;  %v4668_v29 = vmul.f32 %v4665_v48, %v13070_v13  ;;  %v4733_v16 = vmul.f32 %v13002_v11, %v13096_v39 }
 0xe91   : > { %v4708_v6 = vmul.f32 %v4705_v20, %v13112_v38 }
 0xe92   : > { %4506 = vrot.lane.b32.xlu0 %v4497_v60, %s11116_s28 }
 0xe93   : > { %v13037_v30 = vld [vmem:[#allocation3 + $0x18] sm:$0x7] }
 0xe94   : > { %4976 = vrot.lane.b32.xlu1 %v4968_v53, %s11116_s28  ;;  %v4473_v43 = vmul.f32 %v4469_v25, %v13037_v30  ;;  %v4499_v18 = vmul.f32 %v4495_v4, %v13037_v30  ;;  %v4551_v57 = vmul.f32 %v4547_v34, %v13037_v30  ;;  %v13077_v47 = vld [vmem:[#allocation3 + $0x19] sm:$0x7]  ;;  %v4706_v25 = vmul.f32 %v4705_v20, %v13000_v42 }
 0xe95   : > { %v4591_v27 = vmul.f32 %v4587_v8, %v13077_v47  ;;  %v4617_v59 = vmul.f32 %v12994_v24, %v13077_v47  ;;  %v4642_v4 = vmul.f32 %v13066_v15, %v13070_v13  ;;  %v13108_v24 = vstv %s9933_s15  ;;  %v13119_v19 = vld [vmem:[#allocation3 + $0x1a] sm:$0x7]  ;;  %s9920_s15 = sld [smem:[#allocation4 + $0x2e]] }
 0xe96   : > { %4530 = vrot.lane.b32.xlu0 %v4522_v3, %s11119_s30  ;;  %v4669_v51 = vmul.f32 %v4665_v48, %v13077_v47  ;;  %v4758_v52 = vmul.f32 %v13108_v24, %v13000_v42  ;;  %v4759_v60 = vmul.f32 %v13108_v24, %v13096_v39  ;;  %v4783_v53 = vstv %s9934_s18  ;;  %s9925_s18 = sld [smem:[#allocation4 + $0x33]] }
 0xe97   : > { %v4709_v3 = vmul.f32 %v4705_v20, %v13119_v19  ;;  %v4785_v34 = vmul.f32 %v4783_v53, %v13096_v39  ;;  %v4760_v8 = vmul.f32 %v13108_v24, %v13112_v38 }
 0xe98   : > { %4482 = vrot.lane.b32.xlu1 %v4472_v55, %s11117_s29  ;;  %v4784_v55 = vmul.f32 %v4783_v53, %v13000_v42 }
 0xe9a   : > { %4532 = vrot.lane.b32.xlu0 %v4523_v35, %s11119_s30  ;;  %v4734_v35 = vmul.f32 %v13002_v11, %v13112_v38 }
 0xe9c   : > { %4484 = vrot.lane.b32.xlu1 %v4473_v43, %s11117_s29  ;;  %v4823_v43 = vstv %s9936_s23  ;;  %s9930_s23 = sld [smem:[#allocation4 + $0x38]] }
 0xe9e   : > { %4556 = vrot.lane.b32.xlu0 %v4548_v7, %s11120_s17  ;;  %v4735_v7 = vmul.f32 %v13002_v11, %v13119_v19  ;;  %v4786_v11 = vmul.f32 %v4783_v53, %v13112_v38 }
 0xea0   : > { %4508 = vrot.lane.b32.xlu1 %v4498_v9, %s11116_s28  ;;  %v4824_v9 = vmul.f32 %v4823_v43, %v13009_v37 }
 0xea2   : > { %4558 = vrot.lane.b32.xlu0 %v4549_v61, %s11120_s17  ;;  %v13138_v61 = vstv %s9938_s19  ;;  %s9935_s19 = sld [smem:[#allocation4 + $0x3d]] }
 0xea4   : > { %4510 = vrot.lane.b32.xlu1 %v4499_v18, %s11116_s28  ;;  %v4876_v18 = vmul.f32 %v13138_v61, %v13009_v37 }
 0xea6   : > { %4596 = vrot.lane.b32.xlu0 %v4588_v0, %s11117_s29  ;;  %v13146_v0 = vstv %s9939_s22  ;;  %s9940_s22 = sld [smem:[#allocation4 + $0x42]] }
 0xea8   : > { %4534 = vrot.lane.b32.xlu1 %v4524_v49, %s11119_s30  ;;  %v4902_v49 = vmul.f32 %v13146_v0, %v13009_v37 }
 0xeaa   : > { %4598 = vrot.lane.b32.xlu0 %v4589_v23, %s11117_s29  ;;  %v13153_v23 = vstv %s9941_s24  ;;  %s9945_s24 = sld [smem:[#allocation4 + $0x47]] }
 0xeac   : > { %4560 = vrot.lane.b32.xlu1 %v4550_v45, %s11120_s17  ;;  %v4787_v45 = vmul.f32 %v4783_v53, %v13119_v19 }
 0xeae   : > { %4624 = vrot.lane.b32.xlu0 %v4615_v5, %s11116_s28  ;;  %v13157_v5 = vld [vmem:[#allocation3 + $0x13] sm:$0xff] }
 0xeaf   : > { %v4852_v20 = vmul.f32 %v13011_v54, %v13157_v5 }
 0xeb0   : > { %4562 = vrot.lane.b32.xlu1 %v4551_v57, %s11120_s17  ;;  %v4942_v57 = vmul.f32 %v13153_v23, %v13019_v62 }
 0xeb2   : > { %4648 = vrot.lane.b32.xlu0 %v4640_v32, %s11119_s30  ;;  %v13162_v32 = vstv %s9943_s27  ;;  %s9947_s27 = sld [smem:[#allocation4 + $0x49]] }
 0xeb3   : > { %v4994_v48 = vmul.f32 %v13162_v32, %v13019_v62 }
 0xeb4   : > { %4600 = vrot.lane.b32.xlu1 %v4590_v41, %s11117_s29  ;;  %v4826_v41 = vmul.f32 %v4823_v43, %v13157_v5 }
 0xeb6   : > { %4650 = vrot.lane.b32.xlu0 %v4641_v63, %s11119_s30  ;;  %v13166_v63 = vld [vmem:[#allocation3 + $0x1b] sm:$0x7] }
 0xeb8   : > { %4602 = vrot.lane.b32.xlu1 %v4591_v27, %s11117_s29  ;;  %v13171_v27 = vstv %s9944_s14  ;;  %s9948_s14 = sld [smem:[#allocation4 + $0x4a]] }
 0xeba   : > { %4674 = vrot.lane.b32.xlu0 %v4666_v14, %s11120_s17  ;;  %v4827_v14 = vmul.f32 %v4823_v43, %v13166_v63 }
 0xebc   : > { %4626 = vrot.lane.b32.xlu1 %v4616_v58, %s11116_s28  ;;  %v5020_v58 = vmul.f32 %v13171_v27, %v13019_v62 }
 0xebe   : > { %4676 = vrot.lane.b32.xlu0 %v4667_v26, %s11120_s17 }
 0xec0   : > { %4628 = vrot.lane.b32.xlu1 %v4617_v59, %s11116_s28  ;;  %v4525_v59 = vmul.f32 %v13025_v22, %v13037_v30  ;;  %v4761_v22 = vmul.f32 %v13108_v24, %v13119_v19  ;;  %v4905_v24 = vmul.f32 %v13146_v0, %v13166_v63 }
 0xec2   : > { %4714 = vrot.lane.b32.xlu0 %v4706_v25, %s11117_s29 }
 0xec4   : > { %4652 = vrot.lane.b32.xlu1 %v4642_v4, %s11119_s30  ;;  %v4853_v4 = vmul.f32 %v13011_v54, %v13166_v63 }
 0xec6   : > { %4716 = vrot.lane.b32.xlu0 %v4707_v12, %s11117_s29  ;;  %v4643_v12 = vmul.f32 %v13066_v15, %v13077_v47  ;;  %v4904_v15 = vmul.f32 %v13146_v0, %v13157_v5 }
 0xec8   : > { %4678 = vrot.lane.b32.xlu1 %v4668_v29, %s11120_s17 }
 0xeca   : > { %4742 = vrot.lane.b32.xlu0 %v4733_v16, %s11116_s28  ;;  %v4878_v16 = vmul.f32 %v13138_v61, %v13157_v5 }
 0xecc   : > { %4680 = vrot.lane.b32.xlu1 %v4669_v51, %s11120_s17  ;;  %v13202_v51 = vld [vmem:[#allocation3 + $0xb] sm:$0xff] }
 0xece   : > { %4766 = vrot.lane.b32.xlu0 %v4758_v52, %s11119_s30 }
 0xed0   : > { %4718 = vrot.lane.b32.xlu1 %v4708_v6, %s11117_s29 }
 0xed2   : > { %4768 = vrot.lane.b32.xlu0 %v4759_v60, %s11119_s30  ;;  %v4825_v60 = vmul.f32 %v4823_v43, %v13202_v51 }
 0xed4   : > { %4720 = vrot.lane.b32.xlu1 %v4709_v3, %s11117_s29  ;;  %v13218_v3 = vld [vmem:[#allocation3 + $0x14] sm:$0xff] }
 0xed5   : > { %16532 = vst [vmem:[#allocation11_spill] sm:$0xff] %v13218_v3  ;;  %v4944_v43 = vmul.f32 %v13153_v23, %v13218_v3 }
 0xed6   : > { %4792 = vrot.lane.b32.xlu0 %v4784_v55, %s11120_s17 }
 0xed8   : > { %4744 = vrot.lane.b32.xlu1 %v4734_v35, %s11116_s28  ;;  %v4851_v35 = vmul.f32 %v13011_v54, %v13202_v51 }
 0xeda   : > { %4794 = vrot.lane.b32.xlu0 %v4785_v34, %s11120_s17 }
 0xedc   : > { %4746 = vrot.lane.b32.xlu1 %v4735_v7, %s11116_s28  ;;  %v13230_v7 = vld [vmem:[#allocation3 + $0x1c] sm:$0x7] }
 0xedd   : > { %16533 = vst [vmem:[#allocation12_spill] sm:$0xff] %v13230_v7  ;;  %v4945_v54 = vmul.f32 %v13153_v23, %v13230_v7 }
 0xede   : > { %4832 = vrot.lane.b32.xlu0 %v4824_v9, %s11117_s29 }
 0xee0   : > { %4770 = vrot.lane.b32.xlu1 %v4760_v8, %s11119_s30  ;;  %v4877_v8 = vmul.f32 %v13138_v61, %v13202_v51 }
 0xee2   : > { %4884 = vrot.lane.b32.xlu0 %v4876_v18, %s11119_s30 }
 0xee4   : > { %4796 = vrot.lane.b32.xlu1 %v4786_v11, %s11120_s17 }
 0xee6   : > { %4910 = vrot.lane.b32.xlu0 %v4902_v49, %s11120_s17  ;;  %v4903_v49 = vmul.f32 %v13146_v0, %v13202_v51  ;;  %v4971_v0 = vmul.f32 %v13021_v44, %v13230_v7 }
 0xee8   : > { %4798 = vrot.lane.b32.xlu1 %v4787_v45, %s11120_s17 }
 0xeea   : > { %4950 = vrot.lane.b32.xlu0 %v4942_v57, %s11117_s29  ;;  %v4970_v57 = vmul.f32 %v13021_v44, %v13218_v3 }
 0xeec   : > { %4836 = vrot.lane.b32.xlu1 %v4826_v41, %s11117_s29 }
 0xeee   : > { %5002 = vrot.lane.b32.xlu0 %v4994_v48, %s11119_s30  ;;  %v4879_v48 = vmul.f32 %v13138_v61, %v13166_v63  ;;  %v4996_v61 = vmul.f32 %v13162_v32, %v13218_v3 }
 0xef0   : > { %4838 = vrot.lane.b32.xlu1 %v4827_v14, %s11117_s29  ;;  %v13253_v14 = vld [vmem:[#allocation3 + $0xc] sm:$0xff] }
 0xef1   : > { %16534 = vst [vmem:[#allocation13_spill] sm:$0xff] %v13253_v14 }
 0xef2   : > { %5028 = vrot.lane.b32.xlu0 %v5020_v58, %s11120_s17  ;;  %v13179_v26 = vpop.permute.xlu1 %4478 }
 0xef4   : > { %4862 = vrot.lane.b32.xlu1 %v4852_v20, %s11116_s28 }
 0xef6   : > { %4536 = vrot.lane.b32.xlu0 %v4525_v59, %s11119_s30  ;;  %v13187_v25 = vpop.permute.xlu1 %4504  ;;  %v4943_v59 = vmul.f32 %v13153_v23, %v13253_v14  ;;  %v5022_v23 = vmul.f32 %v13171_v27, %v13218_v3 }
 0xef8   : > { %4864 = vrot.lane.b32.xlu1 %v4853_v4, %s11116_s28 }
 0xefa   : > { %4654 = vrot.lane.b32.xlu0 %v4643_v12, %s11119_s30  ;;  %v13195_v29 = vpop.permute.xlu1 %4622 }
 0xefc   : > { %4888 = vrot.lane.b32.xlu1 %v4878_v16, %s11119_s30  ;;  %v4969_v16 = vmul.f32 %v13021_v44, %v13253_v14 }
 0xefe   : > { %4772 = vrot.lane.b32.xlu0 %v4761_v22, %s11119_s30  ;;  %v13205_v52 = vpop.permute.xlu1 %4740 }
 0xf00   : > { %v13209_v6 = vpop.permute.xlu0 %4480  ;;  %4914 = vrot.lane.b32.xlu1 %v4904_v15, %s11120_s17 }
 0xf02   : > { %4834 = vrot.lane.b32.xlu0 %v4825_v60, %s11117_s29  ;;  %v13214_v53 = vpop.permute.xlu1 %4858  ;;  %v4995_v60 = vmul.f32 %v13162_v32, %v13253_v14 }
 0xf04   : > { %v13220_v55 = vpop.permute.xlu0 %4506  ;;  %4916 = vrot.lane.b32.xlu1 %v4905_v24, %s11120_s17 }
 0xf06   : > { %4860 = vrot.lane.b32.xlu0 %v4851_v35, %s11116_s28  ;;  %v13226_v34 = vpop.permute.xlu1 %4976  ;;  %v5021_v35 = vmul.f32 %v13171_v27, %v13253_v14 }
 0xf08   : > { %v4531_v9 = vpop.permute.xlu0 %4530  ;;  %4954 = vrot.lane.b32.xlu1 %v4944_v43, %s11117_s29 }
 0xf0a   : > { %4886 = vrot.lane.b32.xlu0 %v4877_v8, %s11119_s30  ;;  %v13236_v18 = vpop.permute.xlu1 %4482  ;;  %v13293_v8 = vstv %s9920_s15  ;;  %s9951_s15 = sld [smem:[#allocation4 + $0x4d]] }
 0xf0c   : > { %v13240_v11 = vpop.permute.xlu0 %4532  ;;  %4956 = vrot.lane.b32.xlu1 %v4945_v54, %s11117_s29 }
 0xf0e   : > { %4912 = vrot.lane.b32.xlu0 %v4903_v49, %s11120_s17  ;;  %v13246_v45 = vpop.permute.xlu1 %4484  ;;  %v4997_v49 = vmul.f32 %v13162_v32, %v13230_v7 }
 0xf10   : > { %v4557_v41 = vpop.permute.xlu0 %4556  ;;  %4980 = vrot.lane.b32.xlu1 %v4970_v57, %s11116_s28 }
 0xf12   : > { %4890 = vrot.lane.b32.xlu0 %v4879_v48, %s11119_s30  ;;  %v13256_v58 = vpop.permute.xlu1 %4508  ;;  %v4464_v48 = vmul.f32 %v13293_v8, %v12986_v2 }
 0xf14   : > { %v13260_v20 = vpop.permute.xlu0 %4558  ;;  %4982 = vrot.lane.b32.xlu1 %v4971_v0, %s11116_s28 }
 0xf16   : > { %4952 = vrot.lane.b32.xlu0 %v4943_v59, %s11117_s29  ;;  %v13266_v4 = vpop.permute.xlu1 %4510  ;;  %v5023_v59 = vmul.f32 %v13171_v27, %v13230_v7 }
 0xf18   : > { %v4597_v12 = vpop.permute.xlu0 %4596  ;;  %5006 = vrot.lane.b32.xlu1 %v4996_v61, %s11119_s30  ;;  %v4490_v61 = vadd.f32 %v13179_v26, %v4464_v48 }
 0xf1a   : > { %4978 = vrot.lane.b32.xlu0 %v4969_v16, %s11116_s28  ;;  %v13274_v22 = vpop.permute.xlu1 %4534  ;;  %v4516_v32 = vadd.f32 %v13187_v25, %v4490_v61 }
 0xf1c   : > { %v13278_v15 = vpop.permute.xlu0 %4598  ;;  %5032 = vrot.lane.b32.xlu1 %v5022_v23, %s11120_s17 }
 0xf1e   : > { %5004 = vrot.lane.b32.xlu0 %v4995_v60, %s11119_s30  ;;  %v13284_v24 = vpop.permute.xlu1 %4560  ;;  %v4542_v60 = vadd.f32 %v4531_v9, %v4516_v32  ;;  %v13328_v32 = vstv %s9930_s23  ;;  %s9950_s23 = sld [smem:[#allocation4 + $0x4c]] }
 0xf20   : > { %v13286_v44 = vpop.permute.xlu0 %4624  ;;  %v4568_v2 = vadd.f32 %v4557_v41, %v4542_v60 }
 0xf22   : > { %5030 = vrot.lane.b32.xlu0 %v5021_v35, %s11120_s17  ;;  %v13291_v43 = vpop.permute.xlu1 %4562  ;;  %v13311_v35 = vstv %s9925_s18  ;;  %s9954_s18 = sld [smem:[#allocation4 + $0x50]] }
 0xf23   : > { %v4578_v27 = vmul.f32 %v13311_v35, %v12992_v31 }
 0xf24   : > { %v4649_v54 = vpop.permute.xlu0 %4648 }
 0xf25   : > { %v4582_v26 = vadd.f32 %v4578_v27, %v4568_v2  ;;  %v4696_v2 = vmul.f32 %v13328_v32, %v13000_v42 }
 0xf26   : > { %5008 = vrot.lane.b32.xlu0 %v4997_v49, %s11119_s30  ;;  %v13298_v57 = vpop.permute.xlu1 %4600 }
 0xf28   : > { %v13302_v0 = vpop.permute.xlu0 %4650 }
 0xf2a   : > { %5034 = vrot.lane.b32.xlu0 %v5023_v59, %s11120_s17  ;;  %v13308_v16 = vpop.permute.xlu1 %4602  ;;  %v4608_v59 = vadd.f32 %v4597_v12, %v4582_v26 }
 0xf2c   : > { %v4675_v23 = vpop.permute.xlu0 %4674  ;;  %v4634_v9 = vadd.f32 %v13195_v29, %v4608_v59 }
 0xf2e   : > { %v13313_v49 = vpop.permute.xlu1 %4626  ;;  %v4660_v41 = vadd.f32 %v4649_v54, %v4634_v9 }
 0xf30   : > { %v13315_v40 = vpop.permute.xlu0 %4676  ;;  %v4686_v31 = vadd.f32 %v4675_v23, %v4660_v41  ;;  %v13345_v41 = vstv %s9935_s19  ;;  %s9953_s19 = sld [smem:[#allocation4 + $0x4f]] }
 0xf32   : > { %v13319_v1 = vpop.permute.xlu1 %4628  ;;  %v4700_v27 = vadd.f32 %v4696_v2, %v4686_v31  ;;  %v4814_v31 = vmul.f32 %v13345_v41, %v13009_v37 }
 0xf34   : > { %v4715_v48 = vpop.permute.xlu0 %4714 }
 0xf35   : > { %v4726_v50 = vadd.f32 %v4715_v48, %v4700_v27 }
 0xf36   : > { %v13321_v28 = vpop.permute.xlu1 %4652 }
 0xf37   : > { %v4752_v54 = vadd.f32 %v13205_v52, %v4726_v50 }
 0xf38   : > { %v13323_v25 = vpop.permute.xlu0 %4716 }
 0xf3a   : > { %v13326_v61 = vpop.permute.xlu1 %4678 }
 0xf3c   : > { %v13330_v60 = vpop.permute.xlu0 %4742 }
 0xf3e   : > { %v13332_v21 = vpop.permute.xlu1 %4680 }
 0xf40   : > { %v4767_v12 = vpop.permute.xlu0 %4766 }
 0xf41   : > { %v4778_v17 = vadd.f32 %v4767_v12, %v4752_v54  ;;  %v13358_v54 = vstv %s9940_s22  ;;  %s9946_s22 = sld [smem:[#allocation4 + $0x48]] }
 0xf42   : > { %v13336_v26 = vpop.permute.xlu1 %4718 }
 0xf44   : > { %v13338_v29 = vpop.permute.xlu0 %4768 }
 0xf46   : > { %v13340_v59 = vpop.permute.xlu1 %4720 }
 0xf48   : > { %v4793_v9 = vpop.permute.xlu0 %4792 }
 0xf49   : > { %v4804_v10 = vadd.f32 %v4793_v9, %v4778_v17  ;;  %v4466_v17 = vmul.f32 %v13293_v8, %v13030_v56 }
 0xf4a   : > { %v13343_v23 = vpop.permute.xlu1 %4744 }
 0xf4b   : > { %v4818_v48 = vadd.f32 %v4814_v31, %v4804_v10  ;;  %v4492_v14 = vadd.f32 %v13236_v18, %v4466_v17  ;;  %v4932_v10 = vmul.f32 %v13358_v54, %v13019_v62 }
 0xf4c   : > { %v13347_v42 = vpop.permute.xlu0 %4794 }
 0xf4e   : > { %v13351_v2 = vpop.permute.xlu1 %4746 }
 0xf50   : > { %v4833_v27 = vpop.permute.xlu0 %4832 }
 0xf51   : > { %v4844_v46 = vadd.f32 %v4833_v27, %v4818_v48  ;;  %v4465_v27 = vmul.f32 %v13293_v8, %v13007_v33 }
 0xf52   : > { %v13353_v7 = vpop.permute.xlu1 %4770 }
 0xf53   : > { %v4870_v50 = vadd.f32 %v13214_v53, %v4844_v46  ;;  %v4518_v46 = vadd.f32 %v13256_v58, %v4492_v14  ;;  %v4491_v18 = vadd.f32 %v13209_v6, %v4465_v27  ;;  %v13384_v6 = vstv %s9945_s24  ;;  %s9949_s24 = sld [smem:[#allocation4 + $0x4b]] }
 0xf54   : > { %v4885_v52 = vpop.permute.xlu0 %4884 }
 0xf55   : > { %v4896_v9 = vadd.f32 %v4885_v52, %v4870_v50  ;;  %v4544_v56 = vadd.f32 %v13274_v22, %v4518_v46  ;;  %v4517_v14 = vadd.f32 %v13220_v55, %v4491_v18  ;;  %v4467_v22 = vmul.f32 %v13293_v8, %v13037_v30 }
 0xf56   : > { %v13356_v12 = vpop.permute.xlu1 %4796 }
 0xf57   : > { %v4570_v17 = vadd.f32 %v13284_v24, %v4544_v56  ;;  %v4543_v33 = vadd.f32 %v13240_v11, %v4517_v14  ;;  %v4579_v11 = vmul.f32 %v13311_v35, %v13054_v36 }
 0xf58   : > { %v4911_v37 = vpop.permute.xlu0 %4910 }
 0xf59   : > { %v4922_v3 = vadd.f32 %v4911_v37, %v4896_v9  ;;  %v4569_v46 = vadd.f32 %v13260_v20, %v4543_v33 }
 0xf5a   : > { %v13365_v31 = vpop.permute.xlu1 %4798 }
 0xf5b   : > { %v4936_v53 = vadd.f32 %v4932_v10, %v4922_v3  ;;  %v4580_v3 = vmul.f32 %v13311_v35, %v13070_v13  ;;  %v4583_v56 = vadd.f32 %v4579_v11, %v4569_v46 }
 0xf5c   : > { %v4951_v48 = vpop.permute.xlu0 %4950 }
 0xf5d   : > { %v4962_v50 = vadd.f32 %v4951_v48, %v4936_v53  ;;  %v4584_v37 = vadd.f32 %v4580_v3, %v4570_v17 }
 0xf5e   : > { %v13371_v52 = vpop.permute.xlu1 %4836 }
 0xf5f   : > { %v4988_v62 = vadd.f32 %v13226_v34, %v4962_v50  ;;  %v4493_v34 = vadd.f32 %v13246_v45, %v4467_v22  ;;  %v4610_v55 = vadd.f32 %v13298_v57, %v4584_v37  ;;  %v4609_v57 = vadd.f32 %v13278_v15, %v4583_v56 }
 0xf60   : > { %v5003_v9 = vpop.permute.xlu0 %5002 }
 0xf61   : > { %v5014_v10 = vadd.f32 %v5003_v9, %v4988_v62  ;;  %v4519_v48 = vadd.f32 %v13266_v4, %v4493_v34  ;;  %v4636_v30 = vadd.f32 %v13313_v49, %v4610_v55  ;;  %v4581_v4 = vmul.f32 %v13311_v35, %v13077_v47 }
 0xf62   : > { %v13379_v58 = vpop.permute.xlu1 %4838  ;;  %v4635_v62 = vadd.f32 %v13286_v44, %v4609_v57  ;;  %v4697_v44 = vmul.f32 %v13328_v32, %v13096_v39 }
 0xf63   : > { %v4662_v50 = vadd.f32 %v13321_v28, %v4636_v30  ;;  %v4698_v28 = vmul.f32 %v13328_v32, %v13112_v38 }
 0xf64   : > { %v5029_v24 = vpop.permute.xlu0 %5028  ;;  %v4661_v3 = vadd.f32 %v13302_v0, %v4635_v62 }
 0xf65   : > { %v5040_v53 = vadd.f32 %v5029_v24, %v5014_v10  ;;  %v4688_v17 = vadd.f32 %v13326_v61, %v4662_v50 }
 0xf66   : > { %v4863_v13 = vpop.permute.xlu1 %4862  ;;  %v4687_v47 = vadd.f32 %v13315_v40, %v4661_v3 }
 0xf67   : > { %v5046_v8 = vadd.f32 %v13384_v6, %v5040_v53  ;;  %v4702_v15 = vadd.f32 %v4698_v28, %v4688_v17 }
 0xf68   : > { %v4537_v27 = vpop.permute.xlu0 %4536  ;;  %v4701_v24 = vadd.f32 %v4697_v44, %v4687_v47 }
 0xf69   : > { %v5050_v45 = vmax.f32 %v5046_v8, 0.0  ;;  %v4545_v18 = vadd.f32 %v4537_v27, %v4519_v48 }
 0xf6a   : > { %v4865_v20 = vpop.permute.xlu1 %4864 }
 0xf6b   : > { %v4571_v36 = vadd.f32 %v13291_v43, %v4545_v18  ;;  %5058 = vrot.lane.b32.xlu1 %v5050_v45, %s11114_s20  ;;  %v4728_v43 = vadd.f32 %v13336_v26, %v4702_v15  ;;  %v4727_v26 = vadd.f32 %v13323_v25, %v4701_v24 }
 0xf6c   : > { %v4655_v49 = vpop.permute.xlu0 %4654 }
 0xf6d   : > { %v4585_v9 = vadd.f32 %v4581_v4, %v4571_v36  ;;  %v4754_v38 = vadd.f32 %v13343_v23, %v4728_v43  ;;  %v4753_v39 = vadd.f32 %v13330_v60, %v4727_v26  ;;  %v4816_v23 = vmul.f32 %v13345_v41, %v13157_v5  ;;  %v16537_v43 = vld [vmem:[#allocation12_spill] sm:$0xff] }
 0xf6e   : > { %v4889_v14 = vpop.permute.xlu1 %4888  ;;  %v4817_v60 = vmul.f32 %v13345_v41, %v13166_v63 }
 0xf6f   : > { %v4611_v61 = vadd.f32 %v13308_v16, %v4585_v9  ;;  %v4780_v0 = vadd.f32 %v13353_v7, %v4754_v38  ;;  %v4699_v16 = vmul.f32 %v13328_v32, %v13119_v19  ;;  %v4779_v48 = vadd.f32 %v13338_v29, %v4753_v39 }
 0xf70   : > { %v4773_v33 = vpop.permute.xlu0 %4772 }
 0xf71   : > { %v4637_v35 = vadd.f32 %v13319_v1, %v4611_v61  ;;  %v4806_v1 = vadd.f32 %v13356_v12, %v4780_v0  ;;  %v4805_v25 = vadd.f32 %v13347_v42, %v4779_v48 }
 0xf72   : > { %v4915_v22 = vpop.permute.xlu1 %4914 }
 0xf73   : > { %v4663_v37 = vadd.f32 %v4655_v49, %v4637_v35  ;;  %v4820_v19 = vadd.f32 %v4816_v23, %v4806_v1 }
 0xf74   : > { %v4835_v10 = vpop.permute.xlu0 %4834 }
 0xf75   : > { %v4689_v40 = vadd.f32 %v13332_v21, %v4663_v37  ;;  %v4846_v12 = vadd.f32 %v13371_v52, %v4820_v19  ;;  %v5085_v19 = vstv %s9947_s27  ;;  %s9952_s27 = sld [smem:[#allocation4 + $0x4e]] }
 0xf76   : > { %v4917_v34 = vpop.permute.xlu1 %4916 }
 0xf77   : > { %v4703_v46 = vadd.f32 %v4699_v16, %v4689_v40  ;;  %v4872_v8 = vadd.f32 %v4863_v13, %v4846_v12  ;;  %v16535_v13 = vld [vmem:[#allocation11_spill] sm:$0xff] }
 0xf78   : > { %v4861_v55 = vpop.permute.xlu0 %4860  ;;  %v4934_v17 = vmul.f32 %v13358_v54, %v16535_v13 }
 0xf79   : > { %v4729_v53 = vadd.f32 %v13340_v59, %v4703_v46  ;;  %v4815_v59 = vmul.f32 %v13345_v41, %v13202_v51  ;;  %v4898_v27 = vadd.f32 %v4889_v14, %v4872_v8  ;;  %v16536_v14 = vld [vmem:[#allocation13_spill] sm:$0xff] }
 0xf7a   : > { %v4955_v7 = vpop.permute.xlu1 %4954  ;;  %v4933_v3 = vmul.f32 %v13358_v54, %v16536_v14 }
 0xf7b   : > { %v4755_v21 = vadd.f32 %v13351_v2, %v4729_v53  ;;  %v4819_v2 = vadd.f32 %v4815_v59, %v4805_v25  ;;  %v4924_v45 = vadd.f32 %v4915_v22, %v4898_v27  ;;  %v5111_v25 = vstv %s9948_s14  ;;  %s9955_s14 = sld [smem:[#allocation4 + $0x51]] }
 0xf7c   : > { %v4887_v32 = vpop.permute.xlu0 %4886 }
 0xf7d   : > { %v4781_v11 = vadd.f32 %v4773_v33, %v4755_v21  ;;  %v4845_v42 = vadd.f32 %v4835_v10, %v4819_v2 }
 0xf7e   : > { %v4957_v30 = vpop.permute.xlu1 %4956 }
 0xf7f   : > { %v4807_v5 = vadd.f32 %v13365_v31, %v4781_v11  ;;  %v4871_v57 = vadd.f32 %v4861_v55, %v4845_v42  ;;  %v4938_v31 = vadd.f32 %v4934_v17, %v4924_v45  ;;  %v5177_v11 = vstv %s9951_s15  ;;  %s9957_s15 = sld [smem:[#allocation4 + $0x53]] }
 0xf80   : > { %v4913_v29 = vpop.permute.xlu0 %4912 }
 0xf81   : > { %v4821_v56 = vadd.f32 %v4817_v60, %v4807_v5  ;;  %v4897_v36 = vadd.f32 %v4887_v32, %v4871_v57  ;;  %v4964_v51 = vadd.f32 %v4955_v7, %v4938_v31  ;;  %v5243_v5 = vstv %s9954_s18  ;;  %s9958_s18 = sld [smem:[#allocation4 + $0x54]] }
 0xf82   : > { %v4981_v50 = vpop.permute.xlu1 %4980 }
 0xf83   : > { %v4847_v52 = vadd.f32 %v13379_v58, %v4821_v56  ;;  %v4923_v41 = vadd.f32 %v4913_v29, %v4897_v36  ;;  %v4990_v9 = vadd.f32 %v4981_v50, %v4964_v51  ;;  %v5217_v51 = vstv %s9953_s19  ;;  %s9968_s19 = sld [smem:[#allocation4 + $0x5e]] }
 0xf84   : > { %v4891_v18 = vpop.permute.xlu0 %4890 }
 0xf85   : > { %v4873_v63 = vadd.f32 %v4865_v20, %v4847_v52  ;;  %v4937_v61 = vadd.f32 %v4933_v3, %v4923_v41  ;;  %v4935_v20 = vmul.f32 %v13358_v54, %v16537_v43  ;;  %v5151_v52 = vstv %s9950_s23  ;;  %s9963_s23 = sld [smem:[#allocation4 + $0x59]] }
 0xf86   : > { %v4983_v4 = vpop.permute.xlu1 %4982 }
 0xf87   : > { %v4899_v62 = vadd.f32 %v4891_v18, %v4873_v63 }
 0xf88   : > { %v4953_v49 = vpop.permute.xlu0 %4952 }
 0xf89   : > { %v4925_v58 = vadd.f32 %v4917_v34, %v4899_v62  ;;  %v4963_v35 = vadd.f32 %v4953_v49, %v4937_v61 }
 0xf8a   : > { %v5007_v28 = vpop.permute.xlu1 %5006 }
 0xf8b   : > { %v5016_v33 = vadd.f32 %v5007_v28, %v4990_v9  ;;  %v4939_v38 = vadd.f32 %v4935_v20, %v4925_v58 }
 0xf8c   : > { %v4979_v15 = vpop.permute.xlu0 %4978 }
 0xf8d   : > { %v4989_v37 = vadd.f32 %v4979_v15, %v4963_v35  ;;  %v4965_v40 = vadd.f32 %v4957_v30, %v4939_v38 }
 0xf8e   : > { %v5033_v47 = vpop.permute.xlu1 %5032 }
 0xf8f   : > { %v5042_v22 = vadd.f32 %v5033_v47, %v5016_v33  ;;  %v4991_v46 = vadd.f32 %v4983_v4, %v4965_v40 }
 0xf90   : > { %v5005_v44 = vpop.permute.xlu0 %5004 }
 0xf91   : > { %v5048_v10 = vadd.f32 %v13384_v6, %v5042_v22  ;;  %v5015_v0 = vadd.f32 %v5005_v44, %v4989_v37 }
 0xf93   : > { %v5052_v24 = vmax.f32 %v5048_v10, 0.0  ;;  %v5079_v10 = vstv %s9946_s22  ;;  %s9973_s22 = sld [smem:[#allocation4 + $0x63]] }
 0xf94   : > { %v5031_v16 = vpop.permute.xlu0 %5030 }
 0xf95   : > { %v5041_v26 = vadd.f32 %v5031_v16, %v5015_v0  ;;  %5062 = vrot.lane.b32.xlu1 %v5052_v24, %s11114_s20 }
 0xf97   : > { %v5047_v34 = vadd.f32 %v13384_v6, %v5041_v26 }
 0xf98   : > { %v5009_v1 = vpop.permute.xlu0 %5008 }
 0xf99   : > { %v5051_v55 = vmax.f32 %v5047_v34, 0.0  ;;  %v5017_v54 = vadd.f32 %v5009_v1, %v4991_v46  ;;  %v5141_v1 = vstv %s9949_s24  ;;  %s9978_s24 = sld [smem:[#allocation4 + $0x68]] }
 0xf9b   : > { %5060 = vrot.lane.b32.xlu0 %v5051_v55, %s11114_s20 }
 0xf9c   : > { %v5035_v39 = vpop.permute.xlu0 %5034 }
 0xf9d   : > { %v5043_v23 = vadd.f32 %v5035_v39, %v5017_v54 }
 0xf9f   : > { %v5049_v53 = vadd.f32 %v13384_v6, %v5043_v23 }
 0xfa1   : > { %v5053_v7 = vmax.f32 %v5049_v53, 0.0 }
 0xfa3   : > { %5064 = vrot.lane.b32.xlu0 %v5053_v7, %s11114_s20 }
 0xfdd   : > { %v5059_v48 = vpop.permute.xlu1 %5058 }
 0xfde   : > { %5070 = vst.msk [vmem:[#allocation3 + $0x2] sm:$0xff] %vm3612_vm12, %v5059_v48 }
 0xfe5   : > { %v13445_v21 = vld [vmem:[#allocation3 + $0x1] sm:$0xff] }
 0xfe6   : > { %v5086_v32 = vmul.f32 %v5085_v19, %v13445_v21  ;;  %v5112_v12 = vmul.f32 %v5111_v25, %v13445_v21  ;;  %v13450_v6 = vld [vmem:[#allocation3 + $0x2] sm:$0xff]  ;;  %v5080_v16 = vmul.f32 %v5079_v10, %v13445_v21 }
 0xfe7   : > { %v5178_v30 = vmul.f32 %v5177_v11, %v13450_v6  ;;  %v5152_v18 = vmul.f32 %v5151_v52, %v13450_v6  ;;  %v5142_v55 = vmul.f32 %v5141_v1, %v13450_v6 }
 0xfe8   : > { %5094 = vrot.lane.b32.xlu1 %v5086_v32, %s11117_s29  ;;  %v5207_v32 = vstv %s9952_s27  ;;  %s9959_s27 = sld [smem:[#allocation4 + $0x55]] }
 0xfec   : > { %5120 = vrot.lane.b32.xlu1 %v5112_v12, %s11116_s28 }
 0xff0   : > { %5186 = vrot.lane.b32.xlu1 %v5178_v30, %s11116_s28 }
0x1007   : > { %v5063_v8 = vpop.permute.xlu1 %5062 }
0x1008   : > { %5072 = vst.msk [vmem:[#allocation3 + $0x12] sm:$0xff] %vm3612_vm12, %v5063_v8 }
0x100d   : > { %v5061_v60 = vpop.permute.xlu0 %5060 }
0x100e   : > { %5071 = vst.msk [vmem:[#allocation3 + $0xa] sm:$0xff] %vm3612_vm12, %v5061_v60 }
0x100f   : > { %v13482_v31 = vld [vmem:[#allocation3 + $0x12] sm:$0xff] }
0x1010   : > { %v5154_v49 = vmul.f32 %v5151_v52, %v13482_v31  ;;  %v5180_v62 = vmul.f32 %v5177_v11, %v13482_v31 }
0x1015   : > { %v5065_v59 = vpop.permute.xlu0 %5064  ;;  %v13457_v29 = vld [vmem:[#allocation3 + $0x9] sm:$0xff]  ;;  %v13464_v50 = vld [vmem:[#allocation3 + $0x11] sm:$0xff] }
0x1016   : > { %v13459_v27 = vld [vmem:[#allocation3 + $0x3] sm:$0xff]  ;;  %5073 = vst.msk [vmem:[#allocation3 + $0x1a] sm:$0x7] %vm3616_vm13, %v5065_v59  ;;  %v5087_v56 = vmul.f32 %v5085_v19, %v13457_v29  ;;  %v5113_v45 = vmul.f32 %v5111_v25, %v13457_v29  ;;  %v5088_v42 = vmul.f32 %v5085_v19, %v13464_v50  ;;  %v5114_v57 = vmul.f32 %v5111_v25, %v13464_v50  ;;  %v13504_v61 = vld [vmem:[#allocation3 + $0xb] sm:$0xff] }
0x1017   : > { %v5244_v2 = vmul.f32 %v5243_v5, %v13459_v27  ;;  %v13474_v13 = vld [vmem:[#allocation3 + $0xa] sm:$0xff]  ;;  %v5218_v41 = vmul.f32 %v5217_v51, %v13459_v27  ;;  %v5219_v33 = vmul.f32 %v5217_v51, %v13504_v61  ;;  %v5245_v43 = vmul.f32 %v5243_v5, %v13504_v61 }
0x1018   : > { %5096 = vrot.lane.b32.xlu0 %v5087_v56, %s11117_s29  ;;  %v5153_v63 = vmul.f32 %v5151_v52, %v13474_v13  ;;  %v5179_v36 = vmul.f32 %v5177_v11, %v13474_v13  ;;  %v5081_v30 = vmul.f32 %v5079_v10, %v13457_v29  ;;  %v5208_v60 = vmul.f32 %v5207_v32, %v13459_v27 }
0x1019   : > { %5252 = vrot.lane.b32.xlu1 %v5244_v2, %s11116_s28 }
0x101c   : > { %5122 = vrot.lane.b32.xlu0 %v5113_v45, %s11116_s28 }
0x101d   : > { %5098 = vrot.lane.b32.xlu1 %v5088_v42, %s11117_s29  ;;  %v13476_v17 = vld [vmem:[#allocation3 + $0x19] sm:$0x7] }
0x101e   : > { %v5115_v4 = vmul.f32 %v5111_v25, %v13476_v17  ;;  %v13492_v28 = vld [vmem:[#allocation3 + $0x1a] sm:$0x7]  ;;  %v5089_v9 = vmul.f32 %v5085_v19, %v13476_v17  ;;  %v5082_v19 = vmul.f32 %v5079_v10, %v13464_v50 }
0x101f   : > { %v5181_v14 = vmul.f32 %v5177_v11, %v13492_v28  ;;  %v13498_v3 = vld [vmem:[#allocation3 + $0x13] sm:$0xff]  ;;  %v5155_v15 = vmul.f32 %v5151_v52, %v13492_v28  ;;  %v13513_v20 = vld [vmem:[#allocation3 + $0x1b] sm:$0x7]  ;;  %v5269_v52 = vstv %s9955_s14  ;;  %s9960_s14 = sld [smem:[#allocation4 + $0x56]] }
0x1020   : > { %5160 = vrot.lane.b32.xlu0 %v5152_v18, %s11117_s29  ;;  %v5220_v58 = vmul.f32 %v5217_v51, %v13498_v3  ;;  %v5246_v47 = vmul.f32 %v5243_v5, %v13498_v3  ;;  %v5221_v35 = vmul.f32 %v5217_v51, %v13513_v20  ;;  %v5247_v22 = vmul.f32 %v5243_v5, %v13513_v20 }
0x1021   : > { %5124 = vrot.lane.b32.xlu1 %v5114_v57, %s11116_s28  ;;  %v5144_v5 = vmul.f32 %v5141_v1, %v13482_v31  ;;  %v5143_v18 = vmul.f32 %v5141_v1, %v13474_v13  ;;  %v5145_v31 = vmul.f32 %v5141_v1, %v13492_v28 }
0x1024   : > { %5162 = vrot.lane.b32.xlu0 %v5153_v63, %s11117_s29 }
0x1025   : > { %5126 = vrot.lane.b32.xlu1 %v5115_v4, %s11116_s28  ;;  %v5083_v4 = vmul.f32 %v5079_v10, %v13476_v17 }
0x1028   : > { %5188 = vrot.lane.b32.xlu0 %v5179_v36, %s11116_s28 }
0x1029   : > { %5164 = vrot.lane.b32.xlu1 %v5154_v49, %s11117_s29 }
0x102c   : > { %5226 = vrot.lane.b32.xlu0 %v5218_v41, %s11117_s29 }
0x102d   : > { %5190 = vrot.lane.b32.xlu1 %v5180_v62, %s11116_s28 }
0x1030   : > { %5100 = vrot.lane.b32.xlu0 %v5089_v9, %s11117_s29 }
0x1031   : > { %5192 = vrot.lane.b32.xlu1 %v5181_v14, %s11116_s28 }
0x1034   : > { %5166 = vrot.lane.b32.xlu0 %v5155_v15, %s11117_s29  ;;  %v5210_v15 = vmul.f32 %v5207_v32, %v13498_v3 }
0x1035   : > { %5230 = vrot.lane.b32.xlu1 %v5220_v58, %s11117_s29 }
0x1038   : > { %5228 = vrot.lane.b32.xlu0 %v5219_v33, %s11117_s29 }
0x1039   : > { %5256 = vrot.lane.b32.xlu1 %v5246_v47, %s11116_s28 }
0x103c   : > { %5254 = vrot.lane.b32.xlu0 %v5245_v43, %s11116_s28 }
0x1040   : > { %5232 = vrot.lane.b32.xlu0 %v5221_v35, %s11117_s29  ;;  %v5209_v35 = vmul.f32 %v5207_v32, %v13504_v61 }
0x1044   : > { %5258 = vrot.lane.b32.xlu0 %v5247_v22, %s11116_s28 }
0x105a   : > { %v5095_v44 = vpop.permute.xlu1 %5094 }
0x105b   : > { %v5106_v40 = vadd.f32 %v5095_v44, %v5080_v16 }
0x105e   : > { %v5121_v38 = vpop.permute.xlu1 %5120 }
0x105f   : > { %v5132_v46 = vadd.f32 %v5121_v38, %v5106_v40 }
0x1061   : > { %v5146_v23 = vadd.f32 %v5142_v55, %v5132_v46 }
0x1062   : > { %v5187_v37 = vpop.permute.xlu1 %5186 }
0x108a   : > { %v5097_v24 = vpop.permute.xlu0 %5096 }
0x108b   : > { %v5253_v0 = vpop.permute.xlu1 %5252  ;;  %v5107_v6 = vadd.f32 %v5097_v24, %v5081_v30  ;;  %v13545_v30 = vstv %s9963_s23  ;;  %s9965_s23 = sld [smem:[#allocation4 + $0x5b]] }
0x108e   : > { %v5123_v26 = vpop.permute.xlu0 %5122 }
0x108f   : > { %v5099_v34 = vpop.permute.xlu1 %5098  ;;  %v5133_v45 = vadd.f32 %v5123_v26, %v5107_v6  ;;  %v13553_v6 = vstv %s9968_s19  ;;  %s9967_s19 = sld [smem:[#allocation4 + $0x5d]] }
0x1090   : > { %v5108_v25 = vadd.f32 %v5099_v34, %v5082_v19  ;;  %v5211_v34 = vmul.f32 %v5207_v32, %v13513_v20 }
0x1091   : > { %v5147_v49 = vadd.f32 %v5143_v18, %v5133_v45  ;;  %v13562_v45 = vstv %s9973_s22  ;;  %v13572_v18 = vstv %s9978_s24  ;;  %s9969_s22 = sld [smem:[#allocation4 + $0x5f]] }
0x1092   : > { %v5161_v54 = vpop.permute.xlu0 %5160  ;;  %s9970_s24 = sld [smem:[#allocation4 + $0x60]] }
0x1093   : > { %v5125_v39 = vpop.permute.xlu1 %5124  ;;  %v5172_v53 = vadd.f32 %v5161_v54, %v5146_v23 }
0x1094   : > { %v5134_v8 = vadd.f32 %v5125_v39, %v5108_v25  ;;  %v5335_v25 = vstv %s9958_s18  ;;  %s9964_s18 = sld [smem:[#allocation4 + $0x5a]] }
0x1095   : > { %v5198_v21 = vadd.f32 %v5187_v37, %v5172_v53 }
0x1096   : > { %v5163_v7 = vpop.permute.xlu0 %5162  ;;  %v5148_v42 = vadd.f32 %v5144_v5, %v5134_v8 }
0x1097   : > { %v5127_v48 = vpop.permute.xlu1 %5126  ;;  %v5212_v59 = vadd.f32 %v5208_v60, %v5198_v21  ;;  %v5173_v62 = vadd.f32 %v5163_v7, %v5147_v49 }
0x109a   : > { %v5189_v12 = vpop.permute.xlu0 %5188 }
0x109b   : > { %v5165_v11 = vpop.permute.xlu1 %5164  ;;  %v5199_v13 = vadd.f32 %v5189_v12, %v5173_v62 }
0x109c   : > { %v5174_v57 = vadd.f32 %v5165_v11, %v5148_v42 }
0x109d   : > { %v5213_v37 = vadd.f32 %v5209_v35, %v5199_v13 }
0x109e   : > { %v5227_v56 = vpop.permute.xlu0 %5226 }
0x109f   : > { %v5191_v2 = vpop.permute.xlu1 %5190  ;;  %v5238_v50 = vadd.f32 %v5227_v56, %v5212_v59 }
0x10a0   : > { %v5200_v51 = vadd.f32 %v5191_v2, %v5174_v57 }
0x10a1   : > { %v5264_v63 = vadd.f32 %v5253_v0, %v5238_v50 }
0x10a2   : > { %v5101_v29 = vpop.permute.xlu0 %5100  ;;  %v5214_v43 = vadd.f32 %v5210_v15, %v5200_v51 }
0x10a3   : > { %v5193_v36 = vpop.permute.xlu1 %5192  ;;  %v5270_v27 = vadd.f32 %v5269_v52, %v5264_v63  ;;  %v5109_v41 = vadd.f32 %v5101_v29, %v5083_v4  ;;  %v13576_v63 = vstv %s9959_s27  ;;  %s9972_s27 = sld [smem:[#allocation4 + $0x62]] }
0x10a5   : > { %v5274_v9 = vmax.f32 %v5270_v27, 0.0  ;;  %v5135_v14 = vadd.f32 %v5127_v48, %v5109_v41  ;;  %v5309_v48 = vstv %s9957_s15  ;;  %v5387_v41 = vstv %s9960_s14  ;;  %s9962_s15 = sld [smem:[#allocation4 + $0x58]] }
0x10a6   : > { %v5167_v58 = vpop.permute.xlu0 %5166  ;;  %s9974_s14 = sld [smem:[#allocation4 + $0x64]] }
0x10a7   : > { %v5231_v33 = vpop.permute.xlu1 %5230  ;;  %v5149_v47 = vadd.f32 %v5145_v31, %v5135_v14  ;;  %5282 = vrot.lane.b32.xlu1 %v5274_v9, %s11115_s21 }
0x10a8   : > { %v5240_v17 = vadd.f32 %v5231_v33, %v5214_v43 }
0x10a9   : > { %v5175_v38 = vadd.f32 %v5167_v58, %v5149_v47 }
0x10aa   : > { %v5229_v22 = vpop.permute.xlu0 %5228 }
0x10ab   : > { %v5257_v44 = vpop.permute.xlu1 %5256  ;;  %v5239_v10 = vadd.f32 %v5229_v22, %v5213_v37  ;;  %v5201_v16 = vadd.f32 %v5193_v36, %v5175_v38  ;;  %v5427_v15 = vstv %s9962_s15  ;;  %v13617_v22 = vstv %s9964_s18  ;;  %s9975_s15 = sld [smem:[#allocation4 + $0x65]] }
0x10ac   : > { %v5266_v28 = vadd.f32 %v5257_v44, %v5240_v17  ;;  %s9977_s18 = sld [smem:[#allocation4 + $0x67]] }
0x10ad   : > { %v5215_v55 = vadd.f32 %v5211_v34, %v5201_v16  ;;  %v5545_v34 = vstv %s9967_s19  ;;  %s9980_s19 = sld [smem:[#allocation4 + $0x6a]] }
0x10ae   : > { %v5272_v24 = vadd.f32 %v5269_v52, %v5266_v28  ;;  %v5255_v0 = vpop.permute.xlu0 %5254 }
0x10af   : > { %v5265_v40 = vadd.f32 %v5255_v0, %v5239_v10  ;;  %v5505_v0 = vstv %s9965_s23  ;;  %s9979_s23 = sld [smem:[#allocation4 + $0x69]] }
0x10b0   : > { %v5276_v3 = vmax.f32 %v5272_v24, 0.0 }
0x10b1   : > { %v5271_v26 = vadd.f32 %v5269_v52, %v5265_v40 }
0x10b2   : > { %5286 = vrot.lane.b32.xlu1 %v5276_v3, %s11115_s21  ;;  %v5233_v1 = vpop.permute.xlu0 %5232 }
0x10b3   : > { %v5275_v46 = vmax.f32 %v5271_v26, 0.0  ;;  %v5241_v61 = vadd.f32 %v5233_v1, %v5215_v55 }
0x10b5   : > { %5284 = vrot.lane.b32.xlu0 %v5275_v46, %s11115_s21 }
0x10b6   : > { %v5259_v54 = vpop.permute.xlu0 %5258 }
0x10b7   : > { %v5267_v39 = vadd.f32 %v5259_v54, %v5241_v61 }
0x10b9   : > { %v5273_v23 = vadd.f32 %v5269_v52, %v5267_v39 }
0x10bb   : > { %v5277_v53 = vmax.f32 %v5273_v23, 0.0 }
0x10bd   : > { %5288 = vrot.lane.b32.xlu0 %v5277_v53, %s11115_s21  ;;  %v13659_v53 = vstv %s9969_s22  ;;  %s9956_s22 = sld [smem:[#allocation4 + $0x52]] }
0x1119   : > { %v5283_v7 = vpop.permute.xlu1 %5282 }
0x111a   : > { %5294 = vst.msk [vmem:[#allocation3 + $0x2] sm:$0xff] %vm3612_vm12, %v5283_v7 }
0x1121   : > { %v13537_v20 = vld [vmem:[#allocation3] sm:$0xff] }
0x1122   : > { %v5310_v19 = vmul.f32 %v5309_v48, %v13537_v20  ;;  %v5336_v21 = vmul.f32 %v5335_v25, %v13537_v20  ;;  %v13543_v11 = vld [vmem:[#allocation3 + $0x1] sm:$0xff]  ;;  %v5362_v36 = vmul.f32 %v13576_v63, %v13537_v20  ;;  %v5388_v62 = vmul.f32 %v5387_v41, %v13537_v20 }
0x1123   : > { %v5454_v8 = vmul.f32 %v13545_v30, %v13543_v11  ;;  %v13551_v60 = vld [vmem:[#allocation3 + $0x2] sm:$0xff]  ;;  %v5428_v33 = vmul.f32 %v5427_v15, %v13543_v11  ;;  %v5480_v37 = vmul.f32 %v13617_v22, %v13543_v11  ;;  %v5506_v3 = vmul.f32 %v5505_v0, %v13543_v11 }
0x1124   : > { %v5287_v32 = vpop.permute.xlu1 %5286  ;;  %5318 = vrot.lane.b32.xlu1 %v5310_v19, %s11117_s29  ;;  %v5572_v5 = vmul.f32 %v13553_v6, %v13551_v60  ;;  %v5546_v46 = vmul.f32 %v5545_v34, %v13551_v60  ;;  %v5598_v19 = vmul.f32 %v13659_v53, %v13551_v60 }
0x1125   : > { %5296 = vst.msk [vmem:[#allocation3 + $0x12] sm:$0xff] %vm3612_vm12, %v5287_v32 }
0x1127   : > { %v5285_v12 = vpop.permute.xlu0 %5284 }
0x1128   : > { %5295 = vst.msk [vmem:[#allocation3 + $0xa] sm:$0xff] %vm3612_vm12, %v5285_v12  ;;  %5344 = vrot.lane.b32.xlu1 %v5336_v21, %s11116_s28  ;;  %v5623_v12 = vstv %s9970_s24  ;;  %s9961_s24 = sld [smem:[#allocation4 + $0x57]] }
0x112c   : > { %5462 = vrot.lane.b32.xlu1 %v5454_v8, %s11116_s28  ;;  %v5624_v8 = vmul.f32 %v5623_v12, %v13551_v60 }
0x112f   : > { %v5289_v59 = vpop.permute.xlu0 %5288  ;;  %v13558_v56 = vld [vmem:[#allocation3 + $0x8] sm:$0xff]  ;;  %v13581_v29 = vld [vmem:[#allocation3 + $0x10] sm:$0xff] }
0x1130   : > { %v13560_v2 = vld [vmem:[#allocation3 + $0x3] sm:$0xff]  ;;  %5297 = vst.msk [vmem:[#allocation3 + $0x1a] sm:$0x7] %vm3616_vm13, %v5289_v59  ;;  %5580 = vrot.lane.b32.xlu1 %v5572_v5, %s11116_s28  ;;  %v5311_v42 = vmul.f32 %v5309_v48, %v13558_v56  ;;  %v5337_v57 = vmul.f32 %v5335_v25, %v13558_v56  ;;  %v5312_v49 = vmul.f32 %v5309_v48, %v13581_v29  ;;  %v13621_v38 = vld [vmem:[#allocation3 + $0x11] sm:$0xff] }
0x1131   : > { %v5690_v50 = vmul.f32 %v13562_v45, %v13560_v2  ;;  %v13570_v52 = vld [vmem:[#allocation3 + $0x4] sm:$0xff]  ;;  %v5363_v51 = vmul.f32 %v13576_v63, %v13558_v56  ;;  %v5338_v9 = vmul.f32 %v5335_v25, %v13581_v29  ;;  %v5389_v14 = vmul.f32 %v5387_v41, %v13558_v56 }
0x1132   : > { %5320 = vrot.lane.b32.xlu0 %v5311_v42, %s11117_s29  ;;  %v5808_v4 = vmul.f32 %v13572_v18, %v13570_v52  ;;  %v13605_v13 = vld [vmem:[#allocation3 + $0x9] sm:$0xff]  ;;  %v5364_v47 = vmul.f32 %v13576_v63, %v13581_v29  ;;  %v5390_v17 = vmul.f32 %v5387_v41, %v13581_v29  ;;  %v5430_v28 = vmul.f32 %v5427_v15, %v13621_v38 }
0x1133   : > { %v5429_v43 = vmul.f32 %v5427_v15, %v13605_v13  ;;  %v5455_v35 = vmul.f32 %v13545_v30, %v13605_v13  ;;  %v5481_v24 = vmul.f32 %v13617_v22, %v13605_v13  ;;  %v5456_v40 = vmul.f32 %v13545_v30, %v13621_v38  ;;  %v13647_v55 = vld [vmem:[#allocation3 + $0xa] sm:$0xff] }
0x1134   : > { %5698 = vrot.lane.b32.xlu1 %v5690_v50, %s11116_s28  ;;  %v5507_v26 = vmul.f32 %v5505_v0, %v13605_v13  ;;  %v5482_v61 = vmul.f32 %v13617_v22, %v13621_v38  ;;  %v5547_v54 = vmul.f32 %v5545_v34, %v13647_v55  ;;  %v5508_v39 = vmul.f32 %v5505_v0, %v13621_v38 }
0x1135   : > { %v5573_v23 = vmul.f32 %v13553_v6, %v13647_v55  ;;  %v5599_v21 = vmul.f32 %v13659_v53, %v13647_v55  ;;  %v5625_v59 = vmul.f32 %v5623_v12, %v13647_v55  ;;  %v5663_v42 = vstv %s9972_s27  ;;  %s9966_s27 = sld [smem:[#allocation4 + $0x5c]] }
0x1136   : > { %5346 = vrot.lane.b32.xlu0 %v5337_v57, %s11116_s28  ;;  %v5664_v57 = vmul.f32 %v5663_v42, %v13560_v2 }
0x1137   : > { %v13588_v27 = vld [vmem:[#allocation3 + $0x18] sm:$0x7] }
0x1138   : > { %5816 = vrot.lane.b32.xlu1 %v5808_v4, %s11116_s28  ;;  %v5313_v31 = vmul.f32 %v5309_v48, %v13588_v27  ;;  %v5339_v58 = vmul.f32 %v5335_v25, %v13588_v27  ;;  %v5391_v44 = vmul.f32 %v5387_v41, %v13588_v27  ;;  %v13628_v10 = vld [vmem:[#allocation3 + $0x19] sm:$0x7]  ;;  %v13689_v4 = vstv %s9974_s14  ;;  %s9971_s14 = sld [smem:[#allocation4 + $0x61]] }
0x1139   : > { %v5431_v16 = vmul.f32 %v5427_v15, %v13628_v10  ;;  %v5457_v1 = vmul.f32 %v13545_v30, %v13628_v10  ;;  %v5509_v7 = vmul.f32 %v5505_v0, %v13628_v10  ;;  %v13663_v48 = vld [vmem:[#allocation3 + $0x12] sm:$0xff]  ;;  %v13670_v25 = vld [vmem:[#allocation3 + $0x1a] sm:$0x7]  ;;  %v13713_v15 = vstv %s9979_s23  ;;  %s9983_s23 = sld [smem:[#allocation4 + $0x6d]] }
0x113a   : > { %5370 = vrot.lane.b32.xlu0 %v5362_v36, %s11119_s30  ;;  %v5548_v32 = vmul.f32 %v5545_v34, %v13663_v48  ;;  %v5549_v30 = vmul.f32 %v5545_v34, %v13670_v25  ;;  %v5574_v5 = vmul.f32 %v13553_v6, %v13663_v48  ;;  %v5575_v50 = vmul.f32 %v13553_v6, %v13670_v25 }
0x113b   : > { %v5600_v36 = vmul.f32 %v13659_v53, %v13663_v48  ;;  %v5626_v6 = vmul.f32 %v5623_v12, %v13663_v48 }
0x113c   : > { %5322 = vrot.lane.b32.xlu1 %v5312_v49, %s11117_s29  ;;  %v5716_v49 = vmul.f32 %v13689_v4, %v13560_v2 }
0x113e   : > { %5372 = vrot.lane.b32.xlu0 %v5363_v51, %s11119_s30  ;;  %v13697_v51 = vstv %s9975_s15  ;;  %s9976_s15 = sld [smem:[#allocation4 + $0x66]] }
0x113f   : > { %v5742_v41 = vmul.f32 %v13697_v51, %v13560_v2 }
0x1140   : > { %5324 = vrot.lane.b32.xlu1 %v5313_v31, %s11117_s29  ;;  %v13704_v31 = vstv %s9977_s18  ;;  %s9981_s18 = sld [smem:[#allocation4 + $0x6b]] }
0x1142   : > { %5396 = vrot.lane.b32.xlu0 %v5388_v62, %s11120_s17  ;;  %v5627_v62 = vmul.f32 %v5623_v12, %v13670_v25 }
0x1144   : > { %5348 = vrot.lane.b32.xlu1 %v5338_v9, %s11116_s28  ;;  %v13708_v9 = vld [vmem:[#allocation3 + $0x13] sm:$0xff] }
0x1146   : > { %5398 = vrot.lane.b32.xlu0 %v5389_v14, %s11120_s17  ;;  %v5782_v14 = vmul.f32 %v13704_v31, %v13570_v52 }
0x1148   : > { %5350 = vrot.lane.b32.xlu1 %v5339_v58, %s11116_s28  ;;  %v5666_v58 = vmul.f32 %v5663_v42, %v13708_v9 }
0x114a   : > { %5436 = vrot.lane.b32.xlu0 %v5428_v33, %s11117_s29  ;;  %v13717_v33 = vld [vmem:[#allocation3 + $0x1b] sm:$0x7] }
0x114b   : > { %v5693_v0 = vmul.f32 %v13562_v45, %v13717_v33 }
0x114c   : > { %5374 = vrot.lane.b32.xlu1 %v5364_v47, %s11119_s30  ;;  %v5834_v47 = vmul.f32 %v13713_v15, %v13570_v52 }
0x114e   : > { %5438 = vrot.lane.b32.xlu0 %v5429_v43, %s11117_s29  ;;  %v13722_v43 = vstv %s9980_s19  ;;  %s9984_s19 = sld [smem:[#allocation4 + $0x6e]] }
0x1150   : > { %5400 = vrot.lane.b32.xlu1 %v5390_v17, %s11120_s17  ;;  %v5667_v17 = vmul.f32 %v5663_v42, %v13717_v33 }
0x1152   : > { %5464 = vrot.lane.b32.xlu0 %v5455_v35, %s11116_s28  ;;  %v5860_v35 = vmul.f32 %v13722_v43, %v13570_v52 }
0x1154   : > { %5402 = vrot.lane.b32.xlu1 %v5391_v44, %s11120_s17 }
0x1156   : > { %5488 = vrot.lane.b32.xlu0 %v5480_v37, %s11119_s30  ;;  %v5692_v37 = vmul.f32 %v13562_v45, %v13708_v9 }
0x1158   : > { %5440 = vrot.lane.b32.xlu1 %v5430_v28, %s11117_s29  ;;  %v5365_v28 = vmul.f32 %v13576_v63, %v13588_v27  ;;  %v5601_v63 = vmul.f32 %v13659_v53, %v13670_v25 }
0x115a   : > { %5490 = vrot.lane.b32.xlu0 %v5481_v24, %s11119_s30 }
0x115c   : > { %5442 = vrot.lane.b32.xlu1 %v5431_v16, %s11117_s29  ;;  %v5483_v16 = vmul.f32 %v13617_v22, %v13628_v10  ;;  %v5744_v22 = vmul.f32 %v13697_v51, %v13708_v9 }
0x115e   : > { %5514 = vrot.lane.b32.xlu0 %v5506_v3, %s11120_s17 }
0x1160   : > { %5466 = vrot.lane.b32.xlu1 %v5456_v40, %s11116_s28  ;;  %v5718_v40 = vmul.f32 %v13689_v4, %v13708_v9 }
0x1162   : > { %5516 = vrot.lane.b32.xlu0 %v5507_v26, %s11120_s17  ;;  %v13753_v26 = vld [vmem:[#allocation3 + $0xb] sm:$0xff] }
0x1163   : > { %v5691_v53 = vmul.f32 %v13562_v45, %v13753_v26  ;;  %v5717_v12 = vmul.f32 %v13689_v4, %v13753_v26 }
0x1164   : > { %5468 = vrot.lane.b32.xlu1 %v5457_v1, %s11116_s28 }
0x1166   : > { %5554 = vrot.lane.b32.xlu0 %v5546_v46, %s11117_s29  ;;  %v5665_v46 = vmul.f32 %v5663_v42, %v13753_v26 }
0x1168   : > { %5492 = vrot.lane.b32.xlu1 %v5482_v61, %s11119_s30 }
0x116a   : > { %5556 = vrot.lane.b32.xlu0 %v5547_v54, %s11117_s29  ;;  %v5745_v54 = vmul.f32 %v13697_v51, %v13717_v33 }
0x116c   : > { %5518 = vrot.lane.b32.xlu1 %v5508_v39, %s11120_s17  ;;  %v13769_v39 = vld [vmem:[#allocation3 + $0x14] sm:$0xff] }
0x116d   : > { %16538 = vst [vmem:[#allocation11_spill] sm:$0xff] %v13769_v39  ;;  %v5810_v42 = vmul.f32 %v13572_v18, %v13769_v39 }
0x116e   : > { %5582 = vrot.lane.b32.xlu0 %v5573_v23, %s11116_s28 }
0x1170   : > { %5520 = vrot.lane.b32.xlu1 %v5509_v7, %s11120_s17 }
0x1172   : > { %5606 = vrot.lane.b32.xlu0 %v5598_v19, %s11119_s30  ;;  %v5784_v19 = vmul.f32 %v13704_v31, %v13769_v39 }
0x1174   : > { %5558 = vrot.lane.b32.xlu1 %v5548_v32, %s11117_s29  ;;  %v13781_v32 = vld [vmem:[#allocation3 + $0x1c] sm:$0x7] }
0x1175   : > { %16539 = vst [vmem:[#allocation13_spill] sm:$0xff] %v13781_v32  ;;  %v5785_v45 = vmul.f32 %v13704_v31, %v13781_v32 }
0x1176   : > { %5608 = vrot.lane.b32.xlu0 %v5599_v21, %s11119_s30 }
0x1178   : > { %5560 = vrot.lane.b32.xlu1 %v5549_v30, %s11117_s29 }
0x117a   : > { %5632 = vrot.lane.b32.xlu0 %v5624_v8, %s11120_s17 }
0x117c   : > { %5584 = vrot.lane.b32.xlu1 %v5574_v5, %s11116_s28  ;;  %v5743_v5 = vmul.f32 %v13697_v51, %v13753_v26  ;;  %v5811_v51 = vmul.f32 %v13572_v18, %v13781_v32 }
0x117e   : > { %5634 = vrot.lane.b32.xlu0 %v5625_v59, %s11120_s17 }
0x1180   : > { %5586 = vrot.lane.b32.xlu1 %v5575_v50, %s11116_s28 }
0x1182   : > { %5672 = vrot.lane.b32.xlu0 %v5664_v57, %s11117_s29  ;;  %v5719_v57 = vmul.f32 %v13689_v4, %v13717_v33  ;;  %v5836_v4 = vmul.f32 %v13713_v15, %v13769_v39 }
0x1184   : > { %5610 = vrot.lane.b32.xlu1 %v5600_v36, %s11119_s30  ;;  %v13804_v36 = vld [vmem:[#allocation3 + $0xc] sm:$0xff] }
0x1185   : > { %16540 = vst [vmem:[#allocation12_spill] sm:$0xff] %v13804_v36 }
0x1186   : > { %5724 = vrot.lane.b32.xlu0 %v5716_v49, %s11119_s30 }
0x1188   : > { %5636 = vrot.lane.b32.xlu1 %v5626_v6, %s11120_s17 }
0x118a   : > { %5750 = vrot.lane.b32.xlu0 %v5742_v41, %s11120_s17  ;;  %v5783_v41 = vmul.f32 %v13704_v31, %v13804_v36  ;;  %v5862_v31 = vmul.f32 %v13722_v43, %v13769_v39 }
0x118c   : > { %5638 = vrot.lane.b32.xlu1 %v5627_v62, %s11120_s17 }
0x118e   : > { %5790 = vrot.lane.b32.xlu0 %v5782_v14, %s11117_s29 }
0x1190   : > { %5676 = vrot.lane.b32.xlu1 %v5666_v58, %s11117_s29  ;;  %v5809_v58 = vmul.f32 %v13572_v18, %v13804_v36 }
0x1192   : > { %5842 = vrot.lane.b32.xlu0 %v5834_v47, %s11119_s30 }
0x1194   : > { %5678 = vrot.lane.b32.xlu1 %v5667_v17, %s11117_s29 }
0x1196   : > { %5868 = vrot.lane.b32.xlu0 %v5860_v35, %s11120_s17  ;;  %v13730_v44 = vpop.permute.xlu1 %5318  ;;  %v5835_v35 = vmul.f32 %v13713_v15, %v13804_v36 }
0x1198   : > { %5702 = vrot.lane.b32.xlu1 %v5692_v37, %s11116_s28 }
0x119a   : > { %5376 = vrot.lane.b32.xlu0 %v5365_v28, %s11119_s30  ;;  %v13738_v24 = vpop.permute.xlu1 %5344  ;;  %v5861_v28 = vmul.f32 %v13722_v43, %v13804_v36 }
0x119c   : > { %5704 = vrot.lane.b32.xlu1 %v5693_v0, %s11116_s28 }
0x119e   : > { %5494 = vrot.lane.b32.xlu0 %v5483_v16, %s11119_s30  ;;  %v13746_v3 = vpop.permute.xlu1 %5462  ;;  %v13844_v16 = vstv %s9956_s22  ;;  %s9989_s22 = sld [smem:[#allocation4 + $0x73]] }
0x11a0   : > { %5728 = vrot.lane.b32.xlu1 %v5718_v40, %s11119_s30 }
0x11a2   : > { %5612 = vrot.lane.b32.xlu0 %v5601_v63, %s11119_s30  ;;  %v13756_v34 = vpop.permute.xlu1 %5580  ;;  %v5837_v63 = vmul.f32 %v13713_v15, %v13781_v32 }
0x11a4   : > { %v13760_v1 = vpop.permute.xlu0 %5320  ;;  %5754 = vrot.lane.b32.xlu1 %v5744_v22, %s11120_s17 }
0x11a6   : > { %5674 = vrot.lane.b32.xlu0 %v5665_v46, %s11117_s29  ;;  %v13765_v61 = vpop.permute.xlu1 %5698  ;;  %v5304_v46 = vmul.f32 %v13844_v16, %v13537_v20 }
0x11a8   : > { %v13771_v23 = vpop.permute.xlu0 %5346  ;;  %5756 = vrot.lane.b32.xlu1 %v5745_v54, %s11120_s17 }
0x11aa   : > { %5700 = vrot.lane.b32.xlu0 %v5691_v53, %s11116_s28  ;;  %v13777_v7 = vpop.permute.xlu1 %5816  ;;  %v5863_v53 = vmul.f32 %v13722_v43, %v13781_v32 }
0x11ac   : > { %v5371_v21 = vpop.permute.xlu0 %5370  ;;  %5794 = vrot.lane.b32.xlu1 %v5784_v19, %s11117_s29  ;;  %v5330_v19 = vadd.f32 %v13730_v44, %v5304_v46 }
0x11ae   : > { %5726 = vrot.lane.b32.xlu0 %v5717_v12, %s11119_s30  ;;  %v13787_v30 = vpop.permute.xlu1 %5322  ;;  %v5356_v15 = vadd.f32 %v13738_v24, %v5330_v19 }
0x11b0   : > { %v13791_v8 = vpop.permute.xlu0 %5372  ;;  %5796 = vrot.lane.b32.xlu1 %v5785_v45, %s11117_s29 }
0x11b2   : > { %5752 = vrot.lane.b32.xlu0 %v5743_v5, %s11120_s17  ;;  %v13797_v59 = vpop.permute.xlu1 %5324  ;;  %v5382_v5 = vadd.f32 %v5371_v21, %v5356_v15 }
0x11b4   : > { %v5397_v50 = vpop.permute.xlu0 %5396  ;;  %5820 = vrot.lane.b32.xlu1 %v5810_v42, %s11116_s28  ;;  %v13862_v42 = vstv %s9961_s24  ;;  %s9994_s24 = sld [smem:[#allocation4 + $0x78]] }
0x11b5   : > { %v5408_v20 = vadd.f32 %v5397_v50, %v5382_v5  ;;  %v5418_v43 = vmul.f32 %v13862_v42, %v13543_v11 }
0x11b6   : > { %5730 = vrot.lane.b32.xlu0 %v5719_v57, %s11119_s30  ;;  %v13807_v49 = vpop.permute.xlu1 %5348 }
0x11b7   : > { %v5422_v44 = vadd.f32 %v5418_v43, %v5408_v20 }
0x11b8   : > { %v13811_v6 = vpop.permute.xlu0 %5398  ;;  %5822 = vrot.lane.b32.xlu1 %v5811_v51, %s11116_s28 }
0x11ba   : > { %5792 = vrot.lane.b32.xlu0 %v5783_v41, %s11117_s29  ;;  %v13817_v62 = vpop.permute.xlu1 %5350 }
0x11bc   : > { %v5437_v14 = vpop.permute.xlu0 %5436  ;;  %5846 = vrot.lane.b32.xlu1 %v5836_v4, %s11119_s30 }
0x11be   : > { %5818 = vrot.lane.b32.xlu0 %v5809_v58, %s11116_s28  ;;  %v13825_v47 = vpop.permute.xlu1 %5374  ;;  %v5448_v58 = vadd.f32 %v5437_v14, %v5422_v44 }
0x11c0   : > { %v13829_v17 = vpop.permute.xlu0 %5438  ;;  %5872 = vrot.lane.b32.xlu1 %v5862_v31, %s11120_s17  ;;  %v5474_v21 = vadd.f32 %v13746_v3, %v5448_v58  ;;  %v13896_v58 = vstv %s9971_s14  ;;  %s10004_s14 = sld [smem:[#allocation4 + $0x82]] }
0x11c2   : > { %5844 = vrot.lane.b32.xlu0 %v5835_v35, %s11119_s30  ;;  %v13835_v37 = vpop.permute.xlu1 %5400 }
0x11c4   : > { %v13837_v18 = vpop.permute.xlu0 %5464 }
0x11c6   : > { %5870 = vrot.lane.b32.xlu0 %v5861_v28, %s11120_s17  ;;  %v13842_v0 = vpop.permute.xlu1 %5402  ;;  %v13879_v28 = vstv %s9966_s27  ;;  %s9999_s27 = sld [smem:[#allocation4 + $0x7d]] }
0x11c8   : > { %v5489_v40 = vpop.permute.xlu0 %5488 }
0x11c9   : > { %v5500_v50 = vadd.f32 %v5489_v40, %v5474_v21 }
0x11ca   : > { %5848 = vrot.lane.b32.xlu0 %v5837_v63, %s11119_s30  ;;  %v13849_v22 = vpop.permute.xlu1 %5440 }
0x11cc   : > { %v13853_v54 = vpop.permute.xlu0 %5490 }
0x11ce   : > { %5874 = vrot.lane.b32.xlu0 %v5863_v53, %s11120_s17  ;;  %v13859_v12 = vpop.permute.xlu1 %5442  ;;  %v5536_v53 = vmul.f32 %v13879_v28, %v13551_v60 }
0x11d0   : > { %v5515_v45 = vpop.permute.xlu0 %5514 }
0x11d1   : > { %v5526_v11 = vadd.f32 %v5515_v45, %v5500_v50  ;;  %v5654_v50 = vmul.f32 %v13896_v58, %v13560_v2 }
0x11d2   : > { %v13864_v57 = vpop.permute.xlu1 %5466 }
0x11d3   : > { %v5540_v19 = vadd.f32 %v5536_v53, %v5526_v11 }
0x11d4   : > { %v13866_v51 = vpop.permute.xlu0 %5516 }
0x11d6   : > { %v13870_v41 = vpop.permute.xlu1 %5468 }
0x11d8   : > { %v5555_v4 = vpop.permute.xlu0 %5554 }
0x11d9   : > { %v5566_v5 = vadd.f32 %v5555_v4, %v5540_v19 }
0x11da   : > { %v13872_v31 = vpop.permute.xlu1 %5492 }
0x11db   : > { %v5592_v40 = vadd.f32 %v13756_v34, %v5566_v5 }
0x11dc   : > { %v13874_v24 = vpop.permute.xlu0 %5556 }
0x11de   : > { %v13877_v35 = vpop.permute.xlu1 %5518 }
0x11e0   : > { %v13881_v63 = vpop.permute.xlu0 %5582 }
0x11e2   : > { %v13883_v46 = vpop.permute.xlu1 %5520 }
0x11e4   : > { %v5607_v14 = vpop.permute.xlu0 %5606 }
0x11e5   : > { %v5618_v44 = vadd.f32 %v5607_v14, %v5592_v40  ;;  %v13909_v40 = vstv %s9976_s15  ;;  %s9985_s15 = sld [smem:[#allocation4 + $0x6f]] }
0x11e6   : > { %v13887_v15 = vpop.permute.xlu1 %5558 }
0x11e8   : > { %v13889_v3 = vpop.permute.xlu0 %5608 }
0x11ea   : > { %v13891_v20 = vpop.permute.xlu1 %5560 }
0x11ec   : > { %v5633_v43 = vpop.permute.xlu0 %5632 }
0x11ed   : > { %v5644_v21 = vadd.f32 %v5633_v43, %v5618_v44  ;;  %v5306_v43 = vmul.f32 %v13844_v16, %v13581_v29 }
0x11ee   : > { %v13894_v45 = vpop.permute.xlu1 %5584 }
0x11ef   : > { %v5658_v4 = vadd.f32 %v5654_v50, %v5644_v21  ;;  %v5332_v36 = vadd.f32 %v13787_v30, %v5306_v43  ;;  %v5772_v21 = vmul.f32 %v13909_v40, %v13570_v52 }
0x11f0   : > { %v13898_v60 = vpop.permute.xlu0 %5634 }
0x11f2   : > { %v13902_v11 = vpop.permute.xlu1 %5586 }
0x11f4   : > { %v5673_v53 = vpop.permute.xlu0 %5672 }
0x11f5   : > { %v5684_v19 = vadd.f32 %v5673_v53, %v5658_v4 }
0x11f6   : > { %v13904_v32 = vpop.permute.xlu1 %5610 }
0x11f7   : > { %v5710_v34 = vadd.f32 %v13765_v61, %v5684_v19  ;;  %v5358_v61 = vadd.f32 %v13807_v49, %v5332_v36  ;;  %v5305_v19 = vmul.f32 %v13844_v16, %v13558_v56 }
0x11f8   : > { %v5725_v14 = vpop.permute.xlu0 %5724 }
0x11f9   : > { %v5736_v44 = vadd.f32 %v5725_v14, %v5710_v34  ;;  %v5384_v29 = vadd.f32 %v13825_v47, %v5358_v61  ;;  %v5331_v30 = vadd.f32 %v13760_v1, %v5305_v19  ;;  %v5307_v47 = vmul.f32 %v13844_v16, %v13588_v27 }
0x11fa   : > { %v13907_v5 = vpop.permute.xlu1 %5636  ;;  %v13935_v1 = vstv %s9981_s18  ;;  %s9990_s18 = sld [smem:[#allocation4 + $0x74]] }
0x11fb   : > { %v5410_v43 = vadd.f32 %v13835_v37, %v5384_v29  ;;  %v5357_v36 = vadd.f32 %v13771_v23, %v5331_v30 }
0x11fc   : > { %v5751_v2 = vpop.permute.xlu0 %5750 }
0x11fd   : > { %v5762_v39 = vadd.f32 %v5751_v2, %v5736_v44  ;;  %v5383_v56 = vadd.f32 %v13791_v8, %v5357_v36  ;;  %v5419_v8 = vmul.f32 %v13862_v42, %v13605_v13 }
0x11fe   : > { %v13916_v50 = vpop.permute.xlu1 %5638 }
0x11ff   : > { %v5776_v4 = vadd.f32 %v5772_v21, %v5762_v39  ;;  %v5420_v39 = vmul.f32 %v13862_v42, %v13621_v38  ;;  %v5409_v61 = vadd.f32 %v13811_v6, %v5383_v56 }
0x1200   : > { %v5791_v53 = vpop.permute.xlu0 %5790 }
0x1201   : > { %v5802_v34 = vadd.f32 %v5791_v53, %v5776_v4  ;;  %v5424_v2 = vadd.f32 %v5420_v39, %v5410_v43  ;;  %v5423_v29 = vadd.f32 %v5419_v8, %v5409_v61 }
0x1202   : > { %v13922_v14 = vpop.permute.xlu1 %5676 }
0x1203   : > { %v5828_v52 = vadd.f32 %v13777_v7, %v5802_v34  ;;  %v5333_v7 = vadd.f32 %v13797_v59, %v5307_v47  ;;  %v5450_v23 = vadd.f32 %v13849_v22, %v5424_v2  ;;  %v5449_v22 = vadd.f32 %v13829_v17, %v5423_v29 }
0x1204   : > { %v5843_v44 = vpop.permute.xlu0 %5842 }
0x1205   : > { %v5854_v21 = vadd.f32 %v5843_v44, %v5828_v52  ;;  %v5359_v53 = vadd.f32 %v13817_v62, %v5333_v7  ;;  %v5476_v27 = vadd.f32 %v13864_v57, %v5450_v23  ;;  %v5421_v62 = vmul.f32 %v13862_v42, %v13628_v10 }
0x1206   : > { %v13930_v49 = vpop.permute.xlu1 %5678  ;;  %v5475_v52 = vadd.f32 %v13837_v18, %v5449_v22  ;;  %v5537_v18 = vmul.f32 %v13879_v28, %v13647_v55 }
0x1207   : > { %v5502_v34 = vadd.f32 %v13872_v31, %v5476_v27  ;;  %v5538_v31 = vmul.f32 %v13879_v28, %v13663_v48 }
0x1208   : > { %v5869_v37 = vpop.permute.xlu0 %5868  ;;  %v5501_v39 = vadd.f32 %v13853_v54, %v5475_v52 }
0x1209   : > { %v5880_v4 = vadd.f32 %v5869_v37, %v5854_v21  ;;  %v5528_v43 = vadd.f32 %v13877_v35, %v5502_v34 }
0x120a   : > { %v5703_v38 = vpop.permute.xlu1 %5702  ;;  %v5527_v10 = vadd.f32 %v13866_v51, %v5501_v39 }
0x120b   : > { %v5886_v16 = vadd.f32 %v13935_v1, %v5880_v4  ;;  %v5542_v17 = vadd.f32 %v5538_v31, %v5528_v43 }
0x120c   : > { %v5377_v19 = vpop.permute.xlu0 %5376  ;;  %v5541_v37 = vadd.f32 %v5537_v18, %v5527_v10 }
0x120d   : > { %v5890_v59 = vmax.f32 %v5886_v16, 0.0  ;;  %v5385_v30 = vadd.f32 %v5377_v19, %v5359_v53 }
0x120e   : > { %v5705_v6 = vpop.permute.xlu1 %5704 }
0x120f   : > { %v5411_v13 = vadd.f32 %v13842_v0, %v5385_v30  ;;  %5898 = vrot.lane.b32.xlu1 %v5890_v59, %s11115_s21  ;;  %v5568_v0 = vadd.f32 %v13887_v15, %v5542_v17  ;;  %v5567_v15 = vadd.f32 %v13874_v24, %v5541_v37 }
0x1210   : > { %v5495_v57 = vpop.permute.xlu0 %5494 }
0x1211   : > { %v5425_v44 = vadd.f32 %v5421_v62, %v5411_v13  ;;  %v5594_v48 = vadd.f32 %v13894_v45, %v5568_v0  ;;  %v5593_v55 = vadd.f32 %v13881_v63, %v5567_v15  ;;  %v5656_v45 = vmul.f32 %v13896_v58, %v13708_v9  ;;  %v16543_v0 = vld [vmem:[#allocation13_spill] sm:$0xff] }
0x1212   : > { %v5729_v36 = vpop.permute.xlu1 %5728  ;;  %v5657_v63 = vmul.f32 %v13896_v58, %v13717_v33 }
0x1213   : > { %v5451_v35 = vadd.f32 %v13859_v12, %v5425_v44  ;;  %v5620_v54 = vadd.f32 %v13904_v32, %v5594_v48  ;;  %v5539_v12 = vmul.f32 %v13879_v28, %v13670_v25  ;;  %v5619_v53 = vadd.f32 %v13889_v3, %v5593_v55 }
0x1214   : > { %v5613_v56 = vpop.permute.xlu0 %5612 }
0x1215   : > { %v5477_v42 = vadd.f32 %v13870_v41, %v5451_v35  ;;  %v5646_v41 = vadd.f32 %v13907_v5, %v5620_v54  ;;  %v5645_v24 = vadd.f32 %v13898_v60, %v5619_v53 }
0x1216   : > { %v5755_v47 = vpop.permute.xlu1 %5754 }
0x1217   : > { %v5503_v2 = vadd.f32 %v5495_v57, %v5477_v42  ;;  %v5660_v25 = vadd.f32 %v5656_v45, %v5646_v41 }
0x1218   : > { %v5675_v21 = vpop.permute.xlu0 %5674 }
0x1219   : > { %v5529_v51 = vadd.f32 %v13883_v46, %v5503_v2  ;;  %v5686_v5 = vadd.f32 %v13922_v14, %v5660_v25  ;;  %v16544_v25 = vld [vmem:[#allocation7_spill] sm:$0xff] }
0x121a   : > { %v5757_v7 = vpop.permute.xlu1 %5756 }
0x121b   : > { %v5543_v61 = vadd.f32 %v5539_v12, %v5529_v51  ;;  %v5712_v16 = vadd.f32 %v5703_v38, %v5686_v5  ;;  %v16541_v38 = vld [vmem:[#allocation11_spill] sm:$0xff]  ;;  %v16546_v5 = vld [vmem:[#allocation8_spill] sm:$0xff] }
0x121c   : > { %v5701_v23 = vpop.permute.xlu0 %5700  ;;  %v5774_v43 = vmul.f32 %v13909_v40, %v16541_v38  ;;  %v14015_v38 = vstv %s9989_s22  ;;  %s9991_s22 = sld [smem:[#allocation4 + $0x75]] }
0x121d   : > { %v5569_v4 = vadd.f32 %v13891_v20, %v5543_v61  ;;  %v5655_v20 = vmul.f32 %v13896_v58, %v13753_v26  ;;  %v5738_v19 = vadd.f32 %v5729_v36, %v5712_v16  ;;  %v16542_v36 = vld [vmem:[#allocation12_spill] sm:$0xff] }
0x121e   : > { %v5795_v32 = vpop.permute.xlu1 %5794  ;;  %v5773_v39 = vmul.f32 %v13909_v40, %v16542_v36 }
0x121f   : > { %v5595_v28 = vadd.f32 %v13902_v11, %v5569_v4  ;;  %v5659_v11 = vadd.f32 %v5655_v20, %v5645_v24  ;;  %v5764_v59 = vadd.f32 %v5755_v47, %v5738_v19 }
0x1220   : > { %v5727_v46 = vpop.permute.xlu0 %5726 }
0x1221   : > { %v5621_v8 = vadd.f32 %v5613_v56, %v5595_v28  ;;  %v5685_v60 = vadd.f32 %v5675_v21, %v5659_v11  ;;  %v16545_v28 = vmax.f32 %v16544_v25, 0.0 }
0x1222   : > { %v5797_v27 = vpop.permute.xlu1 %5796 }
0x1223   : > { %v5647_v9 = vadd.f32 %v13916_v50, %v5621_v8  ;;  %v5711_v22 = vadd.f32 %v5701_v23, %v5685_v60  ;;  %v5778_v50 = vadd.f32 %v5774_v43, %v5764_v59  ;;  %v16547_v8 = vmax.f32 %v16546_v5, 0.0 }
0x1224   : > { %v5753_v3 = vpop.permute.xlu0 %5752  ;;  %v6141_v5 = vstv %s9991_s22  ;;  %s10005_s22 = sld [smem:[#allocation4 + $0x83]] }
0x1225   : > { %v5661_v29 = vadd.f32 %v5657_v63, %v5647_v9  ;;  %v5737_v13 = vadd.f32 %v5727_v46, %v5711_v22  ;;  %v5804_v26 = vadd.f32 %v5795_v32, %v5778_v50  ;;  %v16548_v63 = vld [vmem:[#allocation9_spill] sm:$0xff] }
0x1226   : > { %v5821_v34 = vpop.permute.xlu1 %5820  ;;  %v16549_v9 = vmax.f32 %v16548_v63, 0.0 }
0x1227   : > { %v5687_v14 = vadd.f32 %v13930_v49, %v5661_v29  ;;  %v5763_v58 = vadd.f32 %v5753_v3, %v5737_v13  ;;  %v5830_v44 = vadd.f32 %v5821_v34, %v5804_v26  ;;  %v16550_v3 = vld [vmem:[#allocation10_spill] sm:$0xff]  ;;  %v5945_v34 = vstv %s9983_s23  ;;  %s9986_s23 = sld [smem:[#allocation4 + $0x70]] }
0x1228   : > { %v5731_v30 = vpop.permute.xlu0 %5730  ;;  %v16551_v19 = vmax.f32 %v16550_v3, 0.0  ;;  %v14030_v26 = vstv %s9999_s27  ;;  %s9995_s27 = sld [smem:[#allocation4 + $0x79]] }
0x1229   : > { %v5713_v33 = vadd.f32 %v5705_v6, %v5687_v14  ;;  %v5777_v35 = vadd.f32 %v5773_v39, %v5763_v58  ;;  %v5775_v6 = vmul.f32 %v13909_v40, %v16543_v0  ;;  %v5971_v14 = vstv %s9984_s19  ;;  %s9988_s19 = sld [smem:[#allocation4 + $0x72]] }
0x122a   : > { %v5823_v62 = vpop.permute.xlu1 %5822 }
0x122b   : > { %v5739_v52 = vadd.f32 %v5731_v30, %v5713_v33 }
0x122c   : > { %v5793_v57 = vpop.permute.xlu0 %5792 }
0x122d   : > { %v5765_v49 = vadd.f32 %v5757_v7, %v5739_v52  ;;  %v5803_v42 = vadd.f32 %v5793_v57, %v5777_v35 }
0x122e   : > { %v5847_v31 = vpop.permute.xlu1 %5846 }
0x122f   : > { %v5856_v56 = vadd.f32 %v5847_v31, %v5830_v44  ;;  %v5779_v48 = vadd.f32 %v5775_v6, %v5765_v49 }
0x1230   : > { %v5819_v17 = vpop.permute.xlu0 %5818 }
0x1231   : > { %v5829_v2 = vadd.f32 %v5819_v17, %v5803_v42  ;;  %v5805_v51 = vadd.f32 %v5797_v27, %v5779_v48  ;;  %v14042_v17 = vstv %s10004_s14  ;;  %s9996_s14 = sld [smem:[#allocation4 + $0x7a]] }
0x1232   : > { %v5873_v10 = vpop.permute.xlu1 %5872 }
0x1233   : > { %v5882_v47 = vadd.f32 %v5873_v10, %v5856_v56  ;;  %v5831_v61 = vadd.f32 %v5823_v62, %v5805_v51  ;;  %v14022_v62 = vstv %s9994_s24  ;;  %v5997_v56 = vstv %s9985_s15  ;;  %s9993_s24 = sld [smem:[#allocation4 + $0x77]] }
0x1234   : > { %v5845_v18 = vpop.permute.xlu0 %5844  ;;  %s9998_s15 = sld [smem:[#allocation4 + $0x7c]] }
0x1235   : > { %v5888_v21 = vadd.f32 %v13935_v1, %v5882_v47  ;;  %v5855_v54 = vadd.f32 %v5845_v18, %v5829_v2  ;;  %v6115_v18 = vstv %s9990_s18  ;;  %s10000_s18 = sld [smem:[#allocation4 + $0x7e]] }
0x1237   : > { %v5892_v37 = vmax.f32 %v5888_v21, 0.0 }
0x1238   : > { %v5871_v12 = vpop.permute.xlu0 %5870 }
0x1239   : > { %v5881_v15 = vadd.f32 %v5871_v12, %v5855_v54  ;;  %5902 = vrot.lane.b32.xlu1 %v5892_v37, %s11115_s21  ;;  %v6023_v54 = vstv %s9986_s23  ;;  %s10001_s23 = sld [smem:[#allocation4 + $0x7f]] }
0x123b   : > { %v5887_v7 = vadd.f32 %v13935_v1, %v5881_v15 }
0x123c   : > { %v5849_v41 = vpop.permute.xlu0 %5848 }
0x123d   : > { %v5891_v23 = vmax.f32 %v5887_v7, 0.0  ;;  %v5857_v40 = vadd.f32 %v5849_v41, %v5831_v61  ;;  %v6063_v41 = vstv %s9988_s19  ;;  %s10003_s19 = sld [smem:[#allocation4 + $0x81]] }
0x123f   : > { %5900 = vrot.lane.b32.xlu0 %v5891_v23, %s11115_s21 }
0x1240   : > { %v5875_v55 = vpop.permute.xlu0 %5874 }
0x1241   : > { %v5883_v45 = vadd.f32 %v5875_v55, %v5857_v40 }
0x1243   : > { %v5889_v4 = vadd.f32 %v13935_v1, %v5883_v45 }
0x1245   : > { %v5893_v32 = vmax.f32 %v5889_v4, 0.0 }
0x1247   : > { %5904 = vrot.lane.b32.xlu0 %v5893_v32, %s11115_s21 }
0x1281   : > { %v5899_v53 = vpop.permute.xlu1 %5898 }
0x1282   : > { %v5910_v46 = vadd.f32 %v5899_v53, %v16545_v28 }
0x1284   : > { %5918 = vrot.lane.b32.xlu1 %v5910_v46, %s11115_s21 }
0x12ab   : > { %v5903_v24 = vpop.permute.xlu1 %5902 }
0x12ac   : > { %v5912_v27 = vadd.f32 %v5903_v24, %v16547_v8 }
0x12ae   : > { %5922 = vrot.lane.b32.xlu1 %v5912_v27, %s11115_s21 }
0x12b1   : > { %v5901_v16 = vpop.permute.xlu0 %5900 }
0x12b2   : > { %v5911_v20 = vadd.f32 %v5901_v16, %v16549_v9  ;;  %v6181_v9 = vstv %s9993_s24  ;;  %s10006_s24 = sld [smem:[#allocation4 + $0x84]] }
0x12b4   : > { %5920 = vrot.lane.b32.xlu0 %v5911_v20, %s11115_s21 }
0x12b9   : > { %v5905_v1 = vpop.permute.xlu0 %5904 }
0x12ba   : > { %v5913_v29 = vadd.f32 %v5905_v1, %v16551_v19 }
0x12bc   : > { %5924 = vrot.lane.b32.xlu0 %v5913_v29, %s11115_s21 }
0x12f6   : > { %v5919_v11 = vpop.permute.xlu1 %5918 }
0x12f7   : > { %5930 = vst.msk [vmem:[#allocation3 + $0x2] sm:$0xff] %vm3612_vm12, %v5919_v11 }
0x12fe   : > { %v14008_v59 = vld [vmem:[#allocation3] sm:$0xff] }
0x12ff   : > { %v5946_v60 = vmul.f32 %v5945_v34, %v14008_v59  ;;  %v5972_v30 = vmul.f32 %v5971_v14, %v14008_v59  ;;  %v14013_v22 = vld [vmem:[#allocation3 + $0x1] sm:$0xff]  ;;  %v5998_v0 = vmul.f32 %v5997_v56, %v14008_v59  ;;  %v6024_v12 = vmul.f32 %v6023_v54, %v14008_v59 }
0x1300   : > { %v6090_v43 = vmul.f32 %v14015_v38, %v14013_v22  ;;  %v14020_v33 = vld [vmem:[#allocation3 + $0x2] sm:$0xff]  ;;  %v6064_v61 = vmul.f32 %v6063_v41, %v14013_v22  ;;  %v6116_v25 = vmul.f32 %v6115_v18, %v14013_v22  ;;  %v6142_v8 = vmul.f32 %v6141_v5, %v14013_v22 }
0x1301   : > { %5954 = vrot.lane.b32.xlu1 %v5946_v60, %s11117_s29  ;;  %v6208_v50 = vmul.f32 %v14022_v62, %v14020_v33  ;;  %v6182_v20 = vmul.f32 %v6181_v9, %v14020_v33  ;;  %v14127_v60 = vstv %s9995_s27  ;;  %s9982_s27 = sld [smem:[#allocation4 + $0x6c]] }
0x1305   : > { %5980 = vrot.lane.b32.xlu1 %v5972_v30, %s11116_s28  ;;  %v6234_v30 = vmul.f32 %v14127_v60, %v14020_v33 }
0x1309   : > { %6098 = vrot.lane.b32.xlu1 %v6090_v43, %s11116_s28 }
0x130d   : > { %6216 = vrot.lane.b32.xlu1 %v6208_v50, %s11116_s28 }
0x1320   : > { %v5923_v13 = vpop.permute.xlu1 %5922 }
0x1321   : > { %5932 = vst.msk [vmem:[#allocation3 + $0x12] sm:$0xff] %vm3612_vm12, %v5923_v13 }
0x1326   : > { %v5921_v57 = vpop.permute.xlu0 %5920 }
0x1327   : > { %5931 = vst.msk [vmem:[#allocation3 + $0xa] sm:$0xff] %vm3612_vm12, %v5921_v57  ;;  %v6259_v57 = vstv %s9996_s14  ;;  %s9987_s14 = sld [smem:[#allocation4 + $0x71]] }
0x132e   : > { %v5925_v58 = vpop.permute.xlu0 %5924  ;;  %v14032_v52 = vld [vmem:[#allocation3 + $0x8] sm:$0xff]  ;;  %v14049_v10 = vld [vmem:[#allocation3 + $0x10] sm:$0xff] }
0x132f   : > { %v14034_v31 = vld [vmem:[#allocation3 + $0x3] sm:$0xff]  ;;  %5933 = vst.msk [vmem:[#allocation3 + $0x1a] sm:$0x7] %vm3616_vm13, %v5925_v58  ;;  %v5947_v44 = vmul.f32 %v5945_v34, %v14032_v52  ;;  %v5973_v49 = vmul.f32 %v5971_v14, %v14032_v52  ;;  %v5948_v6 = vmul.f32 %v5945_v34, %v14049_v10  ;;  %v5999_v21 = vmul.f32 %v5997_v56, %v14032_v52  ;;  %v14092_v53 = vld [vmem:[#allocation3 + $0x11] sm:$0xff] }
0x1330   : > { %v6326_v36 = vmul.f32 %v14030_v26, %v14034_v31  ;;  %v14040_v39 = vld [vmem:[#allocation3 + $0x4] sm:$0xff]  ;;  %v5974_v51 = vmul.f32 %v5971_v14, %v14049_v10  ;;  %v6025_v15 = vmul.f32 %v6023_v54, %v14032_v52  ;;  %v6000_v23 = vmul.f32 %v5997_v56, %v14049_v10 }
0x1331   : > { %5956 = vrot.lane.b32.xlu0 %v5947_v44, %s11117_s29  ;;  %v6444_v35 = vmul.f32 %v14042_v17, %v14040_v39  ;;  %v14081_v40 = vld [vmem:[#allocation3 + $0x9] sm:$0xff]  ;;  %v6026_v45 = vmul.f32 %v6023_v54, %v14049_v10  ;;  %v6066_v28 = vmul.f32 %v6063_v41, %v14092_v53  ;;  %v6092_v27 = vmul.f32 %v14015_v38, %v14092_v53 }
0x1332   : > { %6334 = vrot.lane.b32.xlu1 %v6326_v36, %s11116_s28  ;;  %v6065_v55 = vmul.f32 %v6063_v41, %v14081_v40  ;;  %v6091_v4 = vmul.f32 %v14015_v38, %v14081_v40  ;;  %v6117_v46 = vmul.f32 %v6115_v18, %v14081_v40  ;;  %v6143_v16 = vmul.f32 %v6141_v5, %v14081_v40  ;;  %v14116_v3 = vld [vmem:[#allocation3 + $0xa] sm:$0xff] }
0x1333   : > { %v6118_v1 = vmul.f32 %v6115_v18, %v14092_v53  ;;  %v6183_v19 = vmul.f32 %v6181_v9, %v14116_v3  ;;  %v6144_v29 = vmul.f32 %v6141_v5, %v14092_v53  ;;  %v6209_v11 = vmul.f32 %v14022_v62, %v14116_v3 }
0x1334   : > { %v6235_v50 = vmul.f32 %v14127_v60, %v14116_v3  ;;  %v6260_v58 = vmul.f32 %v6259_v57, %v14020_v33  ;;  %v6261_v36 = vmul.f32 %v6259_v57, %v14116_v3 }
0x1335   : > { %5982 = vrot.lane.b32.xlu0 %v5973_v49, %s11116_s28 }
0x1336   : > { %6452 = vrot.lane.b32.xlu1 %v6444_v35, %s11116_s28  ;;  %v14055_v42 = vld [vmem:[#allocation3 + $0x18] sm:$0x7]  ;;  %v6299_v35 = vstv %s9998_s15  ;;  %s9992_s15 = sld [smem:[#allocation4 + $0x76]] }
0x1337   : > { %v14057_v47 = vld [vmem:[#allocation3 + $0x19] sm:$0x7]  ;;  %v14062_v48 = vmul.f32 %v5997_v56, %v14055_v42  ;;  %v5949_v37 = vmul.f32 %v5945_v34, %v14055_v42  ;;  %v5975_v7 = vmul.f32 %v5971_v14, %v14055_v42  ;;  %v6027_v32 = vmul.f32 %v6023_v54, %v14055_v42 }
0x1338   : > { %v14065_v2 = vmul.f32 %v6115_v18, %v14057_v47  ;;  %v6067_v24 = vmul.f32 %v6063_v41, %v14057_v47  ;;  %v6093_v63 = vmul.f32 %v14015_v38, %v14057_v47  ;;  %v6145_v34 = vmul.f32 %v6141_v5, %v14057_v47  ;;  %v14129_v14 = vld [vmem:[#allocation3 + $0x12] sm:$0xff]  ;;  %v14136_v43 = vld [vmem:[#allocation3 + $0x1a] sm:$0x7] }
0x1339   : > { %6006 = vrot.lane.b32.xlu0 %v5998_v0, %s11119_s30  ;;  %v6184_v38 = vmul.f32 %v6181_v9, %v14129_v14  ;;  %v6185_v13 = vmul.f32 %v6181_v9, %v14136_v43  ;;  %v6210_v44 = vmul.f32 %v14022_v62, %v14129_v14  ;;  %v6211_v49 = vmul.f32 %v14022_v62, %v14136_v43 }
0x133a   : > { %5958 = vrot.lane.b32.xlu1 %v5948_v6, %s11117_s29  ;;  %v6300_v56 = vmul.f32 %v6299_v35, %v14034_v31  ;;  %v6236_v0 = vmul.f32 %v14127_v60, %v14129_v14  ;;  %v14158_v6 = vstv %s10000_s18  ;;  %v6262_v18 = vmul.f32 %v6259_v57, %v14129_v14  ;;  %s9997_s18 = sld [smem:[#allocation4 + $0x7b]] }
0x133b   : > { %v6352_v62 = vmul.f32 %v14158_v6, %v14034_v31  ;;  %v6263_v54 = vmul.f32 %v6259_v57, %v14136_v43  ;;  %v14181_v41 = vstv %s10005_s22  ;;  %s10108_s22 = sld [smem:[#allocation4 + $0x98]] }
0x133d   : > { %6008 = vrot.lane.b32.xlu0 %v5999_v21, %s11119_s30  ;;  %v14165_v21 = vstv %s10001_s23  ;;  %s10002_s23 = sld [smem:[#allocation4 + $0x80]] }
0x133e   : > { %5960 = vrot.lane.b32.xlu1 %v5949_v37, %s11117_s29  ;;  %v6378_v37 = vmul.f32 %v14165_v21, %v14034_v31 }
0x1341   : > { %6032 = vrot.lane.b32.xlu0 %v6024_v12, %s11120_s17  ;;  %v14172_v12 = vstv %s10003_s19  ;;  %s10007_s19 = sld [smem:[#allocation4 + $0x85]] }
0x1342   : > { %5984 = vrot.lane.b32.xlu1 %v5974_v51, %s11116_s28  ;;  %v14174_v51 = vld [vmem:[#allocation3 + $0x13] sm:$0xff] }
0x1343   : > { %v6354_v5 = vmul.f32 %v14158_v6, %v14174_v51 }
0x1345   : > { %6034 = vrot.lane.b32.xlu0 %v6025_v15, %s11120_s17  ;;  %v6418_v15 = vmul.f32 %v14172_v12, %v14040_v39 }
0x1346   : > { %5986 = vrot.lane.b32.xlu1 %v5975_v7, %s11116_s28  ;;  %v6302_v7 = vmul.f32 %v6299_v35, %v14174_v51 }
0x1349   : > { %6072 = vrot.lane.b32.xlu0 %v6064_v61, %s11117_s29  ;;  %v14183_v61 = vld [vmem:[#allocation3 + $0x1b] sm:$0x7] }
0x134a   : > { %6010 = vrot.lane.b32.xlu1 %v6000_v23, %s11119_s30 }
0x134d   : > { %6074 = vrot.lane.b32.xlu0 %v6065_v55, %s11117_s29  ;;  %v6470_v55 = vmul.f32 %v14181_v41, %v14040_v39 }
0x134e   : > { %6036 = vrot.lane.b32.xlu1 %v6026_v45, %s11120_s17  ;;  %v6303_v45 = vmul.f32 %v6299_v35, %v14183_v61 }
0x1351   : > { %6100 = vrot.lane.b32.xlu0 %v6091_v4, %s11116_s28  ;;  %v14190_v4 = vstv %s10006_s24  ;;  %s10114_s24 = sld [smem:[#allocation4 + $0x9e]] }
0x1352   : > { %6038 = vrot.lane.b32.xlu1 %v6027_v32, %s11120_s17 }
0x1355   : > { %6124 = vrot.lane.b32.xlu0 %v6116_v25, %s11119_s30  ;;  %v6496_v25 = vmul.f32 %v14190_v4, %v14040_v39 }
0x1356   : > { %6076 = vrot.lane.b32.xlu1 %v6066_v28, %s11117_s29  ;;  %v6328_v28 = vmul.f32 %v14030_v26, %v14174_v51 }
0x1359   : > { %6126 = vrot.lane.b32.xlu0 %v6117_v46, %s11119_s30  ;;  %v6329_v46 = vmul.f32 %v14030_v26, %v14183_v61 }
0x135a   : > { %6078 = vrot.lane.b32.xlu1 %v6067_v24, %s11117_s29 }
0x135d   : > { %6150 = vrot.lane.b32.xlu0 %v6142_v8, %s11120_s17 }
0x135e   : > { %6102 = vrot.lane.b32.xlu1 %v6092_v27, %s11116_s28  ;;  %v6237_v27 = vmul.f32 %v14127_v60, %v14136_v43  ;;  %v14237_v60 = vld [vmem:[#allocation3 + $0x1c] sm:$0x7] }
0x1361   : > { %6152 = vrot.lane.b32.xlu0 %v6143_v16, %s11120_s17  ;;  %v6380_v16 = vmul.f32 %v14165_v21, %v14174_v51 }
0x1362   : > { %6104 = vrot.lane.b32.xlu1 %v6093_v63, %s11116_s28  ;;  %v14218_v63 = vld [vmem:[#allocation3 + $0xb] sm:$0xff] }
0x1365   : > { %6190 = vrot.lane.b32.xlu0 %v6182_v20, %s11117_s29  ;;  %v6381_v20 = vmul.f32 %v14165_v21, %v14183_v61 }
0x1366   : > { %6128 = vrot.lane.b32.xlu1 %v6118_v1, %s11119_s30  ;;  %v14227_v1 = vld [vmem:[#allocation3 + $0x14] sm:$0xff] }
0x1369   : > { %6192 = vrot.lane.b32.xlu0 %v6183_v19, %s11117_s29 }
0x136a   : > { %6154 = vrot.lane.b32.xlu1 %v6144_v29, %s11120_s17 }
0x136d   : > { %6218 = vrot.lane.b32.xlu0 %v6209_v11, %s11116_s28  ;;  %v6327_v11 = vmul.f32 %v14030_v26, %v14218_v63  ;;  %v6421_v26 = vmul.f32 %v14172_v12, %v14237_v60 }
0x136e   : > { %6156 = vrot.lane.b32.xlu1 %v6145_v34, %s11120_s17  ;;  %v6420_v34 = vmul.f32 %v14172_v12, %v14227_v1 }
0x1371   : > { %6242 = vrot.lane.b32.xlu0 %v6234_v30, %s11119_s30  ;;  %v14239_v30 = vstv %s9982_s27  ;;  %s10113_s27 = sld [smem:[#allocation4 + $0x9d]] }
0x1372   : > { %6194 = vrot.lane.b32.xlu1 %v6184_v38, %s11117_s29  ;;  %v5940_v57 = vmul.f32 %v14239_v30, %v14008_v59  ;;  %v14261_v59 = vstv %s9987_s14  ;;  %s10089_s14 = sld [smem:[#allocation4 + $0xae]] }
0x1373   : > { %v5955_v23 = vpop.permute.xlu1 %5954 }
0x1375   : > { %6244 = vrot.lane.b32.xlu0 %v6235_v50, %s11119_s30 }
0x1376   : > { %6196 = vrot.lane.b32.xlu1 %v6185_v13, %s11117_s29  ;;  %v6353_v13 = vmul.f32 %v14158_v6, %v14218_v63 }
0x1377   : > { %v5981_v32 = vpop.permute.xlu1 %5980 }
0x1379   : > { %6268 = vrot.lane.b32.xlu0 %v6260_v58, %s11120_s17  ;;  %v5966_v58 = vadd.f32 %v5955_v23, %v5940_v57 }
0x137a   : > { %6220 = vrot.lane.b32.xlu1 %v6210_v44, %s11116_s28 }
0x137b   : > { %v14202_v24 = vpop.permute.xlu1 %6098 }
0x137d   : > { %6270 = vrot.lane.b32.xlu0 %v6261_v36, %s11120_s17 }
0x137e   : > { %6222 = vrot.lane.b32.xlu1 %v6211_v49, %s11116_s28  ;;  %v6379_v49 = vmul.f32 %v14165_v21, %v14218_v63  ;;  %v6355_v21 = vmul.f32 %v14158_v6, %v14183_v61 }
0x137f   : > { %v14212_v8 = vpop.permute.xlu1 %6216 }
0x1381   : > { %6308 = vrot.lane.b32.xlu0 %v6300_v56, %s11117_s29  ;;  %v5992_v56 = vadd.f32 %v5981_v32, %v5966_v58  ;;  %v10016_v32 = vld [vmem:[%s16469_s12 + $0x38] sm:$0x7] }
0x1382   : > { %6246 = vrot.lane.b32.xlu1 %v6236_v0, %s11119_s30  ;;  %v5941_v0 = vmul.f32 %v14239_v30, %v14032_v52  ;;  %v6054_v52 = vmul.f32 %v14261_v59, %v14013_v22  ;;  %10888 = vmatprep.subr.msk.mxu1 %vm1940_vm7, %v10016_v32 }
0x1383   : > { %10889 = vmatpush3.msk.msra.mxu1 %vm1940_vm7, %v10016_v32 }
0x1385   : > { %6360 = vrot.lane.b32.xlu0 %v6352_v62, %s11119_s30 }
0x1386   : > { %6272 = vrot.lane.b32.xlu1 %v6262_v18, %s11120_s17 }
0x1389   : > { %6386 = vrot.lane.b32.xlu0 %v6378_v37, %s11120_s17 }
0x138a   : > { %6274 = vrot.lane.b32.xlu1 %v6263_v54, %s11120_s17 }
0x138d   : > { %6426 = vrot.lane.b32.xlu0 %v6418_v15, %s11117_s29  ;;  %v6447_v15 = vmul.f32 %v14042_v17, %v14237_v60 }
0x138e   : > { %6312 = vrot.lane.b32.xlu1 %v6302_v7, %s11117_s29 }
0x1391   : > { %6478 = vrot.lane.b32.xlu0 %v6470_v55, %s11119_s30  ;;  %v14267_v55 = vld [vmem:[#allocation3 + $0xc] sm:$0xff] }
0x1392   : > { %6314 = vrot.lane.b32.xlu1 %v6303_v45, %s11117_s29  ;;  %v6533_v45 = vld [vmem:[%s16469_s12 + $0x18] sm:$0x7]  ;;  %v6471_v58 = vmul.f32 %v14181_v41, %v14267_v55 }
0x1393   : > { %10874 = vmatprep.subr.msk.mxu0 %vm1940_vm7, %v6533_v45 }
0x1394   : > { %10875 = vmatpush3.msk.msra.mxu0 %vm1940_vm7, %v6533_v45  ;;  %v6499_v45 = vmul.f32 %v14190_v4, %v14237_v60 }
0x1395   : > { %6504 = vrot.lane.b32.xlu0 %v6496_v25, %s11120_s17 }
0x1396   : > { %6338 = vrot.lane.b32.xlu1 %v6328_v28, %s11116_s28 }
0x1399   : > { %6012 = vrot.lane.b32.xlu0 %v14062_v48, %s11119_s30 }
0x139a   : > { %6340 = vrot.lane.b32.xlu1 %v6329_v46, %s11116_s28  ;;  %v6419_v46 = vmul.f32 %v14172_v12, %v14267_v55 }
0x139d   : > { %6130 = vrot.lane.b32.xlu0 %v14065_v2, %s11119_s30  ;;  %v6301_v2 = vmul.f32 %v6299_v35, %v14218_v63  ;;  %v6446_v35 = vmul.f32 %v14042_v17, %v14227_v1 }
0x139e   : > { %6364 = vrot.lane.b32.xlu1 %v6354_v5, %s11119_s30  ;;  %v6472_v5 = vmul.f32 %v14181_v41, %v14227_v1 }
0x13a1   : > { %6248 = vrot.lane.b32.xlu0 %v6237_v27, %s11119_s30  ;;  %v5942_v27 = vmul.f32 %v14239_v30, %v14049_v10  ;;  %v6532_v10 = vld [vmem:[%s16469_s12 + $0x10] sm:$0xff] }
0x13a2   : > { %6390 = vrot.lane.b32.xlu1 %v6380_v16, %s11120_s17  ;;  %10876 = vmatprep.subr.mxu0 %v6532_v10 }
0x13a3   : > { %v5957_v48 = vpop.permute.xlu0 %5956  ;;  %10877 = vmatpush3.msra.mxu0 %v6532_v10 }
0x13a4   : > { %v14222_v9 = vpop.permute.xlu1 %6334  ;;  %v5967_v62 = vadd.f32 %v5957_v48, %v5941_v0  ;;  %v6055_v48 = vmul.f32 %v14261_v59, %v14081_v40  ;;  %v10015_v40 = vld [vmem:[%s16469_s12 + $0x30] sm:$0xff] }
0x13a5   : > { %6310 = vrot.lane.b32.xlu0 %v6301_v2, %s11117_s29  ;;  %10890 = vmatprep.subr.mxu1 %v10015_v40 }
0x13a6   : > { %6392 = vrot.lane.b32.xlu1 %v6381_v20, %s11120_s17  ;;  %10891 = vmatpush3.msra.mxu1 %v10015_v40 }
0x13a7   : > { %v5983_v19 = vpop.permute.xlu0 %5982 }
0x13a8   : > { %v14231_v29 = vpop.permute.xlu1 %6452  ;;  %v5993_v7 = vadd.f32 %v5983_v19, %v5967_v62 }
0x13a9   : > { %6336 = vrot.lane.b32.xlu0 %v6327_v11, %s11116_s28  ;;  %v6445_v11 = vmul.f32 %v14042_v17, %v14267_v55  ;;  %v6531_v17 = vld [vmem:[%s16469_s12 + $0x8] sm:$0xff] }
0x13aa   : > { %6430 = vrot.lane.b32.xlu1 %v6420_v34, %s11117_s29  ;;  %v6498_v34 = vmul.f32 %v14190_v4, %v14227_v1  ;;  %10878 = vmatprep.subr.mxu0 %v6531_v17 }
0x13ab   : > { %v6007_v38 = vpop.permute.xlu0 %6006  ;;  %10879 = vmatpush3.msra.mxu0 %v6531_v17 }
0x13ac   : > { %v5959_v50 = vpop.permute.xlu1 %5958  ;;  %v6018_v18 = vadd.f32 %v6007_v38, %v5992_v56  ;;  %v10013_v56 = vld [vmem:[%s16469_s12 + $0x20] sm:$0xff] }
0x13ad   : > { %6362 = vrot.lane.b32.xlu0 %v6353_v13, %s11119_s30  ;;  %v5968_v2 = vadd.f32 %v5959_v50, %v5942_v27  ;;  %v10014_v50 = vld [vmem:[%s16469_s12 + $0x28] sm:$0xff] }
0x13ae   : > { %6432 = vrot.lane.b32.xlu1 %v6421_v26, %s11117_s29  ;;  %10892 = vmatprep.subr.mxu1 %v10014_v50 }
0x13af   : > { %v6009_v44 = vpop.permute.xlu0 %6008  ;;  %10893 = vmatpush3.msra.mxu1 %v10014_v50 }
0x13b0   : > { %v14251_v36 = vpop.permute.xlu1 %5960  ;;  %v6019_v6 = vadd.f32 %v6009_v44, %v5993_v7  ;;  %v6530_v44 = vld [vmem:[%s16469_s12] sm:$0xff]  ;;  %10894 = vmatprep.subr.mxu1 %v10013_v56 }
0x13b1   : > { %6388 = vrot.lane.b32.xlu0 %v6379_v49, %s11120_s17  ;;  %10880 = vmatprep.subr.mxu0 %v6530_v44 }
0x13b2   : > { %6456 = vrot.lane.b32.xlu1 %v6446_v35, %s11116_s28  ;;  %v6056_v35 = vmul.f32 %v14261_v59, %v14092_v53  ;;  %10881 = vmatpush3.msra.mxu0 %v6530_v44  ;;  %v16552_v53 = vmov 0.0  }
0x13b3   : > { %v6033_v37 = vpop.permute.xlu0 %6032  ;;  %10895 = vmatpush3.msra.mxu1 %v10013_v56  ;;  %10902 = vmatprep.subr.mxu0 %v16552_v53 }
0x13b4   : > { %v5985_v54 = vpop.permute.xlu1 %5984  ;;  %v6044_v23 = vadd.f32 %v6033_v37, %v6018_v18  ;;  %v6497_v37 = vmul.f32 %v14190_v4, %v14267_v55  ;;  %10943 = vmatprep.subr.mxu1 %v16552_v53 }
0x13b5   : > { %6366 = vrot.lane.b32.xlu0 %v6355_v21, %s11119_s30  ;;  %v5994_v38 = vadd.f32 %v5985_v54, %v5968_v2 }
0x13b6   : > { %6458 = vrot.lane.b32.xlu1 %v6447_v15, %s11116_s28  ;;  %v6058_v25 = vadd.f32 %v6054_v52, %v6044_v23  ;;  %v6473_v15 = vmul.f32 %v14181_v41, %v14237_v60 }
0x13b7   : > { %v6035_v28 = vpop.permute.xlu0 %6034 }
0x13b8   : > { %v14281_v22 = vpop.permute.xlu1 %5986  ;;  %v6045_v16 = vadd.f32 %v6035_v28, %v6019_v6  ;;  %v14340_v6 = vstv %s9992_s15  ;;  %s10107_s15 = sld [smem:[#allocation4 + $0x97]] }
0x13b9   : > { %6428 = vrot.lane.b32.xlu0 %v6419_v46, %s11117_s29 }
0x13ba   : > { %6482 = vrot.lane.b32.xlu1 %v6472_v5, %s11119_s30  ;;  %v6059_v12 = vadd.f32 %v6055_v48, %v6045_v16  ;;  %v6172_v16 = vmul.f32 %v14340_v6, %v14020_v33  ;;  %v6174_v33 = vmul.f32 %v14340_v6, %v14129_v14 }
0x13bb   : > { %v6073_v20 = vpop.permute.xlu0 %6072 }
0x13bc   : > { %v6011_v19 = vpop.permute.xlu1 %6010  ;;  %v6084_v7 = vadd.f32 %v6073_v20, %v6058_v25 }
0x13bd   : > { %6454 = vrot.lane.b32.xlu0 %v6445_v11, %s11116_s28  ;;  %v6020_v13 = vadd.f32 %v6011_v19, %v5994_v38 }
0x13be   : > { %6508 = vrot.lane.b32.xlu1 %v6498_v34, %s11120_s17  ;;  %v6110_v32 = vadd.f32 %v14202_v24, %v6084_v7  ;;  %v6173_v24 = vmul.f32 %v14340_v6, %v14116_v3 }
0x13bf   : > { %v6075_v26 = vpop.permute.xlu0 %6074 }
0x13c0   : > { %v6037_v57 = vpop.permute.xlu1 %6036  ;;  %v6085_v28 = vadd.f32 %v6075_v26, %v6059_v12 }
0x13c1   : > { %v6046_v49 = vadd.f32 %v6037_v57, %v6020_v13  ;;  %6480 = vrot.lane.b32.xlu0 %v6471_v58, %s11119_s30 }
0x13c3   : > { %v6060_v0 = vadd.f32 %v6056_v35, %v6046_v49  ;;  %v6101_v62 = vpop.permute.xlu0 %6100 }
0x13c4   : > { %v14324_v18 = vpop.permute.xlu1 %6038  ;;  %v6111_v41 = vadd.f32 %v6101_v62, %v6085_v28  ;;  %v14355_v62 = vstv %s9997_s18  ;;  %s10109_s18 = sld [smem:[#allocation4 + $0x99]] }
0x13c5   : > { %6506 = vrot.lane.b32.xlu0 %v6497_v37, %s11120_s17 }
0x13c7   : > { %v6125_v54 = vpop.permute.xlu0 %6124 }
0x13c8   : > { %v6077_v21 = vpop.permute.xlu1 %6076  ;;  %v6136_v46 = vadd.f32 %v6125_v54, %v6110_v32 }
0x13c9   : > { %6484 = vrot.lane.b32.xlu0 %v6473_v15, %s11119_s30  ;;  %v6086_v11 = vadd.f32 %v6077_v21, %v6060_v0 }
0x13cb   : > { %v6127_v23 = vpop.permute.xlu0 %6126 }
0x13cc   : > { %v14334_v52 = vpop.permute.xlu1 %6078  ;;  %v6137_v48 = vadd.f32 %v6127_v23, %v6111_v41  ;;  %v6290_v23 = vmul.f32 %v14355_v62, %v14034_v31 }
0x13cd   : > { %6510 = vrot.lane.b32.xlu0 %v6499_v45, %s11120_s17 }
0x13cf   : > { %v6151_v5 = vpop.permute.xlu0 %6150 }
0x13d0   : > { %v6103_v27 = vpop.permute.xlu1 %6102  ;;  %v6162_v25 = vadd.f32 %v6151_v5, %v6136_v46 }
0x13d1   : > { %v6112_v10 = vadd.f32 %v6103_v27, %v6086_v11 }
0x13d2   : > { %v6176_v2 = vadd.f32 %v6172_v16, %v6162_v25 }
0x13d3   : > { %v6153_v20 = vpop.permute.xlu0 %6152 }
0x13d4   : > { %v14344_v19 = vpop.permute.xlu1 %6104  ;;  %v6163_v4 = vadd.f32 %v6153_v20, %v6137_v48 }
0x13d6   : > { %v6177_v34 = vadd.f32 %v6173_v24, %v6163_v4 }
0x13d7   : > { %v6191_v12 = vpop.permute.xlu0 %6190 }
0x13d8   : > { %v6129_v38 = vpop.permute.xlu1 %6128  ;;  %v6202_v3 = vadd.f32 %v6191_v12, %v6176_v2  ;;  %v14368_v12 = vstv %s10002_s23  ;;  %s10106_s23 = sld [smem:[#allocation4 + $0x96]] }
0x13d9   : > { %v6138_v40 = vadd.f32 %v6129_v38, %v6112_v10 }
0x13da   : > { %v6228_v0 = vadd.f32 %v14212_v8, %v6202_v3  ;;  %v6291_v8 = vmul.f32 %v14355_v62, %v14218_v63 }
0x13db   : > { %v6193_v17 = vpop.permute.xlu0 %6192 }
0x13dc   : > { %v6155_v50 = vpop.permute.xlu1 %6154  ;;  %v6203_v37 = vadd.f32 %v6193_v17, %v6177_v34  ;;  %v6292_v34 = vmul.f32 %v14355_v62, %v14174_v51  ;;  %v5943_v51 = vmul.f32 %v14239_v30, %v14055_v42  ;;  %v6057_v42 = vmul.f32 %v14261_v59, %v14057_v47 }
0x13dd   : > { %v6164_v13 = vadd.f32 %v6155_v50, %v6138_v40  ;;  %v6408_v50 = vmul.f32 %v14368_v12, %v14040_v39  ;;  %v6410_v59 = vmul.f32 %v14368_v12, %v14227_v1 }
0x13df   : > { %v6178_v26 = vadd.f32 %v6174_v33, %v6164_v13  ;;  %v6219_v57 = vpop.permute.xlu0 %6218 }
0x13e0   : > { %v14350_v58 = vpop.permute.xlu1 %6156  ;;  %v6229_v14 = vadd.f32 %v6219_v57, %v6203_v37 }
0x13e3   : > { %v6243_v44 = vpop.permute.xlu0 %6242 }
0x13e4   : > { %v6195_v49 = vpop.permute.xlu1 %6194  ;;  %v6254_v54 = vadd.f32 %v6243_v44, %v6228_v0 }
0x13e5   : > { %v6204_v27 = vadd.f32 %v6195_v49, %v6178_v26 }
0x13e7   : > { %v6245_v35 = vpop.permute.xlu0 %6244 }
0x13e8   : > { %v14352_v56 = vpop.permute.xlu1 %6196  ;;  %v6255_v45 = vadd.f32 %v6245_v35, %v6229_v14  ;;  %v14375_v35 = vstv %s10007_s19  ;;  %s10112_s19 = sld [smem:[#allocation4 + $0x9c]] }
0x13eb   : > { %v6269_v21 = vpop.permute.xlu0 %6268 }
0x13ec   : > { %v6221_v15 = vpop.permute.xlu1 %6220  ;;  %v6280_v7 = vadd.f32 %v6269_v21, %v6254_v54  ;;  %v5969_v54 = vadd.f32 %v14251_v36, %v5943_v51 }
0x13ed   : > { %v6230_v48 = vadd.f32 %v6221_v15, %v6204_v27 }
0x13ee   : > { %v6294_v32 = vadd.f32 %v6290_v23, %v6280_v7  ;;  %v5995_v21 = vadd.f32 %v14281_v22, %v5969_v54 }
0x13ef   : > { %v6271_v28 = vpop.permute.xlu0 %6270 }
0x13f0   : > { %v14359_v46 = vpop.permute.xlu1 %6222  ;;  %v6281_v5 = vadd.f32 %v6271_v28, %v6255_v45 }
0x13f2   : > { %v14363_v41 = vadd.f32 %v6291_v8, %v6281_v5 }
0x13f3   : > { %v6309_v25 = vpop.permute.xlu0 %6308 }
0x13f4   : > { %v6247_v16 = vpop.permute.xlu1 %6246  ;;  %v6320_v2 = vadd.f32 %v6309_v25, %v6294_v32 }
0x13f5   : > { %v6256_v20 = vadd.f32 %v6247_v16, %v6230_v48 }
0x13f6   : > { %v6346_v31 = vadd.f32 %v14222_v9, %v6320_v2 }
0x13f7   : > { %v6361_v4 = vpop.permute.xlu0 %6360 }
0x13f8   : > { %v6273_v24 = vpop.permute.xlu1 %6272  ;;  %v6372_v63 = vadd.f32 %v6361_v4, %v6346_v31  ;;  %v6175_v31 = vmul.f32 %v14340_v6, %v14136_v43 }
0x13f9   : > { %v6282_v11 = vadd.f32 %v6273_v24, %v6256_v20 }
0x13fb   : > { %v6296_v38 = vadd.f32 %v6292_v34, %v6282_v11  ;;  %v6387_v10 = vpop.permute.xlu0 %6386 }
0x13fc   : > { %v6275_v40 = vpop.permute.xlu1 %6274  ;;  %v6398_v17 = vadd.f32 %v6387_v10, %v6372_v63 }
0x13fe   : > { %v6412_v13 = vadd.f32 %v6408_v50, %v6398_v17  ;;  %v6293_v50 = vmul.f32 %v14355_v62, %v14183_v61  ;;  %v6411_v61 = vmul.f32 %v14368_v12, %v14237_v60 }
0x13ff   : > { %v6427_v33 = vpop.permute.xlu0 %6426 }
0x1400   : > { %v6313_v26 = vpop.permute.xlu1 %6312  ;;  %v6438_v9 = vadd.f32 %v6427_v33, %v6412_v13 }
0x1401   : > { %v6322_v45 = vadd.f32 %v6313_v26, %v6296_v38 }
0x1402   : > { %v6464_v57 = vadd.f32 %v14231_v29, %v6438_v9 }
0x1403   : > { %v6479_v44 = vpop.permute.xlu0 %6478 }
0x1404   : > { %v6315_v49 = vpop.permute.xlu1 %6314  ;;  %v6490_v3 = vadd.f32 %v6479_v44, %v6464_v57 }
0x1407   : > { %v6505_v0 = vpop.permute.xlu0 %6504 }
0x1408   : > { %v6339_v37 = vpop.permute.xlu1 %6338  ;;  %v6516_v39 = vadd.f32 %v6505_v0, %v6490_v3 }
0x1409   : > { %v6348_v32 = vadd.f32 %v6339_v37, %v6322_v45 }
0x140a   : > { %v6522_v15 = vadd.f32 %v14375_v35, %v6516_v39 }
0x140b   : > { %v6013_v14 = vpop.permute.xlu0 %6012 }
0x140c   : > { %v6341_v7 = vpop.permute.xlu1 %6340  ;;  %v14380_v29 = vmax.f32 %v6522_v15, 0.0  ;;  %v6021_v23 = vadd.f32 %v6013_v14, %v5995_v21 }
0x140e   : > { %v6047_v30 = vadd.f32 %v14324_v18, %v6021_v23  ;;  %10882 = vmatprep.mubr.msk.f32.mxu0 %vm1927_vm8, %v14380_v29  ;;  %10896 = vmatprep.mubr.msk.f32.mxu1 %vm1927_vm8, %v14380_v29 }
0x140f   : > { %v6131_v36 = vpop.permute.xlu0 %6130 }
0x1410   : > { %v6365_v22 = vpop.permute.xlu1 %6364  ;;  %v6061_v28 = vadd.f32 %v6057_v42, %v6047_v30 }
0x1411   : > { %v6374_v8 = vadd.f32 %v6365_v22, %v6348_v32 }
0x1412   : > { %v6087_v5 = vadd.f32 %v14334_v52, %v6061_v28 }
0x1413   : > { %v6249_v27 = vpop.permute.xlu0 %6248 }
0x1414   : > { %v6391_v25 = vpop.permute.xlu1 %6390  ;;  %v6113_v16 = vadd.f32 %v14344_v19, %v6087_v5 }
0x1415   : > { %v6400_v47 = vadd.f32 %v6391_v25, %v6374_v8 }
0x1416   : > { %v6139_v18 = vadd.f32 %v6131_v36, %v6113_v16 }
0x1417   : > { %v6414_v48 = vadd.f32 %v6410_v59, %v6400_v47  ;;  %v6311_v2 = vpop.permute.xlu0 %6310 }
0x1418   : > { %v6393_v20 = vpop.permute.xlu1 %6392  ;;  %v6165_v4 = vadd.f32 %v14350_v58, %v6139_v18  ;;  %v6321_v63 = vadd.f32 %v6311_v2, %v14363_v41 }
0x141a   : > { %v6179_v24 = vadd.f32 %v6175_v31, %v6165_v4  ;;  %v10022_v4 = vld [vmem:[%s16464_s7 + $0x58] sm:$0xff] }
0x141b   : > { %v6337_v52 = vpop.permute.xlu0 %6336 }
0x141c   : > { %v6431_v11 = vpop.permute.xlu1 %6430  ;;  %v6205_v34 = vadd.f32 %v14352_v56, %v6179_v24  ;;  %v6347_v17 = vadd.f32 %v6337_v52, %v6321_v63  ;;  %v6409_v56 = vmul.f32 %v14368_v12, %v14267_v55  ;;  %v6634_v24 = vld [vmem:[%s16464_s7] sm:$0xff]  ;;  %v10060_v52 = vld [vmem:[%s16469_s12 + $0x58] sm:$0x7]  ;;  %v10024_v63 = vld [vmem:[%s16464_s7 + $0x68] sm:$0xff] }
0x141d   : > { %v6440_v37 = vadd.f32 %v6431_v11, %v6414_v48  ;;  %v10023_v11 = vld [vmem:[%s16464_s7 + $0x60] sm:$0xff] }
0x141e   : > { %v6231_v19 = vadd.f32 %v14359_v46, %v6205_v34  ;;  %v6635_v34 = vld [vmem:[%s16464_s7 + $0x8] sm:$0xff] }
0x141f   : > { %v6363_v38 = vpop.permute.xlu0 %6362 }
0x1420   : > { %v6433_v1 = vpop.permute.xlu1 %6432  ;;  %v6257_v10 = vadd.f32 %v6249_v27, %v6231_v19  ;;  %v6373_v43 = vadd.f32 %v6363_v38, %v6347_v17  ;;  %v10059_v19 = vld [vmem:[%s16469_s12 + $0x50] sm:$0xff]  ;;  %v6637_v17 = vld [vmem:[%s16464_s7 + $0x18] sm:$0xff] }
0x1421   : > { %v6636_v38 = vld [vmem:[%s16464_s7 + $0x10] sm:$0xff] }
0x1422   : > { %v6283_v13 = vadd.f32 %v6275_v40, %v6257_v10  ;;  %v10025_v10 = vld [vmem:[%s16464_s7 + $0x70] sm:$0xff] }
0x1423   : > { %v6389_v6 = vpop.permute.xlu0 %6388 }
0x1424   : > { %v6457_v58 = vpop.permute.xlu1 %6456  ;;  %v6297_v33 = vadd.f32 %v6293_v50, %v6283_v13  ;;  %v6399_v26 = vadd.f32 %v6389_v6, %v6373_v43  ;;  %v10057_v50 = vld [vmem:[%s16469_s12 + $0x40] sm:$0xff]  ;;  %v10026_v13 = vld [vmem:[%s16464_s7 + $0x78] sm:$0xff] }
0x1425   : > { %v6466_v39 = vadd.f32 %v6457_v58, %v6440_v37  ;;  %v6638_v43 = vld [vmem:[%s16464_s7 + $0x20] sm:$0xff]  ;;  %v6639_v58 = vld [vmem:[%s16464_s7 + $0x28] sm:$0xff] }
0x1426   : > { %v6323_v9 = vadd.f32 %v6315_v49, %v6297_v33  ;;  %v6413_v46 = vadd.f32 %v6409_v56, %v6399_v26  ;;  %v10027_v6 = vld [vmem:[%s16464_s7 + $0x80] sm:$0xff]  ;;  %v10028_v33 = vld [vmem:[%s16464_s7 + $0x88] sm:$0xff]  ;;  %v6640_v26 = vld [vmem:[%s16464_s7 + $0x30] sm:$0xff] }
0x1427   : > { %v6367_v57 = vpop.permute.xlu0 %6366  ;;  %v10029_v56 = vld [vmem:[%s16464_s7 + $0x90] sm:$0xff] }
0x1428   : > { %v6459_v41 = vpop.permute.xlu1 %6458  ;;  %v6349_v44 = vadd.f32 %v6341_v7, %v6323_v9  ;;  %v6641_v9 = vld [vmem:[%s16464_s7 + $0x38] sm:$0xff] }
0x142a   : > { %v6375_v51 = vadd.f32 %v6367_v57, %v6349_v44  ;;  %v6642_v57 = vld [vmem:[%s16464_s7 + $0x40] sm:$0xff]  ;;  %v6643_v44 = vld [vmem:[%s16464_s7 + $0x48] sm:$0xff] }
0x142b   : > { %v6429_v3 = vpop.permute.xlu0 %6428 }
0x142c   : > { %v6401_v0 = vadd.f32 %v6393_v20, %v6375_v51  ;;  %v6483_v62 = vpop.permute.xlu1 %6482  ;;  %v6439_v21 = vadd.f32 %v6429_v3, %v6413_v46  ;;  %v10030_v46 = vld [vmem:[%s16464_s7 + $0x98] sm:$0xff]  ;;  %v10032_v51 = vld [vmem:[%s16464_s7 + $0xa8] sm:$0x1]  ;;  %v6644_v3 = vld [vmem:[%s16464_s7 + $0x50] sm:$0x1] }
0x142d   : > { %v6492_v14 = vadd.f32 %v6483_v62, %v6466_v39  ;;  %v14594_v62 = vstv %s10109_s18  ;;  %v14601_v39 = vld [vmem:[#allocation2 + $0x54] sm:$0x1]  ;;  %s10091_s18 = sld [smem:[#allocation4 + $0x87]] }
0x142e   : > { %v6415_v40 = vadd.f32 %v6411_v61, %v6401_v0  ;;  %v8333_v0 = vld [vmem:[#allocation2 + $0x53] sm:$0x1]  ;;  %v14591_v61 = vstv %s10107_s15  ;;  %s10092_s15 = sld [smem:[#allocation4 + $0x88]] }
0x142f   : > { %v6455_v54 = vpop.permute.xlu0 %6454  ;;  %v8574_v37 = vmul.f32 %v14594_v62, %v8333_v0 }
0x1430   : > { %v6509_v15 = vpop.permute.xlu1 %6508  ;;  %v6465_v49 = vadd.f32 %v6455_v54, %v6439_v21  ;;  %v6441_v7 = vadd.f32 %v6433_v1, %v6415_v40  ;;  %v10058_v1 = vld [vmem:[%s16469_s12 + $0x48] sm:$0xff]  ;;  %v14596_v40 = vstv %s10106_s23  ;;  %v14603_v21 = vstv %s10112_s19  ;;  %s10094_s23 = sld [smem:[#allocation4 + $0x8a]] }
0x1431   : > { %v6518_v23 = vadd.f32 %v6509_v15, %v6492_v14  ;;  %v8370_v54 = vmul.f32 %v14596_v40, %v8333_v0  ;;  %v14605_v15 = vstv %s10108_s22  ;;  %s10111_s22 = sld [smem:[#allocation4 + $0x9b]] }
0x1432   : > { %v6467_v12 = vadd.f32 %v6459_v41, %v6441_v7  ;;  %v10031_v41 = vld [vmem:[%s16464_s7 + $0xa0] sm:$0xff]  ;;  %v8506_v14 = vmul.f32 %v14605_v15, %v8333_v0  ;;  %s10093_s19 = sld [smem:[#allocation4 + $0x89]] }
0x1433   : > { %v6481_v55 = vpop.permute.xlu0 %6480  ;;  %v6524_v36 = vadd.f32 %v14375_v35, %v6518_v23  ;;  %8402 = vrot.lane.b32.xlu0 %v8370_v54, %s11117_s29 }
0x1434   : > { %v6491_v45 = vadd.f32 %v6481_v55, %v6465_v49  ;;  %v8745_v55 = vmul.f32 %v14603_v21, %v14601_v39  ;;  %v14612_v49 = vstv %s10114_s24  ;;  %s10123_s24 = sld [smem:[#allocation4 + $0xa7]] }
0x1435   : > { %v14409_v28 = vmax.f32 %v6524_v36, 0.0  ;;  %v8881_v23 = vmul.f32 %v14612_v49, %v14601_v39 }
0x1437   : > { %v6507_v42 = vpop.permute.xlu0 %6506  ;;  %8538 = vrot.lane.b32.xlu0 %v8506_v14, %s11119_s30 }
0x1438   : > { %v6517_v30 = vadd.f32 %v6507_v42, %v6491_v45 }
0x143a   : > { %v6523_v22 = vadd.f32 %v14375_v35, %v6517_v30 }
0x143b   : > { %v6485_v60 = vpop.permute.xlu0 %6484 }
0x143c   : > { %v14407_v32 = vmax.f32 %v6523_v22, 0.0  ;;  %v6493_v5 = vadd.f32 %v6485_v60, %v6467_v12 }
0x143e   : > { %10883 = vmatmul.mubr.msk.f32.vlgmr.msra.gmra.mxu0 %vm1927_vm8, %v14407_v32  ;;  %10897 = vmatmul.mubr.msk.f32.vlgmr.msra.gmra.mxu1 %vm1927_vm8, %v14407_v32 }
0x143f   : > { %v6511_v8 = vpop.permute.xlu0 %6510  ;;  %10885 = vmatprep.mubr.msk.f32.mxu0 %vm1927_vm8, %v14409_v28  ;;  %10899 = vmatprep.mubr.msk.f32.mxu1 %vm1927_vm8, %v14409_v28 }
0x1440   : > { %v6519_v27 = vadd.f32 %v6511_v8, %v6493_v5 }
0x1442   : > { %v6525_v25 = vadd.f32 %v14375_v35, %v6519_v27 }
0x1444   : > { %v14420_v16 = vmax.f32 %v6525_v25, 0.0 }
0x1446   : > { %10886 = vmatmul.mubr.msk.f32.gmra.mxu0 %vm1927_vm8, %v14420_v16  ;;  %10900 = vmatmul.mubr.msk.f32.gmra.mxu1 %vm1927_vm8, %v14420_v16 }
0x1447   : > { %10910 = vmatprep.mubr.msk.f32.mxu0 %vm11118_vm5, %v16552_v53  ;;  %10951 = vmatprep.mubr.msk.f32.mxu1 %vm11118_vm5, %v16552_v53 }
0x14fe   : > { %v10884_v47 = vpop.f32.mrf.mxu0  ;;  %v10898_v59 = vpop.f32.mrf.mxu1 }
0x1500   : > { %v6615_v18 = vpop.f32.mrf.mxu0  ;;  %v6719_v48 = vpop.f32.mrf.mxu1 }
0x1506   : > { %v10887_v2 = vpop.f32.mrf.mxu0  ;;  %v10901_v35 = vpop.f32.mrf.mxu1 }
0x1507   : > { %10903 = vmatpush3.msk.msra.mxu0 %vm1940_vm7, %v10901_v35  ;;  %10944 = vmatpush3.msk.msra.mxu1 %vm1940_vm7, %v10887_v2 }
0x1508   : > { %v6625_v20 = vpop.f32.mrf.mxu0  ;;  %v6729_v31 = vpop.f32.mrf.mxu1  ;;  %10904 = vmatprep.subr.mxu0 %v16552_v53  ;;  %10945 = vmatprep.subr.mxu1 %v16552_v53 }
0x1509   : > { %10905 = vmatpush3.msra.mxu0 %v6729_v31  ;;  %10946 = vmatpush3.msra.mxu1 %v6625_v20 }
0x150a   : > { %10906 = vmatprep.subr.mxu0 %v16552_v53  ;;  %10947 = vmatprep.subr.mxu1 %v16552_v53 }
0x150b   : > { %10907 = vmatpush3.msra.mxu0 %v10898_v59  ;;  %10948 = vmatpush3.msra.mxu1 %v10884_v47 }
0x150c   : > { %10908 = vmatprep.subr.mxu0 %v16552_v53  ;;  %10949 = vmatprep.subr.mxu1 %v16552_v53 }
0x150d   : > { %10909 = vmatpush3.msra.mxu0 %v6719_v48  ;;  %10950 = vmatpush3.msra.mxu1 %v6615_v18 }
0x150e   : > { %10911 = vmatmul.mubr.msk.f32.vlgmr.msra.gmra.mxu0 %vm1927_vm8, %v10022_v4  ;;  %10952 = vmatmul.mubr.msk.f32.vlgmr.msra.gmra.mxu1 %vm1927_vm8, %v6634_v24 }
0x150f   : > { %10913 = vmatprep.mubr.msk.f32.mxu0 %vm11118_vm5, %v16552_v53  ;;  %10954 = vmatprep.mubr.msk.f32.mxu1 %vm11118_vm5, %v16552_v53 }
0x1510   : > { %10984 = vmatprep.subr.msk.mxu0 %vm1940_vm7, %v10060_v52  ;;  %10998 = vmatprep.subr.mxu1 %v16552_v53 }
0x1511   : > { %10985 = vmatpush3.msk.msra.mxu0 %vm1940_vm7, %v10060_v52 }
0x1512   : > { %10914 = vmatmul.mubr.msk.f32.gmra.mxu0 %vm1927_vm8, %v10023_v11  ;;  %10955 = vmatmul.mubr.msk.f32.gmra.mxu1 %vm1927_vm8, %v6635_v34 }
0x1513   : > { %10916 = vmatprep.mubr.msk.f32.mxu0 %vm11118_vm5, %v16552_v53  ;;  %10957 = vmatprep.mubr.msk.f32.mxu1 %vm11118_vm5, %v16552_v53 }
0x1514   : > { %10986 = vmatprep.subr.mxu0 %v10059_v19 }
0x1515   : > { %10987 = vmatpush3.msra.mxu0 %v10059_v19 }
0x1516   : > { %10917 = vmatmul.mubr.msk.f32.gmra.mxu0 %vm1927_vm8, %v10024_v63  ;;  %10958 = vmatmul.mubr.msk.f32.gmra.mxu1 %vm1927_vm8, %v6636_v38 }
0x1517   : > { %10919 = vmatprep.mubr.msk.f32.mxu0 %vm11118_vm5, %v16552_v53  ;;  %10960 = vmatprep.mubr.msk.f32.mxu1 %vm11118_vm5, %v16552_v53 }
0x1518   : > { %10988 = vmatprep.subr.mxu0 %v10058_v1 }
0x1519   : > { %10989 = vmatpush3.msra.mxu0 %v10058_v1 }
0x151a   : > { %10920 = vmatmul.mubr.msk.f32.gmra.mxu0 %vm1927_vm8, %v10025_v10  ;;  %10961 = vmatmul.mubr.msk.f32.gmra.mxu1 %vm1927_vm8, %v6637_v17 }
0x151b   : > { %10922 = vmatprep.mubr.msk.f32.mxu0 %vm11118_vm5, %v16552_v53  ;;  %10963 = vmatprep.mubr.msk.f32.mxu1 %vm11118_vm5, %v16552_v53 }
0x151c   : > { %10990 = vmatprep.subr.mxu0 %v10057_v50 }
0x151d   : > { %10991 = vmatpush3.msra.mxu0 %v10057_v50 }
0x151e   : > { %10923 = vmatmul.mubr.msk.f32.gmra.mxu0 %vm1927_vm8, %v10026_v13  ;;  %10964 = vmatmul.mubr.msk.f32.gmra.mxu1 %vm1927_vm8, %v6638_v43 }
0x151f   : > { %10925 = vmatprep.mubr.msk.f32.mxu0 %vm11118_vm5, %v16552_v53  ;;  %10966 = vmatprep.mubr.msk.f32.mxu1 %vm11118_vm5, %v16552_v53 }
0x1522   : > { %10926 = vmatmul.mubr.msk.f32.gmra.mxu0 %vm1927_vm8, %v10027_v6  ;;  %10967 = vmatmul.mubr.msk.f32.gmra.mxu1 %vm1927_vm8, %v6639_v58 }
0x1523   : > { %10928 = vmatprep.mubr.msk.f32.mxu0 %vm11118_vm5, %v16552_v53  ;;  %10969 = vmatprep.mubr.msk.f32.mxu1 %vm11118_vm5, %v16552_v53 }
0x1526   : > { %10929 = vmatmul.mubr.msk.f32.gmra.mxu0 %vm1927_vm8, %v10028_v33  ;;  %10970 = vmatmul.mubr.msk.f32.gmra.mxu1 %vm1927_vm8, %v6640_v26 }
0x1527   : > { %10931 = vmatprep.mubr.msk.f32.mxu0 %vm11118_vm5, %v16552_v53  ;;  %10972 = vmatprep.mubr.msk.f32.mxu1 %vm11118_vm5, %v16552_v53 }
0x152a   : > { %10932 = vmatmul.mubr.msk.f32.gmra.mxu0 %vm1927_vm8, %v10029_v56  ;;  %10973 = vmatmul.mubr.msk.f32.gmra.mxu1 %vm1927_vm8, %v6641_v9 }
0x152b   : > { %10934 = vmatprep.mubr.msk.f32.mxu0 %vm11118_vm5, %v16552_v53  ;;  %10975 = vmatprep.mubr.msk.f32.mxu1 %vm11118_vm5, %v16552_v53 }
0x152e   : > { %10935 = vmatmul.mubr.msk.f32.gmra.mxu0 %vm1927_vm8, %v10030_v46  ;;  %10976 = vmatmul.mubr.msk.f32.gmra.mxu1 %vm1927_vm8, %v6642_v57 }
0x152f   : > { %10937 = vmatprep.mubr.msk.f32.mxu0 %vm11118_vm5, %v16552_v53  ;;  %10978 = vmatprep.mubr.msk.f32.mxu1 %vm11118_vm5, %v16552_v53 }
0x1532   : > { %10938 = vmatmul.mubr.msk.f32.gmra.mxu0 %vm1927_vm8, %v10031_v41  ;;  %10979 = vmatmul.mubr.msk.f32.gmra.mxu1 %vm1927_vm8, %v6643_v44 }
0x1533   : > { %10940 = vmatprep.mubr.msk.f32.mxu0 %vm11118_vm5, %v16552_v53  ;;  %10981 = vmatprep.mubr.msk.f32.mxu1 %vm11118_vm5, %v16552_v53 }
0x1536   : > { %10941 = vmatmul.mubr.msk.f32.gmra.mxu0 %vm1927_vm8, %v10032_v51  ;;  %10982 = vmatmul.mubr.msk.f32.gmra.mxu1 %vm1927_vm8, %v6644_v3 }
0x1537   : > { %10992 = vmatprep.mubr.msk.f32.mxu0 %vm1927_vm8, %v14380_v29  ;;  %11006 = vmatprep.mubr.msk.f32.mxu1 %vm11118_vm5, %v16552_v53  ;;  %v8438_v29 = vmul.f32 %v14591_v61, %v8333_v0 }
0x1539   : > { %8470 = vrot.lane.b32.xlu1 %v8438_v29, %s11116_s28 }
0x153a   : > { %10993 = vmatmul.mubr.msk.f32.vlgmr.msra.gmra.mxu0 %vm1927_vm8, %v14407_v32 }
0x153b   : > { %10995 = vmatprep.mubr.msk.f32.mxu0 %vm1927_vm8, %v14409_v28 }
0x153d   : > { %8606 = vrot.lane.b32.xlu1 %v8574_v37, %s11120_s17 }
0x153e   : > { %10996 = vmatmul.mubr.msk.f32.gmra.mxu0 %vm1927_vm8, %v14420_v16 }
0x1541   : > { %8777 = vrot.lane.b32.xlu1 %v8745_v55, %s11116_s28 }
0x1545   : > { %8913 = vrot.lane.b32.xlu1 %v8881_v23, %s11120_s17 }
0x15ce   : > { %v6852_v45 = vpop.f32.mrf.mxu0  ;;  %v7008_v42 = vpop.f32.mrf.mxu1 }
0x15cf   : > { %v14619_v7 = vadd.f32 %v7008_v42, %v6852_v45 }
0x15d0   : > { %v10912_v30 = vpop.f32.mrf.mxu0  ;;  %v10953_v36 = vpop.f32.mrf.mxu1 }
0x15d1   : > { %v10066_v36 = vld [vmem:[%s16464_s7 + $0xb0] sm:$0xff] }
0x15d2   : > { %v6857_v22 = vpop.f32.mrf.mxu0  ;;  %v7013_v60 = vpop.f32.mrf.mxu1 }
0x15d3   : > { %v14621_v12 = vadd.f32 %v7013_v60, %v6857_v22  ;;  %v10067_v22 = vld [vmem:[%s16464_s7 + $0xb8] sm:$0xff]  ;;  %v10068_v60 = vld [vmem:[%s16464_s7 + $0xc0] sm:$0xff] }
0x15d4   : > { %v10915_v32 = vpop.f32.mrf.mxu0  ;;  %v10956_v28 = vpop.f32.mrf.mxu1 }
0x15d5   : > { %v10069_v32 = vld [vmem:[%s16464_s7 + $0xc8] sm:$0xff]  ;;  %v10070_v28 = vld [vmem:[%s16464_s7 + $0xd0] sm:$0xff] }
0x15d6   : > { %v6862_v5 = vpop.f32.mrf.mxu0  ;;  %v7018_v8 = vpop.f32.mrf.mxu1 }
0x15d7   : > { %v14623_v27 = vadd.f32 %v7018_v8, %v6862_v5  ;;  %v10071_v5 = vld [vmem:[%s16464_s7 + $0xd8] sm:$0xff]  ;;  %v10072_v8 = vld [vmem:[%s16464_s7 + $0xe0] sm:$0xff] }
0x15d8   : > { %v10918_v25 = vpop.f32.mrf.mxu0  ;;  %v10959_v16 = vpop.f32.mrf.mxu1 }
0x15d9   : > { %v10073_v25 = vld [vmem:[%s16464_s7 + $0xe8] sm:$0xff]  ;;  %v10074_v16 = vld [vmem:[%s16464_s7 + $0xf0] sm:$0xff] }
0x15da   : > { %v6867_v47 = vpop.f32.mrf.mxu0  ;;  %v7023_v59 = vpop.f32.mrf.mxu1 }
0x15db   : > { %v14625_v18 = vadd.f32 %v7023_v59, %v6867_v47  ;;  %v10075_v47 = vld [vmem:[%s16464_s7 + $0xf8] sm:$0xff]  ;;  %v10076_v59 = vld [vmem:[%s16464_s7 + $0x100] sm:$0x1] }
0x15dc   : > { %v10921_v48 = vpop.f32.mrf.mxu0  ;;  %v10962_v2 = vpop.f32.mrf.mxu1 }
0x15dd   : > { %v9346_v48 = vld [vmem:[#allocation2 + $0x53] sm:$0x1]  ;;  %v14709_v2 = vstv %s10111_s22  ;;  %s10097_s22 = sld [smem:[#allocation4 + $0x8d]] }
0x15de   : > { %v6872_v35 = vpop.f32.mrf.mxu0  ;;  %v7028_v20 = vpop.f32.mrf.mxu1 }
0x15df   : > { %v14627_v31 = vadd.f32 %v7028_v20, %v6872_v35  ;;  %v8677_v35 = vmul.f32 %v14709_v2, %v14601_v39  ;;  %v14713_v20 = vstv %s10123_s24  ;;  %s10096_s24 = sld [smem:[#allocation4 + $0x8c]] }
0x15e0   : > { %v10924_v4 = vpop.f32.mrf.mxu0  ;;  %v10965_v24 = vpop.f32.mrf.mxu1  ;;  %16553 = vst [vmem:[#allocation11_spill] sm:$0xff] %v14713_v20 }
0x15e1   : > { %v9383_v4 = vmul.f32 %v14713_v20, %v9346_v48  ;;  %8709 = vrot.lane.b32.xlu0 %v8677_v35, %s11117_s29 }
0x15e2   : > { %v6877_v52 = vpop.f32.mrf.mxu0  ;;  %v7033_v11 = vpop.f32.mrf.mxu1 }
0x15e3   : > { %v14629_v34 = vadd.f32 %v7033_v11, %v6877_v52  ;;  %9415 = vrot.lane.b32.xlu1 %v9383_v4, %s11117_s29  ;;  %v7335_v11 = vstv %s10089_s14  ;;  %s10098_s14 = sld [smem:[#allocation4 + $0x8e]] }
0x15e4   : > { %v10927_v19 = vpop.f32.mrf.mxu0  ;;  %v10968_v63 = vpop.f32.mrf.mxu1 }
0x15e6   : > { %v6882_v38 = vpop.f32.mrf.mxu0  ;;  %v7038_v1 = vpop.f32.mrf.mxu1 }
0x15e7   : > { %v14631_v10 = vadd.f32 %v7038_v1, %v6882_v38 }
0x15e8   : > { %v10930_v17 = vpop.f32.mrf.mxu0  ;;  %v10971_v50 = vpop.f32.mrf.mxu1 }
0x15ea   : > { %v6887_v13 = vpop.f32.mrf.mxu0  ;;  %v7043_v43 = vpop.f32.mrf.mxu1 }
0x15eb   : > { %v14633_v6 = vadd.f32 %v7043_v43, %v6887_v13 }
0x15ec   : > { %v10933_v58 = vpop.f32.mrf.mxu0  ;;  %v10974_v33 = vpop.f32.mrf.mxu1 }
0x15ee   : > { %v6892_v26 = vpop.f32.mrf.mxu0  ;;  %v7048_v56 = vpop.f32.mrf.mxu1 }
0x15ef   : > { %v14635_v9 = vadd.f32 %v7048_v56, %v6892_v26 }
0x15f0   : > { %v10936_v46 = vpop.f32.mrf.mxu0  ;;  %v10977_v57 = vpop.f32.mrf.mxu1 }
0x15f2   : > { %v6897_v41 = vpop.f32.mrf.mxu0  ;;  %v7053_v44 = vpop.f32.mrf.mxu1 }
0x15f3   : > { %v14637_v51 = vadd.f32 %v7053_v44, %v6897_v41 }
0x15f4   : > { %v10939_v3 = vpop.f32.mrf.mxu0  ;;  %v10980_v0 = vpop.f32.mrf.mxu1 }
0x15f6   : > { %v6902_v29 = vpop.f32.mrf.mxu0  ;;  %v7058_v37 = vpop.f32.mrf.mxu1 }
0x15f7   : > { %v14639_v54 = vadd.f32 %v7058_v37, %v6902_v29 }
0x15f8   : > { %v10942_v14 = vpop.f32.mrf.mxu0  ;;  %v10983_v55 = vpop.f32.mrf.mxu1 }
0x15fa   : > { %v10994_v23 = vpop.f32.mrf.mxu0 }
0x15fc   : > { %v7136_v45 = vpop.f32.mrf.mxu0 }
0x15fe   : > { %v10997_v42 = vpop.f32.mrf.mxu0 }
0x15ff   : > { %10999 = vmatpush3.msk.msra.mxu1 %vm1940_vm7, %v10997_v42 }
0x1600   : > { %v7146_v30 = vpop.f32.mrf.mxu0  ;;  %11000 = vmatprep.subr.mxu1 %v16552_v53 }
0x1601   : > { %11001 = vmatpush3.msra.mxu1 %v7146_v30 }
0x1602   : > { %11002 = vmatprep.subr.mxu1 %v16552_v53 }
0x1603   : > { %11003 = vmatpush3.msra.mxu1 %v10994_v23 }
0x1604   : > { %11004 = vmatprep.subr.mxu1 %v16552_v53 }
0x1605   : > { %11005 = vmatpush3.msra.mxu1 %v7136_v45 }
0x1606   : > { %11007 = vmatmul.mubr.msk.f32.vlgmr.msra.gmra.mxu1 %vm1927_vm8, %v10066_v36 }
0x1607   : > { %11009 = vmatprep.mubr.msk.f32.mxu1 %vm11118_vm5, %v16552_v53 }
0x160a   : > { %11010 = vmatmul.mubr.msk.f32.gmra.mxu1 %vm1927_vm8, %v10067_v22 }
0x160b   : > { %11012 = vmatprep.mubr.msk.f32.mxu1 %vm11118_vm5, %v16552_v53 }
0x160e   : > { %11013 = vmatmul.mubr.msk.f32.gmra.mxu1 %vm1927_vm8, %v10068_v60 }
0x160f   : > { %11015 = vmatprep.mubr.msk.f32.mxu1 %vm11118_vm5, %v16552_v53 }
0x1612   : > { %11016 = vmatmul.mubr.msk.f32.gmra.mxu1 %vm1927_vm8, %v10069_v32 }
0x1613   : > { %11018 = vmatprep.mubr.msk.f32.mxu1 %vm11118_vm5, %v16552_v53 }
0x1616   : > { %11019 = vmatmul.mubr.msk.f32.gmra.mxu1 %vm1927_vm8, %v10070_v28 }
0x1617   : > { %11021 = vmatprep.mubr.msk.f32.mxu1 %vm11118_vm5, %v16552_v53 }
0x161a   : > { %11022 = vmatmul.mubr.msk.f32.gmra.mxu1 %vm1927_vm8, %v10071_v5 }
0x161b   : > { %11024 = vmatprep.mubr.msk.f32.mxu1 %vm11118_vm5, %v16552_v53 }
0x161e   : > { %11025 = vmatmul.mubr.msk.f32.gmra.mxu1 %vm1927_vm8, %v10072_v8 }
0x161f   : > { %11027 = vmatprep.mubr.msk.f32.mxu1 %vm11118_vm5, %v16552_v53 }
0x1622   : > { %11028 = vmatmul.mubr.msk.f32.gmra.mxu1 %vm1927_vm8, %v10073_v25 }
0x1623   : > { %11030 = vmatprep.mubr.msk.f32.mxu1 %vm11118_vm5, %v16552_v53 }
0x1626   : > { %11031 = vmatmul.mubr.msk.f32.gmra.mxu1 %vm1927_vm8, %v10074_v16 }
0x1627   : > { %11033 = vmatprep.mubr.msk.f32.mxu1 %vm11118_vm5, %v16552_v53 }
0x162a   : > { %11034 = vmatmul.mubr.msk.f32.gmra.mxu1 %vm1927_vm8, %v10075_v47 }
0x162b   : > { %11036 = vmatprep.mubr.msk.f32.mxu1 %vm11118_vm5, %v16552_v53  ;;  %v14718_v53 = vstv %s10113_s27  ;;  %s10099_s27 = sld [smem:[#allocation4 + $0x8f]] }
0x162c   : > { %v8813_v24 = vmul.f32 %v14718_v53, %v14601_v39 }
0x162e   : > { %11037 = vmatmul.mubr.msk.f32.gmra.mxu1 %vm1927_vm8, %v10076_v59  ;;  %8845 = vrot.lane.b32.xlu0 %v8813_v24, %s11119_s30 }
0x16c6   : > { %v7269_v52 = vpop.f32.mrf.mxu1 }
0x16c7   : > { %v7323_v19 = vadd.f32 %v7269_v52, %v14619_v7 }
0x16c8   : > { %v11008_v63 = vpop.f32.mrf.mxu1 }
0x16c9   : > { %v7336_v38 = vadd.f32 %v7335_v11, %v7323_v19 }
0x16ca   : > { %v7274_v1 = vpop.f32.mrf.mxu1 }
0x16cb   : > { %v7347_v17 = vmax.f32 %v7336_v38, 0.0  ;;  %v7324_v50 = vadd.f32 %v7274_v1, %v14621_v12  ;;  %v14745_v38 = vpop.permute.xlu1 %8470 }
0x16cc   : > { %v11011_v13 = vpop.f32.mrf.mxu1  ;;  %16554 = vst [vmem:[#allocation12_spill] sm:$0xff] %v14745_v38 }
0x16cd   : > { %v7337_v43 = vadd.f32 %v7335_v11, %v7324_v50  ;;  %7369 = vrot.lane.b32.xlu1 %v7347_v17, %s11114_s20 }
0x16ce   : > { %v7279_v58 = vpop.f32.mrf.mxu1 }
0x16cf   : > { %v7348_v33 = vmax.f32 %v7337_v43, 0.0  ;;  %v7325_v39 = vadd.f32 %v7279_v58, %v14623_v27  ;;  %v14747_v1 = vpop.permute.xlu1 %8606 }
0x16d0   : > { %v11014_v26 = vpop.f32.mrf.mxu1  ;;  %16555 = vst [vmem:[#allocation13_spill] sm:$0xff] %v14747_v1 }
0x16d1   : > { %v7338_v56 = vadd.f32 %v7335_v11, %v7325_v39  ;;  %7371 = vrot.lane.b32.xlu0 %v7348_v33, %s11114_s20  ;;  %v14765_v39 = vstv %s10092_s15  ;;  %v14767_v26 = vstv %s10091_s18  ;;  %s10102_s15 = sld [smem:[#allocation4 + $0x92]] }
0x16d2   : > { %v7284_v46 = vpop.f32.mrf.mxu1  ;;  %s10101_s18 = sld [smem:[#allocation4 + $0x91]] }
0x16d3   : > { %v7349_v7 = vmax.f32 %v7338_v56, 0.0  ;;  %v7326_v57 = vadd.f32 %v7284_v46, %v14625_v18  ;;  %v14751_v17 = vpop.permute.xlu1 %8777 }
0x16d4   : > { %v11017_v41 = vpop.f32.mrf.mxu1  ;;  %16557 = vst [vmem:[#allocation8_spill] sm:$0xff] %v14751_v17 }
0x16d5   : > { %v7339_v44 = vadd.f32 %v7335_v11, %v7326_v57  ;;  %7373 = vrot.lane.b32.xlu1 %v7349_v7, %s11114_s20  ;;  %v14776_v41 = vstv %s10094_s23  ;;  %s10104_s23 = sld [smem:[#allocation4 + $0x94]] }
0x16d6   : > { %v7289_v12 = vpop.f32.mrf.mxu1 }
0x16d7   : > { %v7350_v3 = vmax.f32 %v7339_v44, 0.0  ;;  %v7327_v0 = vadd.f32 %v7289_v12, %v14627_v31  ;;  %v14755_v13 = vpop.permute.xlu1 %8913  ;;  %v14778_v44 = vstv %s10093_s19  ;;  %s10103_s19 = sld [smem:[#allocation4 + $0x93]] }
0x16d8   : > { %v11020_v29 = vpop.f32.mrf.mxu1  ;;  %16559 = vst [vmem:[#allocation10_spill] sm:$0xff] %v14755_v13 }
0x16d9   : > { %v7340_v37 = vadd.f32 %v7335_v11, %v7327_v0  ;;  %7375 = vrot.lane.b32.xlu0 %v7350_v3, %s11114_s20 }
0x16da   : > { %v7294_v27 = vpop.f32.mrf.mxu1 }
0x16db   : > { %v7351_v14 = vmax.f32 %v7340_v37, 0.0  ;;  %v7328_v55 = vadd.f32 %v7294_v27, %v14629_v34  ;;  %v14787_v37 = vstv %s10097_s22  ;;  %v14789_v27 = vstv %s10096_s24  ;;  %s10090_s22 = sld [smem:[#allocation4 + $0x86]] }
0x16dc   : > { %v11023_v23 = vpop.f32.mrf.mxu1  ;;  %16563 = vst [vmem:[#allocation17_spill] sm:$0xff] %v14787_v37  ;;  %s10095_s24 = sld [smem:[#allocation4 + $0x8b]] }
0x16dd   : > { %v7341_v45 = vadd.f32 %v7335_v11, %v7328_v55  ;;  %7377 = vrot.lane.b32.xlu1 %v7351_v14, %s11114_s20 }
0x16de   : > { %v7299_v18 = vpop.f32.mrf.mxu1 }
0x16df   : > { %v7352_v42 = vmax.f32 %v7341_v45, 0.0  ;;  %v7329_v30 = vadd.f32 %v7299_v18, %v14631_v10  ;;  %v14796_v45 = vstv %s10099_s27  ;;  %v14798_v18 = vstv %s10098_s14  ;;  %s15625_s27 = sld [smem:[#allocation4 + $0x90]] }
0x16e0   : > { %v11026_v36 = vpop.f32.mrf.mxu1  ;;  %s10105_s14 = sld [smem:[#allocation4 + $0x95]] }
0x16e1   : > { %v7342_v22 = vadd.f32 %v7335_v11, %v7329_v30  ;;  %7379 = vrot.lane.b32.xlu0 %v7352_v42, %s11114_s20 }
0x16e2   : > { %v7304_v31 = vpop.f32.mrf.mxu1 }
0x16e3   : > { %v7353_v60 = vmax.f32 %v7342_v22, 0.0  ;;  %v7330_v32 = vadd.f32 %v7304_v31, %v14633_v6  ;;  %v14805_v31 = vstv %s10102_s15  ;;  %s15793_s15 = sld [smem:[#allocation4 + $0x9a]] }
0x16e4   : > { %v11029_v28 = vpop.f32.mrf.mxu1 }
0x16e5   : > { %v7343_v5 = vadd.f32 %v7335_v11, %v7330_v32  ;;  %7381 = vrot.lane.b32.xlu1 %v7353_v60, %s11114_s20  ;;  %v14807_v60 = vstv %s10101_s18  ;;  %s15909_s18 = sld [smem:[#allocation4 + $0x9f]] }
0x16e6   : > { %v7309_v34 = vpop.f32.mrf.mxu1  ;;  %16564 = vst [vmem:[#allocation18_spill] sm:$0xff] %v14807_v60 }
0x16e7   : > { %v7354_v8 = vmax.f32 %v7343_v5, 0.0  ;;  %v7331_v25 = vadd.f32 %v7309_v34, %v14635_v9  ;;  %v14814_v34 = vstv %s10104_s23  ;;  %s10121_s23 = sld [smem:[#allocation4 + $0xa5]] }
0x16e8   : > { %v11032_v16 = vpop.f32.mrf.mxu1 }
0x16e9   : > { %v7344_v47 = vadd.f32 %v7335_v11, %v7331_v25  ;;  %7383 = vrot.lane.b32.xlu0 %v7354_v8, %s11114_s20  ;;  %v14816_v8 = vstv %s10103_s19  ;;  %s10120_s19 = sld [smem:[#allocation4 + $0xa4]] }
0x16ea   : > { %v7314_v10 = vpop.f32.mrf.mxu1  ;;  %16565 = vst [vmem:[#allocation19_spill] sm:$0xff] %v14816_v8 }
0x16eb   : > { %v7355_v59 = vmax.f32 %v7344_v47, 0.0  ;;  %v7332_v48 = vadd.f32 %v7314_v10, %v14637_v51  ;;  %v14749_v51 = vpop.permute.xlu0 %8402 }
0x16ec   : > { %v11035_v35 = vpop.f32.mrf.mxu1  ;;  %16556 = vst [vmem:[#allocation7_spill] sm:$0xff] %v14749_v51 }
0x16ed   : > { %v7345_v4 = vadd.f32 %v7335_v11, %v7332_v48  ;;  %7385 = vrot.lane.b32.xlu1 %v7355_v59, %s11114_s20 }
0x16ee   : > { %v7319_v6 = vpop.f32.mrf.mxu1 }
0x16ef   : > { %v7356_v24 = vmax.f32 %v7345_v4, 0.0  ;;  %v7333_v52 = vadd.f32 %v7319_v6, %v14639_v54  ;;  %v14753_v50 = vpop.permute.xlu0 %8538 }
0x16f0   : > { %v11038_v19 = vpop.f32.mrf.mxu1  ;;  %16558 = vst [vmem:[#allocation9_spill] sm:$0xff] %v14753_v50 }
0x16f1   : > { %v7346_v63 = vadd.f32 %v7335_v11, %v7333_v52  ;;  %7387 = vrot.lane.b32.xlu0 %v7356_v24, %s11114_s20  ;;  %v14759_v11 = vpop.permute.xlu1 %9415 }
0x16f2   : > { %16561 = vst [vmem:[#allocation15_spill] sm:$0xff] %v14759_v11 }
0x16f3   : > { %v7357_v9 = vmax.f32 %v7346_v63, 0.0  ;;  %v14757_v54 = vpop.permute.xlu0 %8709 }
0x16f4   : > { %16560 = vst [vmem:[#allocation14_spill] sm:$0xff] %v14757_v54 }
0x16f5   : > { %7389 = vrot.lane.b32.xlu1 %v7357_v9, %s11114_s20 }
0x16f7   : > { %v14761_v43 = vpop.permute.xlu0 %8845 }
0x16f8   : > { %16562 = vst [vmem:[#allocation16_spill] sm:$0xff] %v14761_v43 }
0x173f   : > { %v7370_v58 = vpop.permute.xlu1 %7369 }
0x1740   : > { %7402 = vst.msk [vmem:[#allocation2 + $0x2] sm:$0xff] %vm551_vm2, %v7370_v58 }
0x1743   : > { %v7372_v33 = vpop.permute.xlu0 %7371 }
0x1744   : > { %7403 = vst.msk [vmem:[#allocation2 + $0xa] sm:$0xff] %vm551_vm2, %v7372_v33 }
0x1747   : > { %v7374_v56 = vpop.permute.xlu1 %7373  ;;  %v14769_v46 = vld [vmem:[#allocation2] sm:$0xff] }
0x1748   : > { %7404 = vst.msk [vmem:[#allocation2 + $0x12] sm:$0xff] %vm551_vm2, %v7374_v56  ;;  %v7507_v7 = vmul.f32 %v14765_v39, %v14769_v46  ;;  %v7439_v57 = vmul.f32 %v14767_v26, %v14769_v46  ;;  %v7643_v3 = vmul.f32 %v14776_v41, %v14769_v46  ;;  %v7575_v0 = vmul.f32 %v14778_v44, %v14769_v46  ;;  %v7709_v29 = vld [vmem:[#allocation2 + $0x1] sm:$0xff] }
0x1749   : > { %v7814_v55 = vmul.f32 %v14787_v37, %v7709_v29  ;;  %v7746_v23 = vmul.f32 %v14789_v27, %v7709_v29  ;;  %v7950_v30 = vmul.f32 %v14796_v45, %v7709_v29  ;;  %v7882_v36 = vmul.f32 %v14798_v18, %v7709_v29  ;;  %v8016_v22 = vld [vmem:[#allocation2 + $0x2] sm:$0xff] }
0x174a   : > { %7529 = vrot.lane.b32.xlu1 %v7507_v7, %s11116_s28  ;;  %7461 = vrot.lane.b32.xlu0 %v7439_v57, %s11117_s29  ;;  %v8121_v28 = vmul.f32 %v14805_v31, %v8016_v22  ;;  %v8053_v5 = vmul.f32 %v14807_v60, %v8016_v22  ;;  %v8257_v16 = vmul.f32 %v14814_v34, %v8016_v22 }
0x174b   : > { %v7376_v12 = vpop.permute.xlu0 %7375  ;;  %v8189_v47 = vmul.f32 %v14816_v8, %v8016_v22  ;;  %v14823_v10 = vld [vmem:[#allocation2 + $0x8] sm:$0xff] }
0x174c   : > { %7405 = vst.msk [vmem:[#allocation2 + $0x1a] sm:$0xff] %vm551_vm2, %v7376_v12  ;;  %v7440_v48 = vmul.f32 %v14767_v26, %v14823_v10  ;;  %v7508_v35 = vmul.f32 %v14765_v39, %v14823_v10  ;;  %v7576_v6 = vmul.f32 %v14778_v44, %v14823_v10  ;;  %v7644_v24 = vmul.f32 %v14776_v41, %v14823_v10  ;;  %v14839_v52 = vld [vmem:[#allocation2 + $0x9] sm:$0xff] }
0x174d   : > { %v7747_v63 = vmul.f32 %v14789_v27, %v14839_v52  ;;  %v7815_v9 = vmul.f32 %v14787_v37, %v14839_v52  ;;  %v7883_v58 = vmul.f32 %v14798_v18, %v14839_v52  ;;  %v7951_v33 = vmul.f32 %v14796_v45, %v14839_v52  ;;  %v8017_v56 = vld [vmem:[#allocation2 + $0xa] sm:$0xff] }
0x174e   : > { %7665 = vrot.lane.b32.xlu1 %v7643_v3, %s11120_s17  ;;  %7597 = vrot.lane.b32.xlu0 %v7575_v0, %s11119_s30  ;;  %v8054_v7 = vmul.f32 %v14807_v60, %v8017_v56  ;;  %v8122_v57 = vmul.f32 %v14805_v31, %v8017_v56  ;;  %v8190_v12 = vmul.f32 %v14816_v8, %v8017_v56  ;;  %v8323_v0 = vld [vmem:[#allocation2 + $0x3] sm:$0xff] }
0x174f   : > { %v7378_v14 = vpop.permute.xlu1 %7377  ;;  %v8258_v3 = vmul.f32 %v14814_v34, %v8017_v56  ;;  %v8428_v29 = vmul.f32 %v14591_v61, %v8323_v0 }
0x1750   : > { %7406 = vst.msk [vmem:[#allocation2 + $0x22] sm:$0xff] %vm551_vm2, %v7378_v14  ;;  %v8360_v14 = vmul.f32 %v14596_v40, %v8323_v0 }
0x1752   : > { %7836 = vrot.lane.b32.xlu1 %v7814_v55, %s11116_s28  ;;  %7768 = vrot.lane.b32.xlu0 %v7746_v23, %s11117_s29  ;;  %v8564_v55 = vmul.f32 %v14594_v62, %v8323_v0  ;;  %v8496_v23 = vmul.f32 %v14605_v15, %v8323_v0 }
0x1753   : > { %v7380_v42 = vpop.permute.xlu0 %7379 }
0x1754   : > { %7407 = vst.msk [vmem:[#allocation2 + $0x2a] sm:$0xff] %vm551_vm2, %v7380_v42  ;;  %v8630_v42 = vld [vmem:[#allocation2 + $0x4] sm:$0xff] }
0x1755   : > { %v8871_v22 = vmul.f32 %v14612_v49, %v8630_v42 }
0x1756   : > { %7972 = vrot.lane.b32.xlu1 %v7950_v30, %s11120_s17  ;;  %7904 = vrot.lane.b32.xlu0 %v7882_v36, %s11119_s30  ;;  %v8667_v30 = vmul.f32 %v14709_v2, %v8630_v42  ;;  %v8735_v36 = vmul.f32 %v14603_v21, %v8630_v42 }
0x1757   : > { %v7382_v32 = vpop.permute.xlu1 %7381  ;;  %v15060_v13 = vld [vmem:[#allocation2 + $0x22] sm:$0xff] }
0x1758   : > { %7408 = vst.msk [vmem:[#allocation2 + $0x32] sm:$0xff] %vm551_vm2, %v7382_v32  ;;  %v8803_v32 = vmul.f32 %v14718_v53, %v8630_v42  ;;  %16580 = vst [vmem:[#allocation34_spill] sm:$0xff] %v15060_v13  ;;  %v8057_v17 = vmul.f32 %v14807_v60, %v15060_v13  ;;  %v15082_v50 = vld [vmem:[#allocation2 + $0x1b] sm:$0xff] }
0x1759   : > { %16585 = vst [vmem:[#allocation39_spill] sm:$0xff] %v15082_v50  ;;  %v8431_v51 = vmul.f32 %v14591_v61, %v15082_v50 }
0x175a   : > { %8143 = vrot.lane.b32.xlu1 %v8121_v28, %s11116_s28  ;;  %8075 = vrot.lane.b32.xlu0 %v8053_v5, %s11117_s29  ;;  %v14878_v28 = vld [vmem:[#allocation2 + $0x10] sm:$0xff] }
0x175b   : > { %v7384_v25 = vpop.permute.xlu0 %7383  ;;  %v7509_v5 = vmul.f32 %v14765_v39, %v14878_v28 }
0x175c   : > { %7409 = vst.msk [vmem:[#allocation2 + $0x3a] sm:$0xff] %vm551_vm2, %v7384_v25  ;;  %v7441_v25 = vmul.f32 %v14767_v26, %v14878_v28 }
0x175e   : > { %8279 = vrot.lane.b32.xlu1 %v8257_v16, %s11120_s17  ;;  %8211 = vrot.lane.b32.xlu0 %v8189_v47, %s11119_s30  ;;  %v7645_v16 = vmul.f32 %v14776_v41, %v14878_v28  ;;  %v7577_v47 = vmul.f32 %v14778_v44, %v14878_v28 }
0x175f   : > { %v7386_v59 = vpop.permute.xlu1 %7385 }
0x1760   : > { %7410 = vst.msk [vmem:[#allocation2 + $0x42] sm:$0xff] %vm551_vm2, %v7386_v59  ;;  %v14892_v59 = vld [vmem:[#allocation2 + $0x11] sm:$0xff] }
0x1762   : > { %7463 = vrot.lane.b32.xlu1 %v7440_v48, %s11117_s29  ;;  %7531 = vrot.lane.b32.xlu0 %v7508_v35, %s11116_s28  ;;  %v7816_v48 = vmul.f32 %v14787_v37, %v14892_v59  ;;  %v7748_v35 = vmul.f32 %v14789_v27, %v14892_v59 }
0x1763   : > { %v7388_v4 = vpop.permute.xlu0 %7387 }
0x1764   : > { %7411 = vst.msk [vmem:[#allocation2 + $0x4a] sm:$0xff] %vm551_vm2, %v7388_v4  ;;  %v7952_v4 = vmul.f32 %v14796_v45, %v14892_v59 }
0x1766   : > { %7599 = vrot.lane.b32.xlu1 %v7576_v6, %s11119_s30  ;;  %7667 = vrot.lane.b32.xlu0 %v7644_v24, %s11120_s17  ;;  %v7884_v6 = vmul.f32 %v14798_v18, %v14892_v59  ;;  %v8018_v24 = vld [vmem:[#allocation2 + $0x12] sm:$0xff] }
0x1767   : > { %v7390_v19 = vpop.permute.xlu1 %7389 }
0x1768   : > { %7412 = vst.msk [vmem:[#allocation2 + $0x52] sm:$0x1] %vm562_vm3, %v7390_v19  ;;  %v8123_v19 = vmul.f32 %v14805_v31, %v8018_v24 }
0x176a   : > { %7770 = vrot.lane.b32.xlu1 %v7747_v63, %s11117_s29  ;;  %7838 = vrot.lane.b32.xlu0 %v7815_v9, %s11116_s28  ;;  %v8055_v63 = vmul.f32 %v14807_v60, %v8018_v24  ;;  %v8259_v9 = vmul.f32 %v14814_v34, %v8018_v24 }
0x176e   : > { %7906 = vrot.lane.b32.xlu1 %v7883_v58, %s11119_s30  ;;  %7974 = vrot.lane.b32.xlu0 %v7951_v33, %s11120_s17  ;;  %v8191_v58 = vmul.f32 %v14816_v8, %v8018_v24  ;;  %v8324_v33 = vld [vmem:[#allocation2 + $0xb] sm:$0xff] }
0x176f   : > { %v8361_v56 = vmul.f32 %v14596_v40, %v8324_v33 }
0x1772   : > { %8077 = vrot.lane.b32.xlu1 %v8054_v7, %s11117_s29  ;;  %8145 = vrot.lane.b32.xlu0 %v8122_v57, %s11116_s28  ;;  %v8429_v7 = vmul.f32 %v14591_v61, %v8324_v33  ;;  %v8497_v57 = vmul.f32 %v14605_v15, %v8324_v33 }
0x1776   : > { %8213 = vrot.lane.b32.xlu1 %v8190_v12, %s11119_s30  ;;  %8281 = vrot.lane.b32.xlu0 %v8258_v3, %s11120_s17  ;;  %v8565_v12 = vmul.f32 %v14594_v62, %v8324_v33  ;;  %v8631_v3 = vld [vmem:[#allocation2 + $0xc] sm:$0xff] }
0x1777   : > { %v8736_v0 = vmul.f32 %v14603_v21, %v8631_v3 }
0x177a   : > { %8450 = vrot.lane.b32.xlu1 %v8428_v29, %s11116_s28  ;;  %8382 = vrot.lane.b32.xlu0 %v8360_v14, %s11117_s29  ;;  %v8668_v29 = vmul.f32 %v14709_v2, %v8631_v3  ;;  %v8804_v14 = vmul.f32 %v14718_v53, %v8631_v3 }
0x177e   : > { %8586 = vrot.lane.b32.xlu1 %v8564_v55, %s11120_s17  ;;  %8518 = vrot.lane.b32.xlu0 %v8496_v23, %s11119_s30  ;;  %v8872_v55 = vmul.f32 %v14612_v49, %v8631_v3  ;;  %v14930_v23 = vld [vmem:[#allocation2 + $0x18] sm:$0xff] }
0x177f   : > { %v7442_v42 = vmul.f32 %v14767_v26, %v14930_v23 }
0x1782   : > { %8689 = vrot.lane.b32.xlu1 %v8667_v30, %s11117_s29  ;;  %8757 = vrot.lane.b32.xlu0 %v8735_v36, %s11116_s28  ;;  %v7510_v30 = vmul.f32 %v14765_v39, %v14930_v23  ;;  %v7578_v36 = vmul.f32 %v14778_v44, %v14930_v23 }
0x1786   : > { %8893 = vrot.lane.b32.xlu1 %v8871_v22, %s11120_s17  ;;  %8825 = vrot.lane.b32.xlu0 %v8803_v32, %s11119_s30  ;;  %v7646_v22 = vmul.f32 %v14776_v41, %v14930_v23  ;;  %v14944_v32 = vld [vmem:[#allocation2 + $0x19] sm:$0xff] }
0x178a   : > { %7533 = vrot.lane.b32.xlu1 %v7509_v5, %s11116_s28  ;;  %7465 = vrot.lane.b32.xlu0 %v7441_v25, %s11117_s29  ;;  %v7749_v5 = vmul.f32 %v14789_v27, %v14944_v32  ;;  %v7817_v25 = vmul.f32 %v14787_v37, %v14944_v32 }
0x178e   : > { %7669 = vrot.lane.b32.xlu1 %v7645_v16, %s11120_s17  ;;  %7601 = vrot.lane.b32.xlu0 %v7577_v47, %s11119_s30 }
0x1792   : > { %7840 = vrot.lane.b32.xlu1 %v7816_v48, %s11116_s28  ;;  %7772 = vrot.lane.b32.xlu0 %v7748_v35, %s11117_s29  ;;  %v7885_v48 = vmul.f32 %v14798_v18, %v14944_v32  ;;  %v7953_v35 = vmul.f32 %v14796_v45, %v14944_v32 }
0x1796   : > { %7976 = vrot.lane.b32.xlu1 %v7952_v4, %s11120_s17  ;;  %7908 = vrot.lane.b32.xlu0 %v7884_v6, %s11119_s30  ;;  %v14962_v4 = vld [vmem:[#allocation2 + $0x1a] sm:$0xff] }
0x1797   : > { %16566 = vst [vmem:[#allocation20_spill] sm:$0xff] %v14962_v4  ;;  %v8192_v33 = vmul.f32 %v14816_v8, %v14962_v4 }
0x179a   : > { %8147 = vrot.lane.b32.xlu1 %v8123_v19, %s11116_s28  ;;  %8079 = vrot.lane.b32.xlu0 %v8055_v63, %s11117_s29  ;;  %v8056_v19 = vmul.f32 %v14807_v60, %v14962_v4  ;;  %v8124_v63 = vmul.f32 %v14805_v31, %v14962_v4 }
0x179e   : > { %8283 = vrot.lane.b32.xlu1 %v8259_v9, %s11120_s17  ;;  %8215 = vrot.lane.b32.xlu0 %v8191_v58, %s11119_s30 }
0x17a2   : > { %8384 = vrot.lane.b32.xlu1 %v8361_v56, %s11117_s29  ;;  %8452 = vrot.lane.b32.xlu0 %v8429_v7, %s11116_s28  ;;  %v8260_v56 = vmul.f32 %v14814_v34, %v14962_v4  ;;  %v8325_v7 = vld [vmem:[#allocation2 + $0x13] sm:$0xff] }
0x17a3   : > { %v8430_v3 = vmul.f32 %v14591_v61, %v8325_v7 }
0x17a6   : > { %8520 = vrot.lane.b32.xlu1 %v8497_v57, %s11119_s30  ;;  %8588 = vrot.lane.b32.xlu0 %v8565_v12, %s11120_s17 }
0x17aa   : > { %8759 = vrot.lane.b32.xlu1 %v8736_v0, %s11116_s28  ;;  %8691 = vrot.lane.b32.xlu0 %v8668_v29, %s11117_s29  ;;  %v8362_v0 = vmul.f32 %v14596_v40, %v8325_v7 }
0x17ae   : > { %8827 = vrot.lane.b32.xlu1 %v8804_v14, %s11119_s30  ;;  %8895 = vrot.lane.b32.xlu0 %v8872_v55, %s11120_s17  ;;  %v8566_v55 = vmul.f32 %v14594_v62, %v8325_v7 }
0x17b2   : > { %7467 = vrot.lane.b32.xlu1 %v7442_v42, %s11117_s29  ;;  %7535 = vrot.lane.b32.xlu0 %v7510_v30, %s11116_s28  ;;  %v8498_v42 = vmul.f32 %v14605_v15, %v8325_v7  ;;  %v8632_v30 = vld [vmem:[#allocation2 + $0x14] sm:$0xff] }
0x17b6   : > { %7603 = vrot.lane.b32.xlu1 %v7578_v36, %s11119_s30  ;;  %7671 = vrot.lane.b32.xlu0 %v7646_v22, %s11120_s17 }
0x17ba   : > { %7774 = vrot.lane.b32.xlu1 %v7749_v5, %s11117_s29  ;;  %7842 = vrot.lane.b32.xlu0 %v7817_v25, %s11116_s28  ;;  %v8669_v5 = vmul.f32 %v14709_v2, %v8632_v30  ;;  %v8737_v25 = vmul.f32 %v14603_v21, %v8632_v30 }
0x17bc   : > { %v14954_v16 = vpop.permute.xlu0 %7461  ;;  %v14956_v47 = vpop.permute.xlu1 %7529 }
0x17be   : > { %7910 = vrot.lane.b32.xlu1 %v7885_v48, %s11119_s30  ;;  %7978 = vrot.lane.b32.xlu0 %v7953_v35, %s11120_s17 }
0x17c0   : > { %v14966_v6 = vpop.permute.xlu0 %7597  ;;  %v14968_v24 = vpop.permute.xlu1 %7665 }
0x17c2   : > { %8081 = vrot.lane.b32.xlu1 %v8056_v19, %s11117_s29  ;;  %8149 = vrot.lane.b32.xlu0 %v8124_v63, %s11116_s28  ;;  %v8873_v19 = vmul.f32 %v14612_v49, %v8632_v30  ;;  %v8805_v63 = vmul.f32 %v14718_v53, %v8632_v30 }
0x17c4   : > { %v14976_v9 = vpop.permute.xlu0 %7768  ;;  %v14978_v58 = vpop.permute.xlu1 %7836 }
0x17c5   : > { %16567 = vst [vmem:[#allocation21_spill] sm:$0xff] %v14978_v58  ;;  %v15472_v58 = vld [vmem:[#allocation2 + $0x41] sm:$0xff] }
0x17c6   : > { %8217 = vrot.lane.b32.xlu1 %v8192_v33, %s11119_s30  ;;  %8285 = vrot.lane.b32.xlu0 %v8260_v56, %s11120_s17  ;;  %v15016_v33 = vld [vmem:[#allocation2 + $0x20] sm:$0xff]  ;;  %16656 = vst [vmem:[#allocation110_spill] sm:$0xff] %v15472_v58 }
0x17c7   : > { %v7647_v30 = vmul.f32 %v14776_v41, %v15016_v33 }
0x17c8   : > { %v14986_v57 = vpop.permute.xlu0 %7904  ;;  %v14988_v12 = vpop.permute.xlu1 %7972 }
0x17c9   : > { %16568 = vst [vmem:[#allocation22_spill] sm:$0xff] %v14986_v57  ;;  %16569 = vst [vmem:[#allocation23_spill] sm:$0xff] %v14988_v12 }
0x17ca   : > { %8454 = vrot.lane.b32.xlu1 %v8430_v3, %s11116_s28  ;;  %8386 = vrot.lane.b32.xlu0 %v8362_v0, %s11117_s29  ;;  %v7511_v3 = vmul.f32 %v14765_v39, %v15016_v33  ;;  %v7443_v0 = vmul.f32 %v14767_v26, %v15016_v33 }
0x17cc   : > { %v14994_v29 = vpop.permute.xlu0 %8075  ;;  %v14996_v14 = vpop.permute.xlu1 %8143 }
0x17cd   : > { %16570 = vst [vmem:[#allocation24_spill] sm:$0xff] %v14994_v29  ;;  %16571 = vst [vmem:[#allocation25_spill] sm:$0xff] %v14996_v14 }
0x17ce   : > { %8590 = vrot.lane.b32.xlu1 %v8566_v55, %s11120_s17  ;;  %8522 = vrot.lane.b32.xlu0 %v8498_v42, %s11119_s30 }
0x17d0   : > { %v15002_v36 = vpop.permute.xlu0 %8211  ;;  %v15004_v22 = vpop.permute.xlu1 %8279 }
0x17d1   : > { %16572 = vst [vmem:[#allocation26_spill] sm:$0xff] %v15002_v36  ;;  %16573 = vst [vmem:[#allocation27_spill] sm:$0xff] %v15004_v22 }
0x17d2   : > { %8693 = vrot.lane.b32.xlu1 %v8669_v5, %s11117_s29  ;;  %8761 = vrot.lane.b32.xlu0 %v8737_v25, %s11116_s28  ;;  %v7579_v5 = vmul.f32 %v14778_v44, %v15016_v33  ;;  %v15038_v25 = vld [vmem:[#allocation2 + $0x21] sm:$0xff] }
0x17d3   : > { %16575 = vst [vmem:[#allocation29_spill] sm:$0xff] %v15038_v25 }
0x17d4   : > { %v15010_v48 = vpop.permute.xlu0 %7531  ;;  %v15012_v35 = vpop.permute.xlu1 %7463 }
0x17d6   : > { %8897 = vrot.lane.b32.xlu1 %v8873_v19, %s11120_s17  ;;  %8829 = vrot.lane.b32.xlu0 %v8805_v63, %s11119_s30 }
0x17d8   : > { %v15020_v56 = vpop.permute.xlu0 %7667  ;;  %v15022_v7 = vpop.permute.xlu1 %7599 }
0x17da   : > { %7537 = vrot.lane.b32.xlu1 %v7511_v3, %s11116_s28  ;;  %7469 = vrot.lane.b32.xlu0 %v7443_v0, %s11117_s29  ;;  %v7818_v3 = vmul.f32 %v14787_v37, %v15038_v25  ;;  %v7750_v0 = vmul.f32 %v14789_v27, %v15038_v25 }
0x17dc   : > { %v15030_v55 = vpop.permute.xlu0 %7838  ;;  %v15032_v42 = vpop.permute.xlu1 %7770 }
0x17dd   : > { %16574 = vst [vmem:[#allocation28_spill] sm:$0xff] %v15030_v55 }
0x17de   : > { %7673 = vrot.lane.b32.xlu1 %v7647_v30, %s11120_s17  ;;  %7605 = vrot.lane.b32.xlu0 %v7579_v5, %s11119_s30  ;;  %v7954_v30 = vmul.f32 %v14796_v45, %v15038_v25  ;;  %v7886_v5 = vmul.f32 %v14798_v18, %v15038_v25 }
0x17e0   : > { %v15042_v19 = vpop.permute.xlu0 %7974  ;;  %v15044_v63 = vpop.permute.xlu1 %7906 }
0x17e1   : > { %16576 = vst [vmem:[#allocation30_spill] sm:$0xff] %v15042_v19  ;;  %16577 = vst [vmem:[#allocation31_spill] sm:$0xff] %v15044_v63  ;;  %v15252_v19 = vld [vmem:[#allocation2 + $0x31] sm:$0xff] }
0x17e2   : > { %7844 = vrot.lane.b32.xlu1 %v7818_v3, %s11116_s28  ;;  %7776 = vrot.lane.b32.xlu0 %v7750_v0, %s11117_s29  ;;  %v8125_v0 = vmul.f32 %v14805_v31, %v15060_v13  ;;  %16614 = vst [vmem:[#allocation68_spill] sm:$0xff] %v15252_v19 }
0x17e4   : > { %v15052_v11 = vpop.permute.xlu0 %8145  ;;  %v15054_v20 = vpop.permute.xlu1 %8077 }
0x17e5   : > { %16578 = vst [vmem:[#allocation32_spill] sm:$0xff] %v15052_v11  ;;  %16579 = vst [vmem:[#allocation33_spill] sm:$0xff] %v15054_v20  ;;  %v15164_v20 = vld [vmem:[#allocation2 + $0x2a] sm:$0xff] }
0x17e6   : > { %7980 = vrot.lane.b32.xlu1 %v7954_v30, %s11120_s17  ;;  %7912 = vrot.lane.b32.xlu0 %v7886_v5, %s11119_s30  ;;  %v8261_v30 = vmul.f32 %v14814_v34, %v15060_v13  ;;  %v8193_v5 = vmul.f32 %v14816_v8, %v15060_v13  ;;  %16599 = vst [vmem:[#allocation53_spill] sm:$0xff] %v15164_v20 }
0x17e8   : > { %v15064_v43 = vpop.permute.xlu0 %8281  ;;  %v15066_v3 = vpop.permute.xlu1 %8213 }
0x17e9   : > { %16581 = vst [vmem:[#allocation35_spill] sm:$0xff] %v15064_v43  ;;  %16582 = vst [vmem:[#allocation36_spill] sm:$0xff] %v15066_v3  ;;  %v15120_v43 = vld [vmem:[#allocation2 + $0x28] sm:$0xff] }
0x17ea   : > { %8151 = vrot.lane.b32.xlu1 %v8125_v0, %s11116_s28  ;;  %8083 = vrot.lane.b32.xlu0 %v8057_v17, %s11117_s29  ;;  %v8363_v17 = vmul.f32 %v14596_v40, %v15082_v50  ;;  %v15142_v3 = vld [vmem:[#allocation2 + $0x29] sm:$0xff] }
0x17eb   : > { %16594 = vst [vmem:[#allocation48_spill] sm:$0xff] %v15142_v3  ;;  %v7751_v11 = vmul.f32 %v14789_v27, %v15142_v3 }
0x17ec   : > { %v15074_v54 = vpop.permute.xlu0 %8382  ;;  %v15076_v1 = vpop.permute.xlu1 %8450 }
0x17ed   : > { %16583 = vst [vmem:[#allocation37_spill] sm:$0xff] %v15074_v54  ;;  %16584 = vst [vmem:[#allocation38_spill] sm:$0xff] %v15076_v1 }
0x17ee   : > { %8287 = vrot.lane.b32.xlu1 %v8261_v30, %s11120_s17  ;;  %8219 = vrot.lane.b32.xlu0 %v8193_v5, %s11119_s30  ;;  %v8499_v30 = vmul.f32 %v14605_v15, %v15082_v50  ;;  %v8567_v5 = vmul.f32 %v14594_v62, %v15082_v50 }
0x17f0   : > { %v15086_v38 = vpop.permute.xlu0 %8518  ;;  %v15088_v0 = vpop.permute.xlu1 %8586 }
0x17f1   : > { %16586 = vst [vmem:[#allocation40_spill] sm:$0xff] %v15086_v38  ;;  %16587 = vst [vmem:[#allocation41_spill] sm:$0xff] %v15088_v0  ;;  %v8633_v0 = vld [vmem:[#allocation2 + $0x1c] sm:$0xff] }
0x17f2   : > { %8388 = vrot.lane.b32.xlu1 %v8363_v17, %s11117_s29  ;;  %8456 = vrot.lane.b32.xlu0 %v8431_v51, %s11116_s28  ;;  %v8738_v51 = vmul.f32 %v14603_v21, %v8633_v0 }
0x17f4   : > { %v15096_v1 = vpop.permute.xlu0 %8757  ;;  %v15098_v54 = vpop.permute.xlu1 %8689 }
0x17f5   : > { %16588 = vst [vmem:[#allocation42_spill] sm:$0xff] %v15096_v1  ;;  %16589 = vst [vmem:[#allocation43_spill] sm:$0xff] %v15098_v54  ;;  %v8670_v1 = vmul.f32 %v14709_v2, %v8633_v0 }
0x17f6   : > { %8524 = vrot.lane.b32.xlu1 %v8499_v30, %s11119_s30  ;;  %8592 = vrot.lane.b32.xlu0 %v8567_v5, %s11120_s17  ;;  %v8806_v30 = vmul.f32 %v14718_v53, %v8633_v0  ;;  %v8874_v5 = vmul.f32 %v14612_v49, %v8633_v0 }
0x17f8   : > { %v15106_v38 = vpop.permute.xlu0 %8825  ;;  %v15108_v17 = vpop.permute.xlu1 %8893 }
0x17f9   : > { %16590 = vst [vmem:[#allocation44_spill] sm:$0xff] %v15106_v38  ;;  %16591 = vst [vmem:[#allocation45_spill] sm:$0xff] %v15108_v17 }
0x17fa   : > { %8763 = vrot.lane.b32.xlu1 %v8738_v51, %s11116_s28  ;;  %8695 = vrot.lane.b32.xlu0 %v8670_v1, %s11117_s29  ;;  %v7512_v1 = vmul.f32 %v14765_v39, %v15120_v43  ;;  %v7444_v51 = vmul.f32 %v14767_v26, %v15120_v43 }
0x17fc   : > { %v15114_v54 = vpop.permute.xlu0 %7465  ;;  %v15116_v50 = vpop.permute.xlu1 %7533 }
0x17fe   : > { %8831 = vrot.lane.b32.xlu1 %v8806_v30, %s11119_s30  ;;  %8899 = vrot.lane.b32.xlu0 %v8874_v5, %s11120_s17  ;;  %v7648_v30 = vmul.f32 %v14776_v41, %v15120_v43  ;;  %v7580_v5 = vmul.f32 %v14778_v44, %v15120_v43 }
0x1800   : > { %v15124_v17 = vpop.permute.xlu0 %7601  ;;  %v15126_v38 = vpop.permute.xlu1 %7669 }
0x1802   : > { %7539 = vrot.lane.b32.xlu0 %v7512_v1, %s11116_s28  ;;  %7471 = vrot.lane.b32.xlu1 %v7444_v51, %s11117_s29  ;;  %v7819_v51 = vmul.f32 %v14787_v37, %v15142_v3 }
0x1804   : > { %v15134_v0 = vpop.permute.xlu0 %7772  ;;  %v15136_v22 = vpop.permute.xlu1 %7840 }
0x1805   : > { %16592 = vst [vmem:[#allocation46_spill] sm:$0xff] %v15134_v0  ;;  %16593 = vst [vmem:[#allocation47_spill] sm:$0xff] %v15136_v22  ;;  %v15362_v0 = vld [vmem:[#allocation2 + $0x39] sm:$0xff] }
0x1806   : > { %7675 = vrot.lane.b32.xlu0 %v7648_v30, %s11120_s17  ;;  %7607 = vrot.lane.b32.xlu1 %v7580_v5, %s11119_s30  ;;  %v7955_v30 = vmul.f32 %v14796_v45, %v15142_v3  ;;  %v7887_v5 = vmul.f32 %v14798_v18, %v15142_v3  ;;  %16635 = vst [vmem:[#allocation89_spill] sm:$0xff] %v15362_v0 }
0x1808   : > { %v15146_v36 = vpop.permute.xlu0 %7908  ;;  %v15148_v1 = vpop.permute.xlu1 %7976 }
0x1809   : > { %16595 = vst [vmem:[#allocation49_spill] sm:$0xff] %v15146_v36  ;;  %16596 = vst [vmem:[#allocation50_spill] sm:$0xff] %v15148_v1 }
0x180a   : > { %7846 = vrot.lane.b32.xlu0 %v7819_v51, %s11116_s28  ;;  %7778 = vrot.lane.b32.xlu1 %v7751_v11, %s11117_s29  ;;  %v8126_v11 = vmul.f32 %v14805_v31, %v15164_v20 }
0x180c   : > { %v15156_v13 = vpop.permute.xlu0 %8079  ;;  %v15158_v14 = vpop.permute.xlu1 %8147 }
0x180d   : > { %16597 = vst [vmem:[#allocation51_spill] sm:$0xff] %v15156_v13  ;;  %16598 = vst [vmem:[#allocation52_spill] sm:$0xff] %v15158_v14  ;;  %v8058_v14 = vmul.f32 %v14807_v60, %v15164_v20 }
0x180e   : > { %7982 = vrot.lane.b32.xlu0 %v7955_v30, %s11120_s17  ;;  %7914 = vrot.lane.b32.xlu1 %v7887_v5, %s11119_s30  ;;  %v8262_v30 = vmul.f32 %v14814_v34, %v15164_v20  ;;  %v8194_v5 = vmul.f32 %v14816_v8, %v15164_v20 }
0x1810   : > { %v15168_v4 = vpop.permute.xlu0 %8215  ;;  %v15170_v51 = vpop.permute.xlu1 %8283 }
0x1811   : > { %16600 = vst [vmem:[#allocation54_spill] sm:$0xff] %v15168_v4  ;;  %16601 = vst [vmem:[#allocation55_spill] sm:$0xff] %v15170_v51  ;;  %v15186_v51 = vld [vmem:[#allocation2 + $0x23] sm:$0xff] }
0x1812   : > { %8153 = vrot.lane.b32.xlu0 %v8126_v11, %s11116_s28  ;;  %8085 = vrot.lane.b32.xlu1 %v8058_v14, %s11117_s29  ;;  %16604 = vst [vmem:[#allocation58_spill] sm:$0xff] %v15186_v51  ;;  %v8364_v14 = vmul.f32 %v14596_v40, %v15186_v51 }
0x1814   : > { %v15178_v13 = vpop.permute.xlu0 %8452  ;;  %v15180_v29 = vpop.permute.xlu1 %8384 }
0x1815   : > { %16602 = vst [vmem:[#allocation56_spill] sm:$0xff] %v15178_v13  ;;  %16603 = vst [vmem:[#allocation57_spill] sm:$0xff] %v15180_v29  ;;  %v8432_v13 = vmul.f32 %v14591_v61, %v15186_v51 }
0x1816   : > { %8289 = vrot.lane.b32.xlu0 %v8262_v30, %s11120_s17  ;;  %8221 = vrot.lane.b32.xlu1 %v8194_v5, %s11119_s30  ;;  %v8500_v30 = vmul.f32 %v14605_v15, %v15186_v51  ;;  %v8568_v5 = vmul.f32 %v14594_v62, %v15186_v51 }
0x1818   : > { %v15190_v4 = vpop.permute.xlu0 %8588  ;;  %v15192_v11 = vpop.permute.xlu1 %8520 }
0x1819   : > { %16605 = vst [vmem:[#allocation59_spill] sm:$0xff] %v15190_v4  ;;  %16606 = vst [vmem:[#allocation60_spill] sm:$0xff] %v15192_v11  ;;  %v15208_v4 = vld [vmem:[#allocation2 + $0x24] sm:$0xff] }
0x181a   : > { %8390 = vrot.lane.b32.xlu0 %v8364_v14, %s11117_s29  ;;  %8458 = vrot.lane.b32.xlu1 %v8432_v13, %s11116_s28  ;;  %16609 = vst [vmem:[#allocation63_spill] sm:$0xff] %v15208_v4  ;;  %v8739_v13 = vmul.f32 %v14603_v21, %v15208_v4 }
0x181c   : > { %v15200_v29 = vpop.permute.xlu0 %8691  ;;  %v15202_v20 = vpop.permute.xlu1 %8759 }
0x181d   : > { %16607 = vst [vmem:[#allocation61_spill] sm:$0xff] %v15200_v29  ;;  %16608 = vst [vmem:[#allocation62_spill] sm:$0xff] %v15202_v20  ;;  %v8671_v20 = vmul.f32 %v14709_v2, %v15208_v4 }
0x181e   : > { %8526 = vrot.lane.b32.xlu0 %v8500_v30, %s11119_s30  ;;  %8594 = vrot.lane.b32.xlu1 %v8568_v5, %s11120_s17  ;;  %v8807_v30 = vmul.f32 %v14718_v53, %v15208_v4  ;;  %v8875_v5 = vmul.f32 %v14612_v49, %v15208_v4 }
0x1820   : > { %v15212_v11 = vpop.permute.xlu0 %8895  ;;  %v15214_v14 = vpop.permute.xlu1 %8827 }
0x1821   : > { %16610 = vst [vmem:[#allocation64_spill] sm:$0xff] %v15212_v11  ;;  %16611 = vst [vmem:[#allocation65_spill] sm:$0xff] %v15214_v14  ;;  %v15230_v11 = vld [vmem:[#allocation2 + $0x30] sm:$0xff] }
0x1822   : > { %8765 = vrot.lane.b32.xlu0 %v8739_v13, %s11116_s28  ;;  %8697 = vrot.lane.b32.xlu1 %v8671_v20, %s11117_s29  ;;  %v7445_v20 = vmul.f32 %v14767_v26, %v15230_v11  ;;  %v7513_v1 = vmul.f32 %v14765_v39, %v15230_v11 }
0x1824   : > { %v15222_v29 = vpop.permute.xlu0 %7535  ;;  %v15224_v51 = vpop.permute.xlu1 %7467 }
0x1826   : > { %8833 = vrot.lane.b32.xlu0 %v8807_v30, %s11119_s30  ;;  %8901 = vrot.lane.b32.xlu1 %v8875_v5, %s11120_s17  ;;  %v7581_v30 = vmul.f32 %v14778_v44, %v15230_v11  ;;  %v7649_v5 = vmul.f32 %v14776_v41, %v15230_v11 }
0x1828   : > { %v15234_v14 = vpop.permute.xlu0 %7671  ;;  %v15236_v13 = vpop.permute.xlu1 %7603 }
0x182a   : > { %7473 = vrot.lane.b32.xlu0 %v7445_v20, %s11117_s29  ;;  %7541 = vrot.lane.b32.xlu1 %v7513_v1, %s11116_s28  ;;  %v7752_v1 = vmul.f32 %v14789_v27, %v15252_v19 }
0x182c   : > { %v15244_v4 = vpop.permute.xlu0 %7842  ;;  %v15246_v36 = vpop.permute.xlu1 %7774 }
0x182d   : > { %16612 = vst [vmem:[#allocation66_spill] sm:$0xff] %v15244_v4  ;;  %16613 = vst [vmem:[#allocation67_spill] sm:$0xff] %v15246_v36  ;;  %v7820_v4 = vmul.f32 %v14787_v37, %v15252_v19 }
0x182e   : > { %7609 = vrot.lane.b32.xlu0 %v7581_v30, %s11119_s30  ;;  %7677 = vrot.lane.b32.xlu1 %v7649_v5, %s11120_s17  ;;  %v7888_v30 = vmul.f32 %v14798_v18, %v15252_v19  ;;  %v7956_v5 = vmul.f32 %v14796_v45, %v15252_v19 }
0x1830   : > { %v15256_v12 = vpop.permute.xlu0 %7978  ;;  %v15258_v20 = vpop.permute.xlu1 %7910 }
0x1831   : > { %16615 = vst [vmem:[#allocation69_spill] sm:$0xff] %v15256_v12  ;;  %16616 = vst [vmem:[#allocation70_spill] sm:$0xff] %v15258_v20  ;;  %v15274_v12 = vld [vmem:[#allocation2 + $0x32] sm:$0xff] }
0x1832   : > { %7780 = vrot.lane.b32.xlu0 %v7752_v1, %s11117_s29  ;;  %7848 = vrot.lane.b32.xlu1 %v7820_v4, %s11116_s28  ;;  %16619 = vst [vmem:[#allocation73_spill] sm:$0xff] %v15274_v12  ;;  %v8059_v4 = vmul.f32 %v14807_v60, %v15274_v12 }
0x1834   : > { %v15266_v22 = vpop.permute.xlu0 %8149  ;;  %v15268_v63 = vpop.permute.xlu1 %8081 }
0x1835   : > { %16617 = vst [vmem:[#allocation71_spill] sm:$0xff] %v15266_v22  ;;  %16618 = vst [vmem:[#allocation72_spill] sm:$0xff] %v15268_v63  ;;  %v8127_v22 = vmul.f32 %v14805_v31, %v15274_v12 }
0x1836   : > { %7916 = vrot.lane.b32.xlu0 %v7888_v30, %s11119_s30  ;;  %7984 = vrot.lane.b32.xlu1 %v7956_v5, %s11120_s17  ;;  %v8195_v30 = vmul.f32 %v14816_v8, %v15274_v12  ;;  %v8263_v5 = vmul.f32 %v14814_v34, %v15274_v12 }
0x1838   : > { %v15278_v20 = vpop.permute.xlu0 %8285  ;;  %v15280_v1 = vpop.permute.xlu1 %8217 }
0x1839   : > { %16620 = vst [vmem:[#allocation74_spill] sm:$0xff] %v15278_v20  ;;  %16621 = vst [vmem:[#allocation75_spill] sm:$0xff] %v15280_v1  ;;  %v15296_v20 = vld [vmem:[#allocation2 + $0x2b] sm:$0xff] }
0x183a   : > { %8087 = vrot.lane.b32.xlu0 %v8059_v4, %s11117_s29  ;;  %8155 = vrot.lane.b32.xlu1 %v8127_v22, %s11116_s28  ;;  %16624 = vst [vmem:[#allocation78_spill] sm:$0xff] %v15296_v20  ;;  %v8433_v22 = vmul.f32 %v14591_v61, %v15296_v20 }
0x183c   : > { %v15288_v63 = vpop.permute.xlu0 %8386  ;;  %v15290_v19 = vpop.permute.xlu1 %8454 }
0x183d   : > { %16622 = vst [vmem:[#allocation76_spill] sm:$0xff] %v15288_v63  ;;  %16623 = vst [vmem:[#allocation77_spill] sm:$0xff] %v15290_v19  ;;  %v8365_v19 = vmul.f32 %v14596_v40, %v15296_v20 }
0x183e   : > { %8223 = vrot.lane.b32.xlu0 %v8195_v30, %s11119_s30  ;;  %8291 = vrot.lane.b32.xlu1 %v8263_v5, %s11120_s17  ;;  %v8569_v30 = vmul.f32 %v14594_v62, %v15296_v20  ;;  %v8501_v5 = vmul.f32 %v14605_v15, %v15296_v20 }
0x1840   : > { %v15300_v1 = vpop.permute.xlu0 %8522  ;;  %v15302_v4 = vpop.permute.xlu1 %8590 }
0x1841   : > { %16625 = vst [vmem:[#allocation79_spill] sm:$0xff] %v15300_v1  ;;  %16626 = vst [vmem:[#allocation80_spill] sm:$0xff] %v15302_v4  ;;  %v15318_v4 = vld [vmem:[#allocation2 + $0x2c] sm:$0xff] }
0x1842   : > { %8460 = vrot.lane.b32.xlu0 %v8433_v22, %s11116_s28  ;;  %8392 = vrot.lane.b32.xlu1 %v8365_v19, %s11117_s29  ;;  %16629 = vst [vmem:[#allocation83_spill] sm:$0xff] %v15318_v4  ;;  %v8672_v19 = vmul.f32 %v14709_v2, %v15318_v4 }
0x1844   : > { %v15310_v63 = vpop.permute.xlu0 %8761  ;;  %v15312_v12 = vpop.permute.xlu1 %8693 }
0x1845   : > { %16627 = vst [vmem:[#allocation81_spill] sm:$0xff] %v15310_v63  ;;  %16628 = vst [vmem:[#allocation82_spill] sm:$0xff] %v15312_v12  ;;  %v8740_v63 = vmul.f32 %v14603_v21, %v15318_v4 }
0x1846   : > { %8596 = vrot.lane.b32.xlu0 %v8569_v30, %s11120_s17  ;;  %8528 = vrot.lane.b32.xlu1 %v8501_v5, %s11119_s30  ;;  %v8876_v30 = vmul.f32 %v14612_v49, %v15318_v4  ;;  %v8808_v5 = vmul.f32 %v14718_v53, %v15318_v4 }
0x1848   : > { %v15322_v1 = vpop.permute.xlu0 %8829  ;;  %v15324_v22 = vpop.permute.xlu1 %8897 }
0x1849   : > { %16630 = vst [vmem:[#allocation84_spill] sm:$0xff] %v15322_v1  ;;  %16631 = vst [vmem:[#allocation85_spill] sm:$0xff] %v15324_v22  ;;  %v15340_v22 = vld [vmem:[#allocation2 + $0x38] sm:$0xff] }
0x184a   : > { %8699 = vrot.lane.b32.xlu0 %v8672_v19, %s11117_s29  ;;  %8767 = vrot.lane.b32.xlu1 %v8740_v63, %s11116_s28  ;;  %16632 = vst [vmem:[#allocation86_spill] sm:$0xff] %v15340_v22  ;;  %v7514_v63 = vmul.f32 %v14765_v39, %v15340_v22  ;;  %v7446_v57 = vmul.f32 %v14767_v26, %v15340_v22 }
0x184c   : > { %v15332_v12 = vpop.permute.xlu0 %7469  ;;  %v15334_v20 = vpop.permute.xlu1 %7537 }
0x184e   : > { %8903 = vrot.lane.b32.xlu0 %v8876_v30, %s11120_s17  ;;  %8835 = vrot.lane.b32.xlu1 %v8808_v5, %s11119_s30  ;;  %v7650_v30 = vmul.f32 %v14776_v41, %v15340_v22  ;;  %v7582_v5 = vmul.f32 %v14778_v44, %v15340_v22 }
0x1850   : > { %v15344_v1 = vpop.permute.xlu0 %7605  ;;  %v15346_v19 = vpop.permute.xlu1 %7673 }
0x1852   : > { %7543 = vrot.lane.b32.xlu0 %v7514_v63, %s11116_s28  ;;  %7475 = vrot.lane.b32.xlu1 %v7446_v57, %s11117_s29  ;;  %v7821_v57 = vmul.f32 %v14787_v37, %v15362_v0 }
0x1854   : > { %v15354_v4 = vpop.permute.xlu0 %7776  ;;  %v15356_v36 = vpop.permute.xlu1 %7844 }
0x1855   : > { %16633 = vst [vmem:[#allocation87_spill] sm:$0xff] %v15354_v4  ;;  %16634 = vst [vmem:[#allocation88_spill] sm:$0xff] %v15356_v36  ;;  %v7753_v36 = vmul.f32 %v14789_v27, %v15362_v0 }
0x1856   : > { %7679 = vrot.lane.b32.xlu0 %v7650_v30, %s11120_s17  ;;  %7611 = vrot.lane.b32.xlu1 %v7582_v5, %s11119_s30  ;;  %v7957_v30 = vmul.f32 %v14796_v45, %v15362_v0  ;;  %v7889_v5 = vmul.f32 %v14798_v18, %v15362_v0 }
0x1858   : > { %v15366_v55 = vpop.permute.xlu0 %7912  ;;  %v15368_v63 = vpop.permute.xlu1 %7980 }
0x1859   : > { %16636 = vst [vmem:[#allocation90_spill] sm:$0xff] %v15366_v55  ;;  %16637 = vst [vmem:[#allocation91_spill] sm:$0xff] %v15368_v63  ;;  %v15384_v63 = vld [vmem:[#allocation2 + $0x3a] sm:$0xff] }
0x185a   : > { %7850 = vrot.lane.b32.xlu0 %v7821_v57, %s11116_s28  ;;  %7782 = vrot.lane.b32.xlu1 %v7753_v36, %s11117_s29  ;;  %16640 = vst [vmem:[#allocation94_spill] sm:$0xff] %v15384_v63  ;;  %v8128_v36 = vmul.f32 %v14805_v31, %v15384_v63 }
0x185c   : > { %v15376_v22 = vpop.permute.xlu0 %8083  ;;  %v15378_v4 = vpop.permute.xlu1 %8151 }
0x185d   : > { %16638 = vst [vmem:[#allocation92_spill] sm:$0xff] %v15376_v22  ;;  %16639 = vst [vmem:[#allocation93_spill] sm:$0xff] %v15378_v4  ;;  %v8060_v4 = vmul.f32 %v14807_v60, %v15384_v63 }
0x185e   : > { %7986 = vrot.lane.b32.xlu0 %v7957_v30, %s11120_s17  ;;  %7918 = vrot.lane.b32.xlu1 %v7889_v5, %s11119_s30  ;;  %v8264_v30 = vmul.f32 %v14814_v34, %v15384_v63  ;;  %v8196_v5 = vmul.f32 %v14816_v8, %v15384_v63 }
0x1860   : > { %v15388_v55 = vpop.permute.xlu0 %8219  ;;  %v15390_v57 = vpop.permute.xlu1 %8287 }
0x1861   : > { %16641 = vst [vmem:[#allocation95_spill] sm:$0xff] %v15388_v55  ;;  %16642 = vst [vmem:[#allocation96_spill] sm:$0xff] %v15390_v57  ;;  %v15406_v57 = vld [vmem:[#allocation2 + $0x33] sm:$0xff] }
0x1862   : > { %8157 = vrot.lane.b32.xlu0 %v8128_v36, %s11116_s28  ;;  %8089 = vrot.lane.b32.xlu1 %v8060_v4, %s11117_s29  ;;  %16645 = vst [vmem:[#allocation99_spill] sm:$0xff] %v15406_v57  ;;  %v8366_v4 = vmul.f32 %v14596_v40, %v15406_v57 }
0x1864   : > { %v15398_v0 = vpop.permute.xlu0 %8456  ;;  %v15400_v22 = vpop.permute.xlu1 %8388 }
0x1865   : > { %16643 = vst [vmem:[#allocation97_spill] sm:$0xff] %v15398_v0  ;;  %16644 = vst [vmem:[#allocation98_spill] sm:$0xff] %v15400_v22  ;;  %v8434_v0 = vmul.f32 %v14591_v61, %v15406_v57 }
0x1866   : > { %8293 = vrot.lane.b32.xlu0 %v8264_v30, %s11120_s17  ;;  %8225 = vrot.lane.b32.xlu1 %v8196_v5, %s11119_s30  ;;  %v8502_v30 = vmul.f32 %v14605_v15, %v15406_v57  ;;  %v8570_v5 = vmul.f32 %v14594_v62, %v15406_v57 }
0x1868   : > { %v15410_v55 = vpop.permute.xlu0 %8592  ;;  %v15412_v36 = vpop.permute.xlu1 %8524 }
0x1869   : > { %16646 = vst [vmem:[#allocation100_spill] sm:$0xff] %v15410_v55  ;;  %16647 = vst [vmem:[#allocation101_spill] sm:$0xff] %v15412_v36  ;;  %v15428_v55 = vld [vmem:[#allocation2 + $0x34] sm:$0xff] }
0x186a   : > { %8394 = vrot.lane.b32.xlu0 %v8366_v4, %s11117_s29  ;;  %8462 = vrot.lane.b32.xlu1 %v8434_v0, %s11116_s28  ;;  %16650 = vst [vmem:[#allocation104_spill] sm:$0xff] %v15428_v55  ;;  %v8741_v0 = vmul.f32 %v14603_v21, %v15428_v55 }
0x186c   : > { %v15420_v63 = vpop.permute.xlu0 %8695  ;;  %v15422_v22 = vpop.permute.xlu1 %8763 }
0x186d   : > { %16648 = vst [vmem:[#allocation102_spill] sm:$0xff] %v15420_v63  ;;  %16649 = vst [vmem:[#allocation103_spill] sm:$0xff] %v15422_v22  ;;  %v8673_v22 = vmul.f32 %v14709_v2, %v15428_v55 }
0x186e   : > { %8530 = vrot.lane.b32.xlu0 %v8502_v30, %s11119_s30  ;;  %8598 = vrot.lane.b32.xlu1 %v8570_v5, %s11120_s17  ;;  %v8809_v30 = vmul.f32 %v14718_v53, %v15428_v55  ;;  %v8877_v5 = vmul.f32 %v14612_v49, %v15428_v55 }
0x1870   : > { %v15432_v36 = vpop.permute.xlu0 %8899  ;;  %v15434_v4 = vpop.permute.xlu1 %8831 }
0x1871   : > { %16651 = vst [vmem:[#allocation105_spill] sm:$0xff] %v15432_v36  ;;  %16652 = vst [vmem:[#allocation106_spill] sm:$0xff] %v15434_v4  ;;  %v15450_v36 = vld [vmem:[#allocation2 + $0x40] sm:$0xff] }
0x1872   : > { %8769 = vrot.lane.b32.xlu0 %v8741_v0, %s11116_s28  ;;  %8701 = vrot.lane.b32.xlu1 %v8673_v22, %s11117_s29  ;;  %16653 = vst [vmem:[#allocation107_spill] sm:$0xff] %v15450_v36  ;;  %v7447_v22 = vmul.f32 %v14767_v26, %v15450_v36  ;;  %v7515_v3 = vmul.f32 %v14765_v39, %v15450_v36 }
0x1874   : > { %v15442_v63 = vpop.permute.xlu0 %7539  ;;  %v15444_v57 = vpop.permute.xlu1 %7471 }
0x1876   : > { %8837 = vrot.lane.b32.xlu0 %v8809_v30, %s11119_s30  ;;  %8905 = vrot.lane.b32.xlu1 %v8877_v5, %s11120_s17  ;;  %v7583_v30 = vmul.f32 %v14778_v44, %v15450_v36  ;;  %v7651_v5 = vmul.f32 %v14776_v41, %v15450_v36 }
0x1878   : > { %v15454_v4 = vpop.permute.xlu0 %7675  ;;  %v15456_v0 = vpop.permute.xlu1 %7607 }
0x1879   : > { %16654 = vst [vmem:[#allocation108_spill] sm:$0xff] %v15454_v4 }
0x187a   : > { %7477 = vrot.lane.b32.xlu0 %v7447_v22, %s11117_s29  ;;  %7545 = vrot.lane.b32.xlu1 %v7515_v3, %s11116_s28  ;;  %v7754_v3 = vmul.f32 %v14789_v27, %v15472_v58 }
0x187c   : > { %v15464_v55 = vpop.permute.xlu0 %7846  ;;  %v15466_v25 = vpop.permute.xlu1 %7778 }
0x187d   : > { %16655 = vst [vmem:[#allocation109_spill] sm:$0xff] %v15464_v55  ;;  %v7822_v55 = vmul.f32 %v14787_v37, %v15472_v58 }
0x187e   : > { %7613 = vrot.lane.b32.xlu0 %v7583_v30, %s11119_s30  ;;  %7681 = vrot.lane.b32.xlu1 %v7651_v5, %s11120_s17  ;;  %v7890_v5 = vmul.f32 %v14798_v18, %v15472_v58 }
0x1880   : > { %v15476_v4 = vpop.permute.xlu0 %7982  ;;  %v15478_v22 = vpop.permute.xlu1 %7914 }
0x1881   : > { %16657 = vst [vmem:[#allocation111_spill] sm:$0xff] %v15476_v4  ;;  %16658 = vst [vmem:[#allocation112_spill] sm:$0xff] %v15478_v22  ;;  %v7958_v4 = vmul.f32 %v14796_v45, %v15472_v58  ;;  %v15494_v22 = vld [vmem:[#allocation2 + $0x42] sm:$0xff] }
0x1882   : > { %7784 = vrot.lane.b32.xlu0 %v7754_v3, %s11117_s29  ;;  %7852 = vrot.lane.b32.xlu1 %v7822_v55, %s11116_s28  ;;  %16661 = vst [vmem:[#allocation115_spill] sm:$0xff] %v15494_v22  ;;  %v8061_v55 = vmul.f32 %v14807_v60, %v15494_v22  ;;  %v15520_v60 = vld [vmem:[#allocation2 + $0x3b] sm:$0xff] }
0x1883   : > { %16667 = vst [vmem:[#allocation121_spill] sm:$0xff] %v15520_v60 }
0x1884   : > { %v15486_v36 = vpop.permute.xlu0 %8153  ;;  %v15488_v30 = vpop.permute.xlu1 %8085 }
0x1885   : > { %16659 = vst [vmem:[#allocation113_spill] sm:$0xff] %v15486_v36  ;;  %16660 = vst [vmem:[#allocation114_spill] sm:$0xff] %v15488_v30  ;;  %v8129_v36 = vmul.f32 %v14805_v31, %v15494_v22  ;;  %v15506_v30 = vstv %s10090_s22  ;;  %s10116_s22 = sld [smem:[#allocation4 + $0xa0]] }
0x1886   : > { %7920 = vrot.lane.b32.xlu0 %v7890_v5, %s11119_s30  ;;  %7988 = vrot.lane.b32.xlu1 %v7958_v4, %s11120_s17  ;;  %16664 = vst [vmem:[#allocation118_spill] sm:$0xff] %v15506_v30  ;;  %v8197_v4 = vmul.f32 %v14816_v8, %v15494_v22 }
0x1888   : > { %v15498_v37 = vpop.permute.xlu0 %8289  ;;  %v15500_v3 = vpop.permute.xlu1 %8221 }
0x1889   : > { %16662 = vst [vmem:[#allocation116_spill] sm:$0xff] %v15498_v37  ;;  %16663 = vst [vmem:[#allocation117_spill] sm:$0xff] %v15500_v3  ;;  %v8265_v37 = vmul.f32 %v14814_v34, %v15494_v22  ;;  %v7426_v3 = vmul.f32 %v15506_v30, %v14769_v46  ;;  %v8435_v22 = vmul.f32 %v14591_v61, %v15520_v60 }
0x188a   : > { %8091 = vrot.lane.b32.xlu0 %v8061_v55, %s11117_s29  ;;  %8159 = vrot.lane.b32.xlu1 %v8129_v36, %s11116_s28  ;;  %v7427_v55 = vmul.f32 %v15506_v30, %v14823_v10  ;;  %v8367_v46 = vmul.f32 %v14596_v40, %v15520_v60  ;;  %v7428_v10 = vmul.f32 %v15506_v30, %v14878_v28 }
0x188b   : > { %v7494_v36 = vadd.f32 %v14954_v16, %v7426_v3  ;;  %v7429_v16 = vmul.f32 %v15506_v30, %v14930_v23 }
0x188c   : > { %v15510_v58 = vpop.permute.xlu0 %8390  ;;  %v15512_v5 = vpop.permute.xlu1 %8458  ;;  %v7495_v8 = vadd.f32 %v15012_v35, %v7427_v55  ;;  %v8571_v35 = vmul.f32 %v14594_v62, %v15520_v60 }
0x188d   : > { %16665 = vst [vmem:[#allocation119_spill] sm:$0xff] %v15510_v58  ;;  %16666 = vst [vmem:[#allocation120_spill] sm:$0xff] %v15512_v5  ;;  %v7497_v28 = vadd.f32 %v15224_v51, %v7429_v16 }
0x188e   : > { %8227 = vrot.lane.b32.xlu0 %v8197_v4, %s11119_s30  ;;  %8295 = vrot.lane.b32.xlu1 %v8265_v37, %s11120_s17  ;;  %v7562_v37 = vadd.f32 %v14956_v47, %v7494_v36  ;;  %v7563_v55 = vadd.f32 %v15010_v48, %v7495_v8  ;;  %v7496_v47 = vadd.f32 %v15114_v54, %v7428_v10  ;;  %v15553_v36 = vld [vmem:[#allocation2 + $0x3c] sm:$0xff] }
0x188f   : > { %16669 = vst [vmem:[#allocation123_spill] sm:$0xff] %v15553_v36  ;;  %v8674_v54 = vmul.f32 %v14709_v2, %v15553_v36  ;;  %v8742_v48 = vmul.f32 %v14603_v21, %v15553_v36 }
0x1890   : > { %v15527_v5 = vpop.permute.xlu0 %8526  ;;  %v15529_v58 = vpop.permute.xlu1 %8594  ;;  %v7630_v23 = vadd.f32 %v14966_v6, %v7562_v37  ;;  %v7631_v51 = vadd.f32 %v15022_v7, %v7563_v55  ;;  %v7564_v6 = vadd.f32 %v15116_v50, %v7496_v47  ;;  %v15573_v37 = vstv %s10095_s24  ;;  %v11071_v55 = vld [vmem:[#allocation2 + $0x1] sm:$0xff]  ;;  %s10119_s24 = sld [smem:[#allocation4 + $0xa3]] }
0x1891   : > { %v8878_v7 = vmul.f32 %v14612_v49, %v15553_v36  ;;  %v8810_v50 = vmul.f32 %v14718_v53, %v15553_v36  ;;  %v15590_v47 = vld [vmem:[#allocation2 + $0x48] sm:$0xff]  ;;  %v16741_v36 = vld [vmem:[#allocation78_spill] sm:$0xff] }
0x1892   : > { %8464 = vrot.lane.b32.xlu0 %v8435_v22, %s11116_s28  ;;  %8396 = vrot.lane.b32.xlu1 %v8367_v46, %s11117_s29  ;;  %v8503_v22 = vmul.f32 %v14605_v15, %v15520_v60  ;;  %v7430_v46 = vmul.f32 %v15506_v30, %v15016_v33  ;;  %v7431_v60 = vmul.f32 %v15506_v30, %v15120_v43 }
0x1893   : > { %v7565_v33 = vadd.f32 %v15222_v29, %v7497_v28  ;;  %v7698_v16 = vadd.f32 %v14968_v24, %v7630_v23  ;;  %v7722_v29 = vmul.f32 %v11071_v55, %v15573_v37  ;;  %16671 = vst [vmem:[#allocation125_spill] sm:$0xff] %v15590_v47 }
0x1894   : > { %v15543_v3 = vpop.permute.xlu0 %8765  ;;  %v15545_v4 = vpop.permute.xlu1 %8697  ;;  %v7498_v43 = vadd.f32 %v15332_v12, %v7430_v46  ;;  %v7499_v10 = vadd.f32 %v15444_v57, %v7431_v60  ;;  %v7699_v12 = vadd.f32 %v15020_v56, %v7631_v51  ;;  %v7632_v60 = vadd.f32 %v15124_v17, %v7564_v6  ;;  %v15588_v57 = vld [vmem:[#allocation2 + $0x50] sm:$0x1] }
0x1895   : > { %16668 = vst [vmem:[#allocation122_spill] sm:$0xff] %v15543_v3  ;;  %16670 = vst [vmem:[#allocation124_spill] sm:$0xff] %v15588_v57  ;;  %v7633_v24 = vadd.f32 %v15236_v13, %v7565_v33  ;;  %v7733_v46 = vadd.f32 %v7722_v29, %v7698_v16  ;;  %v7723_v56 = vmul.f32 %v15573_v37, %v14839_v52 }
0x1896   : > { %8600 = vrot.lane.b32.xlu0 %v8571_v35, %s11120_s17  ;;  %8532 = vrot.lane.b32.xlu1 %v8503_v22, %s11119_s30  ;;  %v7566_v28 = vadd.f32 %v15334_v20, %v7498_v43  ;;  %v7567_v23 = vadd.f32 %v15442_v63, %v7499_v10  ;;  %v7448_v13 = vmul.f32 %v14767_v26, %v15590_v47 }
0x1897   : > { %v7734_v51 = vadd.f32 %v7723_v56, %v7699_v12  ;;  %v7700_v20 = vadd.f32 %v15126_v38, %v7632_v60  ;;  %v7432_v63 = vmul.f32 %v15506_v30, %v15230_v11  ;;  %v7701_v6 = vadd.f32 %v15234_v14, %v7633_v24  ;;  %v16674_v12 = vld [vmem:[#allocation29_spill] sm:$0xff]  ;;  %v16675_v60 = vld [vmem:[#allocation48_spill] sm:$0xff] }
0x1898   : > { %v15563_v3 = vpop.permute.xlu0 %8833  ;;  %v15565_v8 = vpop.permute.xlu1 %8901  ;;  %v7634_v33 = vadd.f32 %v15344_v1, %v7566_v28  ;;  %v7635_v52 = vadd.f32 %v15456_v0, %v7567_v23  ;;  %v7801_v43 = vadd.f32 %v14976_v9, %v7733_v46  ;;  %v7725_v38 = vmul.f32 %v15573_v37, %v14944_v32  ;;  %v16676_v46 = vld [vmem:[#allocation28_spill] sm:$0xff] }
0x1899   : > { %v7516_v1 = vmul.f32 %v14765_v39, %v15590_v47  ;;  %v7517_v0 = vmul.f32 %v14765_v39, %v15588_v57  ;;  %v7802_v16 = vadd.f32 %v15032_v42, %v7734_v51  ;;  %v7726_v39 = vmul.f32 %v15573_v37, %v16674_v12 }
0x189a   : > { %8703 = vrot.lane.b32.xlu0 %v8674_v54, %s11117_s29  ;;  %8771 = vrot.lane.b32.xlu1 %v8742_v48, %s11116_s28  ;;  %v7449_v48 = vmul.f32 %v14767_v26, %v15588_v57  ;;  %v7724_v26 = vmul.f32 %v15573_v37, %v14892_v59  ;;  %v7736_v59 = vadd.f32 %v7725_v38, %v7701_v6  ;;  %v16679_v6 = vld [vmem:[#allocation22_spill] sm:$0xff]  ;;  %v16680_v38 = vld [vmem:[#allocation31_spill] sm:$0xff] }
0x189b   : > { %v7727_v42 = vmul.f32 %v15573_v37, %v16675_v60  ;;  %v7584_v23 = vmul.f32 %v14778_v44, %v15590_v47  ;;  %v7870_v56 = vadd.f32 %v16676_v46, %v7802_v16  ;;  %v16687_v46 = vld [vmem:[#allocation30_spill] sm:$0xff] }
0x189c   : > { %v7474_v35 = vpop.permute.xlu0 %7473  ;;  %v7542_v22 = vpop.permute.xlu1 %7541  ;;  %v7735_v9 = vadd.f32 %v7724_v26, %v7700_v20 }
0x189d   : > { %v7500_v10 = vadd.f32 %v7474_v35, %v7432_v63  ;;  %v7702_v35 = vadd.f32 %v15346_v19, %v7634_v33  ;;  %v7585_v19 = vmul.f32 %v14778_v44, %v15588_v57  ;;  %v7652_v44 = vmul.f32 %v14776_v41, %v15590_v47  ;;  %v16739_v47 = vld [vmem:[#allocation76_spill] sm:$0xff] }
0x189e   : > { %8907 = vrot.lane.b32.xlu0 %v8878_v7, %s11120_s17  ;;  %8839 = vrot.lane.b32.xlu1 %v8810_v50, %s11119_s30  ;;  %v16672_v7 = vld [vmem:[#allocation108_spill] sm:$0xff]  ;;  %v16673_v50 = vld [vmem:[#allocation21_spill] sm:$0xff] }
0x189f   : > { %v7703_v32 = vadd.f32 %v16672_v7, %v7635_v52  ;;  %v7869_v55 = vadd.f32 %v16673_v50, %v7801_v43  ;;  %v7568_v29 = vadd.f32 %v7542_v22, %v7500_v10  ;;  %v7737_v20 = vadd.f32 %v7726_v39, %v7702_v35 }
0x18a0   : > { %v7610_v54 = vpop.permute.xlu0 %7609  ;;  %v7678_v17 = vpop.permute.xlu1 %7677  ;;  %v7653_v10 = vmul.f32 %v14776_v41, %v15588_v57  ;;  %v15665_v35 = vstv %s15625_s27  ;;  %v16686_v41 = vld [vmem:[#allocation23_spill] sm:$0xff]  ;;  %s10122_s27 = sld [smem:[#allocation4 + $0xa6]] }
0x18a1   : > { %v7738_v63 = vadd.f32 %v7727_v42, %v7703_v32  ;;  %v7937_v33 = vadd.f32 %v16679_v6, %v7869_v55  ;;  %v7636_v52 = vadd.f32 %v7610_v54, %v7568_v29  ;;  %v16684_v54 = vld [vmem:[#allocation66_spill] sm:$0xff]  ;;  %v16685_v32 = vld [vmem:[#allocation87_spill] sm:$0xff] }
0x18a2   : > { %7481 = vrot.lane.b32.xlu0 %v7449_v48, %s11117_s29  ;;  %7479 = vrot.lane.b32.xlu1 %v7448_v13, %s11117_s29  ;;  %v16677_v48 = vld [vmem:[#allocation46_spill] sm:$0xff]  ;;  %v16678_v13 = vld [vmem:[#allocation67_spill] sm:$0xff]  ;;  %v7805_v50 = vadd.f32 %v16685_v32, %v7737_v20 }
0x18a3   : > { %v7803_v22 = vadd.f32 %v16677_v48, %v7735_v9  ;;  %v7804_v51 = vadd.f32 %v16678_v13, %v7736_v59  ;;  %v15660_v9 = vld [vmem:[#allocation2 + $0x51] sm:$0x1]  ;;  %v15662_v59 = vld [vmem:[#allocation2 + $0x49] sm:$0xff]  ;;  %v7806_v55 = vadd.f32 %v15466_v25, %v7738_v63  ;;  %v8005_v29 = vadd.f32 %v16686_v41, %v7937_v33  ;;  %v16689_v13 = vld [vmem:[#allocation68_spill] sm:$0xff] }
0x18a4   : > { %v15616_v11 = vpop.permute.xlu0 %7780  ;;  %v15618_v14 = vpop.permute.xlu1 %7848  ;;  %16682 = vst [vmem:[#allocation108_spill] sm:$0xff] %v15660_v9  ;;  %16683 = vst [vmem:[#allocation21_spill] sm:$0xff] %v15662_v59  ;;  %v7704_v12 = vadd.f32 %v7678_v17, %v7636_v52  ;;  %v7756_v42 = vmul.f32 %v14789_v27, %v15660_v9  ;;  %v16688_v48 = vld [vmem:[#allocation49_spill] sm:$0xff]  ;;  %v7728_v17 = vmul.f32 %v15573_v37, %v16689_v13  ;;  %v16691_v63 = vld [vmem:[#allocation88_spill] sm:$0xff] }
0x18a5   : > { %v7872_v7 = vadd.f32 %v16684_v54, %v7804_v51  ;;  %v16690_v51 = vld [vmem:[#allocation70_spill] sm:$0xff]  ;;  %v7873_v6 = vadd.f32 %v16691_v63, %v7805_v50  ;;  %v16692_v33 = vld [vmem:[#allocation109_spill] sm:$0xff]  ;;  %v7892_v63 = vmul.f32 %v14798_v18, %v15660_v9 }
0x18a6   : > { %7547 = vrot.lane.b32.xlu0 %v7516_v1, %s11116_s28  ;;  %7549 = vrot.lane.b32.xlu1 %v7517_v0, %s11116_s28  ;;  %v7938_v1 = vadd.f32 %v16680_v38, %v7870_v56  ;;  %v16681_v0 = vld [vmem:[#allocation47_spill] sm:$0xff]  ;;  %v7874_v52 = vadd.f32 %v16692_v33, %v7806_v55  ;;  %v7739_v38 = vadd.f32 %v7728_v17, %v7704_v12  ;;  %v16694_v50 = vld [vmem:[#allocation50_spill] sm:$0xff]  ;;  %v16695_v41 = vld [vmem:[#allocation69_spill] sm:$0xff] }
0x18a7   : > { %v7871_v16 = vadd.f32 %v16681_v0, %v7803_v22  ;;  %v7940_v20 = vadd.f32 %v16690_v51, %v7872_v7  ;;  %v16698_v12 = vld [vmem:[#allocation24_spill] sm:$0xff]  ;;  %v16700_v33 = vld [vmem:[#allocation33_spill] sm:$0xff] }
0x18a8   : > { %v15636_v24 = vpop.permute.xlu0 %7916  ;;  %v15638_v28 = vpop.permute.xlu1 %7984  ;;  %v8006_v56 = vadd.f32 %v16687_v46, %v7938_v1  ;;  %v7807_v17 = vadd.f32 %v15616_v11, %v7739_v38  ;;  %v16702_v38 = vld [vmem:[#allocation111_spill] sm:$0xff] }
0x18a9   : > { %v7939_v22 = vadd.f32 %v16688_v48, %v7871_v16  ;;  %v16693_v16 = vld [vmem:[#allocation17_spill] sm:$0xff]  ;;  %v11074_v48 = vld [vmem:[#allocation2 + $0x12] sm:$0xff] }
0x18aa   : > { %7617 = vrot.lane.b32.xlu0 %v7585_v19, %s11119_s30  ;;  %7615 = vrot.lane.b32.xlu1 %v7584_v23, %s11119_s30  ;;  %v7755_v19 = vmul.f32 %v14789_v27, %v15662_v59  ;;  %v11072_v23 = vld [vmem:[#allocation2 + $0x2] sm:$0xff]  ;;  %v7823_v54 = vmul.f32 %v16693_v16, %v15662_v59  ;;  %v7824_v7 = vmul.f32 %v16693_v16, %v15660_v9 }
0x18ab   : > { %v8029_v25 = vmul.f32 %v11072_v23, %v15665_v35  ;;  %v8007_v55 = vadd.f32 %v16694_v50, %v7939_v22  ;;  %v16697_v23 = vld [vmem:[#allocation112_spill] sm:$0xff]  ;;  %v8031_v13 = vmul.f32 %v11074_v48, %v15665_v35  ;;  %v7875_v50 = vadd.f32 %v15618_v14, %v7807_v17  ;;  %v15740_v48 = vld [vmem:[#allocation2 + $0x4a] sm:$0xff] }
0x18ac   : > { %v15650_v43 = vpop.permute.xlu0 %8087  ;;  %v15652_v26 = vpop.permute.xlu1 %8155  ;;  %16708 = vst [vmem:[#allocation29_spill] sm:$0xff] %v15740_v48 }
0x18ad   : > { %v8040_v27 = vadd.f32 %v8029_v25, %v8005_v29  ;;  %v16696_v29 = vld [vmem:[#allocation90_spill] sm:$0xff]  ;;  %v7942_v25 = vadd.f32 %v16697_v23, %v7874_v52  ;;  %v7960_v23 = vmul.f32 %v14796_v45, %v15660_v9 }
0x18ae   : > { %7683 = vrot.lane.b32.xlu0 %v7652_v44, %s11120_s17  ;;  %7685 = vrot.lane.b32.xlu1 %v7653_v10, %s11120_s17  ;;  %v11073_v44 = vld [vmem:[#allocation2 + $0xa] sm:$0xff] }
0x18af   : > { %v8030_v10 = vmul.f32 %v11073_v44, %v15665_v35  ;;  %v8108_v46 = vadd.f32 %v16698_v12, %v8040_v27  ;;  %v8042_v27 = vadd.f32 %v8031_v13, %v8007_v55  ;;  %v8010_v16 = vadd.f32 %v16702_v38, %v7942_v25  ;;  %v16706_v25 = vld [vmem:[#allocation32_spill] sm:$0xff] }
0x18b0   : > { %v15673_v39 = vpop.permute.xlu0 %8223  ;;  %v15675_v60 = vpop.permute.xlu1 %8291  ;;  %v16709_v13 = vld [vmem:[#allocation72_spill] sm:$0xff] }
0x18b1   : > { %v8041_v32 = vadd.f32 %v8030_v10, %v8006_v56  ;;  %v16699_v56 = vld [vmem:[#allocation20_spill] sm:$0xff]  ;;  %v16701_v10 = vld [vmem:[#allocation91_spill] sm:$0xff] }
0x18b2   : > { %7788 = vrot.lane.b32.xlu0 %v7756_v42, %s11117_s29  ;;  %7786 = vrot.lane.b32.xlu1 %v7755_v19, %s11117_s29  ;;  %v8008_v42 = vadd.f32 %v16695_v41, %v7940_v20  ;;  %v7941_v19 = vadd.f32 %v16696_v29, %v7873_v6  ;;  %v8032_v22 = vmul.f32 %v15665_v35, %v16699_v56  ;;  %v16704_v41 = vld [vmem:[#allocation34_spill] sm:$0xff]  ;;  %v16705_v29 = vld [vmem:[#allocation53_spill] sm:$0xff] }
0x18b3   : > { %v7891_v6 = vmul.f32 %v14798_v18, %v15662_v59  ;;  %v8109_v52 = vadd.f32 %v16700_v33, %v8041_v32  ;;  %v8033_v18 = vmul.f32 %v15665_v35, %v16704_v41  ;;  %v8034_v32 = vmul.f32 %v15665_v35, %v16705_v29  ;;  %v16715_v29 = vld [vmem:[#allocation92_spill] sm:$0xff] }
0x18b4   : > { %v15692_v1 = vpop.permute.xlu0 %8460  ;;  %v15694_v0 = vpop.permute.xlu1 %8392  ;;  %v8043_v44 = vadd.f32 %v8032_v22, %v8008_v42  ;;  %v8009_v11 = vadd.f32 %v16701_v10, %v7941_v19  ;;  %v7959_v19 = vmul.f32 %v14796_v45, %v15662_v59  ;;  %v7943_v33 = vadd.f32 %v15636_v24, %v7875_v50  ;;  %v16716_v50 = vld [vmem:[#allocation114_spill] sm:$0xff]  ;;  %v16732_v59 = vld [vmem:[#allocation57_spill] sm:$0xff] }
0x18b5   : > { %v8177_v12 = vadd.f32 %v16706_v25, %v8109_v52  ;;  %v8045_v22 = vadd.f32 %v8034_v32, %v8010_v16  ;;  %v8130_v52 = vmul.f32 %v14805_v31, %v15740_v48  ;;  %v16713_v16 = vld [vmem:[#allocation52_spill] sm:$0xff]  ;;  %v15757_v41 = vstv %s10105_s14 }
0x18b6   : > { %7854 = vrot.lane.b32.xlu0 %v7823_v54, %s11116_s28  ;;  %7856 = vrot.lane.b32.xlu1 %v7824_v7, %s11116_s28  ;;  %v16703_v54 = vld [vmem:[#allocation25_spill] sm:$0xff]  ;;  %v8111_v17 = vadd.f32 %v16709_v13, %v8043_v44  ;;  %v8044_v56 = vadd.f32 %v8033_v18, %v8009_v11  ;;  %v16712_v11 = vld [vmem:[#allocation36_spill] sm:$0xff]  ;;  %v16714_v18 = vld [vmem:[#allocation71_spill] sm:$0xff]  ;;  %v8011_v25 = vadd.f32 %v15638_v28, %v7943_v33 }
0x18b7   : > { %v8176_v7 = vadd.f32 %v16703_v54, %v8108_v46  ;;  %v16707_v46 = vld [vmem:[#allocation51_spill] sm:$0xff]  ;;  %v8245_v38 = vadd.f32 %v16712_v11, %v8177_v12  ;;  %v8113_v32 = vadd.f32 %v16716_v50, %v8045_v22  ;;  %v11075_v11 = vld [vmem:[#allocation2 + $0x3] sm:$0xff] }
0x18b8   : > { %v15711_v51 = vpop.permute.xlu0 %8596  ;;  %v15713_v20 = vpop.permute.xlu1 %8528  ;;  %v8110_v14 = vadd.f32 %v16707_v46, %v8042_v27  ;;  %v16711_v27 = vld [vmem:[#allocation18_spill] sm:$0xff]  ;;  %v8112_v24 = vadd.f32 %v16715_v29, %v8044_v56  ;;  %v16718_v13 = vld [vmem:[#allocation19_spill] sm:$0xff]  ;;  %v8336_v22 = vmul.f32 %v11075_v11, %v15757_v41  ;;  %v16724_v29 = vld [vmem:[#allocation93_spill] sm:$0xff] }
0x18b9   : > { %v8062_v44 = vmul.f32 %v16711_v27, %v15740_v48  ;;  %v16723_v28 = vld [vmem:[#allocation75_spill] sm:$0xff] }
0x18ba   : > { %7924 = vrot.lane.b32.xlu0 %v7892_v63, %s11119_s30  ;;  %7922 = vrot.lane.b32.xlu1 %v7891_v6, %s11119_s30  ;;  %v16710_v63 = vld [vmem:[#allocation26_spill] sm:$0xff]  ;;  %v8178_v54 = vadd.f32 %v16713_v16, %v8110_v14  ;;  %v8266_v14 = vmul.f32 %v14814_v34, %v15740_v48  ;;  %v8180_v50 = vadd.f32 %v16724_v29, %v8112_v24  ;;  %v16726_v24 = vld [vmem:[#allocation37_spill] sm:$0xff] }
0x18bb   : > { %v8244_v6 = vadd.f32 %v16710_v63, %v8176_v7  ;;  %v8179_v7 = vadd.f32 %v16714_v18, %v8111_v17  ;;  %v8198_v17 = vmul.f32 %v16718_v13, %v15740_v48  ;;  %v16719_v63 = vld [vmem:[#allocation35_spill] sm:$0xff]  ;;  %v15775_v18 = vld [vmem:[#allocation2 + $0x43] sm:$0xff] }
0x18bc   : > { %v15730_v55 = vpop.permute.xlu0 %8699  ;;  %v15732_v42 = vpop.permute.xlu1 %8767  ;;  %v8313_v56 = vadd.f32 %v16719_v63, %v8245_v38  ;;  %16722 = vst [vmem:[#allocation48_spill] sm:$0xff] %v15775_v18  ;;  %v11076_v63 = vld [vmem:[#allocation2 + $0xb] sm:$0xff]  ;;  %v8368_v48 = vmul.f32 %v14596_v40, %v15775_v18 }
0x18bd   : > { %v8247_v33 = vadd.f32 %v16723_v28, %v8179_v7  ;;  %v8337_v11 = vmul.f32 %v11076_v63, %v15757_v41  ;;  %v8436_v7 = vmul.f32 %v14591_v61, %v15775_v18  ;;  %v16727_v28 = vld [vmem:[#allocation55_spill] sm:$0xff]  ;;  %v16731_v63 = vld [vmem:[#allocation117_spill] sm:$0xff] }
0x18be   : > { %7990 = vrot.lane.b32.xlu0 %v7959_v19, %s11120_s17  ;;  %7992 = vrot.lane.b32.xlu1 %v7960_v23, %s11120_s17  ;;  %v16717_v19 = vld [vmem:[#allocation27_spill] sm:$0xff] }
0x18bf   : > { %v8312_v23 = vadd.f32 %v16717_v19, %v8244_v6  ;;  %v16725_v19 = vld [vmem:[#allocation113_spill] sm:$0xff]  ;;  %v8348_v29 = vadd.f32 %v8337_v11, %v8313_v56 }
0x18c0   : > { %v15747_v10 = vpop.permute.xlu0 %8903  ;;  %v15749_v45 = vpop.permute.xlu1 %8835  ;;  %v8181_v9 = vadd.f32 %v16725_v19, %v8113_v32 }
0x18c1   : > { %v8347_v38 = vadd.f32 %v8336_v22, %v8312_v23 }
0x18c2   : > { %8161 = vrot.lane.b32.xlu0 %v8130_v52, %s11116_s28  ;;  %8093 = vrot.lane.b32.xlu1 %v8062_v44, %s11117_s29  ;;  %v16720_v52 = vld [vmem:[#allocation54_spill] sm:$0xff]  ;;  %v16721_v44 = vld [vmem:[#allocation73_spill] sm:$0xff]  ;;  %v8249_v57 = vadd.f32 %v16731_v63, %v8181_v9  ;;  %v8504_v9 = vmul.f32 %v14605_v15, %v15775_v18  ;;  %v16737_v63 = vld [vmem:[#allocation116_spill] sm:$0xff] }
0x18c3   : > { %v8246_v16 = vadd.f32 %v16720_v52, %v8178_v54  ;;  %v8035_v6 = vmul.f32 %v15665_v35, %v16721_v44  ;;  %v8415_v32 = vadd.f32 %v16726_v24, %v8347_v38  ;;  %v8416_v38 = vadd.f32 %v16732_v59, %v8348_v29  ;;  %v11077_v24 = vld [vmem:[#allocation2 + $0x13] sm:$0xff] }
0x18c4   : > { %v7544_v46 = vpop.permute.xlu0 %7543  ;;  %v7476_v12 = vpop.permute.xlu1 %7475  ;;  %v8338_v56 = vmul.f32 %v11077_v24, %v15757_v41  ;;  %v16734_v59 = vld [vmem:[#allocation38_spill] sm:$0xff]  ;;  %v8317_v24 = vadd.f32 %v16737_v63, %v8249_v57 }
0x18c5   : > { %v8046_v54 = vadd.f32 %v8035_v6, %v8011_v25  ;;  %v16729_v25 = vld [vmem:[#allocation74_spill] sm:$0xff]  ;;  %v16730_v6 = vld [vmem:[#allocation95_spill] sm:$0xff] }
0x18c6   : > { %8297 = vrot.lane.b32.xlu0 %v8266_v14, %s11120_s17  ;;  %8229 = vrot.lane.b32.xlu1 %v8198_v17, %s11119_s30  ;;  %v8314_v14 = vadd.f32 %v16727_v28, %v8246_v16  ;;  %v16728_v17 = vld [vmem:[#allocation86_spill] sm:$0xff]  ;;  %v8315_v22 = vadd.f32 %v16729_v25, %v8247_v33  ;;  %v8248_v19 = vadd.f32 %v16730_v6, %v8180_v50  ;;  %v16733_v28 = vld [vmem:[#allocation39_spill] sm:$0xff] }
0x18c7   : > { %v7433_v23 = vmul.f32 %v15506_v30, %v16728_v17  ;;  %v8114_v16 = vadd.f32 %v15650_v43, %v8046_v54  ;;  %v8339_v17 = vmul.f32 %v15757_v41, %v16733_v28  ;;  %v16735_v25 = vld [vmem:[#allocation58_spill] sm:$0xff]  ;;  %v16736_v54 = vld [vmem:[#allocation96_spill] sm:$0xff] }
0x18c8   : > { %v15783_v52 = vpop.permute.xlu0 %7679  ;;  %v7612_v44 = vpop.permute.xlu1 %7611  ;;  %v8349_v29 = vadd.f32 %v8338_v56, %v8314_v14  ;;  %v8340_v43 = vmul.f32 %v15757_v41, %v16735_v25  ;;  %v16738_v28 = vld [vmem:[#allocation56_spill] sm:$0xff] }
0x18c9   : > { %v7501_v11 = vadd.f32 %v7476_v12, %v7433_v23  ;;  %v15816_v12 = vld [vmem:[#allocation2 + $0x44] sm:$0xff]  ;;  %v8316_v23 = vadd.f32 %v16736_v54, %v8248_v19  ;;  %v8350_v6 = vadd.f32 %v8339_v17, %v8315_v22  ;;  %v8182_v14 = vadd.f32 %v15652_v26, %v8114_v16 }
0x18ca   : > { %8398 = vrot.lane.b32.xlu0 %v8368_v48, %s11117_s29  ;;  %8466 = vrot.lane.b32.xlu1 %v8436_v7, %s11116_s28  ;;  %v8572_v48 = vmul.f32 %v14594_v62, %v15775_v18  ;;  %v8483_v7 = vadd.f32 %v16734_v59, %v8415_v32  ;;  %v8484_v18 = vadd.f32 %v16738_v28, %v8416_v38  ;;  %v16740_v59 = vld [vmem:[#allocation98_spill] sm:$0xff]  ;;  %v16742_v26 = vld [vmem:[#allocation40_spill] sm:$0xff]  ;;  %v15840_v16 = vstv %s15793_s15 }
0x18cb   : > { %v8417_v32 = vadd.f32 %v16739_v47, %v8349_v29  ;;  %v7569_v56 = vadd.f32 %v7544_v46, %v7501_v11  ;;  %v8418_v25 = vadd.f32 %v16740_v59, %v8350_v6  ;;  %v8341_v19 = vmul.f32 %v15757_v41, %v16741_v36  ;;  %v16743_v36 = vld [vmem:[#allocation60_spill] sm:$0xff]  ;;  %v16744_v29 = vld [vmem:[#allocation77_spill] sm:$0xff]  ;;  %v15847_v28 = vld [vmem:[#allocation2 + $0x52] sm:$0x1] }
0x18cc   : > { %v15805_v33 = vpop.permute.xlu0 %7850  ;;  %v15807_v50 = vpop.permute.xlu1 %7782  ;;  %v8743_v57 = vmul.f32 %v14603_v21, %v15816_v12  ;;  %v8675_v38 = vmul.f32 %v14709_v2, %v15816_v12  ;;  %v8811_v47 = vmul.f32 %v14718_v53, %v15816_v12  ;;  %v8551_v46 = vadd.f32 %v16742_v26, %v8483_v7  ;;  %v16745_v59 = vld [vmem:[#allocation97_spill] sm:$0xff]  ;;  %v16746_v7 = vld [vmem:[#allocation119_spill] sm:$0xff] }
0x18cd   : > { %v8351_v11 = vadd.f32 %v8340_v43, %v8316_v23  ;;  %v8485_v54 = vadd.f32 %v16744_v29, %v8417_v32  ;;  %v8250_v6 = vadd.f32 %v15673_v39, %v8182_v14  ;;  %v7637_v63 = vadd.f32 %v7612_v44, %v7569_v56  ;;  %v16749_v56 = vld [vmem:[#allocation79_spill] sm:$0xff] }
0x18ce   : > { %8534 = vrot.lane.b32.xlu0 %v8504_v9, %s11119_s30  ;;  %8602 = vrot.lane.b32.xlu1 %v8572_v48, %s11120_s17  ;;  %v8352_v9 = vadd.f32 %v8341_v19, %v8317_v24  ;;  %v8552_v48 = vadd.f32 %v16743_v36, %v8484_v18  ;;  %v8486_v30 = vadd.f32 %v16745_v59, %v8418_v25  ;;  %v16747_v19 = vld [vmem:[#allocation41_spill] sm:$0xff]  ;;  %v16751_v36 = vld [vmem:[#allocation120_spill] sm:$0xff] }
0x18cf   : > { %v8419_v26 = vadd.f32 %v16746_v7, %v8351_v11  ;;  %v8879_v18 = vmul.f32 %v14612_v49, %v15816_v12  ;;  %v8619_v32 = vadd.f32 %v16747_v19, %v8551_v46  ;;  %v8063_v44 = vmul.f32 %v16711_v27, %v15847_v28 }
0x18d0   : > { %v15828_v22 = vpop.permute.xlu0 %7986  ;;  %v15830_v17 = vpop.permute.xlu1 %7918  ;;  %v8420_v43 = vadd.f32 %v15694_v0, %v8352_v9  ;;  %v16748_v0 = vld [vmem:[#allocation59_spill] sm:$0xff]  ;;  %v8553_v25 = vadd.f32 %v16749_v56, %v8485_v54  ;;  %v7705_v11 = vadd.f32 %v15783_v52, %v7637_v63  ;;  %v16750_v9 = vld [vmem:[#allocation101_spill] sm:$0xff]  ;;  %v8131_v27 = vmul.f32 %v14805_v31, %v15847_v28 }
0x18d1   : > { %v8620_v14 = vadd.f32 %v16748_v0, %v8552_v48  ;;  %v8554_v46 = vadd.f32 %v16750_v9, %v8486_v30  ;;  %v8487_v29 = vadd.f32 %v16751_v36, %v8419_v26  ;;  %v11079_v48 = vld [vmem:[#allocation2 + $0xc] sm:$0xff]  ;;  %v16753_v52 = vld [vmem:[#allocation99_spill] sm:$0xff]  ;;  %v16754_v26 = vld [vmem:[#allocation80_spill] sm:$0xff]  ;;  %v8267_v36 = vmul.f32 %v14814_v34, %v15847_v28 }
0x18d2   : > { %8773 = vrot.lane.b32.xlu0 %v8743_v57, %s11116_s28  ;;  %8705 = vrot.lane.b32.xlu1 %v8675_v38, %s11117_s29  ;;  %v11078_v57 = vld [vmem:[#allocation2 + $0x4] sm:$0xff]  ;;  %v8318_v38 = vadd.f32 %v15675_v60, %v8250_v6  ;;  %v8488_v59 = vadd.f32 %v15692_v1, %v8420_v43  ;;  %v8644_v54 = vmul.f32 %v11079_v48, %v15840_v16 }
0x18d3   : > { %v8643_v39 = vmul.f32 %v11078_v57, %v15840_v16  ;;  %v8342_v30 = vmul.f32 %v15757_v41, %v16753_v52  ;;  %v8199_v1 = vmul.f32 %v16718_v13, %v15847_v28  ;;  %v8621_v31 = vadd.f32 %v16754_v26, %v8553_v25  ;;  %v15887_v57 = vld [vmem:[#allocation2 + $0x4b] sm:$0xff]  ;;  %v16755_v0 = vld [vmem:[#allocation100_spill] sm:$0xff]  ;;  %v16756_v25 = vld [vmem:[#allocation43_spill] sm:$0xff] }
0x18d4   : > { %v15852_v23 = vpop.permute.xlu0 %8157  ;;  %v15854_v24 = vpop.permute.xlu1 %8089  ;;  %v8655_v63 = vadd.f32 %v8644_v54, %v8620_v14  ;;  %v8622_v56 = vadd.f32 %v16755_v0, %v8554_v46  ;;  %v8555_v9 = vadd.f32 %v15527_v5, %v8487_v29  ;;  %v8437_v5 = vmul.f32 %v14591_v61, %v15887_v57  ;;  %v16762_v0 = vld [vmem:[#allocation82_spill] sm:$0xff] }
0x18d5   : > { %v8654_v6 = vadd.f32 %v8643_v39, %v8619_v32  ;;  %v8353_v19 = vadd.f32 %v8342_v30, %v8318_v38  ;;  %v8556_v32 = vadd.f32 %v15713_v20, %v8488_v59  ;;  %v11081_v38 = vld [vmem:[#allocation2 + $0x1c] sm:$0xff]  ;;  %v16757_v20 = vld [vmem:[#allocation61_spill] sm:$0xff] }
0x18d6   : > { %8841 = vrot.lane.b32.xlu0 %v8811_v47, %s11119_s30  ;;  %8909 = vrot.lane.b32.xlu1 %v8879_v18, %s11120_s17  ;;  %v16752_v18 = vld [vmem:[#allocation89_spill] sm:$0xff]  ;;  %v8646_v48 = vmul.f32 %v11081_v38, %v15840_v16  ;;  %v8723_v46 = vadd.f32 %v16757_v20, %v8655_v63  ;;  %v16759_v63 = vld [vmem:[#allocation83_spill] sm:$0xff]  ;;  %v16765_v38 = vld [vmem:[#allocation44_spill] sm:$0xff] }
0x18d7   : > { %v7729_v60 = vmul.f32 %v15573_v37, %v16752_v18  ;;  %v8623_v18 = vadd.f32 %v15529_v58, %v8555_v9  ;;  %v8573_v58 = vmul.f32 %v14594_v62, %v15887_v57 }
0x18d8   : > { %v15871_v47 = vpop.permute.xlu0 %8293  ;;  %v15873_v7 = vpop.permute.xlu1 %8225  ;;  %v8657_v54 = vadd.f32 %v8646_v48, %v8622_v56 }
0x18d9   : > { %v7740_v43 = vadd.f32 %v7729_v60, %v7705_v11  ;;  %v8722_v11 = vadd.f32 %v16756_v25, %v8654_v6  ;;  %v8624_v60 = vadd.f32 %v15711_v51, %v8556_v32  ;;  %v8369_v6 = vmul.f32 %v14596_v40, %v15887_v57  ;;  %v16760_v40 = vld [vmem:[#allocation42_spill] sm:$0xff]  ;;  %v16764_v25 = vld [vmem:[#allocation104_spill] sm:$0xff] }
0x18da   : > { %8095 = vrot.lane.b32.xlu0 %v8063_v44, %s11117_s29  ;;  %8163 = vrot.lane.b32.xlu1 %v8131_v27, %s11116_s28  ;;  %v11080_v27 = vld [vmem:[#allocation2 + $0x14] sm:$0xff]  ;;  %v8505_v51 = vmul.f32 %v14605_v15, %v15887_v57  ;;  %v15923_v32 = vld [vmem:[#allocation2 + $0x4c] sm:$0xff]  ;;  %v8649_v15 = vmul.f32 %v15840_v16, %v16764_v25 }
0x18db   : > { %v8645_v13 = vmul.f32 %v11080_v27, %v15840_v16  ;;  %v7808_v34 = vadd.f32 %v15807_v50, %v7740_v43  ;;  %v8648_v50 = vmul.f32 %v15840_v16, %v16759_v63  ;;  %v16761_v43 = vld [vmem:[#allocation62_spill] sm:$0xff] }
0x18dc   : > { %v8395_v39 = vpop.permute.xlu0 %8394  ;;  %v8463_v44 = vpop.permute.xlu1 %8462 }
0x18dd   : > { %v8421_v14 = vadd.f32 %v8395_v39, %v8353_v19  ;;  %v8656_v29 = vadd.f32 %v8645_v13, %v8621_v31  ;;  %v8790_v31 = vadd.f32 %v16760_v40, %v8722_v11  ;;  %v8791_v19 = vadd.f32 %v16761_v43, %v8723_v46  ;;  %v16763_v39 = vld [vmem:[#allocation102_spill] sm:$0xff]  ;;  %v16767_v46 = vld [vmem:[#allocation81_spill] sm:$0xff] }
0x18de   : > { %8231 = vrot.lane.b32.xlu0 %v8199_v1, %s11119_s30  ;;  %8299 = vrot.lane.b32.xlu1 %v8267_v36, %s11120_s17  ;;  %v16758_v1 = vld [vmem:[#allocation63_spill] sm:$0xff]  ;;  %v7876_v9 = vadd.f32 %v15805_v33, %v7808_v34  ;;  %v8659_v27 = vadd.f32 %v8648_v50, %v8624_v60  ;;  %v8676_v33 = vmul.f32 %v14709_v2, %v15923_v32  ;;  %v16773_v40 = vld [vmem:[#allocation122_spill] sm:$0xff] }
0x18df   : > { %v8489_v59 = vadd.f32 %v8463_v44, %v8421_v14  ;;  %v8647_v26 = vmul.f32 %v15840_v16, %v16758_v1  ;;  %v8724_v56 = vadd.f32 %v16762_v0, %v8656_v29  ;;  %v8725_v44 = vadd.f32 %v16763_v39, %v8657_v54  ;;  %v16769_v1 = vld [vmem:[#allocation45_spill] sm:$0xff] }
0x18e0   : > { %v8531_v52 = vpop.permute.xlu0 %8530  ;;  %v8599_v30 = vpop.permute.xlu1 %8598  ;;  %v8744_v11 = vmul.f32 %v14603_v21, %v15923_v32  ;;  %v8858_v48 = vadd.f32 %v16765_v38, %v8790_v31  ;;  %v7944_v34 = vadd.f32 %v15830_v17, %v7876_v9  ;;  %v8727_v60 = vadd.f32 %v15730_v55, %v8659_v27  ;;  %v16771_v55 = vld [vmem:[#allocation84_spill] sm:$0xff]  ;;  %v16775_v39 = vld [vmem:[#allocation85_spill] sm:$0xff] }
0x18e1   : > { %v8557_v61 = vadd.f32 %v8531_v52, %v8489_v59  ;;  %v8658_v36 = vadd.f32 %v8647_v26, %v8623_v18  ;;  %v8792_v29 = vadd.f32 %v16767_v46, %v8724_v56  ;;  %v16768_v59 = vld [vmem:[#allocation103_spill] sm:$0xff]  ;;  %v8880_v21 = vmul.f32 %v14612_v49, %v15923_v32  ;;  %v16774_v56 = vld [vmem:[#allocation94_spill] sm:$0xff]  ;;  %v16776_v27 = vld [vmem:[#allocation105_spill] sm:$0xff] }
0x18e2   : > { %8468 = vrot.lane.b32.xlu0 %v8437_v5, %s11116_s28  ;;  %8400 = vrot.lane.b32.xlu1 %v8369_v6, %s11117_s29  ;;  %v16766_v5 = vld [vmem:[#allocation65_spill] sm:$0xff]  ;;  %v8793_v54 = vadd.f32 %v16768_v59, %v8725_v44  ;;  %v15942_v6 = vstv %s15909_s18  ;;  %v8812_v17 = vmul.f32 %v14718_v53, %v15923_v32  ;;  %v8926_v26 = vadd.f32 %v16769_v1, %v8858_v48 }
0x18e3   : > { %v8625_v13 = vadd.f32 %v8599_v30, %v8557_v61  ;;  %v8859_v20 = vadd.f32 %v16766_v5, %v8791_v19  ;;  %v8726_v18 = vadd.f32 %v15545_v4, %v8658_v36  ;;  %v16770_v4 = vld [vmem:[#allocation64_spill] sm:$0xff]  ;;  %v8860_v63 = vadd.f32 %v16771_v55, %v8792_v29  ;;  %v16779_v1 = vld [vmem:[#allocation121_spill] sm:$0xff] }
0x18e4   : > { %v8770_v14 = vpop.permute.xlu0 %8769  ;;  %v8702_v62 = vpop.permute.xlu1 %8701  ;;  %v8012_v50 = vadd.f32 %v15828_v22, %v7944_v34  ;;  %v8795_v43 = vadd.f32 %v15732_v42, %v8727_v60  ;;  %v8036_v53 = vmul.f32 %v15665_v35, %v16774_v56  ;;  %v8939_v9 = vadd.f32 %v15942_v6, %v8926_v26 }
0x18e5   : > { %v8660_v52 = vadd.f32 %v8649_v15, %v8625_v13  ;;  %v8927_v61 = vadd.f32 %v16770_v4, %v8859_v20  ;;  %v8794_v31 = vadd.f32 %v16773_v40, %v8726_v18  ;;  %v8928_v44 = vadd.f32 %v16775_v39, %v8860_v63 }
0x18e6   : > { %8604 = vrot.lane.b32.xlu0 %v8573_v58, %s11120_s17  ;;  %8536 = vrot.lane.b32.xlu1 %v8505_v51, %s11119_s30  ;;  %v16772_v58 = vld [vmem:[#allocation106_spill] sm:$0xff]  ;;  %v8047_v36 = vadd.f32 %v8036_v53, %v8012_v50  ;;  %v8343_v26 = vmul.f32 %v15757_v41, %v16779_v1  ;;  %v16783_v1 = vld [vmem:[#allocation125_spill] sm:$0xff] }
0x18e7   : > { %v8861_v51 = vadd.f32 %v16772_v58, %v8793_v54  ;;  %v8728_v19 = vadd.f32 %v8702_v62, %v8660_v52  ;;  %v8940_v22 = vadd.f32 %v15942_v6, %v8927_v61  ;;  %v8862_v42 = vadd.f32 %v15563_v3, %v8794_v31 }
0x18e8   : > { %v8838_v30 = vpop.permute.xlu0 %8837  ;;  %v8906_v2 = vpop.permute.xlu1 %8905  ;;  %v8863_v62 = vadd.f32 %v15749_v45, %v8795_v43  ;;  %v8115_v38 = vadd.f32 %v15854_v24, %v8047_v36 }
0x18e9   : > { %v8929_v13 = vadd.f32 %v16776_v27, %v8861_v51  ;;  %v8796_v25 = vadd.f32 %v8770_v14, %v8728_v19  ;;  %v8930_v5 = vadd.f32 %v15565_v8, %v8862_v42  ;;  %v16780_v19 = vld [vmem:[#allocation123_spill] sm:$0xff]  ;;  %v16781_v27 = vld [vmem:[#allocation110_spill] sm:$0xff] }
0x18ea   : > { %8707 = vrot.lane.b32.xlu0 %v8676_v33, %s11117_s29  ;;  %8775 = vrot.lane.b32.xlu1 %v8744_v11, %s11116_s28  ;;  %v8941_v11 = vadd.f32 %v15942_v6, %v8928_v44  ;;  %v8931_v20 = vadd.f32 %v15747_v10, %v8863_v62  ;;  %v8183_v14 = vadd.f32 %v15852_v23, %v8115_v38 }
0x18eb   : > { %v8942_v48 = vadd.f32 %v15942_v6, %v8929_v13  ;;  %v8864_v3 = vadd.f32 %v8838_v30, %v8796_v25  ;;  %v8943_v29 = vadd.f32 %v15942_v6, %v8930_v5  ;;  %v8650_v56 = vmul.f32 %v15840_v16, %v16780_v19 }
0x18ec   : > { %v7478_v0 = vpop.permute.xlu0 %7477  ;;  %v7546_v49 = vpop.permute.xlu1 %7545  ;;  %v8944_v34 = vadd.f32 %v15942_v6, %v8931_v20  ;;  %v8251_v8 = vadd.f32 %v15873_v7, %v8183_v14  ;;  %v7730_v13 = vmul.f32 %v15573_v37, %v16781_v27 }
0x18ed   : > { %v8932_v24 = vadd.f32 %v8906_v2, %v8864_v3  ;;  %v16777_v2 = vld [vmem:[#allocation107_spill] sm:$0xff] }
0x18ee   : > { %8911 = vrot.lane.b32.xlu0 %v8880_v21, %s11120_s17  ;;  %8843 = vrot.lane.b32.xlu1 %v8812_v17, %s11119_s30  ;;  %v8319_v23 = vadd.f32 %v15871_v47, %v8251_v8  ;;  %v16778_v21 = vld [vmem:[#allocation118_spill] sm:$0xff]  ;;  %s10118_s30 = sld [smem:[#allocation4 + $0xa2]] }
0x18ef   : > { %v8945_v10 = vadd.f32 %v15942_v6, %v8932_v24  ;;  %v7434_v17 = vmul.f32 %v16778_v21, %v16777_v2  ;;  %v16782_v2 = vld [vmem:[#allocation115_spill] sm:$0xff]  ;;  %s10117_s17 = sld [smem:[#allocation4 + $0xa1]] }
0x18f0   : > { %v7614_v15 = vpop.permute.xlu0 %7613  ;;  %v7682_v33 = vpop.permute.xlu1 %7681  ;;  %v8354_v7 = vadd.f32 %v8343_v26, %v8319_v23 }
0x18f1   : > { %v7502_v4 = vadd.f32 %v7478_v0, %v7434_v17  ;;  %v8037_v17 = vmul.f32 %v15665_v35, %v16782_v2 }
0x18f2   : > { %8961 = vrot.lane.b32.xlu0 %v8939_v9, %s11114_s20  ;;  %8963 = vrot.lane.b32.xlu1 %v8940_v22, %s11114_s20 }
0x18f3   : > { %v7570_v50 = vadd.f32 %v7546_v49, %v7502_v4 }
0x18f4   : > { %v7785_v46 = vpop.permute.xlu0 %7784  ;;  %v7853_v45 = vpop.permute.xlu1 %7852 }
0x18f5   : > { %v7638_v31 = vadd.f32 %v7614_v15, %v7570_v50 }
0x18f6   : > { %8965 = vrot.lane.b32.xlu0 %v8941_v11, %s11114_s20  ;;  %8967 = vrot.lane.b32.xlu1 %v8942_v48, %s11114_s20 }
0x18f7   : > { %v7706_v39 = vadd.f32 %v7682_v33, %v7638_v31 }
0x18f8   : > { %v7921_v59 = vpop.permute.xlu0 %7920  ;;  %v7989_v54 = vpop.permute.xlu1 %7988 }
0x18f9   : > { %v7741_v42 = vadd.f32 %v7730_v13, %v7706_v39 }
0x18fa   : > { %8969 = vrot.lane.b32.xlu0 %v8943_v29, %s11114_s20  ;;  %8971 = vrot.lane.b32.xlu1 %v8944_v34, %s11114_s20 }
0x18fb   : > { %v7809_v38 = vadd.f32 %v7785_v46, %v7741_v42  ;;  %v7435_v46 = vmul.f32 %v16778_v21, %v16783_v1 }
0x18fc   : > { %v8092_v18 = vpop.permute.xlu0 %8091  ;;  %v8160_v60 = vpop.permute.xlu1 %8159 }
0x18fd   : > { %v7877_v33 = vadd.f32 %v7853_v45, %v7809_v38 }
0x18fe   : > { %8973 = vrot.lane.b32.xlu0 %v8945_v10, %s11114_s20 }
0x18ff   : > { %v7945_v29 = vadd.f32 %v7921_v59, %v7877_v33 }
0x1900   : > { %v15985_v52 = vpop.permute.xlu0 %8227  ;;  %v15987_v30 = vpop.permute.xlu1 %8295 }
0x1901   : > { %v8013_v8 = vadd.f32 %v7989_v54, %v7945_v29  ;;  %v16784_v54 = vld [vmem:[#allocation21_spill] sm:$0xff] }
0x1903   : > { %v8048_v26 = vadd.f32 %v8037_v17, %v8013_v8 }
0x1904   : > { %v8465_v61 = vpop.permute.xlu0 %8464  ;;  %v8397_v55 = vpop.permute.xlu1 %8396 }
0x1905   : > { %v8422_v63 = vadd.f32 %v8397_v55, %v8354_v7  ;;  %v8116_v45 = vadd.f32 %v8092_v18, %v8048_v26 }
0x1907   : > { %v8490_v58 = vadd.f32 %v8465_v61, %v8422_v63 }
0x1908   : > { %v8601_v51 = vpop.permute.xlu0 %8600  ;;  %v8533_v40 = vpop.permute.xlu1 %8532 }
0x1909   : > { %v8558_v47 = vadd.f32 %v8533_v40, %v8490_v58  ;;  %v7731_v40 = vmul.f32 %v15573_v37, %v16784_v54 }
0x190b   : > { %v8626_v43 = vadd.f32 %v8601_v51, %v8558_v47  ;;  %v8184_v51 = vadd.f32 %v8160_v60, %v8116_v45 }
0x190c   : > { %v8704_v53 = vpop.permute.xlu0 %8703  ;;  %v8772_v9 = vpop.permute.xlu1 %8771 }
0x190d   : > { %v8661_v22 = vadd.f32 %v8650_v56, %v8626_v43  ;;  %v16785_v43 = vld [vmem:[#allocation124_spill] sm:$0xff] }
0x190e   : > { %v7436_v19 = vmul.f32 %v16778_v21, %v16785_v43  ;;  %v16787_v21 = vld [vmem:[#allocation108_spill] sm:$0xff] }
0x190f   : > { %v8729_v44 = vadd.f32 %v8704_v53, %v8661_v22  ;;  %v8252_v53 = vadd.f32 %v15985_v52, %v8184_v51 }
0x1910   : > { %v8908_v0 = vpop.permute.xlu0 %8907  ;;  %v8840_v36 = vpop.permute.xlu1 %8839 }
0x1911   : > { %v8797_v49 = vadd.f32 %v8772_v9, %v8729_v44 }
0x1913   : > { %v8865_v62 = vadd.f32 %v8840_v36, %v8797_v49 }
0x1914   : > { %v7482_v25 = vpop.permute.xlu0 %7481  ;;  %v7480_v11 = vpop.permute.xlu1 %7479 }
0x1915   : > { %v8933_v15 = vadd.f32 %v8908_v0, %v8865_v62  ;;  %v7503_v4 = vadd.f32 %v7480_v11, %v7435_v46  ;;  %v7504_v9 = vadd.f32 %v7482_v25, %v7436_v19  ;;  %v8320_v0 = vadd.f32 %v15987_v30, %v8252_v53  ;;  %v16786_v62 = vld [vmem:[#allocation48_spill] sm:$0xff] }
0x1916   : > { %v8344_v11 = vmul.f32 %v15757_v41, %v16786_v62 }
0x1917   : > { %v8946_v48 = vadd.f32 %v15942_v6, %v8933_v15  ;;  %v7732_v15 = vmul.f32 %v15573_v37, %v16787_v21  ;;  %v8651_v37 = vmul.f32 %v15840_v16, %v15816_v12 }
0x1918   : > { %v7548_v5 = vpop.permute.xlu0 %7547  ;;  %v7550_v20 = vpop.permute.xlu1 %7549  ;;  %v8355_v25 = vadd.f32 %v8344_v11, %v8320_v0  ;;  %v16790_v11 = vld [vmem:[#allocation12_spill] sm:$0xff] }
0x1919   : > { %8975 = vrot.lane.b32.xlu1 %v8946_v48, %s11114_s20  ;;  %v7571_v55 = vadd.f32 %v7548_v5, %v7503_v4  ;;  %v7572_v18 = vadd.f32 %v7550_v20, %v7504_v9  ;;  %v16788_v20 = vld [vmem:[#allocation29_spill] sm:$0xff] }
0x191a   : > { %v8038_v30 = vmul.f32 %v15665_v35, %v16788_v20 }
0x191c   : > { %v7618_v3 = vpop.permute.xlu0 %7617  ;;  %v7616_v14 = vpop.permute.xlu1 %7615 }
0x191d   : > { %v7639_v63 = vadd.f32 %v7616_v14, %v7571_v55  ;;  %v7640_v36 = vadd.f32 %v7618_v3, %v7572_v18 }
0x1920   : > { %v7684_v34 = vpop.permute.xlu0 %7683  ;;  %v7686_v24 = vpop.permute.xlu1 %7685 }
0x1921   : > { %v7707_v58 = vadd.f32 %v7684_v34, %v7639_v63  ;;  %v7708_v49 = vadd.f32 %v7686_v24, %v7640_v36 }
0x1923   : > { %v7742_v56 = vadd.f32 %v7731_v40, %v7707_v58  ;;  %v7743_v5 = vadd.f32 %v7732_v15, %v7708_v49 }
0x1924   : > { %v7789_v10 = vpop.permute.xlu0 %7788  ;;  %v7787_v23 = vpop.permute.xlu1 %7786 }
0x1925   : > { %v7810_v44 = vadd.f32 %v7787_v23, %v7742_v56  ;;  %v7811_v24 = vadd.f32 %v7789_v10, %v7743_v5  ;;  %v8039_v10 = vmul.f32 %v15665_v35, %v15847_v28  ;;  %v8345_v35 = vmul.f32 %v15757_v41, %v15887_v57 }
0x1926   : > { %v8652_v57 = vmul.f32 %v15840_v16, %v15923_v32  ;;  %v16795_v32 = vld [vmem:[#allocation16_spill] sm:$0xff] }
0x1928   : > { %v7855_v7 = vpop.permute.xlu0 %7854  ;;  %v7857_v61 = vpop.permute.xlu1 %7856 }
0x1929   : > { %v7878_v60 = vadd.f32 %v7855_v7, %v7810_v44  ;;  %v7879_v23 = vadd.f32 %v7857_v61, %v7811_v24 }
0x192c   : > { %v7925_v50 = vpop.permute.xlu0 %7924  ;;  %v7923_v59 = vpop.permute.xlu1 %7922 }
0x192d   : > { %v7946_v42 = vadd.f32 %v7923_v59, %v7878_v60  ;;  %v7947_v26 = vadd.f32 %v7925_v50, %v7879_v23 }
0x1930   : > { %v7991_v47 = vpop.permute.xlu0 %7990  ;;  %v7993_v31 = vpop.permute.xlu1 %7992 }
0x1931   : > { %v8014_v52 = vadd.f32 %v7991_v47, %v7946_v42  ;;  %v8015_v7 = vadd.f32 %v7993_v31, %v7947_v26 }
0x1933   : > { %v8049_v3 = vadd.f32 %v8038_v30, %v8014_v52  ;;  %v8050_v54 = vadd.f32 %v8039_v10, %v8015_v7  ;;  %v11083_v52 = vld [vmem:[#allocation2 + $0x54] sm:$0x1]  ;;  %v16792_v30 = vld [vmem:[#allocation13_spill] sm:$0xff]  ;;  %v16042_v10 = vstv %s10118_s30  ;;  %s474_s30 = scalar_lea.vmem %s16470_s13, %s11039_s16 }
0x1934   : > { %v8162_v22 = vpop.permute.xlu0 %8161  ;;  %v8094_v39 = vpop.permute.xlu1 %8093 }
0x1935   : > { %v8117_v2 = vadd.f32 %v8094_v39, %v8049_v3 }
0x1937   : > { %v8185_v55 = vadd.f32 %v8162_v22, %v8117_v2  ;;  %v11082_v22 = vld [vmem:[#allocation2 + $0x53] sm:$0x1] }
0x1938   : > { %v8298_v27 = vpop.permute.xlu0 %8297  ;;  %v8230_v13 = vpop.permute.xlu1 %8229  ;;  %v8346_v39 = vmul.f32 %v11082_v22, %v15757_v41 }
0x1939   : > { %v8253_v51 = vadd.f32 %v8230_v13, %v8185_v55  ;;  %v16796_v55 = vld [vmem:[#allocation10_spill] sm:$0xff] }
0x193b   : > { %v8321_v19 = vadd.f32 %v8298_v27, %v8253_v51  ;;  %v16789_v27 = vld [vmem:[#allocation7_spill] sm:$0xff]  ;;  %v16044_v51 = vstv %s10117_s17 }
0x193c   : > { %v8399_v38 = vpop.permute.xlu0 %8398  ;;  %v8467_v48 = vpop.permute.xlu1 %8466 }
0x193d   : > { %v8423_v33 = vadd.f32 %v8399_v38, %v8355_v25  ;;  %v8356_v18 = vadd.f32 %v8345_v35, %v8321_v19  ;;  %v8653_v25 = vmul.f32 %v11083_v52, %v15840_v16  ;;  %v16791_v38 = vld [vmem:[#allocation9_spill] sm:$0xff]  ;;  %v16059_v19 = vstv %s10120_s19 }
0x193f   : > { %v8491_v14 = vadd.f32 %v8467_v48, %v8423_v33 }
0x1940   : > { %v8535_v29 = vpop.permute.xlu0 %8534  ;;  %v8603_v34 = vpop.permute.xlu1 %8602 }
0x1941   : > { %v8559_v8 = vadd.f32 %v8535_v29, %v8491_v14 }
0x1943   : > { %v8627_v17 = vadd.f32 %v8603_v34, %v8559_v8  ;;  %v16793_v8 = vld [vmem:[#allocation14_spill] sm:$0xff] }
0x1944   : > { %v8774_v1 = vpop.permute.xlu0 %8773  ;;  %v8706_v46 = vpop.permute.xlu1 %8705 }
0x1945   : > { %v8662_v4 = vadd.f32 %v8651_v37, %v8627_v17  ;;  %v16794_v37 = vld [vmem:[#allocation8_spill] sm:$0xff] }
0x1947   : > { %v8730_v45 = vadd.f32 %v8706_v46, %v8662_v4 }
0x1948   : > { %v8842_v63 = vpop.permute.xlu0 %8841  ;;  %v8910_v59 = vpop.permute.xlu1 %8909 }
0x1949   : > { %v8798_v58 = vadd.f32 %v8774_v1, %v8730_v45 }
0x194b   : > { %v8866_v61 = vadd.f32 %v8842_v63, %v8798_v58 }
0x194c   : > { %v8096_v40 = vpop.permute.xlu0 %8095  ;;  %v8164_v47 = vpop.permute.xlu1 %8163 }
0x194d   : > { %v8934_v43 = vadd.f32 %v8910_v59, %v8866_v61  ;;  %v8118_v12 = vadd.f32 %v8096_v40, %v8050_v54 }
0x194f   : > { %v8947_v50 = vadd.f32 %v15942_v6, %v8934_v43  ;;  %v8186_v56 = vadd.f32 %v8164_v47, %v8118_v12  ;;  %v16057_v12 = vstv %s10121_s23 }
0x1950   : > { %v8232_v31 = vpop.permute.xlu0 %8231  ;;  %v8300_v53 = vpop.permute.xlu1 %8299 }
0x1951   : > { %v8254_v9 = vadd.f32 %v8232_v31, %v8186_v56  ;;  %8977 = vrot.lane.b32.xlu0 %v8947_v50, %s11114_s20 }
0x1953   : > { %v8322_v28 = vadd.f32 %v8300_v53, %v8254_v9 }
0x1954   : > { %v8469_v44 = vpop.permute.xlu0 %8468  ;;  %v8401_v0 = vpop.permute.xlu1 %8400 }
0x1955   : > { %v8357_v36 = vadd.f32 %v8346_v39, %v8322_v28  ;;  %v8424_v60 = vadd.f32 %v8401_v0, %v8356_v18  ;;  %v16797_v0 = vld [vmem:[#allocation11_spill] sm:$0xff] }
0x1957   : > { %v8425_v13 = vadd.f32 %v16789_v27, %v8357_v36  ;;  %v8492_v49 = vadd.f32 %v8469_v44, %v8424_v60 }
0x1958   : > { %v8605_v42 = vpop.permute.xlu0 %8604  ;;  %v8537_v62 = vpop.permute.xlu1 %8536 }
0x1959   : > { %v8493_v21 = vadd.f32 %v16790_v11, %v8425_v13  ;;  %v8560_v15 = vadd.f32 %v8537_v62, %v8492_v49 }
0x195b   : > { %v8561_v48 = vadd.f32 %v16791_v38, %v8493_v21  ;;  %v8628_v41 = vadd.f32 %v8605_v42, %v8560_v15 }
0x195c   : > { %v8708_v5 = vpop.permute.xlu0 %8707  ;;  %v8776_v20 = vpop.permute.xlu1 %8775 }
0x195d   : > { %v8629_v33 = vadd.f32 %v16792_v30, %v8561_v48  ;;  %v8663_v3 = vadd.f32 %v8652_v57, %v8628_v41 }
0x195f   : > { %v8664_v14 = vadd.f32 %v8653_v25, %v8629_v33  ;;  %v8731_v29 = vadd.f32 %v8708_v5, %v8663_v3 }
0x1960   : > { %v8912_v34 = vpop.permute.xlu0 %8911  ;;  %v8844_v24 = vpop.permute.xlu1 %8843 }
0x1961   : > { %v8732_v23 = vadd.f32 %v16793_v8, %v8664_v14  ;;  %v8799_v2 = vadd.f32 %v8776_v20, %v8731_v29 }
0x1963   : > { %v8867_v17 = vadd.f32 %v8844_v24, %v8799_v2  ;;  %v8800_v1 = vadd.f32 %v16794_v37, %v8732_v23 }
0x1964   : > { %v8962_v46 = vpop.permute.xlu0 %8961  ;;  %v8964_v26 = vpop.permute.xlu1 %8963 }
0x1965   : > { %v8935_v16 = vadd.f32 %v8912_v34, %v8867_v17  ;;  %8994 = vst.msk [vmem:[#allocation2 + $0x2] sm:$0xff] %vm551_vm2, %v8962_v46  ;;  %8995 = vst.msk [vmem:[#allocation2 + $0xa] sm:$0xff] %vm551_vm2, %v8964_v26  ;;  %v8868_v4 = vadd.f32 %v16795_v32, %v8800_v1 }
0x1967   : > { %v8948_v7 = vadd.f32 %v15942_v6, %v8935_v16  ;;  %v8936_v45 = vadd.f32 %v16796_v55, %v8868_v4 }
0x1968   : > { %v8966_v63 = vpop.permute.xlu0 %8965  ;;  %v8968_v59 = vpop.permute.xlu1 %8967 }
0x1969   : > { %8996 = vst.msk [vmem:[#allocation2 + $0x12] sm:$0xff] %vm551_vm2, %v8966_v63  ;;  %8997 = vst.msk [vmem:[#allocation2 + $0x1a] sm:$0xff] %vm551_vm2, %v8968_v59  ;;  %8979 = vrot.lane.b32.xlu1 %v8948_v7, %s11114_s20  ;;  %v8949_v58 = vadd.f32 %v15942_v6, %v8936_v45 }
0x196b   : > { %8981 = vrot.lane.b32.xlu0 %v8949_v58, %s11114_s20  ;;  %s10124_s20 = sld [smem:[#allocation4 + $0xa8]] }
0x196c   : > { %v8970_v61 = vpop.permute.xlu0 %8969  ;;  %v8972_v54 = vpop.permute.xlu1 %8971  ;;  %v16047_v40 = vld [vmem:[#allocation2 + $0x1] sm:$0xff]  ;;  %v16068_v53 = vld [vmem:[#allocation2 + $0x9] sm:$0xff] }
0x196d   : > { %8998 = vst.msk [vmem:[#allocation2 + $0x22] sm:$0xff] %vm551_vm2, %v8970_v61  ;;  %8999 = vst.msk [vmem:[#allocation2 + $0x2a] sm:$0xff] %vm551_vm2, %v8972_v54  ;;  %v9099_v47 = vmul.f32 %v16042_v10, %v16047_v40  ;;  %v9031_v6 = vmul.f32 %v16044_v51, %v16047_v40  ;;  %v16055_v43 = vld [vmem:[#allocation2 + $0x2] sm:$0xff]  ;;  %v9100_v9 = vmul.f32 %v16042_v10, %v16068_v53  ;;  %v16076_v39 = vld [vmem:[#allocation2 + $0xa] sm:$0xff] }
0x196e   : > { %v9270_v56 = vmul.f32 %v16057_v12, %v16055_v43  ;;  %v9202_v31 = vmul.f32 %v16059_v19, %v16055_v43  ;;  %v9032_v22 = vmul.f32 %v16044_v51, %v16068_v53  ;;  %v9271_v35 = vmul.f32 %v16057_v12, %v16076_v39  ;;  %v16084_v18 = vld [vmem:[#allocation2 + $0x3] sm:$0xff] }
0x196f   : > { %9121 = vrot.lane.b32.xlu0 %v9099_v47, %s11116_s28  ;;  %9053 = vrot.lane.b32.xlu1 %v9031_v6, %s11117_s29  ;;  %v9203_v28 = vmul.f32 %v16059_v19, %v16076_v39  ;;  %v9373_v36 = vmul.f32 %v16797_v0, %v16084_v18 }
0x1970   : > { %v8974_v50 = vpop.permute.xlu0 %8973  ;;  %v16094_v27 = vld [vmem:[#allocation2 + $0x11] sm:$0xff]  ;;  %v16118_v25 = vld [vmem:[#allocation2 + $0x19] sm:$0xff] }
0x1971   : > { %9000 = vst.msk [vmem:[#allocation2 + $0x32] sm:$0xff] %vm551_vm2, %v8974_v50  ;;  %v16086_v44 = vstv %s10124_s20  ;;  %v9033_v13 = vmul.f32 %v16044_v51, %v16094_v27  ;;  %v9101_v49 = vmul.f32 %v16042_v10, %v16094_v27  ;;  %v16102_v42 = vld [vmem:[#allocation2 + $0x12] sm:$0xff]  ;;  %v9102_v48 = vmul.f32 %v16042_v10, %v16118_v25  ;;  %v16127_v57 = vld [vmem:[#allocation2 + $0x1a] sm:$0xff] }
0x1972   : > { %v9441_v60 = vmul.f32 %v16086_v44, %v16084_v18  ;;  %v9204_v62 = vmul.f32 %v16059_v19, %v16102_v42  ;;  %v9272_v11 = vmul.f32 %v16057_v12, %v16102_v42  ;;  %v16110_v21 = vld [vmem:[#allocation2 + $0xb] sm:$0xff]  ;;  %v9034_v41 = vmul.f32 %v16044_v51, %v16118_v25  ;;  %v16135_v30 = vld [vmem:[#allocation2 + $0x13] sm:$0xff] }
0x1973   : > { %9292 = vrot.lane.b32.xlu0 %v9270_v56, %s11116_s28  ;;  %9224 = vrot.lane.b32.xlu1 %v9202_v31, %s11117_s29  ;;  %v9442_v15 = vmul.f32 %v16086_v44, %v16110_v21  ;;  %v9374_v52 = vmul.f32 %v16797_v0, %v16110_v21  ;;  %v9273_v5 = vmul.f32 %v16057_v12, %v16127_v57 }
0x1974   : > { %v9205_v20 = vmul.f32 %v16059_v19, %v16127_v57  ;;  %v9375_v33 = vmul.f32 %v16797_v0, %v16135_v30  ;;  %v9443_v3 = vmul.f32 %v16086_v44, %v16135_v30  ;;  %v16143_v14 = vld [vmem:[#allocation2 + $0x21] sm:$0xff]  ;;  %v16167_v1 = vld [vmem:[#allocation2 + $0x29] sm:$0xff] }
0x1975   : > { %v9035_v29 = vmul.f32 %v16044_v51, %v16143_v14  ;;  %v9103_v34 = vmul.f32 %v16042_v10, %v16143_v14  ;;  %v16151_v24 = vld [vmem:[#allocation2 + $0x22] sm:$0xff]  ;;  %v9104_v46 = vmul.f32 %v16042_v10, %v16167_v1  ;;  %v9036_v26 = vmul.f32 %v16044_v51, %v16167_v1  ;;  %v16175_v16 = vld [vmem:[#allocation2 + $0x2a] sm:$0xff] }
0x1976   : > { %v9206_v8 = vmul.f32 %v16059_v19, %v16151_v24  ;;  %v9274_v23 = vmul.f32 %v16057_v12, %v16151_v24  ;;  %v16159_v2 = vld [vmem:[#allocation2 + $0x1b] sm:$0xff]  ;;  %v9275_v32 = vmul.f32 %v16057_v12, %v16175_v16  ;;  %v9207_v4 = vmul.f32 %v16059_v19, %v16175_v16  ;;  %v16183_v7 = vld [vmem:[#allocation2 + $0x23] sm:$0xff] }
0x1977   : > { %9123 = vrot.lane.b32.xlu1 %v9100_v9, %s11116_s28  ;;  %9055 = vrot.lane.b32.xlu0 %v9032_v22, %s11117_s29  ;;  %v9444_v17 = vmul.f32 %v16086_v44, %v16159_v2  ;;  %v9376_v37 = vmul.f32 %v16797_v0, %v16159_v2  ;;  %v9377_v55 = vmul.f32 %v16797_v0, %v16183_v7 }
0x1978   : > { %v9445_v45 = vmul.f32 %v16086_v44, %v16183_v7  ;;  %v16191_v63 = vld [vmem:[#allocation2 + $0x31] sm:$0xff] }
0x1979   : > { %v9037_v59 = vmul.f32 %v16044_v51, %v16191_v63  ;;  %v9105_v58 = vmul.f32 %v16042_v10, %v16191_v63  ;;  %v16199_v61 = vld [vmem:[#allocation2 + $0x32] sm:$0xff] }
0x197a   : > { %v9208_v54 = vmul.f32 %v16059_v19, %v16199_v61  ;;  %v9276_v47 = vmul.f32 %v16057_v12, %v16199_v61  ;;  %v16207_v6 = vld [vmem:[#allocation2 + $0x2b] sm:$0xff] }
0x197b   : > { %9294 = vrot.lane.b32.xlu1 %v9271_v35, %s11116_s28  ;;  %9226 = vrot.lane.b32.xlu0 %v9203_v28, %s11117_s29  ;;  %v9446_v50 = vmul.f32 %v16086_v44, %v16207_v6  ;;  %v9378_v56 = vmul.f32 %v16797_v0, %v16207_v6 }
0x197f   : > { %9395 = vrot.lane.b32.xlu1 %v9373_v36, %s11117_s29  ;;  %9463 = vrot.lane.b32.xlu0 %v9441_v60, %s11116_s28 }
0x1983   : > { %9057 = vrot.lane.b32.xlu1 %v9033_v13, %s11117_s29  ;;  %9125 = vrot.lane.b32.xlu0 %v9101_v49, %s11116_s28 }
0x1987   : > { %9228 = vrot.lane.b32.xlu1 %v9204_v62, %s11117_s29  ;;  %9296 = vrot.lane.b32.xlu0 %v9272_v11, %s11116_s28 }
0x198b   : > { %9465 = vrot.lane.b32.xlu1 %v9442_v15, %s11116_s28  ;;  %9397 = vrot.lane.b32.xlu0 %v9374_v52, %s11117_s29  ;;  %v8976_v38 = vpop.permute.xlu1 %8975 }
0x198c   : > { %9001 = vst.msk [vmem:[#allocation2 + $0x3a] sm:$0xff] %vm551_vm2, %v8976_v38 }
0x198f   : > { %9127 = vrot.lane.b32.xlu1 %v9102_v48, %s11116_s28  ;;  %9059 = vrot.lane.b32.xlu0 %v9034_v41, %s11117_s29 }
0x1993   : > { %9298 = vrot.lane.b32.xlu1 %v9273_v5, %s11116_s28  ;;  %9230 = vrot.lane.b32.xlu0 %v9205_v20, %s11117_s29  ;;  %v16215_v31 = vld [vmem:[#allocation2 + $0x39] sm:$0xff] }
0x1994   : > { %v9106_v9 = vmul.f32 %v16042_v10, %v16215_v31  ;;  %v9038_v22 = vmul.f32 %v16044_v51, %v16215_v31  ;;  %v16223_v35 = vld [vmem:[#allocation2 + $0x3a] sm:$0xff] }
0x1995   : > { %v9277_v28 = vmul.f32 %v16057_v12, %v16223_v35  ;;  %v9209_v36 = vmul.f32 %v16059_v19, %v16223_v35  ;;  %v16231_v60 = vld [vmem:[#allocation2 + $0x33] sm:$0xff] }
0x1996   : > { %v9379_v49 = vmul.f32 %v16797_v0, %v16231_v60  ;;  %v9447_v62 = vmul.f32 %v16086_v44, %v16231_v60 }
0x1997   : > { %9399 = vrot.lane.b32.xlu1 %v9375_v33, %s11117_s29  ;;  %9467 = vrot.lane.b32.xlu0 %v9443_v3, %s11116_s28 }
0x199b   : > { %9061 = vrot.lane.b32.xlu1 %v9035_v29, %s11117_s29  ;;  %9129 = vrot.lane.b32.xlu0 %v9103_v34, %s11116_s28  ;;  %v16267_v34 = vstv %s10116_s22 }
0x199f   : > { %9232 = vrot.lane.b32.xlu1 %v9206_v8, %s11117_s29  ;;  %9300 = vrot.lane.b32.xlu0 %v9274_v23, %s11116_s28  ;;  %v9018_v8 = vmul.f32 %v16267_v34, %v16047_v40 }
0x19a3   : > { %9469 = vrot.lane.b32.xlu1 %v9444_v17, %s11116_s28  ;;  %9401 = vrot.lane.b32.xlu0 %v9376_v37, %s11117_s29  ;;  %v16272_v37 = vstv %s10119_s24 }
0x19a7   : > { %9131 = vrot.lane.b32.xlu1 %v9104_v46, %s11116_s28  ;;  %9063 = vrot.lane.b32.xlu0 %v9036_v26, %s11117_s29 }
0x19ab   : > { %9302 = vrot.lane.b32.xlu1 %v9275_v32, %s11116_s28  ;;  %9234 = vrot.lane.b32.xlu0 %v9207_v4, %s11117_s29 }
0x19af   : > { %9403 = vrot.lane.b32.xlu1 %v9377_v55, %s11117_s29  ;;  %9471 = vrot.lane.b32.xlu0 %v9445_v45, %s11116_s28  ;;  %v9178_v55 = vmul.f32 %v16272_v37, %v16055_v43 }
0x19b3   : > { %9065 = vrot.lane.b32.xlu1 %v9037_v59, %s11117_s29  ;;  %9133 = vrot.lane.b32.xlu0 %v9105_v58, %s11116_s28 }
0x19b7   : > { %9236 = vrot.lane.b32.xlu1 %v9208_v54, %s11117_s29  ;;  %9304 = vrot.lane.b32.xlu0 %v9276_v47, %s11116_s28  ;;  %v16286_v47 = vstv %s10122_s27 }
0x19bb   : > { %9473 = vrot.lane.b32.xlu1 %v9446_v50, %s11116_s28  ;;  %9405 = vrot.lane.b32.xlu0 %v9378_v56, %s11117_s29  ;;  %v9019_v56 = vmul.f32 %v16267_v34, %v16068_v53  ;;  %v9349_v53 = vmul.f32 %v16286_v47, %v16084_v18 }
0x19bf   : > { %9135 = vrot.lane.b32.xlu1 %v9106_v9, %s11116_s28  ;;  %9067 = vrot.lane.b32.xlu0 %v9038_v22, %s11117_s29 }
0x19c3   : > { %v8978_v13 = vpop.permute.xlu0 %8977  ;;  %9306 = vrot.lane.b32.xlu1 %v9277_v28, %s11116_s28  ;;  %9238 = vrot.lane.b32.xlu0 %v9209_v36, %s11117_s29 }
0x19c4   : > { %9002 = vst.msk [vmem:[#allocation2 + $0x42] sm:$0xff] %vm551_vm2, %v8978_v13 }
0x19c7   : > { %9407 = vrot.lane.b32.xlu1 %v9379_v49, %s11117_s29  ;;  %9475 = vrot.lane.b32.xlu0 %v9447_v62, %s11116_s28  ;;  %v9179_v62 = vmul.f32 %v16272_v37, %v16076_v39 }
0x19cb   : > { %v16242_v11 = vld [vmem:[#allocation2 + $0x41] sm:$0xff] }
0x19cc   : > { %v9039_v15 = vmul.f32 %v16044_v51, %v16242_v11  ;;  %v9107_v52 = vmul.f32 %v16042_v10, %v16242_v11  ;;  %v16248_v38 = vld [vmem:[#allocation2 + $0x42] sm:$0xff] }
0x19cd   : > { %v9210_v48 = vmul.f32 %v16059_v19, %v16248_v38  ;;  %v9278_v41 = vmul.f32 %v16057_v12, %v16248_v38  ;;  %v16256_v5 = vld [vmem:[#allocation2 + $0x3b] sm:$0xff] }
0x19ce   : > { %9069 = vrot.lane.b32.xlu1 %v9039_v15, %s11117_s29  ;;  %9137 = vrot.lane.b32.xlu0 %v9107_v52, %s11116_s28  ;;  %v9448_v20 = vmul.f32 %v16086_v44, %v16256_v5  ;;  %v9380_v33 = vmul.f32 %v16797_v0, %v16256_v5 }
0x19d2   : > { %9240 = vrot.lane.b32.xlu1 %v9210_v48, %s11117_s29  ;;  %9308 = vrot.lane.b32.xlu0 %v9278_v41, %s11116_s28 }
0x19d6   : > { %9477 = vrot.lane.b32.xlu1 %v9448_v20, %s11116_s28  ;;  %9409 = vrot.lane.b32.xlu0 %v9380_v33, %s11117_s29 }
0x19db   : > { %v8980_v3 = vpop.permute.xlu1 %8979 }
0x19dc   : > { %9003 = vst.msk [vmem:[#allocation2 + $0x4a] sm:$0xff] %vm551_vm2, %v8980_v3 }
0x19dd   : > { %v8982_v29 = vpop.permute.xlu0 %8981 }
0x19de   : > { %9004 = vst.msk [vmem:[#allocation2 + $0x52] sm:$0x1] %vm562_vm3, %v8982_v29 }
0x19e1   : > { %v9122_v23 = vpop.permute.xlu0 %9121  ;;  %v9054_v17 = vpop.permute.xlu1 %9053 }
0x19e2   : > { %v9086_v46 = vadd.f32 %v9054_v17, %v9018_v8 }
0x19e3   : > { %v16274_v26 = vld [vmem:[#allocation2 + $0x51] sm:$0x1]  ;;  %v16276_v32 = vld [vmem:[#allocation2 + $0x49] sm:$0xff] }
0x19e4   : > { %v9154_v4 = vadd.f32 %v9122_v23, %v9086_v46  ;;  %v9041_v45 = vmul.f32 %v16044_v51, %v16274_v26  ;;  %v9040_v59 = vmul.f32 %v16044_v51, %v16276_v32  ;;  %v9108_v43 = vmul.f32 %v16042_v10, %v16276_v32  ;;  %v16296_v36 = vld [vmem:[#allocation2 + $0x4a] sm:$0xff] }
0x19e5   : > { %v9293_v40 = vpop.permute.xlu0 %9292  ;;  %v9225_v58 = vpop.permute.xlu1 %9224  ;;  %v9109_v9 = vmul.f32 %v16042_v10, %v16274_v26  ;;  %v16294_v28 = vld [vmem:[#allocation2 + $0x52] sm:$0x1]  ;;  %v9211_v52 = vmul.f32 %v16059_v19, %v16296_v36  ;;  %v9279_v18 = vmul.f32 %v16057_v12, %v16296_v36  ;;  %v16314_v23 = vld [vmem:[#allocation2 + $0x43] sm:$0xff] }
0x19e6   : > { %v9189_v54 = vadd.f32 %v9178_v55, %v9154_v4  ;;  %9073 = vrot.lane.b32.xlu1 %v9041_v45, %s11117_s29  ;;  %9071 = vrot.lane.b32.xlu0 %v9040_v59, %s11117_s29  ;;  %v9212_v10 = vmul.f32 %v16059_v19, %v16294_v28  ;;  %v9280_v39 = vmul.f32 %v16057_v12, %v16294_v28  ;;  %v16316_v19 = vld [vmem:[#allocation2 + $0x4b] sm:$0xff] }
0x19e7   : > { %v9350_v4 = vmul.f32 %v16286_v47, %v16110_v21  ;;  %v9020_v55 = vmul.f32 %v16267_v34, %v16094_v27  ;;  %v9381_v12 = vmul.f32 %v16797_v0, %v16314_v23  ;;  %v9382_v59 = vmul.f32 %v16797_v0, %v16316_v19 }
0x19e8   : > { %v9257_v50 = vadd.f32 %v9225_v58, %v9189_v54  ;;  %v9180_v27 = vmul.f32 %v16272_v37, %v16102_v42  ;;  %v10126_v42 = vld [vmem:[%s16460_s3] ss:$0 sm:$0xff] }
0x19e9   : > { %v9056_v51 = vpop.permute.xlu0 %9055  ;;  %v9124_v22 = vpop.permute.xlu1 %9123 }
0x19ea   : > { %v9325_v13 = vadd.f32 %v9293_v40, %v9257_v50  ;;  %v9087_v49 = vadd.f32 %v9056_v51, %v9019_v56  ;;  %9139 = vrot.lane.b32.xlu1 %v9108_v43, %s11116_s28  ;;  %9141 = vrot.lane.b32.xlu0 %v9109_v9, %s11116_s28  ;;  %v9450_v56 = vmul.f32 %v16086_v44, %v16316_v19 }
0x19eb   : > { %v9449_v43 = vmul.f32 %v16086_v44, %v16314_v23 }
0x19ec   : > { %v9155_v15 = vadd.f32 %v9124_v22, %v9087_v49  ;;  %v9360_v48 = vadd.f32 %v9349_v53, %v9325_v13  ;;  %v16340_v22 = vld [vmem:[#allocation2 + $0x53] sm:$0x1] }
0x19ed   : > { %v9227_v41 = vpop.permute.xlu0 %9226  ;;  %v9295_v20 = vpop.permute.xlu1 %9294  ;;  %v9451_v13 = vmul.f32 %v16340_v22, %v16086_v44  ;;  %v9021_v44 = vmul.f32 %v16267_v34, %v16118_v25 }
0x19ee   : > { %v9190_v33 = vadd.f32 %v9179_v62, %v9155_v15  ;;  %9244 = vrot.lane.b32.xlu1 %v9212_v10, %s11117_s29  ;;  %9242 = vrot.lane.b32.xlu0 %v9211_v52, %s11117_s29  ;;  %v9351_v52 = vmul.f32 %v16286_v47, %v16135_v30 }
0x19f0   : > { %v9258_v3 = vadd.f32 %v9227_v41, %v9190_v33 }
0x19f1   : > { %v9464_v29 = vpop.permute.xlu0 %9463  ;;  %v9396_v8 = vpop.permute.xlu1 %9395 }
0x19f2   : > { %v9326_v17 = vadd.f32 %v9295_v20, %v9258_v3  ;;  %v9428_v46 = vadd.f32 %v9396_v8, %v9360_v48  ;;  %9310 = vrot.lane.b32.xlu1 %v9279_v18, %s11116_s28  ;;  %9312 = vrot.lane.b32.xlu0 %v9280_v39, %s11116_s28  ;;  %v9181_v39 = vmul.f32 %v16272_v37, %v16127_v57 }
0x19f4   : > { %v16324_v45 = vadd.f32 %v9464_v29, %v9428_v46  ;;  %v9361_v40 = vadd.f32 %v9350_v4, %v9326_v17 }
0x19f5   : > { %v9126_v58 = vpop.permute.xlu0 %9125  ;;  %v9058_v54 = vpop.permute.xlu1 %9057 }
0x19f6   : > { %v9088_v50 = vadd.f32 %v9058_v54, %v9020_v55  ;;  %9411 = vrot.lane.b32.xlu1 %v9381_v12, %s11117_s29  ;;  %9413 = vrot.lane.b32.xlu0 %v9382_v59, %s11117_s29  ;;  %v9352_v59 = vmul.f32 %v16286_v47, %v16159_v2 }
0x19f8   : > { %v9156_v21 = vadd.f32 %v9126_v58, %v9088_v50 }
0x19f9   : > { %v9297_v9 = vpop.permute.xlu0 %9296  ;;  %v9229_v0 = vpop.permute.xlu1 %9228 }
0x19fa   : > { %v9191_v51 = vadd.f32 %v9180_v27, %v9156_v21  ;;  %9481 = vrot.lane.b32.xlu1 %v9450_v56, %s11116_s28  ;;  %9479 = vrot.lane.b32.xlu0 %v9449_v43, %s11116_s28  ;;  %v9182_v27 = vmul.f32 %v16272_v37, %v16151_v24 }
0x19fc   : > { %v9259_v49 = vadd.f32 %v9229_v0, %v9191_v51 }
0x19fd   : > { %v9398_v53 = vpop.permute.xlu0 %9397  ;;  %v9466_v62 = vpop.permute.xlu1 %9465 }
0x19fe   : > { %v9327_v15 = vadd.f32 %v9297_v9, %v9259_v49  ;;  %v9429_v10 = vadd.f32 %v9398_v53, %v9361_v40  ;;  %9526 = vrot.lane.b32.xlu1 %v10126_v42, %s11115_s21  ;;  %9483 = vrot.lane.b32.xlu0 %v9451_v13, %s11116_s28  ;;  %v9022_v40 = vmul.f32 %v16267_v34, %v16143_v14  ;;  %s10125_s21 = sld [smem:[#allocation4 + $0xa9]] }
0x19ff   : > { %v9353_v49 = vmul.f32 %v16286_v47, %v16183_v7  ;;  %v9023_v53 = vmul.f32 %v16267_v34, %v16167_v1  ;;  %v9354_v1 = vmul.f32 %v16286_v47, %v16207_v6 }
0x1a00   : > { %v16351_v48 = vadd.f32 %v9466_v62, %v9429_v10  ;;  %v9362_v41 = vadd.f32 %v9351_v52, %v9327_v15 }
0x1a01   : > { %v9060_v20 = vpop.permute.xlu0 %9059  ;;  %v9128_v33 = vpop.permute.xlu1 %9127 }
0x1a02   : > { %v9089_v3 = vadd.f32 %v9060_v20, %v9021_v44  ;;  %v9183_v44 = vmul.f32 %v16272_v37, %v16175_v16 }
0x1a04   : > { %v9157_v18 = vadd.f32 %v9128_v33, %v9089_v3 }
0x1a05   : > { %v9231_v29 = vpop.permute.xlu0 %9230  ;;  %v9299_v8 = vpop.permute.xlu1 %9298 }
0x1a06   : > { %v9192_v17 = vadd.f32 %v9181_v39, %v9157_v18 }
0x1a08   : > { %v9260_v46 = vadd.f32 %v9231_v29, %v9192_v17 }
0x1a09   : > { %v9468_v4 = vpop.permute.xlu0 %9467  ;;  %v9400_v55 = vpop.permute.xlu1 %9399 }
0x1a0a   : > { %v9328_v30 = vadd.f32 %v9299_v8, %v9260_v46  ;;  %v9430_v12 = vadd.f32 %v9400_v55, %v9362_v41  ;;  %v9024_v8 = vmul.f32 %v16267_v34, %v16191_v63  ;;  %v9355_v63 = vmul.f32 %v16286_v47, %v16231_v60 }
0x1a0b   : > { %v9356_v60 = vmul.f32 %v16286_v47, %v16256_v5  ;;  %v9357_v5 = vmul.f32 %v16286_v47, %v16314_v23  ;;  %v9187_v23 = vmul.f32 %v16272_v37, %v16296_v36 }
0x1a0c   : > { %v16359_v25 = vadd.f32 %v9468_v4, %v9430_v12  ;;  %v9363_v58 = vadd.f32 %v9352_v59, %v9328_v30  ;;  %v9184_v30 = vmul.f32 %v16272_v37, %v16199_v61 }
0x1a0d   : > { %v9130_v54 = vpop.permute.xlu0 %9129  ;;  %v9062_v50 = vpop.permute.xlu1 %9061 }
0x1a0e   : > { %v9090_v57 = vadd.f32 %v9062_v50, %v9022_v40 }
0x1a10   : > { %v9158_v21 = vadd.f32 %v9130_v54, %v9090_v57  ;;  %v9025_v57 = vmul.f32 %v16267_v34, %v16215_v31 }
0x1a11   : > { %v9301_v56 = vpop.permute.xlu0 %9300  ;;  %v9233_v43 = vpop.permute.xlu1 %9232 }
0x1a12   : > { %v9193_v9 = vadd.f32 %v9182_v27, %v9158_v21 }
0x1a14   : > { %v9261_v0 = vadd.f32 %v9233_v43, %v9193_v9  ;;  %v9185_v9 = vmul.f32 %v16272_v37, %v16223_v35  ;;  %v9186_v35 = vmul.f32 %v16272_v37, %v16248_v38 }
0x1a15   : > { %v9402_v51 = vpop.permute.xlu0 %9401  ;;  %v9470_v13 = vpop.permute.xlu1 %9469 }
0x1a16   : > { %v9329_v2 = vadd.f32 %v9301_v56, %v9261_v0  ;;  %v9431_v42 = vadd.f32 %v9402_v51, %v9363_v58 }
0x1a18   : > { %v16367_v14 = vadd.f32 %v9470_v13, %v9431_v42  ;;  %v9364_v62 = vadd.f32 %v9353_v49, %v9329_v2 }
0x1a19   : > { %v9064_v15 = vpop.permute.xlu0 %9063  ;;  %v9132_v10 = vpop.permute.xlu1 %9131 }
0x1a1a   : > { %v9091_v24 = vadd.f32 %v9064_v15, %v9023_v53 }
0x1a1c   : > { %v9159_v52 = vadd.f32 %v9132_v10, %v9091_v24 }
0x1a1d   : > { %v9235_v41 = vpop.permute.xlu0 %9234  ;;  %v9303_v20 = vpop.permute.xlu1 %9302 }
0x1a1e   : > { %v9194_v33 = vadd.f32 %v9183_v44, %v9159_v52 }
0x1a20   : > { %v9262_v3 = vadd.f32 %v9235_v41, %v9194_v33 }
0x1a21   : > { %v16373_v18 = vpop.permute.xlu0 %9471  ;;  %v9404_v7 = vpop.permute.xlu1 %9403 }
0x1a22   : > { %v9330_v39 = vadd.f32 %v9303_v20, %v9262_v3  ;;  %v16375_v29 = vadd.f32 %v9404_v7, %v9364_v62  ;;  %v9026_v62 = vmul.f32 %v16267_v34, %v16242_v11 }
0x1a24   : > { %v16381_v17 = vadd.f32 %v9354_v1, %v9330_v39 }
0x1a25   : > { %v9134_v46 = vpop.permute.xlu0 %9133  ;;  %v9066_v16 = vpop.permute.xlu1 %9065 }
0x1a26   : > { %v9092_v4 = vadd.f32 %v9066_v16, %v9024_v8  ;;  %v9028_v16 = vmul.f32 %v16267_v34, %v16274_v26  ;;  %v9358_v26 = vmul.f32 %v16286_v47, %v16316_v19 }
0x1a28   : > { %v9160_v55 = vadd.f32 %v9134_v46, %v9092_v4  ;;  %v9027_v46 = vmul.f32 %v16267_v34, %v16276_v32 }
0x1a29   : > { %v9305_v12 = vpop.permute.xlu0 %9304  ;;  %v9237_v59 = vpop.permute.xlu1 %9236 }
0x1a2a   : > { %v9195_v40 = vadd.f32 %v9184_v30, %v9160_v55 }
0x1a2c   : > { %v9263_v58 = vadd.f32 %v9237_v59, %v9195_v40  ;;  %v9188_v40 = vmul.f32 %v16272_v37, %v16294_v28 }
0x1a2d   : > { %v9406_v54 = vpop.permute.xlu0 %9405  ;;  %v16385_v50 = vpop.permute.xlu1 %9473 }
0x1a2e   : > { %v9331_v6 = vadd.f32 %v9305_v12, %v9263_v58  ;;  %v9433_v36 = vadd.f32 %v9406_v54, %v16381_v17 }
0x1a30   : > { %v16391_v21 = vadd.f32 %v9355_v63, %v9331_v6 }
0x1a31   : > { %v9068_v27 = vpop.permute.xlu0 %9067  ;;  %v9136_v56 = vpop.permute.xlu1 %9135 }
0x1a32   : > { %v9093_v43 = vadd.f32 %v9068_v27, %v9025_v57 }
0x1a34   : > { %v9161_v61 = vadd.f32 %v9136_v56, %v9093_v43 }
0x1a35   : > { %v9307_v51 = vpop.permute.xlu1 %9306  ;;  %v9239_v13 = vpop.permute.xlu0 %9238 }
0x1a36   : > { %v9196_v0 = vadd.f32 %v9185_v9, %v9161_v61  ;;  %v9508_v9 = vstv %s10125_s21 }
0x1a37   : > { %v9509_v37 = vadd.f32 %v9508_v9, %v16324_v45  ;;  %v9510_v28 = vadd.f32 %v9508_v9, %v16351_v48  ;;  %v9511_v19 = vadd.f32 %v9508_v9, %v16359_v25  ;;  %v9512_v45 = vadd.f32 %v9508_v9, %v16367_v14 }
0x1a38   : > { %v9264_v2 = vadd.f32 %v9239_v13, %v9196_v0 }
0x1a39   : > { %v9408_v49 = vpop.permute.xlu1 %9407  ;;  %v16397_v31 = vpop.permute.xlu0 %9475 }
0x1a3a   : > { %v9332_v42 = vadd.f32 %v9307_v51, %v9264_v2  ;;  %v9434_v17 = vadd.f32 %v9408_v49, %v16391_v21 }
0x1a3c   : > { %v9367_v53 = vadd.f32 %v9356_v60, %v9332_v42  ;;  %v9359_v42 = vmul.f32 %v16340_v22, %v16286_v47 }
0x1a40   : > { %v9070_v15 = vpop.permute.xlu1 %9069  ;;  %v9138_v24 = vpop.permute.xlu0 %9137 }
0x1a41   : > { %v9094_v10 = vadd.f32 %v9070_v15, %v9026_v62  ;;  %v9500_v15 = vadd.f32 %v16373_v18, %v16375_v29 }
0x1a43   : > { %v9162_v52 = vadd.f32 %v9138_v24, %v9094_v10  ;;  %v9501_v10 = vadd.f32 %v16385_v50, %v9433_v36 }
0x1a44   : > { %v9241_v41 = vpop.permute.xlu1 %9240  ;;  %v9309_v33 = vpop.permute.xlu0 %9308 }
0x1a45   : > { %v9197_v44 = vadd.f32 %v9186_v35, %v9162_v52  ;;  %v9513_v52 = vadd.f32 %v9508_v9, %v9500_v15  ;;  %v9514_v25 = vadd.f32 %v9508_v9, %v9501_v10  ;;  %v9502_v35 = vadd.f32 %v16397_v31, %v9434_v17 }
0x1a47   : > { %v9265_v20 = vadd.f32 %v9241_v41, %v9197_v44 }
0x1a48   : > { %v9410_v39 = vpop.permute.xlu0 %9409  ;;  %v9478_v1 = vpop.permute.xlu1 %9477 }
0x1a49   : > { %v9333_v3 = vadd.f32 %v9309_v33, %v9265_v20  ;;  %v9435_v54 = vadd.f32 %v9410_v39, %v9367_v53  ;;  %v9515_v20 = vadd.f32 %v9508_v9, %v9502_v35 }
0x1a4b   : > { %v9368_v7 = vadd.f32 %v9357_v5, %v9333_v3  ;;  %v9503_v29 = vadd.f32 %v9478_v1, %v9435_v54  ;;  %v16798_v3 = vld [vmem:[#allocation15_spill] sm:$0xff] }
0x1a4d   : > { %v9516_v33 = vadd.f32 %v9508_v9, %v9503_v29 }
0x1a58   : > { %v9072_v8 = vpop.permute.xlu0 %9071  ;;  %v9074_v11 = vpop.permute.xlu1 %9073 }
0x1a59   : > { %v9095_v38 = vadd.f32 %v9072_v8, %v9027_v46  ;;  %v9096_v4 = vadd.f32 %v9074_v11, %v9028_v16 }
0x1a5c   : > { %v9142_v55 = vpop.permute.xlu0 %9141  ;;  %v9140_v30 = vpop.permute.xlu1 %9139 }
0x1a5d   : > { %v9164_v12 = vadd.f32 %v9142_v55, %v9096_v4  ;;  %v9163_v59 = vadd.f32 %v9140_v30, %v9095_v38 }
0x1a5f   : > { %v9198_v58 = vadd.f32 %v9187_v23, %v9163_v59  ;;  %v9199_v6 = vadd.f32 %v9188_v40, %v9164_v12 }
0x1a60   : > { %v9243_v63 = vpop.permute.xlu0 %9242  ;;  %v9245_v57 = vpop.permute.xlu1 %9244 }
0x1a61   : > { %v9266_v32 = vadd.f32 %v9243_v63, %v9198_v58  ;;  %v9267_v2 = vadd.f32 %v9245_v57, %v9199_v6 }
0x1a64   : > { %v9311_v27 = vpop.permute.xlu1 %9310  ;;  %v9313_v43 = vpop.permute.xlu0 %9312 }
0x1a65   : > { %v9334_v34 = vadd.f32 %v9311_v27, %v9266_v32  ;;  %v9335_v48 = vadd.f32 %v9313_v43, %v9267_v2 }
0x1a67   : > { %v9369_v56 = vadd.f32 %v9358_v26, %v9334_v34  ;;  %v9370_v50 = vadd.f32 %v9359_v42, %v9335_v48 }
0x1a68   : > { %v9412_v61 = vpop.permute.xlu1 %9411  ;;  %v9414_v51 = vpop.permute.xlu0 %9413 }
0x1a69   : > { %v9436_v18 = vadd.f32 %v9412_v61, %v9368_v7  ;;  %v9437_v44 = vadd.f32 %v9414_v51, %v9369_v56  ;;  %v9438_v5 = vadd.f32 %v16798_v3, %v9370_v50 }
0x1a6c   : > { %v9482_v0 = vpop.permute.xlu1 %9481  ;;  %v9480_v47 = vpop.permute.xlu0 %9479 }
0x1a6d   : > { %v9504_v14 = vadd.f32 %v9480_v47, %v9436_v18  ;;  %v9505_v21 = vadd.f32 %v9482_v0, %v9437_v44 }
0x1a6f   : > { %v9517_v31 = vadd.f32 %v9508_v9, %v9504_v14  ;;  %v9518_v7 = vadd.f32 %v9508_v9, %v9505_v21 }
0x1a70   : > { %v9527_v13 = vpop.permute.xlu1 %9526  ;;  %v9484_v41 = vpop.permute.xlu0 %9483 }
0x1a71   : > { %v9530_v60 = vmul.f32 %v9527_v13, %v9510_v28  ;;  %v9529_v62 = vmul.f32 %v9527_v13, %v9509_v37  ;;  %v9532_v22 = vmul.f32 %v9527_v13, %v9512_v45  ;;  %v9531_v24 = vmul.f32 %v9527_v13, %v9511_v19 }
0x1a72   : > { %v9534_v49 = vmul.f32 %v9527_v13, %v9514_v25  ;;  %v9533_v53 = vmul.f32 %v9527_v13, %v9513_v52  ;;  %v9506_v39 = vadd.f32 %v9484_v41, %v9438_v5  ;;  %v9536_v1 = vmul.f32 %v9527_v13, %v9516_v33 }
0x1a73   : > { %9553 = vrot.lane.b32.xlu1 %v9530_v60, %s11117_s29  ;;  %9551 = vrot.lane.b32.xlu0 %v9529_v62, %s11117_s29  ;;  %v9535_v8 = vmul.f32 %v9527_v13, %v9515_v20  ;;  %v9538_v46 = vmul.f32 %v9527_v13, %v9518_v7  ;;  %v9537_v16 = vmul.f32 %v9527_v13, %v9517_v31 }
0x1a74   : > { %v9519_v11 = vadd.f32 %v9508_v9, %v9506_v39 }
0x1a76   : > { %v9539_v38 = vmul.f32 %v9527_v13, %v9519_v11 }
0x1a77   : > { %9557 = vrot.lane.b32.xlu1 %v9532_v22, %s11117_s29  ;;  %9555 = vrot.lane.b32.xlu0 %v9531_v24, %s11117_s29 }
0x1a7b   : > { %9561 = vrot.lane.b32.xlu1 %v9534_v49, %s11117_s29  ;;  %9559 = vrot.lane.b32.xlu0 %v9533_v53, %s11117_s29 }
0x1a7f   : > { %9565 = vrot.lane.b32.xlu1 %v9536_v1, %s11117_s29  ;;  %9563 = vrot.lane.b32.xlu0 %v9535_v8, %s11117_s29 }
0x1a83   : > { %9569 = vrot.lane.b32.xlu1 %v9538_v46, %s11117_s29  ;;  %9567 = vrot.lane.b32.xlu0 %v9537_v16, %s11117_s29 }
0x1a87   : > { %9571 = vrot.lane.b32.xlu0 %v9539_v38, %s11117_s29 }
0x1ae5   : > { %v9554_v4 = vpop.permute.xlu1 %9553  ;;  %v9552_v55 = vpop.permute.xlu0 %9551 }
0x1ae6   : > { %9585 = vst.msk [vmem:[%s474_s30 + $0x8] sm:$0xff] %vm1178_vm6, %v9554_v4  ;;  %9584 = vst.msk [vmem:[%s474_s30] sm:$0xff] %vm1178_vm6, %v9552_v55 }
0x1ae9   : > { %v9558_v30 = vpop.permute.xlu1 %9557  ;;  %v9556_v12 = vpop.permute.xlu0 %9555 }
0x1aea   : > { %9587 = vst.msk [vmem:[%s474_s30 + $0x18] sm:$0xff] %vm1178_vm6, %v9558_v30  ;;  %9586 = vst.msk [vmem:[%s474_s30 + $0x10] sm:$0xff] %vm1178_vm6, %v9556_v12 }
0x1aed   : > { %v9562_v59 = vpop.permute.xlu1 %9561  ;;  %v9560_v23 = vpop.permute.xlu0 %9559 }
0x1aee   : > { %9589 = vst.msk [vmem:[%s474_s30 + $0x28] sm:$0xff] %vm1178_vm6, %v9562_v59  ;;  %9588 = vst.msk [vmem:[%s474_s30 + $0x20] sm:$0xff] %vm1178_vm6, %v9560_v23 }
0x1af1   : > { %v9566_v40 = vpop.permute.xlu1 %9565  ;;  %v9564_v58 = vpop.permute.xlu0 %9563 }
0x1af2   : > { %9591 = vst.msk [vmem:[%s474_s30 + $0x38] sm:$0xff] %vm1178_vm6, %v9566_v40  ;;  %9590 = vst.msk [vmem:[%s474_s30 + $0x30] sm:$0xff] %vm1178_vm6, %v9564_v58 }
0x1af5   : > { %v9570_v6 = vpop.permute.xlu1 %9569  ;;  %v9568_v63 = vpop.permute.xlu0 %9567 }
0x1af6   : > { %9593 = vst.msk [vmem:[%s474_s30 + $0x48] sm:$0xff] %vm1178_vm6, %v9570_v6  ;;  %9592 = vst.msk [vmem:[%s474_s30 + $0x40] sm:$0xff] %vm1178_vm6, %v9568_v63 }
0x1af9   : > { %v9572_v57 = vpop.permute.xlu0 %9571 }
0x1afa   : > { %9595 = vst.msk [vmem:[%s474_s30 + $0x50] sm:$0x1] %vm9594_vm14, %v9572_v57 }
0x1afb PF: > { %s24_s25 = sadd.s32 1, %s11110_s25  }
0x1afc   : > { %p21_p1 = scmp.ge.s32.totalorder %s24_s25, 4  }
0x1afe   :  { %23 = sbr.rel (!%p21_p1) target bundleno = 1 (0x1), region = 128 }
0x1b03   :  { %9617 = vsyncpa [#allocation5], 1 }
0x1b04   :  { %9619 = vsyncpa [#allocation5 + $0x1], 1 }

</bundles_post_ra>
